<compile_context>
chip_gen: v5e
topology: v5e:2x2
jax: 0.10.0
libtpu: 0.0.40
codegen_flags: <defaults>
</compile_context>

<pallas_src>
import math

import jax
import jax.numpy as jnp
from jax.experimental import pallas as pl
from jax.experimental.pallas import tpu as pltpu

_EPS = 1e-5
_LANE = 128
_VMEM_BUDGET = 6 << 20      # per-grid-step live-VMEM target (fits v5e 16 MiB scoped)


def _round_up(v, m):
    return ((v + m - 1) // m) * m


def _largest_divisor(n, cap):
    """Largest divisor of n that is <= cap (>= 1)."""
    cap = max(1, min(n, cap))
    for d in range(cap, 0, -1):
        if n % d == 0:
            return d
    return 1


def _pick_hw_block(howo, t_in, to, cmidp, coutp, budget_bytes):
    """HoWo slab per temporal grid step: big enough to amortize grid overhead,
    small enough that (double-buffered y1 block + normalized temporaries +
    double-buffered output block) stays under the VMEM budget."""
    per_row = (2 * 2 * t_in * cmidp        # y1 block, bf16, double buffered
               + (4 + 2) * t_in * cmidp    # f32 + bf16 normalized temporaries
               + 2 * 2 * to * coutp)       # output block, bf16, double buffered
    cap = max(8, budget_bytes // max(per_row, 1))
    if howo <= cap:
        return howo
    cand = [d for d in range(8, howo, 8) if howo % d == 0 and d <= cap]
    return max(cand) if cand else howo


# --------------------------------------------------------------------------- #
# Kernel factories
# --------------------------------------------------------------------------- #
def _make_spatial_kernel(kh, sh, ho, wo, tb, kwc, cmidp):
    """Spatial (1,kh,kw) conv.  The kw taps were pre-gathered in the wrapper,
    so one grid step does kh MXU dots with contraction K = kw*cin, accumulated
    in f32, adds the bias, and emits
      * the raw conv output in bf16 (lane-dense, channels padded to 128),
      * per-tile partial channel sum / sum-of-squares for BatchNorm, so the
        grid axis can stay 'parallel' (no cross-step accumulator)."""
    m_rows = tb * ho * wo

    def kernel(x_ref, w_ref, b_ref, y_ref, sum_ref, ssq_ref):
        x = x_ref[...]                                   # (TB, Hp, Wo, kw*Cin) bf16
        w = w_ref[...]                                   # (kh, kw*Cin, Cmidp)  bf16
        acc = None
        for i in range(kh):
            v = x[:, i:i + sh * (ho - 1) + 1:sh, :, :]   # (TB, Ho, Wo, kw*Cin)
            v = v.reshape(m_rows, kwc)                   # minor dim preserved
            d = jnp.dot(v, w[i], preferred_element_type=jnp.float32)
            acc = d if acc is None else acc + d
        y = acc + b_ref[...]                             # (M, Cmidp) f32
        sum_ref[...] = jnp.sum(y, axis=0, keepdims=True).reshape(1, 1, cmidp)
        ssq_ref[...] = jnp.sum(y * y, axis=0, keepdims=True).reshape(1, 1, cmidp)
        y_ref[...] = y.astype(y_ref.dtype).reshape(tb, ho * wo, cmidp)

    return kernel


def _make_temporal_kernel(kt, st, pt, t_in, to, hw_blk, cmidp, coutp):
    """Temporal (kt,1,1) conv with fused BatchNorm + ReLU.  Grid = (N, HoWo
    blocks); each step loads ALL t_in frames of one HoWo slab (so every y1
    element is read from HBM exactly once), normalizes the whole slab once,
    and produces every output frame with an unrolled (tt, k) tap loop.  Taps
    that fall into the zero time-halo are skipped at trace time (static), so
    no padded copy of y1 is needed and no out-of-bounds DMA can occur."""

    def kernel(y_ref, scale_ref, shift_ref, w_ref, b_ref, o_ref):
        x = y_ref[0].reshape(t_in * hw_blk, cmidp)       # (T*HWb, Cmidp) bf16
        # BN affine + ReLU exactly once per element (f32 math keeps v5e happy;
        # accumulation below stays f32 either way).
        a = jnp.maximum(x.astype(jnp.float32) * scale_ref[...] + shift_ref[...],
                        0.0).astype(jnp.bfloat16)
        w = w_ref[...]                                   # (kt, Cmidp, Coutp) bf16
        bias = b_ref[...]                                # (1, Coutp) f32
        for tt in range(to):
            acc = None
            for k in range(kt):
                ti = tt * st + k - pt                    # static at trace time
                if 0 <= ti < t_in:                       # halo frames contribute 0
                    frame = a[ti * hw_blk:(ti + 1) * hw_blk, :]
                    d = jnp.dot(frame, w[k], preferred_element_type=jnp.float32)
                    acc = d if acc is None else acc + d
            if acc is None:                              # window fully in the halo
                acc = jnp.zeros((hw_blk, coutp), jnp.float32)
            o_ref[0, tt, :, :] = (acc + bias).astype(o_ref.dtype)

    return kernel


# --------------------------------------------------------------------------- #
# Module: params + forward
# --------------------------------------------------------------------------- #
def _triple(v):
    return (v, v, v) if isinstance(v, int) else tuple(v)


def init_spatio_temporal_conv(key, in_channels, out_channels, kernel_size,
                              stride=1, padding=0, bias=True):
    kt, kh, kw = _triple(kernel_size)
    st, sh, sw = _triple(stride)
    pt, ph, pw = _triple(padding)
    intermed = int(math.floor(
        kt * kh * kw * in_channels * out_channels /
        (kh * kw * in_channels + kt * out_channels)))
    k1, k2, k3, k4 = jax.random.split(key, 4)
    fan1 = in_channels * kh * kw
    fan2 = intermed * kt
    b1 = 1.0 / math.sqrt(fan1)
    b2 = 1.0 / math.sqrt(fan2)
    params = dict(
        w_spatial=jax.random.uniform(k1, (intermed, in_channels, 1, kh, kw),
                                     jnp.float32, -b1, b1),
        b_spatial=(jax.random.uniform(k2, (intermed,), jnp.float32, -b1, b1)
                   if bias else jnp.zeros((intermed,), jnp.float32)),
        gamma=jnp.ones((intermed,), jnp.float32),
        beta=jnp.zeros((intermed,), jnp.float32),
        w_temporal=jax.random.uniform(k3, (out_channels, intermed, kt, 1, 1),
                                      jnp.float32, -b2, b2),
        b_temporal=(jax.random.uniform(k4, (out_channels,), jnp.float32, -b2, b2)
                    if bias else jnp.zeros((out_channels,), jnp.float32)),
    )
    cfg = dict(kernel_size=(kt, kh, kw), stride=(st, sh, sw),
               padding=(pt, ph, pw), intermed=intermed,
               in_channels=in_channels, out_channels=out_channels)
    return params, cfg


def spatio_temporal_conv(x_ncdhw, params, cfg):
    kt, kh, kw = cfg["kernel_size"]
    st, sh, sw = cfg["stride"]
    pt, ph, pw = cfg["padding"]
    cmid = cfg["intermed"]
    cout = cfg["out_channels"]

    n, cin, t, h, w = x_ncdhw.shape
    hp, wp = h + 2 * ph, w + 2 * pw
    ho = (hp - kh) // sh + 1
    wo = (wp - kw) // sw + 1
    to = (t + 2 * pt - kt) // st + 1
    nt, howo = n * t, ho * wo
    cmidp = _round_up(cmid, _LANE)    # lane-dense channel dims
    coutp = _round_up(cout, _LANE)
    kwc = kw * cin

    # ---- layout: NCDHW -> (N*T, Hp, Wp, Cin) channels-last, bf16 ---------- #
    x = jnp.transpose(x_ncdhw, (0, 2, 3, 4, 1)).reshape(nt, h, w, cin)
    xp = jnp.pad(x, ((0, 0), (ph, ph), (pw, pw), (0, 0))).astype(jnp.bfloat16)

    # kw-tap pre-im2col in the wrapper (cheap XLA concat) -> kernel contracts
    # over K = kw*cin per row tap instead of K = cin per (row, col) tap.
    x_kw = jnp.concatenate(
        [xp[:, :, j:j + sw * (wo - 1) + 1:sw, :] for j in range(kw)],
        axis=-1)                                           # (nt, hp, wo, kw*cin)

    # spatial weights: (Cmid, Cin, 1, kh, kw) -> (kh, kw*Cin, Cmidp), bf16
    w1 = jnp.transpose(params["w_spatial"][:, :, 0], (2, 3, 1, 0))  # (kh,kw,cin,cmid)
    w1 = w1.reshape(kh, kwc, cmid)
    w1p = jnp.pad(w1, ((0, 0), (0, 0), (0, cmidp - cmid))).astype(jnp.bfloat16)
    b1p = jnp.pad(params["b_spatial"], (0, cmidp - cmid)).reshape(1, cmidp)
    b1p = b1p.astype(jnp.float32)

    # ---- pass 1: spatial conv + per-tile BN partial statistics ------------ #
    tb = _largest_divisor(nt, max(1, 1024 // max(howo, 1)))   # ~1024 rows/step
    g = nt // tb
    spatial_kernel = _make_spatial_kernel(kh, sh, ho, wo, tb, kwc, cmidp)
    y1, s_part, q_part = pl.pallas_call(
        spatial_kernel,
        out_shape=(
            jax.ShapeDtypeStruct((nt, howo, cmidp), jnp.bfloat16),
            jax.ShapeDtypeStruct((g, 1, cmidp), jnp.float32),
            jax.ShapeDtypeStruct((g, 1, cmidp), jnp.float32),
        ),
        grid=(g,),
        in_specs=[
            pl.BlockSpec((tb, hp, wo, kwc), lambda i: (i, 0, 0, 0)),
            pl.BlockSpec((kh, kwc, cmidp), lambda i: (0, 0, 0)),
            pl.BlockSpec((1, cmidp), lambda i: (0, 0)),
        ],
        out_specs=(
            pl.BlockSpec((tb, howo, cmidp), lambda i: (i, 0, 0)),
            pl.BlockSpec((1, 1, cmidp), lambda i: (i, 0, 0)),
            pl.BlockSpec((1, 1, cmidp), lambda i: (i, 0, 0)),
        ),
        compiler_params=pltpu.CompilerParams(
            dimension_semantics=("parallel",)),
    )(x_kw, w1p, b1p)

    # ---- training-mode BatchNorm scale/shift (tiny XLA reduction) --------- #
    m1 = float(nt * howo)
    csum = jnp.sum(s_part, axis=0).reshape(cmidp)
    cssq = jnp.sum(q_part, axis=0).reshape(cmidp)
    mean = csum / m1
    # TODO(synk): E[x^2]-E[x]^2 in f32 can cancel for large-mean activations;
    # a two-pass variance would be more robust at production scale.
    var = jnp.maximum(cssq / m1 - mean * mean, 0.0)
    gamma = jnp.pad(params["gamma"], (0, cmidp - cmid))
    beta = jnp.pad(params["beta"], (0, cmidp - cmid))
    scale_vec = gamma * jax.lax.rsqrt(var + _EPS)
    shift_vec = beta - mean * scale_vec
    scale = scale_vec.reshape(1, cmidp).astype(jnp.float32)
    shift = shift_vec.reshape(1, cmidp).astype(jnp.float32)

    # ---- pass 2: temporal conv with fused BN + ReLU (no time-halo pad) ---- #
    y1 = y1.reshape(n, t, howo, cmidp)

    # temporal weights: (Cout, Cmid, kt, 1, 1) -> (kt, Cmidp, Coutp), bf16
    w2 = jnp.transpose(params["w_temporal"][:, :, :, 0, 0], (2, 1, 0))
    w2p = jnp.pad(w2, ((0, 0), (0, cmidp - cmid), (0, coutp - cout)))
    w2p = w2p.astype(jnp.bfloat16)
    b2p = jnp.pad(params["b_temporal"], (0, coutp - cout)).reshape(1, coutp)
    b2p = b2p.astype(jnp.float32)

    hw_blk = _pick_hw_block(howo, t, to, cmidp, coutp, _VMEM_BUDGET)
    n_hw = howo // hw_blk
    if n * n_hw < 2 and hw_blk % 16 == 0:      # keep >= 2 parallel steps (v7x 2 TCs)
        hw_blk //= 2
        n_hw = howo // hw_blk

    temporal_kernel = _make_temporal_kernel(kt, st, pt, t, to, hw_blk,
                                            cmidp, coutp)
    out = pl.pallas_call(
        temporal_kernel,
        out_shape=jax.ShapeDtypeStruct((n, to, howo, coutp), jnp.bfloat16),
        grid=(n, n_hw),
        in_specs=[
            pl.BlockSpec((1, t, hw_blk, cmidp), lambda b, hwi: (b, 0, hwi, 0)),
            pl.BlockSpec((1, cmidp), lambda b, hwi: (0, 0)),
            pl.BlockSpec((1, cmidp), lambda b, hwi: (0, 0)),
            pl.BlockSpec((kt, cmidp, coutp), lambda b, hwi: (0, 0, 0)),
            pl.BlockSpec((1, coutp), lambda b, hwi: (0, 0)),
        ],
        out_specs=pl.BlockSpec((1, to, hw_blk, coutp),
                               lambda b, hwi: (b, 0, hwi, 0)),
        compiler_params=pltpu.CompilerParams(
            dimension_semantics=("parallel", "parallel")),
    )(y1, scale, shift, w2p, b2p)

    out = out[..., :cout].astype(jnp.float32)                 # drop lane padding
    out = out.reshape(n, to, ho, wo, cout)
    return jnp.transpose(out, (0, 4, 1, 2, 3))                # back to NCDHW


# --------------------------------------------------------------------------- #
# Pure-JAX reference (same semantics as the PyTorch module at init, train mode)
# --------------------------------------------------------------------------- #
def reference(x, params, cfg):
    kt, kh, kw = cfg["kernel_size"]
    st, sh, sw = cfg["stride"]
    pt, ph, pw = cfg["padding"]
    dn = ("NCDHW", "OIDHW", "NCDHW")
    prec = jax.lax.Precision.HIGHEST
    y = jax.lax.conv_general_dilated(
        x, params["w_spatial"], window_strides=(1, sh, sw),
        padding=[(0, 0), (ph, ph), (pw, pw)], dimension_numbers=dn,
        precision=prec)
    y = y + params["b_spatial"].reshape(1, -1, 1, 1, 1)
    mean = jnp.mean(y, axis=(0, 2, 3, 4), keepdims=True)
    var = jnp.var(y, axis=(0, 2, 3, 4), keepdims=True)
    y = ((y - mean) * jax.lax.rsqrt(var + _EPS) *
         params["gamma"].reshape(1, -1, 1, 1, 1) +
         params["beta"].reshape(1, -1, 1, 1, 1))
    y = jnp.maximum(y, 0.0)
    out = jax.lax.conv_general_dilated(
        y, params["w_temporal"], window_strides=(st, 1, 1),
        padding=[(pt, pt), (0, 0), (0, 0)], dimension_numbers=dn,
        precision=prec)
    return out + params["b_temporal"].reshape(1, -1, 1, 1, 1)


if __name__ == "__main__":
    key = jax.random.PRNGKey(0)
    kx, kp = jax.random.split(key)

    in_channels, out_channels = 4, 8
    n, t, h, w = 2, 8, 16, 16           # x: (N, C, T, H, W) = (2, 4, 8, 16, 16)

    params, cfg = init_spatio_temporal_conv(
        kp, in_channels, out_channels, kernel_size=3, stride=1, padding=1,
        bias=True)
    x = jax.random.normal(kx, (n, in_channels, t, h, w), jnp.float32)

    fwd = jax.jit(lambda xx: spatio_temporal_conv(xx, params, cfg))
    out = jax.block_until_ready(fwd(x))

    ref = reference(x, params, cfg)
    assert out.shape == ref.shape, (out.shape, ref.shape)
    err = float(jnp.max(jnp.abs(out - ref)))
    # bf16 MXU inputs / bf16 intermediate & output stores with f32 accumulation
    # vs. fp32-HIGHEST reference.
    assert err < 5e-2, f"max abs error {err}"

    print("KERNEL_OK")
</pallas_src>

<mosaic_0001>
module attributes {stable_mosaic.version = 11 : i64} {
  func.func @kernel(%arg0: i32, %arg1: memref<4x18x16x12xbf16, #tpu.memory_space<vmem>>, %arg2: memref<3x12x128xbf16, #tpu.memory_space<vmem>>, %arg3: memref<1x128xf32, #tpu.memory_space<vmem>>, %arg4: memref<4x256x128xbf16, #tpu.memory_space<vmem>>, %arg5: memref<1x1x128xf32, #tpu.memory_space<vmem>>, %arg6: memref<1x1x128xf32, #tpu.memory_space<vmem>>) attributes {dimension_semantics = [#tpu.dimension_semantics<parallel>], iteration_bounds = array<i64: 4>, scalar_prefetch = 0 : i64, scratch_operands = 0 : i64, tpu.core_type = #tpu.core_type<tc>, window_params = [{transform_indices = @transform_0, window_bounds = array<i64: 4, 18, 16, 12>}, {pipeline_mode = #tpu.pipeline_mode<synchronous>, transform_indices = @transform_1, window_bounds = array<i64: 3, 12, 128>}, {pipeline_mode = #tpu.pipeline_mode<synchronous>, transform_indices = @transform_2, window_bounds = array<i64: 1, 128>}, {transform_indices = @transform_3, window_bounds = array<i64: 4, 256, 128>}, {transform_indices = @transform_4, window_bounds = array<i64: 1, 1, 128>}, {transform_indices = @transform_5, window_bounds = array<i64: 1, 1, 128>}]} {
    %c0 = arith.constant 0 : index
    %c0_0 = arith.constant 0 : index
    %c0_1 = arith.constant 0 : index
    %c0_2 = arith.constant 0 : index
    %0 = vector.load %arg1[%c0, %c0_0, %c0_1, %c0_2] : memref<4x18x16x12xbf16, #tpu.memory_space<vmem>>, vector<4x18x16x12xbf16>
    %c0_3 = arith.constant 0 : index
    %c0_4 = arith.constant 0 : index
    %c0_5 = arith.constant 0 : index
    %1 = vector.load %arg2[%c0_3, %c0_4, %c0_5] : memref<3x12x128xbf16, #tpu.memory_space<vmem>>, vector<3x12x128xbf16>
    %2 = vector.extract_strided_slice %0 {offsets = [0, 0, 0, 0], sizes = [4, 16, 16, 12], strides = [1, 1, 1, 1]} : vector<4x18x16x12xbf16> to vector<4x16x16x12xbf16>
    %3 = vector.shape_cast %2 : vector<4x16x16x12xbf16> to vector<1024x12xbf16>
    %4 = vector.extract_strided_slice %1 {offsets = [0, 0, 0], sizes = [1, 12, 128], strides = [1, 1, 1]} : vector<3x12x128xbf16> to vector<1x12x128xbf16>
    %5 = vector.shape_cast %4 : vector<1x12x128xbf16> to vector<12x128xbf16>
    %cst = arith.constant dense<0.000000e+00> : vector<1024x128xf32>
    %6 = tpu.matmul %3, %5, %cst {dimension_numbers = #tpu.dot_dimension_numbers<[1], [0], [0], [1], [0, 0, 1, 1], [], []>} : vector<1024x12xbf16>, vector<12x128xbf16>, vector<1024x128xf32> -> vector<1024x128xf32>
    %7 = vector.extract_strided_slice %0 {offsets = [0, 1, 0, 0], sizes = [4, 16, 16, 12], strides = [1, 1, 1, 1]} : vector<4x18x16x12xbf16> to vector<4x16x16x12xbf16>
    %8 = vector.shape_cast %7 : vector<4x16x16x12xbf16> to vector<1024x12xbf16>
    %9 = vector.extract_strided_slice %1 {offsets = [1, 0, 0], sizes = [1, 12, 128], strides = [1, 1, 1]} : vector<3x12x128xbf16> to vector<1x12x128xbf16>
    %10 = vector.shape_cast %9 : vector<1x12x128xbf16> to vector<12x128xbf16>
    %cst_6 = arith.constant dense<0.000000e+00> : vector<1024x128xf32>
    %11 = tpu.matmul %8, %10, %cst_6 {dimension_numbers = #tpu.dot_dimension_numbers<[1], [0], [0], [1], [0, 0, 1, 1], [], []>} : vector<1024x12xbf16>, vector<12x128xbf16>, vector<1024x128xf32> -> vector<1024x128xf32>
    %12 = arith.addf %6, %11 : vector<1024x128xf32>
    %13 = vector.extract_strided_slice %0 {offsets = [0, 2, 0, 0], sizes = [4, 16, 16, 12], strides = [1, 1, 1, 1]} : vector<4x18x16x12xbf16> to vector<4x16x16x12xbf16>
    %14 = vector.shape_cast %13 : vector<4x16x16x12xbf16> to vector<1024x12xbf16>
    %15 = vector.extract_strided_slice %1 {offsets = [2, 0, 0], sizes = [1, 12, 128], strides = [1, 1, 1]} : vector<3x12x128xbf16> to vector<1x12x128xbf16>
    %16 = vector.shape_cast %15 : vector<1x12x128xbf16> to vector<12x128xbf16>
    %cst_7 = arith.constant dense<0.000000e+00> : vector<1024x128xf32>
    %17 = tpu.matmul %14, %16, %cst_7 {dimension_numbers = #tpu.dot_dimension_numbers<[1], [0], [0], [1], [0, 0, 1, 1], [], []>} : vector<1024x12xbf16>, vector<12x128xbf16>, vector<1024x128xf32> -> vector<1024x128xf32>
    %18 = arith.addf %12, %17 : vector<1024x128xf32>
    %c0_8 = arith.constant 0 : index
    %c0_9 = arith.constant 0 : index
    %19 = vector.load %arg3[%c0_8, %c0_9] : memref<1x128xf32, #tpu.memory_space<vmem>>, vector<1x128xf32>
    %20 = vector.broadcast %19 : vector<1x128xf32> to vector<1024x128xf32>
    %21 = arith.addf %18, %20 : vector<1024x128xf32>
    %cst_10 = arith.constant dense<0.000000e+00> : vector<128xf32>
    %22 = vector.multi_reduction <add>, %21, %cst_10 [0] : vector<1024x128xf32> to vector<128xf32>
    %23 = vector.shape_cast %22 : vector<128xf32> to vector<1x128xf32>
    %24 = vector.shape_cast %23 : vector<1x128xf32> to vector<1x1x128xf32>
    %c0_11 = arith.constant 0 : index
    %c0_12 = arith.constant 0 : index
    %c0_13 = arith.constant 0 : index
    %25 = vector.load %arg5[%c0_11, %c0_12, %c0_13] : memref<1x1x128xf32, #tpu.memory_space<vmem>>, vector<1x1x128xf32>
    tpu.vector_store %arg5[%c0_11, %c0_12, %c0_13], %24 {strides = array<i32>} : memref<1x1x128xf32, #tpu.memory_space<vmem>>, vector<1x1x128xf32>,
    %26 = arith.mulf %21, %21 : vector<1024x128xf32>
    %cst_14 = arith.constant dense<0.000000e+00> : vector<128xf32>
    %27 = vector.multi_reduction <add>, %26, %cst_14 [0] : vector<1024x128xf32> to vector<128xf32>
    %28 = vector.shape_cast %27 : vector<128xf32> to vector<1x128xf32>
    %29 = vector.shape_cast %28 : vector<1x128xf32> to vector<1x1x128xf32>
    %c0_15 = arith.constant 0 : index
    %c0_16 = arith.constant 0 : index
    %c0_17 = arith.constant 0 : index
    %30 = vector.load %arg6[%c0_15, %c0_16, %c0_17] : memref<1x1x128xf32, #tpu.memory_space<vmem>>, vector<1x1x128xf32>
    tpu.vector_store %arg6[%c0_15, %c0_16, %c0_17], %29 {strides = array<i32>} : memref<1x1x128xf32, #tpu.memory_space<vmem>>, vector<1x1x128xf32>,
    %31 = arith.truncf %21 : vector<1024x128xf32> to vector<1024x128xbf16>
    %32 = vector.shape_cast %31 : vector<1024x128xbf16> to vector<4x256x128xbf16>
    %c0_18 = arith.constant 0 : index
    %c0_19 = arith.constant 0 : index
    %c0_20 = arith.constant 0 : index
    %33 = vector.load %arg4[%c0_18, %c0_19, %c0_20] : memref<4x256x128xbf16, #tpu.memory_space<vmem>>, vector<4x256x128xbf16>
    tpu.vector_store %arg4[%c0_18, %c0_19, %c0_20], %32 {strides = array<i32>} : memref<4x256x128xbf16, #tpu.memory_space<vmem>>, vector<4x256x128xbf16>,
    return
  }
  func.func @transform_0(%arg0: i32) -> (i32, i32, i32, i32) {
    %c0_i32 = arith.constant 0 : i32
    %c0_i32_0 = arith.constant 0 : i32
    %c0_i32_1 = arith.constant 0 : i32
    %c0_i32_2 = arith.constant 0 : i32
    return %arg0, %c0_i32, %c0_i32_0, %c0_i32_1 : i32, i32, i32, i32
  }
  func.func @transform_1(%arg0: i32) -> (i32, i32, i32) {
    %c0_i32 = arith.constant 0 : i32
    %c0_i32_0 = arith.constant 0 : i32
    %c0_i32_1 = arith.constant 0 : i32
    %c0_i32_2 = arith.constant 0 : i32
    return %c0_i32, %c0_i32_0, %c0_i32_1 : i32, i32, i32
  }
  func.func @transform_2(%arg0: i32) -> (i32, i32) {
    %c0_i32 = arith.constant 0 : i32
    %c0_i32_0 = arith.constant 0 : i32
    %c0_i32_1 = arith.constant 0 : i32
    return %c0_i32, %c0_i32_0 : i32, i32
  }
  func.func @transform_3(%arg0: i32) -> (i32, i32, i32) {
    %c0_i32 = arith.constant 0 : i32
    %c0_i32_0 = arith.constant 0 : i32
    %c0_i32_1 = arith.constant 0 : i32
    return %arg0, %c0_i32, %c0_i32_0 : i32, i32, i32
  }
  func.func @transform_4(%arg0: i32) -> (i32, i32, i32) {
    %c0_i32 = arith.constant 0 : i32
    %c0_i32_0 = arith.constant 0 : i32
    %c0_i32_1 = arith.constant 0 : i32
    return %arg0, %c0_i32, %c0_i32_0 : i32, i32, i32
  }
  func.func @transform_5(%arg0: i32) -> (i32, i32, i32) {
    %c0_i32 = arith.constant 0 : i32
    %c0_i32_0 = arith.constant 0 : i32
    %c0_i32_1 = arith.constant 0 : i32
    return %arg0, %c0_i32, %c0_i32_0 : i32, i32, i32
  }
}

module attributes {stable_mosaic.version = 11 : i64} {
  func.func @kernel(%arg0: i32, %arg1: i32, %arg2: memref<1x8x256x128xbf16, #tpu.memory_space<vmem>>, %arg3: memref<1x128xf32, #tpu.memory_space<vmem>>, %arg4: memref<1x128xf32, #tpu.memory_space<vmem>>, %arg5: memref<3x128x128xbf16, #tpu.memory_space<vmem>>, %arg6: memref<1x128xf32, #tpu.memory_space<vmem>>, %arg7: memref<1x8x256x128xbf16, #tpu.memory_space<vmem>>) attributes {dimension_semantics = [#tpu.dimension_semantics<parallel>, #tpu.dimension_semantics<parallel>], iteration_bounds = array<i64: 2, 1>, scalar_prefetch = 0 : i64, scratch_operands = 0 : i64, tpu.core_type = #tpu.core_type<tc>, window_params = [{transform_indices = @transform_0, window_bounds = array<i64: 1, 8, 256, 128>}, {pipeline_mode = #tpu.pipeline_mode<synchronous>, transform_indices = @transform_1, window_bounds = array<i64: 1, 128>}, {pipeline_mode = #tpu.pipeline_mode<synchronous>, transform_indices = @transform_2, window_bounds = array<i64: 1, 128>}, {pipeline_mode = #tpu.pipeline_mode<synchronous>, transform_indices = @transform_3, window_bounds = array<i64: 3, 128, 128>}, {pipeline_mode = #tpu.pipeline_mode<synchronous>, transform_indices = @transform_4, window_bounds = array<i64: 1, 128>}, {transform_indices = @transform_5, window_bounds = array<i64: 1, 8, 256, 128>}]} {
    %c0 = arith.constant 0 : index
    %c0_0 = arith.constant 0 : index
    %c0_1 = arith.constant 0 : index
    %c0_2 = arith.constant 0 : index
    %0 = vector.load %arg2[%c0, %c0_0, %c0_1, %c0_2] : memref<1x8x256x128xbf16, #tpu.memory_space<vmem>>, vector<1x8x256x128xbf16>
    %1 = vector.shape_cast %0 : vector<1x8x256x128xbf16> to vector<8x256x128xbf16>
    %2 = vector.shape_cast %1 : vector<8x256x128xbf16> to vector<2048x128xbf16>
    %3 = arith.extf %2 : vector<2048x128xbf16> to vector<2048x128xf32>
    %c0_3 = arith.constant 0 : index
    %c0_4 = arith.constant 0 : index
    %4 = vector.load %arg3[%c0_3, %c0_4] : memref<1x128xf32, #tpu.memory_space<vmem>>, vector<1x128xf32>
    %5 = vector.broadcast %4 : vector<1x128xf32> to vector<2048x128xf32>
    %6 = arith.mulf %3, %5 : vector<2048x128xf32>
    %c0_5 = arith.constant 0 : index
    %c0_6 = arith.constant 0 : index
    %7 = vector.load %arg4[%c0_5, %c0_6] : memref<1x128xf32, #tpu.memory_space<vmem>>, vector<1x128xf32>
    %8 = vector.broadcast %7 : vector<1x128xf32> to vector<2048x128xf32>
    %9 = arith.addf %6, %8 : vector<2048x128xf32>
    %cst = arith.constant 0.000000e+00 : f32
    %10 = vector.broadcast %cst : f32 to vector<2048x128xf32>
    %11 = arith.maximumf %9, %10 : vector<2048x128xf32>
    %12 = arith.truncf %11 : vector<2048x128xf32> to vector<2048x128xbf16>
    %c0_7 = arith.constant 0 : index
    %c0_8 = arith.constant 0 : index
    %c0_9 = arith.constant 0 : index
    %13 = vector.load %arg5[%c0_7, %c0_8, %c0_9] : memref<3x128x128xbf16, #tpu.memory_space<vmem>>, vector<3x128x128xbf16>
    %c0_10 = arith.constant 0 : index
    %c0_11 = arith.constant 0 : index
    %14 = vector.load %arg6[%c0_10, %c0_11] : memref<1x128xf32, #tpu.memory_space<vmem>>, vector<1x128xf32>
    %15 = vector.extract_strided_slice %12 {offsets = [0, 0], sizes = [256, 128], strides = [1, 1]} : vector<2048x128xbf16> to vector<256x128xbf16>
    %16 = vector.extract_strided_slice %13 {offsets = [1, 0, 0], sizes = [1, 128, 128], strides = [1, 1, 1]} : vector<3x128x128xbf16> to vector<1x128x128xbf16>
    %17 = vector.shape_cast %16 : vector<1x128x128xbf16> to vector<128x128xbf16>
    %cst_12 = arith.constant dense<0.000000e+00> : vector<256x128xf32>
    %18 = tpu.matmul %15, %17, %cst_12 {dimension_numbers = #tpu.dot_dimension_numbers<[1], [0], [0], [1], [0, 0, 1, 1], [], []>} : vector<256x128xbf16>, vector<128x128xbf16>, vector<256x128xf32> -> vector<256x128xf32>
    %19 = vector.extract_strided_slice %12 {offsets = [256, 0], sizes = [256, 128], strides = [1, 1]} : vector<2048x128xbf16> to vector<256x128xbf16>
    %20 = vector.extract_strided_slice %13 {offsets = [2, 0, 0], sizes = [1, 128, 128], strides = [1, 1, 1]} : vector<3x128x128xbf16> to vector<1x128x128xbf16>
    %21 = vector.shape_cast %20 : vector<1x128x128xbf16> to vector<128x128xbf16>
    %cst_13 = arith.constant dense<0.000000e+00> : vector<256x128xf32>
    %22 = tpu.matmul %19, %21, %cst_13 {dimension_numbers = #tpu.dot_dimension_numbers<[1], [0], [0], [1], [0, 0, 1, 1], [], []>} : vector<256x128xbf16>, vector<128x128xbf16>, vector<256x128xf32> -> vector<256x128xf32>
    %23 = arith.addf %18, %22 : vector<256x128xf32>
    %24 = vector.broadcast %14 : vector<1x128xf32> to vector<256x128xf32>
    %25 = arith.addf %23, %24 : vector<256x128xf32>
    %26 = arith.truncf %25 : vector<256x128xf32> to vector<256x128xbf16>
    %c0_14 = arith.constant 0 : index
    %c0_15 = arith.constant 0 : index
    %c0_16 = arith.constant 0 : index
    %c0_17 = arith.constant 0 : index
    %27 = vector.load %arg7[%c0_14, %c0_15, %c0_16, %c0_17] : memref<1x8x256x128xbf16, #tpu.memory_space<vmem>>, vector<1x1x256x128xbf16>
    %28 = vector.shape_cast %27 : vector<1x1x256x128xbf16> to vector<256x128xbf16>
    %29 = vector.shape_cast %26 : vector<256x128xbf16> to vector<1x1x256x128xbf16>
    tpu.vector_store %arg7[%c0_14, %c0_15, %c0_16, %c0_17], %29 {strides = array<i32>} : memref<1x8x256x128xbf16, #tpu.memory_space<vmem>>, vector<1x1x256x128xbf16>,
    %30 = vector.extract_strided_slice %12 {offsets = [0, 0], sizes = [256, 128], strides = [1, 1]} : vector<2048x128xbf16> to vector<256x128xbf16>
    %31 = vector.extract_strided_slice %13 {offsets = [0, 0, 0], sizes = [1, 128, 128], strides = [1, 1, 1]} : vector<3x128x128xbf16> to vector<1x128x128xbf16>
    %32 = vector.shape_cast %31 : vector<1x128x128xbf16> to vector<128x128xbf16>
    %cst_18 = arith.constant dense<0.000000e+00> : vector<256x128xf32>
    %33 = tpu.matmul %30, %32, %cst_18 {dimension_numbers = #tpu.dot_dimension_numbers<[1], [0], [0], [1], [0, 0, 1, 1], [], []>} : vector<256x128xbf16>, vector<128x128xbf16>, vector<256x128xf32> -> vector<256x128xf32>
    %34 = vector.extract_strided_slice %12 {offsets = [256, 0], sizes = [256, 128], strides = [1, 1]} : vector<2048x128xbf16> to vector<256x128xbf16>
    %35 = vector.extract_strided_slice %13 {offsets = [1, 0, 0], sizes = [1, 128, 128], strides = [1, 1, 1]} : vector<3x128x128xbf16> to vector<1x128x128xbf16>
    %36 = vector.shape_cast %35 : vector<1x128x128xbf16> to vector<128x128xbf16>
    %cst_19 = arith.constant dense<0.000000e+00> : vector<256x128xf32>
    %37 = tpu.matmul %34, %36, %cst_19 {dimension_numbers = #tpu.dot_dimension_numbers<[1], [0], [0], [1], [0, 0, 1, 1], [], []>} : vector<256x128xbf16>, vector<128x128xbf16>, vector<256x128xf32> -> vector<256x128xf32>
    %38 = arith.addf %33, %37 : vector<256x128xf32>
    %39 = vector.extract_strided_slice %12 {offsets = [512, 0], sizes = [256, 128], strides = [1, 1]} : vector<2048x128xbf16> to vector<256x128xbf16>
    %40 = vector.extract_strided_slice %13 {offsets = [2, 0, 0], sizes = [1, 128, 128], strides = [1, 1, 1]} : vector<3x128x128xbf16> to vector<1x128x128xbf16>
    %41 = vector.shape_cast %40 : vector<1x128x128xbf16> to vector<128x128xbf16>
    %cst_20 = arith.constant dense<0.000000e+00> : vector<256x128xf32>
    %42 = tpu.matmul %39, %41, %cst_20 {dimension_numbers = #tpu.dot_dimension_numbers<[1], [0], [0], [1], [0, 0, 1, 1], [], []>} : vector<256x128xbf16>, vector<128x128xbf16>, vector<256x128xf32> -> vector<256x128xf32>
    %43 = arith.addf %38, %42 : vector<256x128xf32>
    %44 = vector.broadcast %14 : vector<1x128xf32> to vector<256x128xf32>
    %45 = arith.addf %43, %44 : vector<256x128xf32>
    %46 = arith.truncf %45 : vector<256x128xf32> to vector<256x128xbf16>
    %c0_21 = arith.constant 0 : index
    %c1 = arith.constant 1 : index
    %c0_22 = arith.constant 0 : index
    %c0_23 = arith.constant 0 : index
    %47 = vector.load %arg7[%c0_21, %c1, %c0_22, %c0_23] : memref<1x8x256x128xbf16, #tpu.memory_space<vmem>>, vector<1x1x256x128xbf16>
    %48 = vector.shape_cast %47 : vector<1x1x256x128xbf16> to vector<256x128xbf16>
    %49 = vector.shape_cast %46 : vector<256x128xbf16> to vector<1x1x256x128xbf16>
    tpu.vector_store %arg7[%c0_21, %c1, %c0_22, %c0_23], %49 {strides = array<i32>} : memref<1x8x256x128xbf16, #tpu.memory_space<vmem>>, vector<1x1x256x128xbf16>,
    %50 = vector.extract_strided_slice %12 {offsets = [256, 0], sizes = [256, 128], strides = [1, 1]} : vector<2048x128xbf16> to vector<256x128xbf16>
    %51 = vector.extract_strided_slice %13 {offsets = [0, 0, 0], sizes = [1, 128, 128], strides = [1, 1, 1]} : vector<3x128x128xbf16> to vector<1x128x128xbf16>
    %52 = vector.shape_cast %51 : vector<1x128x128xbf16> to vector<128x128xbf16>
    %cst_24 = arith.constant dense<0.000000e+00> : vector<256x128xf32>
    %53 = tpu.matmul %50, %52, %cst_24 {dimension_numbers = #tpu.dot_dimension_numbers<[1], [0], [0], [1], [0, 0, 1, 1], [], []>} : vector<256x128xbf16>, vector<128x128xbf16>, vector<256x128xf32> -> vector<256x128xf32>
    %54 = vector.extract_strided_slice %12 {offsets = [512, 0], sizes = [256, 128], strides = [1, 1]} : vector<2048x128xbf16> to vector<256x128xbf16>
    %55 = vector.extract_strided_slice %13 {offsets = [1, 0, 0], sizes = [1, 128, 128], strides = [1, 1, 1]} : vector<3x128x128xbf16> to vector<1x128x128xbf16>
    %56 = vector.shape_cast %55 : vector<1x128x128xbf16> to vector<128x128xbf16>
    %cst_25 = arith.constant dense<0.000000e+00> : vector<256x128xf32>
    %57 = tpu.matmul %54, %56, %cst_25 {dimension_numbers = #tpu.dot_dimension_numbers<[1], [0], [0], [1], [0, 0, 1, 1], [], []>} : vector<256x128xbf16>, vector<128x128xbf16>, vector<256x128xf32> -> vector<256x128xf32>
    %58 = arith.addf %53, %57 : vector<256x128xf32>
    %59 = vector.extract_strided_slice %12 {offsets = [768, 0], sizes = [256, 128], strides = [1, 1]} : vector<2048x128xbf16> to vector<256x128xbf16>
    %60 = vector.extract_strided_slice %13 {offsets = [2, 0, 0], sizes = [1, 128, 128], strides = [1, 1, 1]} : vector<3x128x128xbf16> to vector<1x128x128xbf16>
    %61 = vector.shape_cast %60 : vector<1x128x128xbf16> to vector<128x128xbf16>
    %cst_26 = arith.constant dense<0.000000e+00> : vector<256x128xf32>
    %62 = tpu.matmul %59, %61, %cst_26 {dimension_numbers = #tpu.dot_dimension_numbers<[1], [0], [0], [1], [0, 0, 1, 1], [], []>} : vector<256x128xbf16>, vector<128x128xbf16>, vector<256x128xf32> -> vector<256x128xf32>
    %63 = arith.addf %58, %62 : vector<256x128xf32>
    %64 = vector.broadcast %14 : vector<1x128xf32> to vector<256x128xf32>
    %65 = arith.addf %63, %64 : vector<256x128xf32>
    %66 = arith.truncf %65 : vector<256x128xf32> to vector<256x128xbf16>
    %c0_27 = arith.constant 0 : index
    %c2 = arith.constant 2 : index
    %c0_28 = arith.constant 0 : index
    %c0_29 = arith.constant 0 : index
    %67 = vector.load %arg7[%c0_27, %c2, %c0_28, %c0_29] : memref<1x8x256x128xbf16, #tpu.memory_space<vmem>>, vector<1x1x256x128xbf16>
    %68 = vector.shape_cast %67 : vector<1x1x256x128xbf16> to vector<256x128xbf16>
    %69 = vector.shape_cast %66 : vector<256x128xbf16> to vector<1x1x256x128xbf16>
    tpu.vector_store %arg7[%c0_27, %c2, %c0_28, %c0_29], %69 {strides = array<i32>} : memref<1x8x256x128xbf16, #tpu.memory_space<vmem>>, vector<1x1x256x128xbf16>,
    %70 = vector.extract_strided_slice %12 {offsets = [512, 0], sizes = [256, 128], strides = [1, 1]} : vector<2048x128xbf16> to vector<256x128xbf16>
    %71 = vector.extract_strided_slice %13 {offsets = [0, 0, 0], sizes = [1, 128, 128], strides = [1, 1, 1]} : vector<3x128x128xbf16> to vector<1x128x128xbf16>
    %72 = vector.shape_cast %71 : vector<1x128x128xbf16> to vector<128x128xbf16>
    %cst_30 = arith.constant dense<0.000000e+00> : vector<256x128xf32>
    %73 = tpu.matmul %70, %72, %cst_30 {dimension_numbers = #tpu.dot_dimension_numbers<[1], [0], [0], [1], [0, 0, 1, 1], [], []>} : vector<256x128xbf16>, vector<128x128xbf16>, vector<256x128xf32> -> vector<256x128xf32>
    %74 = vector.extract_strided_slice %12 {offsets = [768, 0], sizes = [256, 128], strides = [1, 1]} : vector<2048x128xbf16> to vector<256x128xbf16>
    %75 = vector.extract_strided_slice %13 {offsets = [1, 0, 0], sizes = [1, 128, 128], strides = [1, 1, 1]} : vector<3x128x128xbf16> to vector<1x128x128xbf16>
    %76 = vector.shape_cast %75 : vector<1x128x128xbf16> to vector<128x128xbf16>
    %cst_31 = arith.constant dense<0.000000e+00> : vector<256x128xf32>
    %77 = tpu.matmul %74, %76, %cst_31 {dimension_numbers = #tpu.dot_dimension_numbers<[1], [0], [0], [1], [0, 0, 1, 1], [], []>} : vector<256x128xbf16>, vector<128x128xbf16>, vector<256x128xf32> -> vector<256x128xf32>
    %78 = arith.addf %73, %77 : vector<256x128xf32>
    %79 = vector.extract_strided_slice %12 {offsets = [1024, 0], sizes = [256, 128], strides = [1, 1]} : vector<2048x128xbf16> to vector<256x128xbf16>
    %80 = vector.extract_strided_slice %13 {offsets = [2, 0, 0], sizes = [1, 128, 128], strides = [1, 1, 1]} : vector<3x128x128xbf16> to vector<1x128x128xbf16>
    %81 = vector.shape_cast %80 : vector<1x128x128xbf16> to vector<128x128xbf16>
    %cst_32 = arith.constant dense<0.000000e+00> : vector<256x128xf32>
    %82 = tpu.matmul %79, %81, %cst_32 {dimension_numbers = #tpu.dot_dimension_numbers<[1], [0], [0], [1], [0, 0, 1, 1], [], []>} : vector<256x128xbf16>, vector<128x128xbf16>, vector<256x128xf32> -> vector<256x128xf32>
    %83 = arith.addf %78, %82 : vector<256x128xf32>
    %84 = vector.broadcast %14 : vector<1x128xf32> to vector<256x128xf32>
    %85 = arith.addf %83, %84 : vector<256x128xf32>
    %86 = arith.truncf %85 : vector<256x128xf32> to vector<256x128xbf16>
    %c0_33 = arith.constant 0 : index
    %c3 = arith.constant 3 : index
    %c0_34 = arith.constant 0 : index
    %c0_35 = arith.constant 0 : index
    %87 = vector.load %arg7[%c0_33, %c3, %c0_34, %c0_35] : memref<1x8x256x128xbf16, #tpu.memory_space<vmem>>, vector<1x1x256x128xbf16>
    %88 = vector.shape_cast %87 : vector<1x1x256x128xbf16> to vector<256x128xbf16>
    %89 = vector.shape_cast %86 : vector<256x128xbf16> to vector<1x1x256x128xbf16>
    tpu.vector_store %arg7[%c0_33, %c3, %c0_34, %c0_35], %89 {strides = array<i32>} : memref<1x8x256x128xbf16, #tpu.memory_space<vmem>>, vector<1x1x256x128xbf16>,
    %90 = vector.extract_strided_slice %12 {offsets = [768, 0], sizes = [256, 128], strides = [1, 1]} : vector<2048x128xbf16> to vector<256x128xbf16>
    %91 = vector.extract_strided_slice %13 {offsets = [0, 0, 0], sizes = [1, 128, 128], strides = [1, 1, 1]} : vector<3x128x128xbf16> to vector<1x128x128xbf16>
    %92 = vector.shape_cast %91 : vector<1x128x128xbf16> to vector<128x128xbf16>
    %cst_36 = arith.constant dense<0.000000e+00> : vector<256x128xf32>
    %93 = tpu.matmul %90, %92, %cst_36 {dimension_numbers = #tpu.dot_dimension_numbers<[1], [0], [0], [1], [0, 0, 1, 1], [], []>} : vector<256x128xbf16>, vector<128x128xbf16>, vector<256x128xf32> -> vector<256x128xf32>
    %94 = vector.extract_strided_slice %12 {offsets = [1024, 0], sizes = [256, 128], strides = [1, 1]} : vector<2048x128xbf16> to vector<256x128xbf16>
    %95 = vector.extract_strided_slice %13 {offsets = [1, 0, 0], sizes = [1, 128, 128], strides = [1, 1, 1]} : vector<3x128x128xbf16> to vector<1x128x128xbf16>
    %96 = vector.shape_cast %95 : vector<1x128x128xbf16> to vector<128x128xbf16>
    %cst_37 = arith.constant dense<0.000000e+00> : vector<256x128xf32>
    %97 = tpu.matmul %94, %96, %cst_37 {dimension_numbers = #tpu.dot_dimension_numbers<[1], [0], [0], [1], [0, 0, 1, 1], [], []>} : vector<256x128xbf16>, vector<128x128xbf16>, vector<256x128xf32> -> vector<256x128xf32>
    %98 = arith.addf %93, %97 : vector<256x128xf32>
    %99 = vector.extract_strided_slice %12 {offsets = [1280, 0], sizes = [256, 128], strides = [1, 1]} : vector<2048x128xbf16> to vector<256x128xbf16>
    %100 = vector.extract_strided_slice %13 {offsets = [2, 0, 0], sizes = [1, 128, 128], strides = [1, 1, 1]} : vector<3x128x128xbf16> to vector<1x128x128xbf16>
    %101 = vector.shape_cast %100 : vector<1x128x128xbf16> to vector<128x128xbf16>
    %cst_38 = arith.constant dense<0.000000e+00> : vector<256x128xf32>
    %102 = tpu.matmul %99, %101, %cst_38 {dimension_numbers = #tpu.dot_dimension_numbers<[1], [0], [0], [1], [0, 0, 1, 1], [], []>} : vector<256x128xbf16>, vector<128x128xbf16>, vector<256x128xf32> -> vector<256x128xf32>
    %103 = arith.addf %98, %102 : vector<256x128xf32>
    %104 = vector.broadcast %14 : vector<1x128xf32> to vector<256x128xf32>
    %105 = arith.addf %103, %104 : vector<256x128xf32>
    %106 = arith.truncf %105 : vector<256x128xf32> to vector<256x128xbf16>
    %c0_39 = arith.constant 0 : index
    %c4 = arith.constant 4 : index
    %c0_40 = arith.constant 0 : index
    %c0_41 = arith.constant 0 : index
    %107 = vector.load %arg7[%c0_39, %c4, %c0_40, %c0_41] : memref<1x8x256x128xbf16, #tpu.memory_space<vmem>>, vector<1x1x256x128xbf16>
    %108 = vector.shape_cast %107 : vector<1x1x256x128xbf16> to vector<256x128xbf16>
    %109 = vector.shape_cast %106 : vector<256x128xbf16> to vector<1x1x256x128xbf16>
    tpu.vector_store %arg7[%c0_39, %c4, %c0_40, %c0_41], %109 {strides = array<i32>} : memref<1x8x256x128xbf16, #tpu.memory_space<vmem>>, vector<1x1x256x128xbf16>,
    %110 = vector.extract_strided_slice %12 {offsets = [1024, 0], sizes = [256, 128], strides = [1, 1]} : vector<2048x128xbf16> to vector<256x128xbf16>
    %111 = vector.extract_strided_slice %13 {offsets = [0, 0, 0], sizes = [1, 128, 128], strides = [1, 1, 1]} : vector<3x128x128xbf16> to vector<1x128x128xbf16>
    %112 = vector.shape_cast %111 : vector<1x128x128xbf16> to vector<128x128xbf16>
    %cst_42 = arith.constant dense<0.000000e+00> : vector<256x128xf32>
    %113 = tpu.matmul %110, %112, %cst_42 {dimension_numbers = #tpu.dot_dimension_numbers<[1], [0], [0], [1], [0, 0, 1, 1], [], []>} : vector<256x128xbf16>, vector<128x128xbf16>, vector<256x128xf32> -> vector<256x128xf32>
    %114 = vector.extract_strided_slice %12 {offsets = [1280, 0], sizes = [256, 128], strides = [1, 1]} : vector<2048x128xbf16> to vector<256x128xbf16>
    %115 = vector.extract_strided_slice %13 {offsets = [1, 0, 0], sizes = [1, 128, 128], strides = [1, 1, 1]} : vector<3x128x128xbf16> to vector<1x128x128xbf16>
    %116 = vector.shape_cast %115 : vector<1x128x128xbf16> to vector<128x128xbf16>
    %cst_43 = arith.constant dense<0.000000e+00> : vector<256x128xf32>
    %117 = tpu.matmul %114, %116, %cst_43 {dimension_numbers = #tpu.dot_dimension_numbers<[1], [0], [0], [1], [0, 0, 1, 1], [], []>} : vector<256x128xbf16>, vector<128x128xbf16>, vector<256x128xf32> -> vector<256x128xf32>
    %118 = arith.addf %113, %117 : vector<256x128xf32>
    %119 = vector.extract_strided_slice %12 {offsets = [1536, 0], sizes = [256, 128], strides = [1, 1]} : vector<2048x128xbf16> to vector<256x128xbf16>
    %120 = vector.extract_strided_slice %13 {offsets = [2, 0, 0], sizes = [1, 128, 128], strides = [1, 1, 1]} : vector<3x128x128xbf16> to vector<1x128x128xbf16>
    %121 = vector.shape_cast %120 : vector<1x128x128xbf16> to vector<128x128xbf16>
    %cst_44 = arith.constant dense<0.000000e+00> : vector<256x128xf32>
    %122 = tpu.matmul %119, %121, %cst_44 {dimension_numbers = #tpu.dot_dimension_numbers<[1], [0], [0], [1], [0, 0, 1, 1], [], []>} : vector<256x128xbf16>, vector<128x128xbf16>, vector<256x128xf32> -> vector<256x128xf32>
    %123 = arith.addf %118, %122 : vector<256x128xf32>
    %124 = vector.broadcast %14 : vector<1x128xf32> to vector<256x128xf32>
    %125 = arith.addf %123, %124 : vector<256x128xf32>
    %126 = arith.truncf %125 : vector<256x128xf32> to vector<256x128xbf16>
    %c0_45 = arith.constant 0 : index
    %c5 = arith.constant 5 : index
    %c0_46 = arith.constant 0 : index
    %c0_47 = arith.constant 0 : index
    %127 = vector.load %arg7[%c0_45, %c5, %c0_46, %c0_47] : memref<1x8x256x128xbf16, #tpu.memory_space<vmem>>, vector<1x1x256x128xbf16>
    %128 = vector.shape_cast %127 : vector<1x1x256x128xbf16> to vector<256x128xbf16>
    %129 = vector.shape_cast %126 : vector<256x128xbf16> to vector<1x1x256x128xbf16>
    tpu.vector_store %arg7[%c0_45, %c5, %c0_46, %c0_47], %129 {strides = array<i32>} : memref<1x8x256x128xbf16, #tpu.memory_space<vmem>>, vector<1x1x256x128xbf16>,
    %130 = vector.extract_strided_slice %12 {offsets = [1280, 0], sizes = [256, 128], strides = [1, 1]} : vector<2048x128xbf16> to vector<256x128xbf16>
    %131 = vector.extract_strided_slice %13 {offsets = [0, 0, 0], sizes = [1, 128, 128], strides = [1, 1, 1]} : vector<3x128x128xbf16> to vector<1x128x128xbf16>
    %132 = vector.shape_cast %131 : vector<1x128x128xbf16> to vector<128x128xbf16>
    %cst_48 = arith.constant dense<0.000000e+00> : vector<256x128xf32>
    %133 = tpu.matmul %130, %132, %cst_48 {dimension_numbers = #tpu.dot_dimension_numbers<[1], [0], [0], [1], [0, 0, 1, 1], [], []>} : vector<256x128xbf16>, vector<128x128xbf16>, vector<256x128xf32> -> vector<256x128xf32>
    %134 = vector.extract_strided_slice %12 {offsets = [1536, 0], sizes = [256, 128], strides = [1, 1]} : vector<2048x128xbf16> to vector<256x128xbf16>
    %135 = vector.extract_strided_slice %13 {offsets = [1, 0, 0], sizes = [1, 128, 128], strides = [1, 1, 1]} : vector<3x128x128xbf16> to vector<1x128x128xbf16>
    %136 = vector.shape_cast %135 : vector<1x128x128xbf16> to vector<128x128xbf16>
    %cst_49 = arith.constant dense<0.000000e+00> : vector<256x128xf32>
    %137 = tpu.matmul %134, %136, %cst_49 {dimension_numbers = #tpu.dot_dimension_numbers<[1], [0], [0], [1], [0, 0, 1, 1], [], []>} : vector<256x128xbf16>, vector<128x128xbf16>, vector<256x128xf32> -> vector<256x128xf32>
    %138 = arith.addf %133, %137 : vector<256x128xf32>
    %139 = vector.extract_strided_slice %12 {offsets = [1792, 0], sizes = [256, 128], strides = [1, 1]} : vector<2048x128xbf16> to vector<256x128xbf16>
    %140 = vector.extract_strided_slice %13 {offsets = [2, 0, 0], sizes = [1, 128, 128], strides = [1, 1, 1]} : vector<3x128x128xbf16> to vector<1x128x128xbf16>
    %141 = vector.shape_cast %140 : vector<1x128x128xbf16> to vector<128x128xbf16>
    %cst_50 = arith.constant dense<0.000000e+00> : vector<256x128xf32>
    %142 = tpu.matmul %139, %141, %cst_50 {dimension_numbers = #tpu.dot_dimension_numbers<[1], [0], [0], [1], [0, 0, 1, 1], [], []>} : vector<256x128xbf16>, vector<128x128xbf16>, vector<256x128xf32> -> vector<256x128xf32>
    %143 = arith.addf %138, %142 : vector<256x128xf32>
    %144 = vector.broadcast %14 : vector<1x128xf32> to vector<256x128xf32>
    %145 = arith.addf %143, %144 : vector<256x128xf32>
    %146 = arith.truncf %145 : vector<256x128xf32> to vector<256x128xbf16>
    %c0_51 = arith.constant 0 : index
    %c6 = arith.constant 6 : index
    %c0_52 = arith.constant 0 : index
    %c0_53 = arith.constant 0 : index
    %147 = vector.load %arg7[%c0_51, %c6, %c0_52, %c0_53] : memref<1x8x256x128xbf16, #tpu.memory_space<vmem>>, vector<1x1x256x128xbf16>
    %148 = vector.shape_cast %147 : vector<1x1x256x128xbf16> to vector<256x128xbf16>
    %149 = vector.shape_cast %146 : vector<256x128xbf16> to vector<1x1x256x128xbf16>
    tpu.vector_store %arg7[%c0_51, %c6, %c0_52, %c0_53], %149 {strides = array<i32>} : memref<1x8x256x128xbf16, #tpu.memory_space<vmem>>, vector<1x1x256x128xbf16>,
    %150 = vector.extract_strided_slice %12 {offsets = [1536, 0], sizes = [256, 128], strides = [1, 1]} : vector<2048x128xbf16> to vector<256x128xbf16>
    %151 = vector.extract_strided_slice %13 {offsets = [0, 0, 0], sizes = [1, 128, 128], strides = [1, 1, 1]} : vector<3x128x128xbf16> to vector<1x128x128xbf16>
    %152 = vector.shape_cast %151 : vector<1x128x128xbf16> to vector<128x128xbf16>
    %cst_54 = arith.constant dense<0.000000e+00> : vector<256x128xf32>
    %153 = tpu.matmul %150, %152, %cst_54 {dimension_numbers = #tpu.dot_dimension_numbers<[1], [0], [0], [1], [0, 0, 1, 1], [], []>} : vector<256x128xbf16>, vector<128x128xbf16>, vector<256x128xf32> -> vector<256x128xf32>
    %154 = vector.extract_strided_slice %12 {offsets = [1792, 0], sizes = [256, 128], strides = [1, 1]} : vector<2048x128xbf16> to vector<256x128xbf16>
    %155 = vector.extract_strided_slice %13 {offsets = [1, 0, 0], sizes = [1, 128, 128], strides = [1, 1, 1]} : vector<3x128x128xbf16> to vector<1x128x128xbf16>
    %156 = vector.shape_cast %155 : vector<1x128x128xbf16> to vector<128x128xbf16>
    %cst_55 = arith.constant dense<0.000000e+00> : vector<256x128xf32>
    %157 = tpu.matmul %154, %156, %cst_55 {dimension_numbers = #tpu.dot_dimension_numbers<[1], [0], [0], [1], [0, 0, 1, 1], [], []>} : vector<256x128xbf16>, vector<128x128xbf16>, vector<256x128xf32> -> vector<256x128xf32>
    %158 = arith.addf %153, %157 : vector<256x128xf32>
    %159 = vector.broadcast %14 : vector<1x128xf32> to vector<256x128xf32>
    %160 = arith.addf %158, %159 : vector<256x128xf32>
    %161 = arith.truncf %160 : vector<256x128xf32> to vector<256x128xbf16>
    %c0_56 = arith.constant 0 : index
    %c7 = arith.constant 7 : index
    %c0_57 = arith.constant 0 : index
    %c0_58 = arith.constant 0 : index
    %162 = vector.load %arg7[%c0_56, %c7, %c0_57, %c0_58] : memref<1x8x256x128xbf16, #tpu.memory_space<vmem>>, vector<1x1x256x128xbf16>
    %163 = vector.shape_cast %162 : vector<1x1x256x128xbf16> to vector<256x128xbf16>
    %164 = vector.shape_cast %161 : vector<256x128xbf16> to vector<1x1x256x128xbf16>
    tpu.vector_store %arg7[%c0_56, %c7, %c0_57, %c0_58], %164 {strides = array<i32>} : memref<1x8x256x128xbf16, #tpu.memory_space<vmem>>, vector<1x1x256x128xbf16>,
    return
  }
  func.func @transform_0(%arg0: i32, %arg1: i32) -> (i32, i32, i32, i32) {
    %c0_i32 = arith.constant 0 : i32
    %c0_i32_0 = arith.constant 0 : i32
    %c0_i32_1 = arith.constant 0 : i32
    return %arg0, %c0_i32, %arg1, %c0_i32_0 : i32, i32, i32, i32
  }
  func.func @transform_1(%arg0: i32, %arg1: i32) -> (i32, i32) {
    %c0_i32 = arith.constant 0 : i32
    %c0_i32_0 = arith.constant 0 : i32
    %c0_i32_1 = arith.constant 0 : i32
    return %c0_i32, %c0_i32_0 : i32, i32
  }
  func.func @transform_2(%arg0: i32, %arg1: i32) -> (i32, i32) {
    %c0_i32 = arith.constant 0 : i32
    %c0_i32_0 = arith.constant 0 : i32
    %c0_i32_1 = arith.constant 0 : i32
    return %c0_i32, %c0_i32_0 : i32, i32
  }
  func.func @transform_3(%arg0: i32, %arg1: i32) -> (i32, i32, i32) {
    %c0_i32 = arith.constant 0 : i32
    %c0_i32_0 = arith.constant 0 : i32
    %c0_i32_1 = arith.constant 0 : i32
    %c0_i32_2 = arith.constant 0 : i32
    return %c0_i32, %c0_i32_0, %c0_i32_1 : i32, i32, i32
  }
  func.func @transform_4(%arg0: i32, %arg1: i32) -> (i32, i32) {
    %c0_i32 = arith.constant 0 : i32
    %c0_i32_0 = arith.constant 0 : i32
    %c0_i32_1 = arith.constant 0 : i32
    return %c0_i32, %c0_i32_0 : i32, i32
  }
  func.func @transform_5(%arg0: i32, %arg1: i32) -> (i32, i32, i32, i32) {
    %c0_i32 = arith.constant 0 : i32
    %c0_i32_0 = arith.constant 0 : i32
    %c0_i32_1 = arith.constant 0 : i32
    return %arg0, %c0_i32, %arg1, %c0_i32_0 : i32, i32, i32, i32
  }
}

</mosaic_0001>

<bundles_post_ra>
// kernel: _lambda_.2
= control target key start
LH: loop header
LB: loop body
LE: loop exit
PB: predicated region body
PF: predicated region fallthrough
CT: control target
= control target key end

     0   :  { %s4041_s18 = smov 0   ;;  %s5235_s0 = inlined_call_operand.vmem [shape: bf16[16,18,16,12], index: 0, kind: input, shape index: {}]   ;;  %s5236_s1 = inlined_call_operand.vmem [shape: bf16[3,12,128], index: 1, kind: input, shape index: {}]   ;;  %s5237_s2 = inlined_call_operand.vmem [shape: f32[1,128], index: 2, kind: input, shape index: {}]   ;;  %s5238_s3 = inlined_call_operand.vmem [shape: bf16[16,256,128], index: 3, kind: output, shape index: {0}]   ;;  %s5239_s4 = inlined_call_operand.vmem [shape: f32[4,1,128], index: 4, kind: output, shape index: {1}]   ;;  %s5240_s5 = inlined_call_operand.vmem [shape: f32[4,1,128], index: 5, kind: output, shape index: {2}]  }
   0x1 LB: > { %s4047_s19 = sadd.s32 4294967295, %s4009_s18   ;;  %p3014_p0 = scmp.ge.s32.totalorder %s4009_s18, 1  ;;  %s4009_s18 = sphi %s4041_s18, %s16_s18  }
   0x2   : > { %p194_p1 = scmp.lt.s32.totalorder %s4009_s18, 5 }
   0x4   : > { %p195_p2 = pnand %p3014_p0, %p194_p1 }
   0x6   : > { %198 = sbr.rel (%p195_p2) target bundleno = 998 (0x3e6), region = 32 }
   0xb   : > { %v3278_v0 = vld [vmem:[%s5236_s1 + $0x8] sm:$0xf]  ;;  %v3588_v1 = vld [vmem:[%s5236_s1 + $0x8] sm:$0x30]  ;;  %vm919_vm0 = vcmask 1045504   ;;  %s3015_s24 = sshll.u32 %s4047_s19, 2 }
   0xc   : > { %v3279_v2 = vor.u32 %v3588_v1, %v3278_v0  ;;  %v3362_v3 = vld [vmem:[%s5236_s1] sm:$0xf]  ;;  %v3587_v4 = vld [vmem:[%s5236_s1] sm:$0x30]  ;;  %v3446_v5 = vld [vmem:[%s5236_s1 + $0x10] sm:$0xf] }
   0xd   : > { %v3363_v6 = vor.u32 %v3587_v4, %v3362_v3  ;;  %v3589_v7 = vld [vmem:[%s5236_s1 + $0x10] sm:$0x30]  ;;  %p231_p3 = scmp.lt.s32.totalorder %s3015_s24, 15  ;;  %vm726_vm1 = vcmask 97280   ;;  %v4169_v40 = vld [vmem:[%s5237_s2] ss:$0 sm:$0xff] }
   0xe   : > { %v921_v8 = vsel %vm919_vm0, %v3279_v2, 0  ;;  %v3447_v9 = vor.u32 %v3589_v7, %v3446_v5  ;;  %p244_p4 = scmp.lt.s32.totalorder %s4047_s19, 3 }
   0xf   : > { %930 = vmatpush.bf16.msra.mxu0 %v921_v8  ;;  %3973 = vmatpush.bf16.msra.mxu3 %v921_v8  ;;  %v1290_v10 = vsel %vm919_vm0, %v3363_v6, 0  ;;  %s5288_s24 = smov (!%p231_p3, %s3015_s24), 15 }
  0x10   : > { %1299 = vmatpush.bf16.msra.mxu1 %v1290_v10  ;;  %v1659_v11 = vsel %vm919_vm0, %v3447_v9, 0  ;;  %s3976_s8 = smul.u32 144, %s5288_s24  ;;  %s3514_s14 = sshll.u32 %s5288_s24, 7 }
  0x11   : > { %1668 = vmatpush.bf16.msra.mxu2 %v1659_v11  ;;  %s4185_s17 = scalar_lea.vmem %s5238_s3, %s3514_s14  ;;  %s5290_s19 = smov (!%p244_p4, %s4047_s19), 3 }
  0x12   : > { %s4079_s11 = scalar_lea.vmem %s5235_s0, %s3976_s8  ;;  %s246_s26 = scalar_lea.vmem %s5239_s4, %s5290_s19 }
  0x13   : > { %3974 = vmatpush.bf16.msrb.mxu3 %v1290_v10  ;;  %v3516_v12 = vld [vmem:[%s4079_s11 + $0x8] sm:$0xff]  ;;  %v4083_v13 = vld [vmem:[%s4079_s11 + $0x1b8] sm:$0xff]  ;;  %v3515_v14 = vld [vmem:[%s4079_s11] sm:$0xff]  ;;  %s249_s29 = scalar_lea.vmem %s5240_s5, %s5290_s19 }
  0x14   : > { %v3517_v15 = vld [vmem:[%s4079_s11 + $0x10] sm:$0xff]  ;;  %3280 = vmatmul.msk.bf16.vlgmr.msra.gmra.mxu0 %vm726_vm1, %v3516_v12  ;;  %3328 = vmatmul.msk.bf16.vlgmr.msra.gmra.mxu3 %vm726_vm1, %v4083_v13  ;;  %v4093_v16 = vld [vmem:[%s4079_s11 + $0x1c0] sm:$0xff]  ;;  %v3518_v17 = vld [vmem:[%s4079_s11 + $0x18] sm:$0xff] }
  0x15   : > { %3364 = vmatmul.msk.bf16.vlgmr.msra.gmra.mxu1 %vm726_vm1, %v3515_v14  ;;  %3448 = vmatmul.msk.bf16.vlgmr.msra.gmra.mxu2 %vm726_vm1, %v3517_v15  ;;  %v4102_v18 = vld [vmem:[%s4079_s11 + $0x1c8] sm:$0xff]  ;;  %v3519_v19 = vld [vmem:[%s4079_s11 + $0x20] sm:$0xff]  ;;  %v4111_v20 = vld [vmem:[%s4079_s11 + $0x1d0] sm:$0xff] }
  0x16   : > { %v3520_v21 = vld [vmem:[%s4079_s11 + $0x28] sm:$0xff]  ;;  %v4120_v22 = vld [vmem:[%s4079_s11 + $0x1d8] sm:$0xff]  ;;  %v3521_v23 = vld [vmem:[%s4079_s11 + $0x30] sm:$0xff] }
  0x17   : > { %3975 = vmatpush.bf16.msra.mxu3 %v1659_v11  ;;  %v4129_v24 = vld [vmem:[%s4079_s11 + $0x1e0] sm:$0xff]  ;;  %v3522_v25 = vld [vmem:[%s4079_s11 + $0x38] sm:$0xff]  ;;  %v4138_v26 = vld [vmem:[%s4079_s11 + $0x1e8] sm:$0xff] }
  0x18   : > { %v3523_v27 = vld [vmem:[%s4079_s11 + $0x40] sm:$0xff]  ;;  %v4147_v28 = vld [vmem:[%s4079_s11 + $0x1f0] sm:$0xff]  ;;  %v3524_v29 = vld [vmem:[%s4079_s11 + $0x48] sm:$0xff] }
  0x19   : > { %v4156_v30 = vld [vmem:[%s4079_s11 + $0x1f8] sm:$0xff]  ;;  %v3525_v32 = vld [vmem:[%s4079_s11 + $0x50] sm:$0xff]  ;;  %v4175_v45 = vld [vmem:[%s4079_s11 + $0x200] sm:$0xff] }
  0x1a   : > { %v4179_v48 = vld [vmem:[%s4079_s11 + $0x58] sm:$0xff]  ;;  %v4200_v5 = vld [vmem:[%s4079_s11 + $0x208] sm:$0xff]  ;;  %v4203_v8 = vld [vmem:[%s4079_s11 + $0x60] sm:$0xff] }
  0x24   : > { %3281 = vmatmul.msk.bf16.gmra.mxu0 %vm726_vm1, %v3517_v15  ;;  %3329 = vmatmul.msk.bf16.gmra.mxu3 %vm726_vm1, %v4093_v16 }
  0x25   : > { %3365 = vmatmul.msk.bf16.gmra.mxu1 %vm726_vm1, %v3516_v12  ;;  %3449 = vmatmul.msk.bf16.gmra.mxu2 %vm726_vm1, %v3518_v17 }
  0x34   : > { %3282 = vmatmul.msk.bf16.gmra.mxu0 %vm726_vm1, %v3518_v17  ;;  %3330 = vmatmul.msk.bf16.gmra.mxu3 %vm726_vm1, %v4102_v18 }
  0x35   : > { %3366 = vmatmul.msk.bf16.gmra.mxu1 %vm726_vm1, %v3517_v15  ;;  %3450 = vmatmul.msk.bf16.gmra.mxu2 %vm726_vm1, %v3519_v19 }
  0x44   : > { %3283 = vmatmul.msk.bf16.gmra.mxu0 %vm726_vm1, %v3519_v19  ;;  %3331 = vmatmul.msk.bf16.gmra.mxu3 %vm726_vm1, %v4111_v20 }
  0x45   : > { %3367 = vmatmul.msk.bf16.gmra.mxu1 %vm726_vm1, %v3518_v17  ;;  %3451 = vmatmul.msk.bf16.gmra.mxu2 %vm726_vm1, %v3520_v21 }
  0x54   : > { %3284 = vmatmul.msk.bf16.gmra.mxu0 %vm726_vm1, %v3520_v21  ;;  %3332 = vmatmul.msk.bf16.gmra.mxu3 %vm726_vm1, %v4120_v22 }
  0x55   : > { %3368 = vmatmul.msk.bf16.gmra.mxu1 %vm726_vm1, %v3519_v19  ;;  %3452 = vmatmul.msk.bf16.gmra.mxu2 %vm726_vm1, %v3521_v23 }
  0x64   : > { %3285 = vmatmul.msk.bf16.gmra.mxu0 %vm726_vm1, %v3521_v23  ;;  %3333 = vmatmul.msk.bf16.gmra.mxu3 %vm726_vm1, %v4129_v24 }
  0x65   : > { %3369 = vmatmul.msk.bf16.gmra.mxu1 %vm726_vm1, %v3520_v21  ;;  %3453 = vmatmul.msk.bf16.gmra.mxu2 %vm726_vm1, %v3522_v25 }
  0x74   : > { %3286 = vmatmul.msk.bf16.gmra.mxu0 %vm726_vm1, %v3522_v25  ;;  %3334 = vmatmul.msk.bf16.gmra.mxu3 %vm726_vm1, %v4138_v26 }
  0x75   : > { %3370 = vmatmul.msk.bf16.gmra.mxu1 %vm726_vm1, %v3521_v23  ;;  %3454 = vmatmul.msk.bf16.gmra.mxu2 %vm726_vm1, %v3523_v27 }
  0x84   : > { %3287 = vmatmul.msk.bf16.gmra.mxu0 %vm726_vm1, %v3523_v27  ;;  %3335 = vmatmul.msk.bf16.gmra.mxu3 %vm726_vm1, %v4147_v28 }
  0x85   : > { %3371 = vmatmul.msk.bf16.gmra.mxu1 %vm726_vm1, %v3522_v25  ;;  %3455 = vmatmul.msk.bf16.gmra.mxu2 %vm726_vm1, %v3524_v29 }
  0x91   : > { %v932_v31 = vpop.f32.mrf.mxu0 }
  0x92   : > { %v1301_v33 = vpop.f32.mrf.mxu1 }
  0x93   : > { %v1302_v35 = vadd.f32 %v1301_v33, %v932_v31 }
  0x94   : > { %3288 = vmatmul.msk.bf16.gmra.mxu0 %vm726_vm1, %v3524_v29  ;;  %3336 = vmatmul.msk.bf16.gmra.mxu3 %vm726_vm1, %v4156_v30 }
  0x95   : > { %3372 = vmatmul.msk.bf16.gmra.mxu1 %vm726_vm1, %v3523_v27  ;;  %3456 = vmatmul.msk.bf16.gmra.mxu2 %vm726_vm1, %v3525_v32 }
  0x97   : > { %v4164_v34 = vpop.f32.mrf.mxu3 }
  0x98   : > { %v1670_v36 = vpop.f32.mrf.mxu2 }
  0x99   : > { %v934_v37 = vpop.f32.mrf.mxu0  ;;  %v1990_v39 = vadd.f32 %v1670_v36, %v1302_v35 }
  0x9a   : > { %v1303_v38 = vpop.f32.mrf.mxu1 }
  0x9b   : > { %v1304_v41 = vadd.f32 %v1303_v38, %v934_v37  ;;  %v2122_v43 = vadd.f32 %v4169_v40, %v1990_v39  ;;  %v4220_v38 = vld [vmem:[%s4079_s11 + $0x210] sm:$0xff] }
  0x9d   : > { %v2384_v51 = vmul.f32 %v2122_v43, %v2122_v43 }
  0x9f   : > { %v4171_v42 = vpop.f32.mrf.mxu3 }
  0xa0   : > { %v1672_v44 = vpop.f32.mrf.mxu2 }
  0xa1   : > { %v1991_v46 = vadd.f32 %v1672_v44, %v1304_v41  ;;  %v937_v47 = vpop.f32.mrf.mxu0 }
  0xa2   : > { %v1306_v49 = vpop.f32.mrf.mxu1 }
  0xa3   : > { %v2123_v50 = vadd.f32 %v4169_v40, %v1991_v46  ;;  %v1307_v52 = vadd.f32 %v1306_v49, %v937_v47 }
  0xa4   : > { %3289 = vmatmul.msk.bf16.gmra.mxu0 %vm726_vm1, %v3525_v32  ;;  %3337 = vmatmul.msk.bf16.gmra.mxu3 %vm726_vm1, %v4175_v45 }
  0xa5   : > { %v2250_v53 = vadd.f32 %v2123_v50, %v2122_v43  ;;  %v2385_v54 = vmul.f32 %v2123_v50, %v2123_v50  ;;  %v3593_v55 = vpack.c.bf16 %v2123_v50, %v2122_v43  ;;  %3373 = vmatmul.msk.bf16.gmra.mxu1 %vm726_vm1, %v3524_v29  ;;  %3457 = vmatmul.msk.bf16.gmra.mxu2 %vm726_vm1, %v4179_v48  ;;  %v4223_v43 = vld [vmem:[%s4079_s11 + $0x68] sm:$0xff] }
  0xa7   : > { %v2512_v56 = vadd.f32 %v2385_v54, %v2384_v51  ;;  %3594 = vst [vmem:[%s4185_s17] sm:$0xff] %v3593_v55   ;;  %v4194_v57 = vpop.f32.mrf.mxu3 }
  0xa8   : > { %v1675_v58 = vpop.f32.mrf.mxu2 }
  0xa9   : > { %v1992_v59 = vadd.f32 %v1675_v58, %v1307_v52  ;;  %v939_v60 = vpop.f32.mrf.mxu0 }
  0xaa   : > { %v1308_v61 = vpop.f32.mrf.mxu1 }
  0xab   : > { %v2124_v62 = vadd.f32 %v4169_v40, %v1992_v59  ;;  %v1309_v2 = vadd.f32 %v1308_v61, %v939_v60 }
  0xad   : > { %v2251_v63 = vadd.f32 %v2250_v53, %v2124_v62  ;;  %v2386_v0 = vmul.f32 %v2124_v62, %v2124_v62 }
  0xaf   : > { %v2513_v1 = vadd.f32 %v2512_v56, %v2386_v0  ;;  %v4197_v3 = vpop.f32.mrf.mxu3 }
  0xb0   : > { %v1677_v4 = vpop.f32.mrf.mxu2 }
  0xb1   : > { %v1993_v6 = vadd.f32 %v1677_v4, %v1309_v2  ;;  %v942_v7 = vpop.f32.mrf.mxu0 }
  0xb2   : > { %v1311_v9 = vpop.f32.mrf.mxu1 }
  0xb3   : > { %v2125_v10 = vadd.f32 %v4169_v40, %v1993_v6  ;;  %v1312_v11 = vadd.f32 %v1311_v9, %v942_v7  ;;  %v4244_v6 = vld [vmem:[%s4079_s11 + $0x70] sm:$0xff] }
  0xb4   : > { %3290 = vmatmul.msk.bf16.gmra.mxu0 %vm726_vm1, %v4179_v48  ;;  %3338 = vmatmul.msk.bf16.gmra.mxu3 %vm726_vm1, %v4200_v5 }
  0xb5   : > { %v2252_v12 = vadd.f32 %v2251_v63, %v2125_v10  ;;  %v2387_v14 = vmul.f32 %v2125_v10, %v2125_v10  ;;  %v3598_v15 = vpack.c.bf16 %v2125_v10, %v2124_v62  ;;  %3374 = vmatmul.msk.bf16.gmra.mxu1 %vm726_vm1, %v3525_v32  ;;  %3458 = vmatmul.msk.bf16.gmra.mxu2 %vm726_vm1, %v4203_v8 }
  0xb7   : > { %v2514_v17 = vadd.f32 %v2513_v1, %v2387_v14  ;;  %3910 = vst [vmem:[%s4185_s17 + $0x8] sm:$0xff] %v3598_v15   ;;  %v4214_v19 = vpop.f32.mrf.mxu3  ;;  %v4241_v1 = vld [vmem:[%s4079_s11 + $0x218] sm:$0xff] }
  0xb8   : > { %v1680_v21 = vpop.f32.mrf.mxu2 }
  0xb9   : > { %v1994_v23 = vadd.f32 %v1680_v21, %v1312_v11  ;;  %v944_v25 = vpop.f32.mrf.mxu0 }
  0xba   : > { %v1313_v27 = vpop.f32.mrf.mxu1 }
  0xbb   : > { %v2126_v29 = vadd.f32 %v4169_v40, %v1994_v23  ;;  %v1314_v36 = vadd.f32 %v1313_v27, %v944_v25 }
  0xbd   : > { %v2253_v31 = vadd.f32 %v2252_v12, %v2126_v29  ;;  %v2388_v33 = vmul.f32 %v2126_v29, %v2126_v29 }
  0xbf   : > { %v2515_v35 = vadd.f32 %v2514_v17, %v2388_v33  ;;  %v4217_v32 = vpop.f32.mrf.mxu3 }
  0xc0   : > { %v1682_v37 = vpop.f32.mrf.mxu2 }
  0xc1   : > { %v1995_v39 = vadd.f32 %v1682_v37, %v1314_v36  ;;  %v947_v41 = vpop.f32.mrf.mxu0 }
  0xc2   : > { %v1316_v44 = vpop.f32.mrf.mxu1 }
  0xc3   : > { %v2127_v46 = vadd.f32 %v4169_v40, %v1995_v39  ;;  %v1317_v47 = vadd.f32 %v1316_v44, %v947_v41  ;;  %v4262_v39 = vld [vmem:[%s4079_s11 + $0x220] sm:$0xff] }
  0xc4   : > { %3291 = vmatmul.msk.bf16.gmra.mxu0 %vm726_vm1, %v4203_v8  ;;  %3339 = vmatmul.msk.bf16.gmra.mxu3 %vm726_vm1, %v4220_v38 }
  0xc5   : > { %v2254_v49 = vadd.f32 %v2253_v31, %v2127_v46  ;;  %v2389_v50 = vmul.f32 %v2127_v46, %v2127_v46  ;;  %v3603_v51 = vpack.c.bf16 %v2127_v46, %v2126_v29  ;;  %3375 = vmatmul.msk.bf16.gmra.mxu1 %vm726_vm1, %v4179_v48  ;;  %3459 = vmatmul.msk.bf16.gmra.mxu2 %vm726_vm1, %v4223_v43  ;;  %v4265_v46 = vld [vmem:[%s4079_s11 + $0x78] sm:$0xff] }
  0xc7   : > { %v2516_v52 = vadd.f32 %v2515_v35, %v2389_v50  ;;  %3911 = vst [vmem:[%s4185_s17 + $0x10] sm:$0xff] %v3603_v51   ;;  %v4235_v53 = vpop.f32.mrf.mxu3 }
  0xc8   : > { %v1685_v54 = vpop.f32.mrf.mxu2 }
  0xc9   : > { %v1996_v55 = vadd.f32 %v1685_v54, %v1317_v47  ;;  %v949_v56 = vpop.f32.mrf.mxu0 }
  0xca   : > { %v1318_v58 = vpop.f32.mrf.mxu1 }
  0xcb   : > { %v2128_v59 = vadd.f32 %v4169_v40, %v1996_v55  ;;  %v1319_v63 = vadd.f32 %v1318_v58, %v949_v56 }
  0xcd   : > { %v2255_v60 = vadd.f32 %v2254_v49, %v2128_v59  ;;  %v2390_v61 = vmul.f32 %v2128_v59, %v2128_v59 }
  0xcf   : > { %v2517_v62 = vadd.f32 %v2516_v52, %v2390_v61  ;;  %v4238_v48 = vpop.f32.mrf.mxu3 }
  0xd0   : > { %v1687_v0 = vpop.f32.mrf.mxu2 }
  0xd1   : > { %v1997_v2 = vadd.f32 %v1687_v0, %v1319_v63  ;;  %v952_v4 = vpop.f32.mrf.mxu0 }
  0xd2   : > { %v1321_v7 = vpop.f32.mrf.mxu1 }
  0xd3   : > { %v2129_v9 = vadd.f32 %v4169_v40, %v1997_v2  ;;  %v1322_v10 = vadd.f32 %v1321_v7, %v952_v4 }
  0xd4   : > { %3292 = vmatmul.msk.bf16.gmra.mxu0 %vm726_vm1, %v4223_v43  ;;  %3340 = vmatmul.msk.bf16.gmra.mxu3 %vm726_vm1, %v4241_v1 }
  0xd5   : > { %v2256_v11 = vadd.f32 %v2255_v60, %v2129_v9  ;;  %v2391_v12 = vmul.f32 %v2129_v9, %v2129_v9  ;;  %v3608_v14 = vpack.c.bf16 %v2129_v9, %v2128_v59  ;;  %3376 = vmatmul.msk.bf16.gmra.mxu1 %vm726_vm1, %v4203_v8  ;;  %3460 = vmatmul.msk.bf16.gmra.mxu2 %vm726_vm1, %v4244_v6  ;;  %v4283_v9 = vld [vmem:[%s4079_s11 + $0x228] sm:$0xff] }
  0xd7   : > { %v2518_v15 = vadd.f32 %v2517_v62, %v2391_v12  ;;  %3912 = vst [vmem:[%s4185_s17 + $0x18] sm:$0xff] %v3608_v14   ;;  %v4256_v17 = vpop.f32.mrf.mxu3  ;;  %v3531_v12 = vld [vmem:[%s4079_s11 + $0x80] sm:$0xff] }
  0xd8   : > { %v1690_v21 = vpop.f32.mrf.mxu2 }
  0xd9   : > { %v1998_v23 = vadd.f32 %v1690_v21, %v1322_v10  ;;  %v954_v25 = vpop.f32.mrf.mxu0 }
  0xda   : > { %v1323_v27 = vpop.f32.mrf.mxu1 }
  0xdb   : > { %v2130_v29 = vadd.f32 %v4169_v40, %v1998_v23  ;;  %v1324_v36 = vadd.f32 %v1323_v27, %v954_v25 }
  0xdd   : > { %v2257_v31 = vadd.f32 %v2256_v11, %v2130_v29  ;;  %v2392_v33 = vmul.f32 %v2130_v29, %v2130_v29 }
  0xdf   : > { %v2519_v35 = vadd.f32 %v2518_v15, %v2392_v33  ;;  %v4259_v8 = vpop.f32.mrf.mxu3 }
  0xe0   : > { %v1692_v37 = vpop.f32.mrf.mxu2 }
  0xe1   : > { %v1999_v41 = vadd.f32 %v1692_v37, %v1324_v36  ;;  %v957_v44 = vpop.f32.mrf.mxu0 }
  0xe2   : > { %v1326_v47 = vpop.f32.mrf.mxu1 }
  0xe3   : > { %v2131_v49 = vadd.f32 %v4169_v40, %v1999_v41  ;;  %v1327_v50 = vadd.f32 %v1326_v47, %v957_v44 }
  0xe4   : > { %3293 = vmatmul.msk.bf16.gmra.mxu0 %vm726_vm1, %v4244_v6  ;;  %3341 = vmatmul.msk.bf16.gmra.mxu3 %vm726_vm1, %v4262_v39 }
  0xe5   : > { %v2258_v51 = vadd.f32 %v2257_v31, %v2131_v49  ;;  %v2393_v52 = vmul.f32 %v2131_v49, %v2131_v49  ;;  %v3613_v54 = vpack.c.bf16 %v2131_v49, %v2130_v29  ;;  %3377 = vmatmul.msk.bf16.gmra.mxu1 %vm726_vm1, %v4223_v43  ;;  %3461 = vmatmul.msk.bf16.gmra.mxu2 %vm726_vm1, %v4265_v46 }
  0xe7   : > { %v2520_v55 = vadd.f32 %v2519_v35, %v2393_v52  ;;  %3913 = vst [vmem:[%s4185_s17 + $0x20] sm:$0xff] %v3613_v54   ;;  %v4277_v56 = vpop.f32.mrf.mxu3  ;;  %v3585_v52 = vld [vmem:[%s4079_s11 + $0x230] sm:$0xff] }
  0xe8   : > { %v1695_v58 = vpop.f32.mrf.mxu2 }
  0xe9   : > { %v2000_v59 = vadd.f32 %v1695_v58, %v1327_v50  ;;  %v959_v60 = vpop.f32.mrf.mxu0  ;;  %v3532_v58 = vld [vmem:[%s4079_s11 + $0x88] sm:$0xff] }
  0xea   : > { %v1328_v61 = vpop.f32.mrf.mxu1 }
  0xeb   : > { %v2132_v62 = vadd.f32 %v4169_v40, %v2000_v59  ;;  %v1329_v4 = vadd.f32 %v1328_v61, %v959_v60 }
  0xed   : > { %v2259_v63 = vadd.f32 %v2258_v51, %v2132_v62  ;;  %v2394_v0 = vmul.f32 %v2132_v62, %v2132_v62 }
  0xef   : > { %v2521_v2 = vadd.f32 %v2520_v55, %v2394_v0  ;;  %v4280_v43 = vpop.f32.mrf.mxu3 }
  0xf0   : > { %v1697_v7 = vpop.f32.mrf.mxu2 }
  0xf1   : > { %v2001_v10 = vadd.f32 %v1697_v7, %v1329_v4  ;;  %v962_v11 = vpop.f32.mrf.mxu0 }
  0xf2   : > { %v1331_v14 = vpop.f32.mrf.mxu1 }
  0xf3   : > { %v2133_v15 = vadd.f32 %v4169_v40, %v2001_v10  ;;  %v1332_v21 = vadd.f32 %v1331_v14, %v962_v11 }
  0xf4   : > { %3294 = vmatmul.msk.bf16.gmra.mxu0 %vm726_vm1, %v4265_v46  ;;  %3342 = vmatmul.msk.bf16.gmra.mxu3 %vm726_vm1, %v4283_v9 }
  0xf5   : > { %v2260_v23 = vadd.f32 %v2259_v63, %v2133_v15  ;;  %v2395_v25 = vmul.f32 %v2133_v15, %v2133_v15  ;;  %v3618_v27 = vpack.c.bf16 %v2133_v15, %v2132_v62  ;;  %3378 = vmatmul.msk.bf16.gmra.mxu1 %vm726_vm1, %v4244_v6  ;;  %3462 = vmatmul.msk.bf16.gmra.mxu2 %vm726_vm1, %v3531_v12 }
  0xf7   : > { %v2522_v29 = vadd.f32 %v2521_v2, %v2395_v25  ;;  %3914 = vst [vmem:[%s4185_s17 + $0x28] sm:$0xff] %v3618_v27   ;;  %v4295_v31 = vpop.f32.mrf.mxu3 }
  0xf8   : > { %v1700_v33 = vpop.f32.mrf.mxu2 }
  0xf9   : > { %v2002_v35 = vadd.f32 %v1700_v33, %v1332_v21  ;;  %v964_v36 = vpop.f32.mrf.mxu0  ;;  %v3569_v33 = vld [vmem:[%s4079_s11 + $0x1b0] sm:$0xff] }
  0xfa   : > { %v1333_v37 = vpop.f32.mrf.mxu1 }
  0xfb   : > { %v2134_v41 = vadd.f32 %v4169_v40, %v2002_v35  ;;  %v1334_v50 = vadd.f32 %v1333_v37, %v964_v36  ;;  %v3533_v37 = vld [vmem:[%s4079_s11 + $0x90] sm:$0xff] }
  0xfd   : > { %v2261_v44 = vadd.f32 %v2260_v23, %v2134_v41  ;;  %v2396_v47 = vmul.f32 %v2134_v41, %v2134_v41 }
  0xff   : > { %v2523_v49 = vadd.f32 %v2522_v29, %v2396_v47  ;;  %v4298_v51 = vpop.f32.mrf.mxu3  ;;  %v3534_v29 = vld [vmem:[%s4079_s11 + $0x98] sm:$0xff] }
 0x100   : > { %v1702_v6 = vpop.f32.mrf.mxu2 }
 0x101   : > { %v2003_v54 = vadd.f32 %v1702_v6, %v1334_v50  ;;  %v967_v55 = vpop.f32.mrf.mxu0 }
 0x102   : > { %v1336_v59 = vpop.f32.mrf.mxu1 }
 0x103   : > { %v2135_v60 = vadd.f32 %v4169_v40, %v2003_v54  ;;  %v1337_v61 = vadd.f32 %v1336_v59, %v967_v55 }
 0x104   : > { %3295 = vmatmul.msk.bf16.gmra.mxu0 %vm726_vm1, %v3531_v12  ;;  %3343 = vmatmul.msk.bf16.gmra.mxu3 %vm726_vm1, %v3585_v52 }
 0x105   : > { %v2262_v62 = vadd.f32 %v2261_v44, %v2135_v60  ;;  %v2397_v63 = vmul.f32 %v2135_v60, %v2135_v60  ;;  %v3623_v0 = vpack.c.bf16 %v2135_v60, %v2134_v41  ;;  %3379 = vmatmul.msk.bf16.gmra.mxu1 %vm726_vm1, %v4265_v46  ;;  %3463 = vmatmul.msk.bf16.gmra.mxu2 %vm726_vm1, %v3532_v58  ;;  %v4318_v41 = vld [vmem:[%s4079_s11 + $0xa0] sm:$0xff] }
 0x107   : > { %v2524_v2 = vadd.f32 %v2523_v49, %v2397_v63  ;;  %3915 = vst [vmem:[%s4185_s17 + $0x30] sm:$0xff] %v3623_v0   ;;  %v4309_v4 = vpop.f32.mrf.mxu3 }
 0x108   : > { %v1705_v7 = vpop.f32.mrf.mxu2 }
 0x109   : > { %v2004_v10 = vadd.f32 %v1705_v7, %v1337_v61  ;;  %v969_v11 = vpop.f32.mrf.mxu0 }
 0x10a   : > { %v1338_v12 = vpop.f32.mrf.mxu1 }
 0x10b   : > { %v2136_v14 = vadd.f32 %v4169_v40, %v2004_v10  ;;  %v1339_v46 = vadd.f32 %v1338_v12, %v969_v11 }
 0x10d   : > { %v2263_v15 = vadd.f32 %v2262_v62, %v2136_v14  ;;  %v2398_v21 = vmul.f32 %v2136_v14, %v2136_v14 }
 0x10f   : > { %v2525_v23 = vadd.f32 %v2524_v2, %v2398_v21  ;;  %v4312_v25 = vpop.f32.mrf.mxu3 }
 0x110   : > { %v1707_v27 = vpop.f32.mrf.mxu2 }
 0x111   : > { %v2005_v35 = vadd.f32 %v1707_v27, %v1339_v46  ;;  %v972_v36 = vpop.f32.mrf.mxu0 }
 0x112   : > { %v1341_v44 = vpop.f32.mrf.mxu1 }
 0x113   : > { %v2137_v47 = vadd.f32 %v4169_v40, %v2005_v35  ;;  %v1342_v49 = vadd.f32 %v1341_v44, %v972_v36 }
 0x114   : > { %3296 = vmatmul.msk.bf16.gmra.mxu0 %vm726_vm1, %v3534_v29  ;;  %3412 = vmatmul.msk.bf16.vlgmr.msrb.gmra.mxu3 %vm726_vm1, %v3569_v33 }
 0x115   : > { %v2264_v50 = vadd.f32 %v2263_v15, %v2137_v47  ;;  %v2399_v6 = vmul.f32 %v2137_v47, %v2137_v47  ;;  %v3628_v52 = vpack.c.bf16 %v2137_v47, %v2136_v14  ;;  %3380 = vmatmul.msk.bf16.gmra.mxu1 %vm726_vm1, %v3533_v37  ;;  %3464 = vmatmul.msk.bf16.gmra.mxu2 %vm726_vm1, %v4318_v41  ;;  %v4333_v15 = vld [vmem:[%s4079_s11 + $0xa8] sm:$0xff] }
 0x117   : > { %v2526_v54 = vadd.f32 %v2525_v23, %v2399_v6  ;;  %3916 = vst [vmem:[%s4185_s17 + $0x38] sm:$0xff] %v3628_v52   ;;  %v4327_v55 = vpop.f32.mrf.mxu3 }
 0x118   : > { %v1710_v58 = vpop.f32.mrf.mxu2 }
 0x119   : > { %v2006_v59 = vadd.f32 %v1710_v58, %v1342_v49  ;;  %v974_v60 = vpop.f32.mrf.mxu0 }
 0x11a   : > { %v1343_v61 = vpop.f32.mrf.mxu1 }
 0x11b   : > { %v2138_v62 = vadd.f32 %v4169_v40, %v2006_v59  ;;  %v1344_v7 = vadd.f32 %v1343_v61, %v974_v60 }
 0x11d   : > { %v2265_v63 = vadd.f32 %v2264_v50, %v2138_v62  ;;  %v2400_v0 = vmul.f32 %v2138_v62, %v2138_v62 }
 0x11f   : > { %v2527_v2 = vadd.f32 %v2526_v54, %v2400_v0  ;;  %v4330_v10 = vpop.f32.mrf.mxu3 }
 0x120   : > { %v1712_v11 = vpop.f32.mrf.mxu2 }
 0x121   : > { %v2007_v12 = vadd.f32 %v1712_v11, %v1344_v7  ;;  %v977_v14 = vpop.f32.mrf.mxu0 }
 0x122   : > { %v1346_v21 = vpop.f32.mrf.mxu1 }
 0x123   : > { %v2139_v23 = vadd.f32 %v4169_v40, %v2007_v12  ;;  %v1347_v46 = vadd.f32 %v1346_v21, %v977_v14 }
 0x124   : > { %3297 = vmatmul.msk.bf16.gmra.mxu0 %vm726_vm1, %v4318_v41  ;;  %3413 = vmatmul.msk.bf16.gmra.mxu3 %vm726_vm1, %v4083_v13 }
 0x125   : > { %v2266_v27 = vadd.f32 %v2265_v63, %v2139_v23  ;;  %v2401_v33 = vmul.f32 %v2139_v23, %v2139_v23  ;;  %v3633_v35 = vpack.c.bf16 %v2139_v23, %v2138_v62  ;;  %3381 = vmatmul.msk.bf16.gmra.mxu1 %vm726_vm1, %v3534_v29  ;;  %3465 = vmatmul.msk.bf16.gmra.mxu2 %vm726_vm1, %v4333_v15  ;;  %v4350_v62 = vld [vmem:[%s4079_s11 + $0xb0] sm:$0xff] }
 0x127   : > { %v2528_v36 = vadd.f32 %v2527_v2, %v2401_v33  ;;  %3917 = vst [vmem:[%s4185_s17 + $0x40] sm:$0xff] %v3633_v35   ;;  %v4344_v37 = vpop.f32.mrf.mxu3 }
 0x128   : > { %v1715_v44 = vpop.f32.mrf.mxu2 }
 0x129   : > { %v2008_v47 = vadd.f32 %v1715_v44, %v1347_v46  ;;  %v979_v49 = vpop.f32.mrf.mxu0 }
 0x12a   : > { %v1348_v50 = vpop.f32.mrf.mxu1 }
 0x12b   : > { %v2140_v6 = vadd.f32 %v4169_v40, %v2008_v47  ;;  %v1349_v58 = vadd.f32 %v1348_v50, %v979_v49 }
 0x12d   : > { %v2267_v13 = vadd.f32 %v2266_v27, %v2140_v6  ;;  %v2402_v52 = vmul.f32 %v2140_v6, %v2140_v6 }
 0x12f   : > { %v2529_v54 = vadd.f32 %v2528_v36, %v2402_v52  ;;  %v4347_v59 = vpop.f32.mrf.mxu3 }
 0x130   : > { %v1717_v29 = vpop.f32.mrf.mxu2 }
 0x131   : > { %v2009_v60 = vadd.f32 %v1717_v29, %v1349_v58  ;;  %v982_v61 = vpop.f32.mrf.mxu0 }
 0x132   : > { %v1351_v63 = vpop.f32.mrf.mxu1 }
 0x133   : > { %v2141_v0 = vadd.f32 %v4169_v40, %v2009_v60  ;;  %v1352_v2 = vadd.f32 %v1351_v63, %v982_v61 }
 0x134   : > { %3298 = vmatmul.msk.bf16.gmra.mxu0 %vm726_vm1, %v4333_v15  ;;  %3414 = vmatmul.msk.bf16.gmra.mxu3 %vm726_vm1, %v4093_v16 }
 0x135   : > { %v2268_v7 = vadd.f32 %v2267_v13, %v2141_v0  ;;  %v2403_v11 = vmul.f32 %v2141_v0, %v2141_v0  ;;  %v3638_v12 = vpack.c.bf16 %v2141_v0, %v2140_v6  ;;  %3382 = vmatmul.msk.bf16.gmra.mxu1 %vm726_vm1, %v4318_v41  ;;  %3466 = vmatmul.msk.bf16.gmra.mxu2 %vm726_vm1, %v4350_v62  ;;  %v4368_v13 = vld [vmem:[%s4079_s11 + $0xb8] sm:$0xff] }
 0x137   : > { %v2530_v14 = vadd.f32 %v2529_v54, %v2403_v11  ;;  %3918 = vst [vmem:[%s4185_s17 + $0x48] sm:$0xff] %v3638_v12   ;;  %v4362_v21 = vpop.f32.mrf.mxu3 }
 0x138   : > { %v1720_v23 = vpop.f32.mrf.mxu2 }
 0x139   : > { %v2010_v46 = vadd.f32 %v1720_v23, %v1352_v2  ;;  %v984_v27 = vpop.f32.mrf.mxu0 }
 0x13a   : > { %v1353_v33 = vpop.f32.mrf.mxu1 }
 0x13b   : > { %v2142_v16 = vadd.f32 %v4169_v40, %v2010_v46  ;;  %v1354_v47 = vadd.f32 %v1353_v33, %v984_v27 }
 0x13d   : > { %v2269_v35 = vadd.f32 %v2268_v7, %v2142_v16  ;;  %v2404_v36 = vmul.f32 %v2142_v16, %v2142_v16 }
 0x13f   : > { %v2531_v44 = vadd.f32 %v2530_v14, %v2404_v36  ;;  %v4365_v49 = vpop.f32.mrf.mxu3  ;;  %v4386_v36 = vld [vmem:[%s4079_s11 + $0xc0] sm:$0xff] }
 0x140   : > { %5241 = vst [vmem:[#allocation2_spill] sm:$0xff] %v4365_v49  ;;  %v1722_v41 = vpop.f32.mrf.mxu2 }
 0x141   : > { %v2011_v50 = vadd.f32 %v1722_v41, %v1354_v47  ;;  %v987_v6 = vpop.f32.mrf.mxu0 }
 0x142   : > { %v1356_v52 = vpop.f32.mrf.mxu1 }
 0x143   : > { %v2143_v54 = vadd.f32 %v4169_v40, %v2011_v50  ;;  %v1357_v58 = vadd.f32 %v1356_v52, %v987_v6 }
 0x144   : > { %3299 = vmatmul.msk.bf16.gmra.mxu0 %vm726_vm1, %v4350_v62  ;;  %3415 = vmatmul.msk.bf16.gmra.mxu3 %vm726_vm1, %v4102_v18 }
 0x145   : > { %v2270_v29 = vadd.f32 %v2269_v35, %v2143_v54  ;;  %v2405_v60 = vmul.f32 %v2143_v54, %v2143_v54  ;;  %v3643_v61 = vpack.c.bf16 %v2143_v54, %v2142_v16  ;;  %3383 = vmatmul.msk.bf16.gmra.mxu1 %vm726_vm1, %v4333_v15  ;;  %3467 = vmatmul.msk.bf16.gmra.mxu2 %vm726_vm1, %v4368_v13 }
 0x147   : > { %v2532_v63 = vadd.f32 %v2531_v44, %v2405_v60  ;;  %3919 = vst [vmem:[%s4185_s17 + $0x50] sm:$0xff] %v3643_v61   ;;  %v4380_v0 = vpop.f32.mrf.mxu3 }
 0x148   : > { %5242 = vst [vmem:[#allocation3_spill] sm:$0xff] %v4380_v0  ;;  %v1725_v2 = vpop.f32.mrf.mxu2 }
 0x149   : > { %v2012_v7 = vadd.f32 %v1725_v2, %v1357_v58  ;;  %v989_v11 = vpop.f32.mrf.mxu0 }
 0x14a   : > { %v1358_v12 = vpop.f32.mrf.mxu1 }
 0x14b   : > { %v2144_v18 = vadd.f32 %v4169_v40, %v2012_v7  ;;  %v1359_v27 = vadd.f32 %v1358_v12, %v989_v11 }
 0x14d   : > { %v2271_v14 = vadd.f32 %v2270_v29, %v2144_v18  ;;  %v2406_v23 = vmul.f32 %v2144_v18, %v2144_v18 }
 0x14f   : > { %v2533_v46 = vadd.f32 %v2532_v63, %v2406_v23  ;;  %v4383_v33 = vpop.f32.mrf.mxu3 }
 0x150   : > { %5243 = vst [vmem:[#allocation4_spill] sm:$0xff] %v4383_v33  ;;  %v1727_v15 = vpop.f32.mrf.mxu2 }
 0x151   : > { %v2013_v16 = vadd.f32 %v1727_v15, %v1359_v27  ;;  %v992_v35 = vpop.f32.mrf.mxu0 }
 0x152   : > { %v1361_v44 = vpop.f32.mrf.mxu1 }
 0x153   : > { %v2145_v47 = vadd.f32 %v4169_v40, %v2013_v16  ;;  %v1362_v41 = vadd.f32 %v1361_v44, %v992_v35 }
 0x154   : > { %3300 = vmatmul.msk.bf16.gmra.mxu0 %vm726_vm1, %v4368_v13  ;;  %3416 = vmatmul.msk.bf16.gmra.mxu3 %vm726_vm1, %v4111_v20 }
 0x155   : > { %v2272_v50 = vadd.f32 %v2271_v14, %v2145_v47  ;;  %v2407_v6 = vmul.f32 %v2145_v47, %v2145_v47  ;;  %v3648_v52 = vpack.c.bf16 %v2145_v47, %v2144_v18  ;;  %3384 = vmatmul.msk.bf16.gmra.mxu1 %vm726_vm1, %v4350_v62  ;;  %3468 = vmatmul.msk.bf16.gmra.mxu2 %vm726_vm1, %v4386_v36 }
 0x157   : > { %v2534_v54 = vadd.f32 %v2533_v46, %v2407_v6  ;;  %3920 = vst [vmem:[%s4185_s17 + $0x58] sm:$0xff] %v3648_v52   ;;  %v4398_v58 = vpop.f32.mrf.mxu3  ;;  %v4404_v46 = vld [vmem:[%s4079_s11 + $0xc8] sm:$0xff] }
 0x158   : > { %5244 = vst [vmem:[#allocation5_spill] sm:$0xff] %v4398_v58  ;;  %v1730_v29 = vpop.f32.mrf.mxu2 }
 0x159   : > { %v2014_v60 = vadd.f32 %v1730_v29, %v1362_v41  ;;  %v994_v61 = vpop.f32.mrf.mxu0 }
 0x15a   : > { %v1363_v63 = vpop.f32.mrf.mxu1 }
 0x15b   : > { %v2146_v20 = vadd.f32 %v4169_v40, %v2014_v60  ;;  %v1364_v12 = vadd.f32 %v1363_v63, %v994_v61 }
 0x15d   : > { %v2273_v2 = vadd.f32 %v2272_v50, %v2146_v20  ;;  %v2408_v7 = vmul.f32 %v2146_v20, %v2146_v20 }
 0x15f   : > { %v2535_v11 = vadd.f32 %v2534_v54, %v2408_v7  ;;  %v4401_v18 = vpop.f32.mrf.mxu3 }
 0x160   : > { %5245 = vst [vmem:[#allocation6_spill] sm:$0xff] %v4401_v18  ;;  %v1732_v62 = vpop.f32.mrf.mxu2 }
 0x161   : > { %v2015_v14 = vadd.f32 %v1732_v62, %v1364_v12  ;;  %v997_v23 = vpop.f32.mrf.mxu0  ;;  %v4422_v12 = vld [vmem:[%s4079_s11 + $0xd0] sm:$0xff] }
 0x162   : > { %v1366_v27 = vpop.f32.mrf.mxu1 }
 0x163   : > { %v2147_v15 = vadd.f32 %v4169_v40, %v2015_v14  ;;  %v1367_v16 = vadd.f32 %v1366_v27, %v997_v23 }
 0x164   : > { %3301 = vmatmul.msk.bf16.gmra.mxu0 %vm726_vm1, %v4386_v36  ;;  %3417 = vmatmul.msk.bf16.gmra.mxu3 %vm726_vm1, %v4120_v22 }
 0x165   : > { %v2274_v35 = vadd.f32 %v2273_v2, %v2147_v15  ;;  %v2409_v44 = vmul.f32 %v2147_v15, %v2147_v15  ;;  %v3653_v47 = vpack.c.bf16 %v2147_v15, %v2146_v20  ;;  %3385 = vmatmul.msk.bf16.gmra.mxu1 %vm726_vm1, %v4368_v13  ;;  %3469 = vmatmul.msk.bf16.gmra.mxu2 %vm726_vm1, %v4404_v46 }
 0x167   : > { %v2536_v41 = vadd.f32 %v2535_v11, %v2409_v44  ;;  %3921 = vst [vmem:[%s4185_s17 + $0x60] sm:$0xff] %v3653_v47   ;;  %v4416_v50 = vpop.f32.mrf.mxu3 }
 0x168   : > { %5246 = vst [vmem:[#allocation7_spill] sm:$0xff] %v4416_v50  ;;  %v1735_v6 = vpop.f32.mrf.mxu2 }
 0x169   : > { %v2016_v52 = vadd.f32 %v1735_v6, %v1367_v16  ;;  %v999_v54 = vpop.f32.mrf.mxu0 }
 0x16a   : > { %v1368_v29 = vpop.f32.mrf.mxu1 }
 0x16b   : > { %v2148_v22 = vadd.f32 %v4169_v40, %v2016_v52  ;;  %v1369_v20 = vadd.f32 %v1368_v29, %v999_v54 }
 0x16d   : > { %v2275_v60 = vadd.f32 %v2274_v35, %v2148_v22  ;;  %v2410_v61 = vmul.f32 %v2148_v22, %v2148_v22 }
 0x16f   : > { %v2537_v63 = vadd.f32 %v2536_v41, %v2410_v61  ;;  %v4419_v2 = vpop.f32.mrf.mxu3 }
 0x170   : > { %5247 = vst [vmem:[#allocation8_spill] sm:$0xff] %v4419_v2  ;;  %v1737_v13 = vpop.f32.mrf.mxu2 }
 0x171   : > { %v2017_v7 = vadd.f32 %v1737_v13, %v1369_v20  ;;  %v1002_v11 = vpop.f32.mrf.mxu0  ;;  %v4440_v13 = vld [vmem:[%s4079_s11 + $0xd8] sm:$0xff] }
 0x172   : > { %v1371_v62 = vpop.f32.mrf.mxu1 }
 0x173   : > { %v2149_v14 = vadd.f32 %v4169_v40, %v2017_v7  ;;  %v1372_v23 = vadd.f32 %v1371_v62, %v1002_v11 }
 0x174   : > { %3302 = vmatmul.msk.bf16.gmra.mxu0 %vm726_vm1, %v4404_v46  ;;  %3418 = vmatmul.msk.bf16.gmra.mxu3 %vm726_vm1, %v4129_v24 }
 0x175   : > { %v2276_v27 = vadd.f32 %v2275_v60, %v2149_v14  ;;  %v2411_v15 = vmul.f32 %v2149_v14, %v2149_v14  ;;  %v3658_v16 = vpack.c.bf16 %v2149_v14, %v2148_v22  ;;  %3386 = vmatmul.msk.bf16.gmra.mxu1 %vm726_vm1, %v4386_v36  ;;  %3470 = vmatmul.msk.bf16.gmra.mxu2 %vm726_vm1, %v4422_v12 }
 0x177   : > { %v2538_v35 = vadd.f32 %v2537_v63, %v2411_v15  ;;  %3922 = vst [vmem:[%s4185_s17 + $0x68] sm:$0xff] %v3658_v16   ;;  %v4434_v44 = vpop.f32.mrf.mxu3 }
 0x178   : > { %5248 = vst [vmem:[#allocation9_spill] sm:$0xff] %v4434_v44  ;;  %v1740_v47 = vpop.f32.mrf.mxu2 }
 0x179   : > { %v2018_v41 = vadd.f32 %v1740_v47, %v1372_v23  ;;  %v1004_v6 = vpop.f32.mrf.mxu0 }
 0x17a   : > { %v1373_v52 = vpop.f32.mrf.mxu1 }
 0x17b   : > { %v2150_v24 = vadd.f32 %v4169_v40, %v2018_v41  ;;  %v1374_v60 = vadd.f32 %v1373_v52, %v1004_v6 }
 0x17d   : > { %v2277_v54 = vadd.f32 %v2276_v27, %v2150_v24  ;;  %v2412_v29 = vmul.f32 %v2150_v24, %v2150_v24 }
 0x17f   : > { %v2539_v22 = vadd.f32 %v2538_v35, %v2412_v29  ;;  %v4437_v61 = vpop.f32.mrf.mxu3 }
 0x180   : > { %5249 = vst [vmem:[#allocation10_spill] sm:$0xff] %v4437_v61  ;;  %v1742_v36 = vpop.f32.mrf.mxu2 }
 0x181   : > { %v2019_v20 = vadd.f32 %v1742_v36, %v1374_v60  ;;  %v1007_v63 = vpop.f32.mrf.mxu0 }
 0x182   : > { %v1376_v7 = vpop.f32.mrf.mxu1 }
 0x183   : > { %v2151_v11 = vadd.f32 %v4169_v40, %v2019_v20  ;;  %v1377_v62 = vadd.f32 %v1376_v7, %v1007_v63  ;;  %v4458_v20 = vld [vmem:[%s4079_s11 + $0xe0] sm:$0xff] }
 0x184   : > { %3303 = vmatmul.msk.bf16.gmra.mxu0 %vm726_vm1, %v4422_v12  ;;  %3419 = vmatmul.msk.bf16.gmra.mxu3 %vm726_vm1, %v4138_v26 }
 0x185   : > { %v2278_v14 = vadd.f32 %v2277_v54, %v2151_v11  ;;  %v2413_v23 = vmul.f32 %v2151_v11, %v2151_v11  ;;  %v3663_v27 = vpack.c.bf16 %v2151_v11, %v2150_v24  ;;  %3387 = vmatmul.msk.bf16.gmra.mxu1 %vm726_vm1, %v4404_v46  ;;  %3471 = vmatmul.msk.bf16.gmra.mxu2 %vm726_vm1, %v4440_v13 }
 0x187   : > { %v2540_v15 = vadd.f32 %v2539_v22, %v2413_v23  ;;  %3923 = vst [vmem:[%s4185_s17 + $0x70] sm:$0xff] %v3663_v27   ;;  %v4452_v16 = vpop.f32.mrf.mxu3 }
 0x188   : > { %5250 = vst [vmem:[#allocation11_spill] sm:$0xff] %v4452_v16  ;;  %v1745_v35 = vpop.f32.mrf.mxu2 }
 0x189   : > { %v2020_v47 = vadd.f32 %v1745_v35, %v1377_v62  ;;  %v1009_v41 = vpop.f32.mrf.mxu0 }
 0x18a   : > { %v1378_v6 = vpop.f32.mrf.mxu1 }
 0x18b   : > { %v2152_v26 = vadd.f32 %v4169_v40, %v2020_v47  ;;  %v1379_v29 = vadd.f32 %v1378_v6, %v1009_v41 }
 0x18d   : > { %v2279_v52 = vadd.f32 %v2278_v14, %v2152_v26  ;;  %v2414_v54 = vmul.f32 %v2152_v26, %v2152_v26 }
 0x18f   : > { %v2541_v24 = vadd.f32 %v2540_v15, %v2414_v54  ;;  %v4455_v60 = vpop.f32.mrf.mxu3 }
 0x190   : > { %5251 = vst [vmem:[#allocation12_spill] sm:$0xff] %v4455_v60  ;;  %v1747_v46 = vpop.f32.mrf.mxu2 }
 0x191   : > { %v2021_v36 = vadd.f32 %v1747_v46, %v1379_v29  ;;  %v1012_v22 = vpop.f32.mrf.mxu0 }
 0x192   : > { %v1381_v63 = vpop.f32.mrf.mxu1 }
 0x193   : > { %v2153_v7 = vadd.f32 %v4169_v40, %v2021_v36  ;;  %v1382_v11 = vadd.f32 %v1381_v63, %v1012_v22  ;;  %v4476_v22 = vld [vmem:[%s4079_s11 + $0xe8] sm:$0xff] }
 0x194   : > { %3304 = vmatmul.msk.bf16.gmra.mxu0 %vm726_vm1, %v4440_v13  ;;  %3420 = vmatmul.msk.bf16.gmra.mxu3 %vm726_vm1, %v4147_v28 }
 0x195   : > { %v2280_v62 = vadd.f32 %v2279_v52, %v2153_v7  ;;  %v2415_v14 = vmul.f32 %v2153_v7, %v2153_v7  ;;  %v3668_v23 = vpack.c.bf16 %v2153_v7, %v2152_v26  ;;  %3388 = vmatmul.msk.bf16.gmra.mxu1 %vm726_vm1, %v4422_v12  ;;  %3472 = vmatmul.msk.bf16.gmra.mxu2 %vm726_vm1, %v4458_v20 }
 0x197   : > { %v2542_v27 = vadd.f32 %v2541_v24, %v2415_v14  ;;  %3924 = vst [vmem:[%s4185_s17 + $0x78] sm:$0xff] %v3668_v23   ;;  %v4470_v15 = vpop.f32.mrf.mxu3 }
 0x198   : > { %v1750_v35 = vpop.f32.mrf.mxu2 }
 0x199   : > { %v2022_v47 = vadd.f32 %v1750_v35, %v1382_v11  ;;  %v1014_v41 = vpop.f32.mrf.mxu0 }
 0x19a   : > { %v1383_v6 = vpop.f32.mrf.mxu1 }
 0x19b   : > { %v2154_v28 = vadd.f32 %v4169_v40, %v2022_v47  ;;  %v1384_v29 = vadd.f32 %v1383_v6, %v1014_v41 }
 0x19d   : > { %v2281_v52 = vadd.f32 %v2280_v62, %v2154_v28  ;;  %v2416_v54 = vmul.f32 %v2154_v28, %v2154_v28 }
 0x19f   : > { %v2543_v26 = vadd.f32 %v2542_v27, %v2416_v54  ;;  %v4473_v46 = vpop.f32.mrf.mxu3 }
 0x1a0   : > { %v1752_v12 = vpop.f32.mrf.mxu2 }
 0x1a1   : > { %v2023_v36 = vadd.f32 %v1752_v12, %v1384_v29  ;;  %v1017_v24 = vpop.f32.mrf.mxu0 }
 0x1a2   : > { %v1386_v63 = vpop.f32.mrf.mxu1 }
 0x1a3   : > { %v2155_v7 = vadd.f32 %v4169_v40, %v2023_v36  ;;  %v1387_v11 = vadd.f32 %v1386_v63, %v1017_v24  ;;  %v4494_v63 = vld [vmem:[%s4079_s11 + $0xf0] sm:$0xff] }
 0x1a4   : > { %3305 = vmatmul.msk.bf16.gmra.mxu0 %vm726_vm1, %v4458_v20  ;;  %3421 = vmatmul.msk.bf16.gmra.mxu3 %vm726_vm1, %v4156_v30 }
 0x1a5   : > { %v2282_v62 = vadd.f32 %v2281_v52, %v2155_v7  ;;  %v2417_v14 = vmul.f32 %v2155_v7, %v2155_v7  ;;  %v3673_v23 = vpack.c.bf16 %v2155_v7, %v2154_v28  ;;  %3389 = vmatmul.msk.bf16.gmra.mxu1 %vm726_vm1, %v4440_v13  ;;  %3473 = vmatmul.msk.bf16.gmra.mxu2 %vm726_vm1, %v4476_v22 }
 0x1a7   : > { %v2544_v27 = vadd.f32 %v2543_v26, %v2417_v14  ;;  %3925 = vst [vmem:[%s4185_s17 + $0x80] sm:$0xff] %v3673_v23   ;;  %v4488_v35 = vpop.f32.mrf.mxu3 }
 0x1a8   : > { %v1755_v47 = vpop.f32.mrf.mxu2 }
 0x1a9   : > { %v2024_v41 = vadd.f32 %v1755_v47, %v1387_v11  ;;  %v1019_v6 = vpop.f32.mrf.mxu0 }
 0x1aa   : > { %v1388_v54 = vpop.f32.mrf.mxu1 }
 0x1ab   : > { %v2156_v30 = vadd.f32 %v4169_v40, %v2024_v41  ;;  %v1389_v12 = vadd.f32 %v1388_v54, %v1019_v6 }
 0x1ad   : > { %v2283_v52 = vadd.f32 %v2282_v62, %v2156_v30  ;;  %v2418_v29 = vmul.f32 %v2156_v30, %v2156_v30 }
 0x1af   : > { %v2545_v28 = vadd.f32 %v2544_v27, %v2418_v29  ;;  %v4491_v36 = vpop.f32.mrf.mxu3 }
 0x1b0   : > { %v1757_v13 = vpop.f32.mrf.mxu2 }
 0x1b1   : > { %v2025_v24 = vadd.f32 %v1757_v13, %v1389_v12  ;;  %v1022_v26 = vpop.f32.mrf.mxu0 }
 0x1b2   : > { %v1391_v7 = vpop.f32.mrf.mxu1 }
 0x1b3   : > { %v2157_v14 = vadd.f32 %v4169_v40, %v2025_v24  ;;  %v1392_v11 = vadd.f32 %v1391_v7, %v1022_v26 }
 0x1b4   : > { %3306 = vmatmul.msk.bf16.gmra.mxu0 %vm726_vm1, %v4476_v22  ;;  %3422 = vmatmul.msk.bf16.gmra.mxu3 %vm726_vm1, %v4175_v45 }
 0x1b5   : > { %v2284_v62 = vadd.f32 %v2283_v52, %v2157_v14  ;;  %v2419_v23 = vmul.f32 %v2157_v14, %v2157_v14  ;;  %v3678_v27 = vpack.c.bf16 %v2157_v14, %v2156_v30  ;;  %3390 = vmatmul.msk.bf16.gmra.mxu1 %vm726_vm1, %v4458_v20  ;;  %3474 = vmatmul.msk.bf16.gmra.mxu2 %vm726_vm1, %v4494_v63  ;;  %v4512_v14 = vld [vmem:[%s4079_s11 + $0xf8] sm:$0xff] }
 0x1b7   : > { %v2546_v47 = vadd.f32 %v2545_v28, %v2419_v23  ;;  %3926 = vst [vmem:[%s4185_s17 + $0x88] sm:$0xff] %v3678_v27   ;;  %v4506_v41 = vpop.f32.mrf.mxu3 }
 0x1b8   : > { %v1760_v6 = vpop.f32.mrf.mxu2 }
 0x1b9   : > { %v2026_v54 = vadd.f32 %v1760_v6, %v1392_v11  ;;  %v1024_v29 = vpop.f32.mrf.mxu0 }
 0x1ba   : > { %v1393_v12 = vpop.f32.mrf.mxu1 }
 0x1bb   : > { %v2158_v45 = vadd.f32 %v4169_v40, %v2026_v54  ;;  %v1394_v24 = vadd.f32 %v1393_v12, %v1024_v29 }
 0x1bd   : > { %v2285_v52 = vadd.f32 %v2284_v62, %v2158_v45  ;;  %v2420_v13 = vmul.f32 %v2158_v45, %v2158_v45 }
 0x1bf   : > { %v2547_v30 = vadd.f32 %v2546_v47, %v2420_v13  ;;  %v4509_v26 = vpop.f32.mrf.mxu3 }
 0x1c0   : > { %v1762_v20 = vpop.f32.mrf.mxu2 }
 0x1c1   : > { %v2027_v7 = vadd.f32 %v1762_v20, %v1394_v24  ;;  %v1027_v28 = vpop.f32.mrf.mxu0 }
 0x1c2   : > { %v1396_v23 = vpop.f32.mrf.mxu1 }
 0x1c3   : > { %v2159_v27 = vadd.f32 %v4169_v40, %v2027_v7  ;;  %v1397_v11 = vadd.f32 %v1396_v23, %v1027_v28 }
 0x1c4   : > { %3307 = vmatmul.msk.bf16.gmra.mxu0 %vm726_vm1, %v4494_v63  ;;  %3423 = vmatmul.msk.bf16.gmra.mxu3 %vm726_vm1, %v4200_v5  ;;  %v4529_v5 = vld [vmem:[%s5237_s2] ss:$0 sm:$0xff] }
 0x1c5   : > { %v2286_v62 = vadd.f32 %v2285_v52, %v2159_v27  ;;  %v2421_v47 = vmul.f32 %v2159_v27, %v2159_v27  ;;  %v3683_v6 = vpack.c.bf16 %v2159_v27, %v2158_v45  ;;  %3391 = vmatmul.msk.bf16.gmra.mxu1 %vm726_vm1, %v4476_v22  ;;  %3475 = vmatmul.msk.bf16.gmra.mxu2 %vm726_vm1, %v4512_v14 }
 0x1c7   : > { %v2548_v54 = vadd.f32 %v2547_v30, %v2421_v47  ;;  %3927 = vst [vmem:[%s4185_s17 + $0x90] sm:$0xff] %v3683_v6   ;;  %v4524_v40 = vpop.f32.mrf.mxu3 }
 0x1c8   : > { %v1765_v29 = vpop.f32.mrf.mxu2 }
 0x1c9   : > { %v2028_v12 = vadd.f32 %v1765_v29, %v1397_v11  ;;  %v1029_v13 = vpop.f32.mrf.mxu0  ;;  %v4535_v11 = vld [vmem:[%s4079_s11 + $0x100] sm:$0xff] }
 0x1ca   : > { %v1398_v24 = vpop.f32.mrf.mxu1 }
 0x1cb   : > { %v2160_v45 = vadd.f32 %v4529_v5, %v2028_v12  ;;  %v1399_v7 = vadd.f32 %v1398_v24, %v1029_v13 }
 0x1cd   : > { %v2287_v22 = vadd.f32 %v2286_v62, %v2160_v45  ;;  %v2422_v52 = vmul.f32 %v2160_v45, %v2160_v45 }
 0x1cf   : > { %v2549_v20 = vadd.f32 %v2548_v54, %v2422_v52  ;;  %v4532_v30 = vpop.f32.mrf.mxu3 }
 0x1d0   : > { %v1767_v28 = vpop.f32.mrf.mxu2 }
 0x1d1   : > { %v2029_v23 = vadd.f32 %v1767_v28, %v1399_v7  ;;  %v1032_v27 = vpop.f32.mrf.mxu0 }
 0x1d2   : > { %v1401_v47 = vpop.f32.mrf.mxu1 }
 0x1d3   : > { %v2161_v6 = vadd.f32 %v4529_v5, %v2029_v23  ;;  %v1402_v29 = vadd.f32 %v1401_v47, %v1032_v27 }
 0x1d4   : > { %3308 = vmatmul.msk.bf16.gmra.mxu0 %vm726_vm1, %v4512_v14  ;;  %3424 = vmatmul.msk.bf16.gmra.mxu3 %vm726_vm1, %v4220_v38 }
 0x1d5   : > { %v2288_v62 = vadd.f32 %v2287_v22, %v2161_v6  ;;  %v2423_v54 = vmul.f32 %v2161_v6, %v2161_v6  ;;  %v3688_v12 = vpack.c.bf16 %v2161_v6, %v2160_v45  ;;  %3392 = vmatmul.msk.bf16.gmra.mxu1 %vm726_vm1, %v4494_v63  ;;  %3476 = vmatmul.msk.bf16.gmra.mxu2 %vm726_vm1, %v4535_v11 }
 0x1d7   : > { %v2550_v13 = vadd.f32 %v2549_v20, %v2423_v54  ;;  %3928 = vst [vmem:[%s4185_s17 + $0x98] sm:$0xff] %v3688_v12   ;;  %v4547_v24 = vpop.f32.mrf.mxu3  ;;  %v4553_v54 = vld [vmem:[%s4079_s11 + $0x108] sm:$0xff] }
 0x1d8   : > { %v1770_v52 = vpop.f32.mrf.mxu2 }
 0x1d9   : > { %v2030_v7 = vadd.f32 %v1770_v52, %v1402_v29  ;;  %v1034_v28 = vpop.f32.mrf.mxu0 }
 0x1da   : > { %v1403_v23 = vpop.f32.mrf.mxu1 }
 0x1db   : > { %v2162_v38 = vadd.f32 %v4529_v5, %v2030_v7  ;;  %v1404_v47 = vadd.f32 %v1403_v23, %v1034_v28 }
 0x1dd   : > { %v2289_v22 = vadd.f32 %v2288_v62, %v2162_v38  ;;  %v2424_v27 = vmul.f32 %v2162_v38, %v2162_v38 }
 0x1df   : > { %v2551_v45 = vadd.f32 %v2550_v13, %v2424_v27  ;;  %v4550_v6 = vpop.f32.mrf.mxu3 }
 0x1e0   : > { %v1772_v63 = vpop.f32.mrf.mxu2 }
 0x1e1   : > { %v2031_v60 = vadd.f32 %v1772_v63, %v1404_v47  ;;  %v1037_v20 = vpop.f32.mrf.mxu0 }
 0x1e2   : > { %v1406_v12 = vpop.f32.mrf.mxu1 }
 0x1e3   : > { %v2163_v16 = vadd.f32 %v4529_v5, %v2031_v60  ;;  %v1407_v29 = vadd.f32 %v1406_v12, %v1037_v20 }
 0x1e4   : > { %3309 = vmatmul.msk.bf16.gmra.mxu0 %vm726_vm1, %v4535_v11  ;;  %3425 = vmatmul.msk.bf16.gmra.mxu3 %vm726_vm1, %v4241_v1 }
 0x1e5   : > { %v2290_v62 = vadd.f32 %v2289_v22, %v2163_v16  ;;  %v2425_v13 = vmul.f32 %v2163_v16, %v2163_v16  ;;  %v3693_v52 = vpack.c.bf16 %v2163_v16, %v2162_v38  ;;  %3393 = vmatmul.msk.bf16.gmra.mxu1 %vm726_vm1, %v4512_v14  ;;  %3477 = vmatmul.msk.bf16.gmra.mxu2 %vm726_vm1, %v4553_v54 }
 0x1e7   : > { %v2552_v7 = vadd.f32 %v2551_v45, %v2425_v13  ;;  %3929 = vst [vmem:[%s4185_s17 + $0xa0] sm:$0xff] %v3693_v52   ;;  %v4565_v60 = vpop.f32.mrf.mxu3  ;;  %v3549_v13 = vld [vmem:[%s4079_s11 + $0x110] sm:$0xff] }
 0x1e8   : > { %v1775_v28 = vpop.f32.mrf.mxu2 }
 0x1e9   : > { %v2032_v23 = vadd.f32 %v1775_v28, %v1407_v29  ;;  %v1039_v27 = vpop.f32.mrf.mxu0 }
 0x1ea   : > { %v1408_v47 = vpop.f32.mrf.mxu1 }
 0x1eb   : > { %v2164_v1 = vadd.f32 %v4529_v5, %v2032_v23  ;;  %v1409_v38 = vadd.f32 %v1408_v47, %v1039_v27 }
 0x1ed   : > { %v2291_v22 = vadd.f32 %v2290_v62, %v2164_v1  ;;  %v2426_v63 = vmul.f32 %v2164_v1, %v2164_v1 }
 0x1ef   : > { %v2553_v16 = vadd.f32 %v2552_v7, %v2426_v63  ;;  %v4568_v20 = vpop.f32.mrf.mxu3 }
 0x1f0   : > { %v1777_v14 = vpop.f32.mrf.mxu2 }
 0x1f1   : > { %v2033_v12 = vadd.f32 %v1777_v14, %v1409_v38  ;;  %v1042_v45 = vpop.f32.mrf.mxu0 }
 0x1f2   : > { %v1411_v52 = vpop.f32.mrf.mxu1 }
 0x1f3   : > { %v2165_v61 = vadd.f32 %v4529_v5, %v2033_v12  ;;  %v1412_v44 = vadd.f32 %v1411_v52, %v1042_v45  ;;  %v3550_v52 = vld [vmem:[%s4079_s11 + $0x118] sm:$0xff] }
 0x1f4   : > { %3310 = vmatmul.msk.bf16.gmra.mxu0 %vm726_vm1, %v4553_v54  ;;  %3426 = vmatmul.msk.bf16.gmra.mxu3 %vm726_vm1, %v4262_v39 }
 0x1f5   : > { %v2292_v29 = vadd.f32 %v2291_v22, %v2165_v61  ;;  %v2427_v62 = vmul.f32 %v2165_v61, %v2165_v61  ;;  %v3698_v7 = vpack.c.bf16 %v2165_v61, %v2164_v1  ;;  %3394 = vmatmul.msk.bf16.gmra.mxu1 %vm726_vm1, %v4535_v11  ;;  %3478 = vmatmul.msk.bf16.gmra.mxu2 %vm726_vm1, %v3549_v13 }
 0x1f7   : > { %v2554_v28 = vadd.f32 %v2553_v16, %v2427_v62  ;;  %3930 = vst [vmem:[%s4185_s17 + $0xa8] sm:$0xff] %v3698_v7   ;;  %v4580_v23 = vpop.f32.mrf.mxu3 }
 0x1f8   : > { %v1780_v27 = vpop.f32.mrf.mxu2 }
 0x1f9   : > { %v2034_v47 = vadd.f32 %v1780_v27, %v1412_v44  ;;  %v1044_v63 = vpop.f32.mrf.mxu0 }
 0x1fa   : > { %v1413_v38 = vpop.f32.mrf.mxu1 }
 0x1fb   : > { %v2166_v14 = vadd.f32 %v4529_v5, %v2034_v47  ;;  %v1414_v61 = vadd.f32 %v1413_v38, %v1044_v63 }
 0x1fd   : > { %v2293_v39 = vadd.f32 %v2292_v29, %v2166_v14  ;;  %v2428_v22 = vmul.f32 %v2166_v14, %v2166_v14 }
 0x1ff   : > { %v2555_v12 = vadd.f32 %v2554_v28, %v2428_v22  ;;  %v4583_v1 = vpop.f32.mrf.mxu3 }
 0x200   : > { %v1782_v11 = vpop.f32.mrf.mxu2 }
 0x201   : > { %v2035_v45 = vadd.f32 %v1782_v11, %v1414_v61  ;;  %v1047_v16 = vpop.f32.mrf.mxu0 }
 0x202   : > { %v1416_v62 = vpop.f32.mrf.mxu1 }
 0x203   : > { %v2167_v7 = vadd.f32 %v4529_v5, %v2035_v45  ;;  %v1417_v2 = vadd.f32 %v1416_v62, %v1047_v16  ;;  %v3551_v62 = vld [vmem:[%s4079_s11 + $0x120] sm:$0xff] }
 0x204   : > { %3311 = vmatmul.msk.bf16.gmra.mxu0 %vm726_vm1, %v3549_v13  ;;  %3427 = vmatmul.msk.bf16.gmra.mxu3 %vm726_vm1, %v4283_v9 }
 0x205   : > { %v2294_v44 = vadd.f32 %v2293_v39, %v2167_v7  ;;  %v2429_v29 = vmul.f32 %v2167_v7, %v2167_v7  ;;  %v3703_v28 = vpack.c.bf16 %v2167_v7, %v2166_v14  ;;  %3395 = vmatmul.msk.bf16.gmra.mxu1 %vm726_vm1, %v4553_v54  ;;  %3479 = vmatmul.msk.bf16.gmra.mxu2 %vm726_vm1, %v3550_v52  ;;  %v4602_v7 = vld [vmem:[%s4079_s11 + $0x130] sm:$0xff] }
 0x207   : > { %v2556_v27 = vadd.f32 %v2555_v12, %v2429_v29  ;;  %3931 = vst [vmem:[%s4185_s17 + $0xb0] sm:$0xff] %v3703_v28   ;;  %v4594_v47 = vpop.f32.mrf.mxu3  ;;  %v3552_v12 = vld [vmem:[%s4079_s11 + $0x128] sm:$0xff] }
 0x208   : > { %v1785_v63 = vpop.f32.mrf.mxu2 }
 0x209   : > { %v2036_v13 = vadd.f32 %v1785_v63, %v1417_v2  ;;  %v1049_v38 = vpop.f32.mrf.mxu0 }
 0x20a   : > { %v1418_v22 = vpop.f32.mrf.mxu1 }
 0x20b   : > { %v2168_v9 = vadd.f32 %v4529_v5, %v2036_v13  ;;  %v1419_v54 = vadd.f32 %v1418_v22, %v1049_v38 }
 0x20d   : > { %v2295_v14 = vadd.f32 %v2294_v44, %v2168_v9  ;;  %v2430_v39 = vmul.f32 %v2168_v9, %v2168_v9  ;;  %v3987_v44 = vld [vmem:[%s4079_s11 + $0x1c0] sm:$0xff] }
 0x20f   : > { %v2557_v61 = vadd.f32 %v2556_v27, %v2430_v39  ;;  %v4597_v11 = vpop.f32.mrf.mxu3 }
 0x210   : > { %v1787_v45 = vpop.f32.mrf.mxu2 }
 0x211   : > { %v2037_v16 = vadd.f32 %v1787_v45, %v1419_v54  ;;  %v1052_v52 = vpop.f32.mrf.mxu0 }
 0x212   : > { %v1421_v2 = vpop.f32.mrf.mxu1 }
 0x213   : > { %v2169_v29 = vadd.f32 %v4529_v5, %v2037_v16  ;;  %v1422_v28 = vadd.f32 %v1421_v2, %v1052_v52 }
 0x214   : > { %3312 = vmatmul.msk.bf16.gmra.mxu0 %vm726_vm1, %v3552_v12  ;;  %3496 = vmatmul.msk.bf16.vlgmr.msra.gmra.mxu3 %vm726_vm1, %v3987_v44 }
 0x215   : > { %v2296_v27 = vadd.f32 %v2295_v14, %v2169_v29  ;;  %v2431_v63 = vmul.f32 %v2169_v29, %v2169_v29  ;;  %v3708_v13 = vpack.c.bf16 %v2169_v29, %v2168_v9  ;;  %3396 = vmatmul.msk.bf16.gmra.mxu1 %vm726_vm1, %v3551_v62  ;;  %3480 = vmatmul.msk.bf16.gmra.mxu2 %vm726_vm1, %v4602_v7 }
 0x217   : > { %v2558_v38 = vadd.f32 %v2557_v61, %v2431_v63  ;;  %3932 = vst [vmem:[%s4185_s17 + $0xb8] sm:$0xff] %v3708_v13   ;;  %v4612_v22 = vpop.f32.mrf.mxu3  ;;  %v4618_v13 = vld [vmem:[%s4079_s11 + $0x138] sm:$0xff] }
 0x218   : > { %v1790_v39 = vpop.f32.mrf.mxu2 }
 0x219   : > { %v2038_v54 = vadd.f32 %v1790_v39, %v1422_v28  ;;  %v1054_v45 = vpop.f32.mrf.mxu0 }
 0x21a   : > { %v1423_v16 = vpop.f32.mrf.mxu1 }
 0x21b   : > { %v2170_v52 = vadd.f32 %v4529_v5, %v2038_v54  ;;  %v1424_v29 = vadd.f32 %v1423_v16, %v1054_v45  ;;  %v3988_v54 = vld [vmem:[%s4079_s11 + $0x1c8] sm:$0xff] }
 0x21d   : > { %v2297_v14 = vadd.f32 %v2296_v27, %v2170_v52  ;;  %v2432_v2 = vmul.f32 %v2170_v52, %v2170_v52 }
 0x21f   : > { %v2559_v9 = vadd.f32 %v2558_v38, %v2432_v2  ;;  %v4615_v62 = vpop.f32.mrf.mxu3 }
 0x220   : > { %v1792_v44 = vpop.f32.mrf.mxu2 }
 0x221   : > { %v2039_v61 = vadd.f32 %v1792_v44, %v1424_v29  ;;  %v1057_v63 = vpop.f32.mrf.mxu0 }
 0x222   : > { %v1426_v50 = vpop.f32.mrf.mxu1 }
 0x223   : > { %v2171_v28 = vadd.f32 %v4529_v5, %v2039_v61  ;;  %v1427_v39 = vadd.f32 %v1426_v50, %v1057_v63 }
 0x224   : > { %3313 = vmatmul.msk.bf16.gmra.mxu0 %vm726_vm1, %v4602_v7  ;;  %3497 = vmatmul.msk.bf16.gmra.mxu3 %vm726_vm1, %v3988_v54 }
 0x225   : > { %v2298_v27 = vadd.f32 %v2297_v14, %v2171_v28  ;;  %v2433_v38 = vmul.f32 %v2171_v28, %v2171_v28  ;;  %v3713_v45 = vpack.c.bf16 %v2171_v28, %v2170_v52  ;;  %3397 = vmatmul.msk.bf16.gmra.mxu1 %vm726_vm1, %v3552_v12  ;;  %3481 = vmatmul.msk.bf16.gmra.mxu2 %vm726_vm1, %v4618_v13 }
 0x227   : > { %v2560_v16 = vadd.f32 %v2559_v9, %v2433_v38  ;;  %3933 = vst [vmem:[%s4185_s17 + $0xc0] sm:$0xff] %v3713_v45   ;;  %v4629_v2 = vpop.f32.mrf.mxu3  ;;  %v4635_v45 = vld [vmem:[%s4079_s11 + $0x140] sm:$0xff] }
 0x228   : > { %v1795_v50 = vpop.f32.mrf.mxu2 }
 0x229   : > { %v2040_v29 = vadd.f32 %v1795_v50, %v1427_v39  ;;  %v1059_v44 = vpop.f32.mrf.mxu0 }
 0x22a   : > { %v1428_v61 = vpop.f32.mrf.mxu1 }
 0x22b   : > { %v2172_v63 = vadd.f32 %v4529_v5, %v2040_v29  ;;  %v1429_v28 = vadd.f32 %v1428_v61, %v1059_v44  ;;  %v3989_v29 = vld [vmem:[%s4079_s11 + $0x1d0] sm:$0xff] }
 0x22d   : > { %v2299_v14 = vadd.f32 %v2298_v27, %v2172_v63  ;;  %v2434_v54 = vmul.f32 %v2172_v63, %v2172_v63 }
 0x22f   : > { %v2561_v52 = vadd.f32 %v2560_v16, %v2434_v54  ;;  %v4632_v12 = vpop.f32.mrf.mxu3 }
 0x230   : > { %v1797_v18 = vpop.f32.mrf.mxu2 }
 0x231   : > { %v2041_v9 = vadd.f32 %v1797_v18, %v1429_v28  ;;  %v1062_v38 = vpop.f32.mrf.mxu0 }
 0x232   : > { %v1431_v58 = vpop.f32.mrf.mxu1 }
 0x233   : > { %v2173_v39 = vadd.f32 %v4529_v5, %v2041_v9  ;;  %v1432_v50 = vadd.f32 %v1431_v58, %v1062_v38 }
 0x234   : > { %3314 = vmatmul.msk.bf16.gmra.mxu0 %vm726_vm1, %v4618_v13  ;;  %3498 = vmatmul.msk.bf16.gmra.mxu3 %vm726_vm1, %v3989_v29 }
 0x235   : > { %v2300_v27 = vadd.f32 %v2299_v14, %v2173_v39  ;;  %v2435_v16 = vmul.f32 %v2173_v39, %v2173_v39  ;;  %v3718_v44 = vpack.c.bf16 %v2173_v39, %v2172_v63  ;;  %3398 = vmatmul.msk.bf16.gmra.mxu1 %vm726_vm1, %v4602_v7  ;;  %3482 = vmatmul.msk.bf16.gmra.mxu2 %vm726_vm1, %v4635_v45 }
 0x237   : > { %v2562_v18 = vadd.f32 %v2561_v52, %v2435_v16  ;;  %3934 = vst [vmem:[%s4185_s17 + $0xc8] sm:$0xff] %v3718_v44   ;;  %v4647_v61 = vpop.f32.mrf.mxu3  ;;  %v4653_v44 = vld [vmem:[%s4079_s11 + $0x148] sm:$0xff] }
 0x238   : > { %5252 = vst [vmem:[#allocation13_spill] sm:$0xff] %v4647_v61  ;;  %v1800_v58 = vpop.f32.mrf.mxu2  ;;  %v4761_v61 = vld [vmem:[%s4079_s11 + $0x178] sm:$0xff] }
 0x239   : > { %v2042_v54 = vadd.f32 %v1800_v58, %v1432_v50  ;;  %v1064_v28 = vpop.f32.mrf.mxu0 }
 0x23a   : > { %v1433_v9 = vpop.f32.mrf.mxu1 }
 0x23b   : > { %v2174_v14 = vadd.f32 %v4529_v5, %v2042_v54  ;;  %v1434_v29 = vadd.f32 %v1433_v9, %v1064_v28  ;;  %v3990_v54 = vld [vmem:[%s4079_s11 + $0x1d8] sm:$0xff] }
 0x23d   : > { %v2301_v38 = vadd.f32 %v2300_v27, %v2174_v14  ;;  %v2436_v63 = vmul.f32 %v2174_v14, %v2174_v14 }
 0x23f   : > { %v2563_v39 = vadd.f32 %v2562_v18, %v2436_v63  ;;  %v4650_v7 = vpop.f32.mrf.mxu3 }
 0x240   : > { %5253 = vst [vmem:[#allocation14_spill] sm:$0xff] %v4650_v7  ;;  %v1802_v33 = vpop.f32.mrf.mxu2 }
 0x241   : > { %v2043_v52 = vadd.f32 %v1802_v33, %v1434_v29  ;;  %v1067_v16 = vpop.f32.mrf.mxu0 }
 0x242   : > { %v1436_v0 = vpop.f32.mrf.mxu1 }
 0x243   : > { %v2175_v50 = vadd.f32 %v4529_v5, %v2043_v52  ;;  %v1437_v58 = vadd.f32 %v1436_v0, %v1067_v16 }
 0x244   : > { %3315 = vmatmul.msk.bf16.gmra.mxu0 %vm726_vm1, %v4635_v45  ;;  %3499 = vmatmul.msk.bf16.gmra.mxu3 %vm726_vm1, %v3990_v54 }
 0x245   : > { %v2302_v27 = vadd.f32 %v2301_v38, %v2175_v50  ;;  %v2437_v18 = vmul.f32 %v2175_v50, %v2175_v50  ;;  %v3723_v28 = vpack.c.bf16 %v2175_v50, %v2174_v14  ;;  %3399 = vmatmul.msk.bf16.gmra.mxu1 %vm726_vm1, %v4618_v13  ;;  %3483 = vmatmul.msk.bf16.gmra.mxu2 %vm726_vm1, %v4653_v44 }
 0x247   : > { %v2564_v33 = vadd.f32 %v2563_v39, %v2437_v18  ;;  %3935 = vst [vmem:[%s4185_s17 + $0xd0] sm:$0xff] %v3723_v28   ;;  %v4665_v9 = vpop.f32.mrf.mxu3  ;;  %v4671_v28 = vld [vmem:[%s4079_s11 + $0x150] sm:$0xff] }
 0x248   : > { %5254 = vst [vmem:[#allocation15_spill] sm:$0xff] %v4665_v9  ;;  %v1805_v0 = vpop.f32.mrf.mxu2 }
 0x249   : > { %v2044_v63 = vadd.f32 %v1805_v0, %v1437_v58  ;;  %v1069_v29 = vpop.f32.mrf.mxu0 }
 0x24a   : > { %v1438_v52 = vpop.f32.mrf.mxu1 }
 0x24b   : > { %v2176_v38 = vadd.f32 %v4529_v5, %v2044_v63  ;;  %v1439_v54 = vadd.f32 %v1438_v52, %v1069_v29  ;;  %v3991_v63 = vld [vmem:[%s4079_s11 + $0x1e0] sm:$0xff] }
 0x24d   : > { %v2303_v16 = vadd.f32 %v2302_v27, %v2176_v38  ;;  %v2438_v14 = vmul.f32 %v2176_v38, %v2176_v38 }
 0x24f   : > { %v2565_v50 = vadd.f32 %v2564_v33, %v2438_v14  ;;  %v4668_v13 = vpop.f32.mrf.mxu3 }
 0x250   : > { %5255 = vst [vmem:[#allocation16_spill] sm:$0xff] %v4668_v13  ;;  %v1807_v7 = vpop.f32.mrf.mxu2 }
 0x251   : > { %v2045_v39 = vadd.f32 %v1807_v7, %v1439_v54  ;;  %v1072_v18 = vpop.f32.mrf.mxu0 }
 0x252   : > { %v1441_v9 = vpop.f32.mrf.mxu1 }
 0x253   : > { %v2177_v58 = vadd.f32 %v4529_v5, %v2045_v39  ;;  %v1442_v0 = vadd.f32 %v1441_v9, %v1072_v18 }
 0x254   : > { %3316 = vmatmul.msk.bf16.gmra.mxu0 %vm726_vm1, %v4653_v44  ;;  %3500 = vmatmul.msk.bf16.gmra.mxu3 %vm726_vm1, %v3991_v63 }
 0x255   : > { %v2304_v27 = vadd.f32 %v2303_v16, %v2177_v58  ;;  %v2439_v33 = vmul.f32 %v2177_v58, %v2177_v58  ;;  %v3728_v29 = vpack.c.bf16 %v2177_v58, %v2176_v38  ;;  %3400 = vmatmul.msk.bf16.gmra.mxu1 %vm726_vm1, %v4635_v45  ;;  %3484 = vmatmul.msk.bf16.gmra.mxu2 %vm726_vm1, %v4671_v28 }
 0x257   : > { %v2566_v7 = vadd.f32 %v2565_v50, %v2439_v33  ;;  %3936 = vst [vmem:[%s4185_s17 + $0xd8] sm:$0xff] %v3728_v29   ;;  %v4683_v52 = vpop.f32.mrf.mxu3  ;;  %v4689_v29 = vld [vmem:[%s4079_s11 + $0x158] sm:$0xff] }
 0x258   : > { %5256 = vst [vmem:[#allocation17_spill] sm:$0xff] %v4683_v52  ;;  %v1810_v9 = vpop.f32.mrf.mxu2 }
 0x259   : > { %v2046_v14 = vadd.f32 %v1810_v9, %v1442_v0  ;;  %v1074_v54 = vpop.f32.mrf.mxu0 }
 0x25a   : > { %v1443_v39 = vpop.f32.mrf.mxu1 }
 0x25b   : > { %v2178_v16 = vadd.f32 %v4529_v5, %v2046_v14  ;;  %v1444_v63 = vadd.f32 %v1443_v39, %v1074_v54  ;;  %v3992_v14 = vld [vmem:[%s4079_s11 + $0x1e8] sm:$0xff] }
 0x25d   : > { %v2305_v18 = vadd.f32 %v2304_v27, %v2178_v16  ;;  %v2440_v38 = vmul.f32 %v2178_v16, %v2178_v16 }
 0x25f   : > { %v2567_v58 = vadd.f32 %v2566_v7, %v2440_v38  ;;  %v4686_v45 = vpop.f32.mrf.mxu3 }
 0x260   : > { %5257 = vst [vmem:[#allocation18_spill] sm:$0xff] %v4686_v45  ;;  %v1812_v13 = vpop.f32.mrf.mxu2 }
 0x261   : > { %v2047_v50 = vadd.f32 %v1812_v13, %v1444_v63  ;;  %v1077_v33 = vpop.f32.mrf.mxu0 }
 0x262   : > { %v1446_v52 = vpop.f32.mrf.mxu1 }
 0x263   : > { %v2179_v0 = vadd.f32 %v4529_v5, %v2047_v50  ;;  %v1447_v9 = vadd.f32 %v1446_v52, %v1077_v33 }
 0x264   : > { %3317 = vmatmul.msk.bf16.gmra.mxu0 %vm726_vm1, %v4671_v28  ;;  %3501 = vmatmul.msk.bf16.gmra.mxu3 %vm726_vm1, %v3992_v14 }
 0x265   : > { %v2306_v27 = vadd.f32 %v2305_v18, %v2179_v0  ;;  %v2441_v7 = vmul.f32 %v2179_v0, %v2179_v0  ;;  %v3733_v54 = vpack.c.bf16 %v2179_v0, %v2178_v16  ;;  %3401 = vmatmul.msk.bf16.gmra.mxu1 %vm726_vm1, %v4653_v44  ;;  %3485 = vmatmul.msk.bf16.gmra.mxu2 %vm726_vm1, %v4689_v29 }
 0x267   : > { %v2568_v13 = vadd.f32 %v2567_v58, %v2441_v7  ;;  %3937 = vst [vmem:[%s4185_s17 + $0xe0] sm:$0xff] %v3733_v54   ;;  %v4701_v39 = vpop.f32.mrf.mxu3  ;;  %v4707_v54 = vld [vmem:[%s4079_s11 + $0x160] sm:$0xff] }
 0x268   : > { %5258 = vst [vmem:[#allocation19_spill] sm:$0xff] %v4701_v39  ;;  %v1815_v52 = vpop.f32.mrf.mxu2 }
 0x269   : > { %v2048_v38 = vadd.f32 %v1815_v52, %v1447_v9  ;;  %v1079_v63 = vpop.f32.mrf.mxu0 }
 0x26a   : > { %v1448_v50 = vpop.f32.mrf.mxu1 }
 0x26b   : > { %v2180_v18 = vadd.f32 %v4529_v5, %v2048_v38  ;;  %v1449_v14 = vadd.f32 %v1448_v50, %v1079_v63  ;;  %v3993_v38 = vld [vmem:[%s4079_s11 + $0x1f0] sm:$0xff] }
 0x26d   : > { %v2307_v33 = vadd.f32 %v2306_v27, %v2180_v18  ;;  %v2442_v16 = vmul.f32 %v2180_v18, %v2180_v18 }
 0x26f   : > { %v2569_v0 = vadd.f32 %v2568_v13, %v2442_v16  ;;  %v4704_v44 = vpop.f32.mrf.mxu3 }
 0x270   : > { %5259 = vst [vmem:[#allocation20_spill] sm:$0xff] %v4704_v44  ;;  %v1817_v45 = vpop.f32.mrf.mxu2 }
 0x271   : > { %v2049_v58 = vadd.f32 %v1817_v45, %v1449_v14  ;;  %v1082_v7 = vpop.f32.mrf.mxu0 }
 0x272   : > { %v1451_v39 = vpop.f32.mrf.mxu1 }
 0x273   : > { %v2181_v9 = vadd.f32 %v4529_v5, %v2049_v58  ;;  %v1452_v52 = vadd.f32 %v1451_v39, %v1082_v7 }
 0x274   : > { %3318 = vmatmul.msk.bf16.gmra.mxu0 %vm726_vm1, %v4689_v29  ;;  %3502 = vmatmul.msk.bf16.gmra.mxu3 %vm726_vm1, %v3993_v38 }
 0x275   : > { %v2308_v27 = vadd.f32 %v2307_v33, %v2181_v9  ;;  %v2443_v13 = vmul.f32 %v2181_v9, %v2181_v9  ;;  %v3738_v63 = vpack.c.bf16 %v2181_v9, %v2180_v18  ;;  %3402 = vmatmul.msk.bf16.gmra.mxu1 %vm726_vm1, %v4671_v28  ;;  %3486 = vmatmul.msk.bf16.gmra.mxu2 %vm726_vm1, %v4707_v54 }
 0x277   : > { %v2570_v45 = vadd.f32 %v2569_v0, %v2443_v13  ;;  %3938 = vst [vmem:[%s4185_s17 + $0xe8] sm:$0xff] %v3738_v63   ;;  %v4719_v50 = vpop.f32.mrf.mxu3  ;;  %v4725_v63 = vld [vmem:[%s4079_s11 + $0x168] sm:$0xff] }
 0x278   : > { %5260 = vst [vmem:[#allocation21_spill] sm:$0xff] %v4719_v50  ;;  %v1820_v39 = vpop.f32.mrf.mxu2 }
 0x279   : > { %v2050_v16 = vadd.f32 %v1820_v39, %v1452_v52  ;;  %v1084_v14 = vpop.f32.mrf.mxu0 }
 0x27a   : > { %v1453_v58 = vpop.f32.mrf.mxu1 }
 0x27b   : > { %v2182_v33 = vadd.f32 %v4529_v5, %v2050_v16  ;;  %v1454_v38 = vadd.f32 %v1453_v58, %v1084_v14  ;;  %v3994_v16 = vld [vmem:[%s4079_s11 + $0x1f8] sm:$0xff] }
 0x27d   : > { %v2309_v7 = vadd.f32 %v2308_v27, %v2182_v33  ;;  %v2444_v18 = vmul.f32 %v2182_v33, %v2182_v33 }
 0x27f   : > { %v2571_v9 = vadd.f32 %v2570_v45, %v2444_v18  ;;  %v4722_v28 = vpop.f32.mrf.mxu3 }
 0x280   : > { %5261 = vst [vmem:[#allocation22_spill] sm:$0xff] %v4722_v28  ;;  %v1822_v44 = vpop.f32.mrf.mxu2 }
 0x281   : > { %v2051_v0 = vadd.f32 %v1822_v44, %v1454_v38  ;;  %v1087_v13 = vpop.f32.mrf.mxu0 }
 0x282   : > { %v1456_v50 = vpop.f32.mrf.mxu1 }
 0x283   : > { %v2183_v52 = vadd.f32 %v4529_v5, %v2051_v0  ;;  %v1457_v39 = vadd.f32 %v1456_v50, %v1087_v13 }
 0x284   : > { %3319 = vmatmul.msk.bf16.gmra.mxu0 %vm726_vm1, %v4707_v54  ;;  %3503 = vmatmul.msk.bf16.gmra.mxu3 %vm726_vm1, %v3994_v16 }
 0x285   : > { %v2310_v27 = vadd.f32 %v2309_v7, %v2183_v52  ;;  %v2445_v45 = vmul.f32 %v2183_v52, %v2183_v52  ;;  %v3743_v14 = vpack.c.bf16 %v2183_v52, %v2182_v33  ;;  %3403 = vmatmul.msk.bf16.gmra.mxu1 %vm726_vm1, %v4689_v29  ;;  %3487 = vmatmul.msk.bf16.gmra.mxu2 %vm726_vm1, %v4725_v63 }
 0x287   : > { %v2572_v44 = vadd.f32 %v2571_v9, %v2445_v45  ;;  %3939 = vst [vmem:[%s4185_s17 + $0xf0] sm:$0xff] %v3743_v14   ;;  %v4737_v58 = vpop.f32.mrf.mxu3  ;;  %v4743_v14 = vld [vmem:[%s4079_s11 + $0x170] sm:$0xff] }
 0x288   : > { %5262 = vst [vmem:[#allocation23_spill] sm:$0xff] %v4737_v58  ;;  %v1825_v50 = vpop.f32.mrf.mxu2 }
 0x289   : > { %v2052_v18 = vadd.f32 %v1825_v50, %v1457_v39  ;;  %v1089_v38 = vpop.f32.mrf.mxu0 }
 0x28a   : > { %v1458_v0 = vpop.f32.mrf.mxu1 }
 0x28b   : > { %v2184_v7 = vadd.f32 %v4529_v5, %v2052_v18  ;;  %v1459_v16 = vadd.f32 %v1458_v0, %v1089_v38  ;;  %v3995_v18 = vld [vmem:[%s4079_s11 + $0x200] sm:$0xff] }
 0x28d   : > { %v2311_v13 = vadd.f32 %v2310_v27, %v2184_v7  ;;  %v2446_v33 = vmul.f32 %v2184_v7, %v2184_v7 }
 0x28f   : > { %v2573_v52 = vadd.f32 %v2572_v44, %v2446_v33  ;;  %v4740_v29 = vpop.f32.mrf.mxu3 }
 0x290   : > { %5263 = vst [vmem:[#allocation24_spill] sm:$0xff] %v4740_v29  ;;  %v1827_v28 = vpop.f32.mrf.mxu2 }
 0x291   : > { %v2053_v9 = vadd.f32 %v1827_v28, %v1459_v16  ;;  %v1092_v45 = vpop.f32.mrf.mxu0 }
 0x292   : > { %v1461_v58 = vpop.f32.mrf.mxu1 }
 0x293   : > { %v2185_v39 = vadd.f32 %v4529_v5, %v2053_v9  ;;  %v1462_v50 = vadd.f32 %v1461_v58, %v1092_v45 }
 0x294   : > { %3320 = vmatmul.msk.bf16.gmra.mxu0 %vm726_vm1, %v4725_v63  ;;  %3504 = vmatmul.msk.bf16.gmra.mxu3 %vm726_vm1, %v3995_v18 }
 0x295   : > { %v2312_v27 = vadd.f32 %v2311_v13, %v2185_v39  ;;  %v2447_v44 = vmul.f32 %v2185_v39, %v2185_v39  ;;  %v3748_v38 = vpack.c.bf16 %v2185_v39, %v2184_v7  ;;  %3404 = vmatmul.msk.bf16.gmra.mxu1 %vm726_vm1, %v4707_v54  ;;  %3488 = vmatmul.msk.bf16.gmra.mxu2 %vm726_vm1, %v4743_v14 }
 0x296   : > { %v1542_v13 = vadd.f32 %v4470_v15, %v4164_v34  ;;  %v1544_v54 = vadd.f32 %v4473_v46, %v4171_v42 }
 0x297   : > { %v2574_v28 = vadd.f32 %v2573_v52, %v2447_v44  ;;  %3940 = vst [vmem:[%s4185_s17 + $0xf8] sm:$0xff] %v3748_v38   ;;  %v1910_v0 = vpop.f32.mrf.mxu3 }
 0x298   : > { %v1830_v33 = vpop.f32.mrf.mxu2  ;;  %v2086_v18 = vadd.f32 %v1910_v0, %v1542_v13 }
 0x299   : > { %v2054_v58 = vadd.f32 %v1830_v33, %v1462_v50  ;;  %v1094_v16 = vpop.f32.mrf.mxu0 }
 0x29a   : > { %v1463_v9 = vpop.f32.mrf.mxu1 }
 0x29b   : > { %v2186_v45 = vadd.f32 %v4529_v5, %v2054_v58  ;;  %v1464_v44 = vadd.f32 %v1463_v9, %v1094_v16  ;;  %v4764_v58 = vadd.f32 %v4529_v5, %v2086_v18 }
 0x29d   : > { %v2313_v7 = vadd.f32 %v2312_v27, %v2186_v45  ;;  %v2448_v39 = vmul.f32 %v2186_v45, %v2186_v45 }
 0x29f   : > { %v2575_v52 = vadd.f32 %v2574_v28, %v2448_v39  ;;  %v1912_v38 = vpop.f32.mrf.mxu3 }
 0x2a0   : > { %v1832_v29 = vpop.f32.mrf.mxu2  ;;  %v2087_v50 = vadd.f32 %v1912_v38, %v1544_v54 }
 0x2a1   : > { %v2055_v33 = vadd.f32 %v1832_v29, %v1464_v44  ;;  %v1097_v49 = vpop.f32.mrf.mxu0  ;;  %v3996_v29 = vld [vmem:[%s4079_s11 + $0x208] sm:$0xff] }
 0x2a2   : > { %v4767_v34 = vadd.f32 %v4529_v5, %v2087_v50  ;;  %v1466_v42 = vpop.f32.mrf.mxu1 }
 0x2a3   : > { %v2187_v15 = vadd.f32 %v4529_v5, %v2055_v33  ;;  %v1467_v27 = vadd.f32 %v1466_v42, %v1097_v49 }
 0x2a4   : > { %v3833_v46 = vpack.c.bf16 %v4767_v34, %v4764_v58  ;;  %3321 = vmatmul.msk.bf16.gmra.mxu0 %vm726_vm1, %v4743_v14  ;;  %3505 = vmatmul.msk.bf16.gmra.mxu3 %vm726_vm1, %v3996_v29 }
 0x2a5   : > { %v2314_v28 = vadd.f32 %v2313_v7, %v2187_v15  ;;  %v2449_v0 = vmul.f32 %v2187_v15, %v2187_v15  ;;  %v3753_v16 = vpack.c.bf16 %v2187_v15, %v2186_v45  ;;  %3405 = vmatmul.msk.bf16.gmra.mxu1 %vm726_vm1, %v4725_v63  ;;  %3489 = vmatmul.msk.bf16.gmra.mxu2 %vm726_vm1, %v4761_v61 }
 0x2a6   : > { %3957 = vst [vmem:[%s4185_s17 + $0x180] sm:$0xff] %v3833_v46   ;;  %v1547_v45 = vadd.f32 %v4488_v35, %v4194_v57  ;;  %v1549_v63 = vadd.f32 %v4491_v36, %v4197_v3 }
 0x2a7   : > { %v2576_v9 = vadd.f32 %v2575_v52, %v2449_v0  ;;  %3941 = vst [vmem:[%s4185_s17 + $0x100] sm:$0xff] %v3753_v16   ;;  %v1915_v13 = vpop.f32.mrf.mxu3  ;;  %v4788_v0 = vld [vmem:[%s4079_s11 + $0x180] sm:$0xff] }
 0x2a8   : > { %v1835_v49 = vpop.f32.mrf.mxu2  ;;  %v2088_v50 = vadd.f32 %v1915_v13, %v1547_v45 }
 0x2a9   : > { %v2056_v39 = vadd.f32 %v1835_v49, %v1467_v27  ;;  %v1099_v54 = vpop.f32.mrf.mxu0 }
 0x2aa   : > { %v1468_v18 = vpop.f32.mrf.mxu1  ;;  %v4791_v16 = vadd.f32 %v4529_v5, %v2088_v50 }
 0x2ab   : > { %v2188_v44 = vadd.f32 %v4529_v5, %v2056_v39  ;;  %v1469_v33 = vadd.f32 %v1468_v18, %v1099_v54 }
 0x2ad   : > { %v2315_v7 = vadd.f32 %v2314_v28, %v2188_v44  ;;  %v2450_v38 = vmul.f32 %v2188_v44, %v2188_v44 }
 0x2af   : > { %v2577_v52 = vadd.f32 %v2576_v9, %v2450_v38  ;;  %v1917_v42 = vpop.f32.mrf.mxu3  ;;  %v3997_v9 = vld [vmem:[%s4079_s11 + $0x210] sm:$0xff] }
 0x2b0   : > { %v1837_v15 = vpop.f32.mrf.mxu2  ;;  %v2089_v46 = vadd.f32 %v1917_v42, %v1549_v63 }
 0x2b1   : > { %v2057_v27 = vadd.f32 %v1837_v15, %v1469_v33  ;;  %v1102_v29 = vpop.f32.mrf.mxu0 }
 0x2b2   : > { %v4794_v57 = vadd.f32 %v4529_v5, %v2089_v46  ;;  %v1471_v3 = vpop.f32.mrf.mxu1 }
 0x2b3   : > { %v2189_v35 = vadd.f32 %v4529_v5, %v2057_v27  ;;  %v1472_v28 = vadd.f32 %v1471_v3, %v1102_v29 }
 0x2b4   : > { %v3838_v36 = vpack.c.bf16 %v4794_v57, %v4791_v16  ;;  %3322 = vmatmul.msk.bf16.gmra.mxu0 %vm726_vm1, %v4761_v61  ;;  %3506 = vmatmul.msk.bf16.gmra.mxu3 %vm726_vm1, %v3997_v9 }
 0x2b5   : > { %v2316_v13 = vadd.f32 %v2315_v7, %v2189_v35  ;;  %v2451_v49 = vmul.f32 %v2189_v35, %v2189_v35  ;;  %v3758_v39 = vpack.c.bf16 %v2189_v35, %v2188_v44  ;;  %3406 = vmatmul.msk.bf16.gmra.mxu1 %vm726_vm1, %v4743_v14  ;;  %3490 = vmatmul.msk.bf16.gmra.mxu2 %vm726_vm1, %v4788_v0 }
 0x2b6   : > { %3958 = vst [vmem:[%s4185_s17 + $0x188] sm:$0xff] %v3838_v36   ;;  %v1552_v44 = vadd.f32 %v4506_v41, %v4214_v19  ;;  %v1554_v14 = vadd.f32 %v4509_v26, %v4217_v32 }
 0x2b7   : > { %v2578_v54 = vadd.f32 %v2577_v52, %v2451_v49  ;;  %3942 = vst [vmem:[%s4185_s17 + $0x108] sm:$0xff] %v3758_v39   ;;  %v1920_v18 = vpop.f32.mrf.mxu3  ;;  %v3998_v49 = vld [vmem:[%s4079_s11 + $0x218] sm:$0xff] }
 0x2b8   : > { %v1840_v45 = vpop.f32.mrf.mxu2  ;;  %v2090_v15 = vadd.f32 %v1920_v18, %v1552_v44 }
 0x2b9   : > { %v2058_v38 = vadd.f32 %v1840_v45, %v1472_v28  ;;  %v1104_v63 = vpop.f32.mrf.mxu0  ;;  %v4815_v28 = vld [vmem:[%s4079_s11 + $0x188] sm:$0xff] }
 0x2ba   : > { %v1473_v50 = vpop.f32.mrf.mxu1  ;;  %v4818_v9 = vadd.f32 %v4529_v5, %v2090_v15 }
 0x2bb   : > { %v2190_v33 = vadd.f32 %v4529_v5, %v2058_v38  ;;  %v1474_v46 = vadd.f32 %v1473_v50, %v1104_v63 }
 0x2bd   : > { %v2317_v7 = vadd.f32 %v2316_v13, %v2190_v33  ;;  %v2452_v42 = vmul.f32 %v2190_v33, %v2190_v33 }
 0x2bf   : > { %v2579_v52 = vadd.f32 %v2578_v54, %v2452_v42  ;;  %v1922_v27 = vpop.f32.mrf.mxu3 }
 0x2c0   : > { %v1842_v29 = vpop.f32.mrf.mxu2  ;;  %v2091_v3 = vadd.f32 %v1922_v27, %v1554_v14 }
 0x2c1   : > { %v2059_v35 = vadd.f32 %v1842_v29, %v1474_v46  ;;  %v1107_v36 = vpop.f32.mrf.mxu0 }
 0x2c2   : > { %v4821_v19 = vadd.f32 %v4529_v5, %v2091_v3  ;;  %v1476_v32 = vpop.f32.mrf.mxu1 }
 0x2c3   : > { %v2191_v41 = vadd.f32 %v4529_v5, %v2059_v35  ;;  %v1477_v13 = vadd.f32 %v1476_v32, %v1107_v36 }
 0x2c4   : > { %v3843_v26 = vpack.c.bf16 %v4821_v19, %v4818_v9  ;;  %3323 = vmatmul.msk.bf16.gmra.mxu0 %vm726_vm1, %v4788_v0  ;;  %3507 = vmatmul.msk.bf16.gmra.mxu3 %vm726_vm1, %v3998_v49  ;;  %v3999_v49 = vld [vmem:[%s4079_s11 + $0x220] sm:$0xff] }
 0x2c5   : > { %v2318_v39 = vadd.f32 %v2317_v7, %v2191_v41  ;;  %v2453_v54 = vmul.f32 %v2191_v41, %v2191_v41  ;;  %v3763_v18 = vpack.c.bf16 %v2191_v41, %v2190_v33  ;;  %3407 = vmatmul.msk.bf16.gmra.mxu1 %vm726_vm1, %v4761_v61  ;;  %3491 = vmatmul.msk.bf16.gmra.mxu2 %vm726_vm1, %v4815_v28  ;;  %v4842_v41 = vld [vmem:[%s4079_s11 + $0x190] sm:$0xff] }
 0x2c6   : > { %3959 = vst [vmem:[%s4185_s17 + $0x190] sm:$0xff] %v3843_v26   ;;  %v1557_v33 = vadd.f32 %v4524_v40, %v4235_v53  ;;  %v1559_v61 = vadd.f32 %v4532_v30, %v4238_v48 }
 0x2c7   : > { %v2580_v45 = vadd.f32 %v2579_v52, %v2453_v54  ;;  %3943 = vst [vmem:[%s4185_s17 + $0x110] sm:$0xff] %v3763_v18   ;;  %v1925_v38 = vpop.f32.mrf.mxu3 }
 0x2c8   : > { %v1845_v63 = vpop.f32.mrf.mxu2  ;;  %v2092_v46 = vadd.f32 %v1925_v38, %v1557_v33 }
 0x2c9   : > { %v2060_v50 = vadd.f32 %v1845_v63, %v1477_v13  ;;  %v1109_v44 = vpop.f32.mrf.mxu0 }
 0x2ca   : > { %v1478_v42 = vpop.f32.mrf.mxu1  ;;  %v4845_v26 = vadd.f32 %v4529_v5, %v2092_v46 }
 0x2cb   : > { %v2192_v14 = vadd.f32 %v4529_v5, %v2060_v50  ;;  %v1479_v27 = vadd.f32 %v1478_v42, %v1109_v44 }
 0x2cd   : > { %v2319_v7 = vadd.f32 %v2318_v39, %v2192_v14  ;;  %v2454_v15 = vmul.f32 %v2192_v14, %v2192_v14 }
 0x2cf   : > { %v2581_v52 = vadd.f32 %v2580_v45, %v2454_v15  ;;  %v1927_v29 = vpop.f32.mrf.mxu3 }
 0x2d0   : > { %v1847_v3 = vpop.f32.mrf.mxu2  ;;  %v2093_v35 = vadd.f32 %v1927_v29, %v1559_v61 }
 0x2d1   : > { %v2061_v36 = vadd.f32 %v1847_v3, %v1479_v27  ;;  %v1112_v32 = vpop.f32.mrf.mxu0 }
 0x2d2   : > { %v4848_v53 = vadd.f32 %v4529_v5, %v2093_v35  ;;  %v1481_v48 = vpop.f32.mrf.mxu1 }
 0x2d3   : > { %v2193_v40 = vadd.f32 %v4529_v5, %v2061_v36  ;;  %v1482_v13 = vadd.f32 %v1481_v48, %v1112_v32  ;;  %v4869_v32 = vld [vmem:[%s4079_s11 + $0x198] sm:$0xff] }
 0x2d4   : > { %v3848_v30 = vpack.c.bf16 %v4848_v53, %v4845_v26  ;;  %3324 = vmatmul.msk.bf16.gmra.mxu0 %vm726_vm1, %v4815_v28  ;;  %3508 = vmatmul.msk.bf16.gmra.mxu3 %vm726_vm1, %v3999_v49 }
 0x2d5   : > { %v2320_v39 = vadd.f32 %v2319_v7, %v2193_v40  ;;  %v2455_v54 = vmul.f32 %v2193_v40, %v2193_v40  ;;  %v3768_v18 = vpack.c.bf16 %v2193_v40, %v2192_v14  ;;  %3408 = vmatmul.msk.bf16.gmra.mxu1 %vm726_vm1, %v4788_v0  ;;  %3492 = vmatmul.msk.bf16.gmra.mxu2 %vm726_vm1, %v4842_v41 }
 0x2d6   : > { %3960 = vst [vmem:[%s4185_s17 + $0x198] sm:$0xff] %v3848_v30   ;;  %v1562_v14 = vadd.f32 %v4547_v24, %v4256_v17  ;;  %v1564_v0 = vadd.f32 %v4550_v6, %v4259_v8  ;;  %v4000_v30 = vld [vmem:[%s4079_s11 + $0x228] sm:$0xff] }
 0x2d7   : > { %v2582_v45 = vadd.f32 %v2581_v52, %v2455_v54  ;;  %3944 = vst [vmem:[%s4185_s17 + $0x118] sm:$0xff] %v3768_v18   ;;  %v1930_v38 = vpop.f32.mrf.mxu3 }
 0x2d8   : > { %v1850_v63 = vpop.f32.mrf.mxu2  ;;  %v2094_v61 = vadd.f32 %v1930_v38, %v1562_v14  ;;  %v1569_v14 = vadd.f32 %v4568_v20, %v4280_v43 }
 0x2d9   : > { %v2062_v50 = vadd.f32 %v1850_v63, %v1482_v13  ;;  %v1114_v44 = vpop.f32.mrf.mxu0 }
 0x2da   : > { %v1483_v42 = vpop.f32.mrf.mxu1  ;;  %v4872_v48 = vadd.f32 %v4529_v5, %v2094_v61 }
 0x2db   : > { %v2194_v33 = vadd.f32 %v4529_v5, %v2062_v50  ;;  %v1484_v52 = vadd.f32 %v1483_v42, %v1114_v44  ;;  %v4893_v50 = vld [vmem:[%s5237_s2] ss:$0 sm:$0xff] }
 0x2dd   : > { %v2321_v7 = vadd.f32 %v2320_v39, %v2194_v33  ;;  %v2456_v15 = vmul.f32 %v2194_v33, %v2194_v33 }
 0x2df   : > { %v2583_v46 = vadd.f32 %v2582_v45, %v2456_v15  ;;  %v1932_v27 = vpop.f32.mrf.mxu3 }
 0x2e0   : > { %v1852_v29 = vpop.f32.mrf.mxu2  ;;  %v2095_v3 = vadd.f32 %v1932_v27, %v1564_v0 }
 0x2e1   : > { %v2063_v35 = vadd.f32 %v1852_v29, %v1484_v52  ;;  %v1117_v36 = vpop.f32.mrf.mxu0 }
 0x2e2   : > { %v4875_v17 = vadd.f32 %v4529_v5, %v2095_v3  ;;  %v1486_v8 = vpop.f32.mrf.mxu1  ;;  %v3567_v3 = vld [vmem:[%s4079_s11 + $0x1a0] sm:$0xff] }
 0x2e3   : > { %v2195_v24 = vadd.f32 %v4529_v5, %v2063_v35  ;;  %v1487_v40 = vadd.f32 %v1486_v8, %v1117_v36  ;;  %v4002_v8 = vld [vmem:[%s4079_s11 + $0x230] sm:$0xff] }
 0x2e4   : > { %v3853_v6 = vpack.c.bf16 %v4875_v17, %v4872_v48  ;;  %3325 = vmatmul.msk.bf16.gmra.mxu0 %vm726_vm1, %v4842_v41  ;;  %3509 = vmatmul.msk.bf16.gmra.mxu3 %vm726_vm1, %v4000_v30 }
 0x2e5   : > { %v2322_v13 = vadd.f32 %v2321_v7, %v2195_v24  ;;  %v2457_v49 = vmul.f32 %v2195_v24, %v2195_v24  ;;  %v3773_v39 = vpack.c.bf16 %v2195_v24, %v2194_v33  ;;  %3409 = vmatmul.msk.bf16.gmra.mxu1 %vm726_vm1, %v4815_v28  ;;  %3493 = vmatmul.msk.bf16.gmra.mxu2 %vm726_vm1, %v4869_v32 }
 0x2e6   : > { %3961 = vst [vmem:[%s4185_s17 + $0x1a0] sm:$0xff] %v3853_v6   ;;  %v1567_v28 = vadd.f32 %v4565_v60, %v4277_v56 }
 0x2e7   : > { %v2584_v5 = vadd.f32 %v2583_v46, %v2457_v49  ;;  %3945 = vst [vmem:[%s4185_s17 + $0x120] sm:$0xff] %v3773_v39   ;;  %v1935_v54 = vpop.f32.mrf.mxu3 }
 0x2e8   : > { %v1855_v18 = vpop.f32.mrf.mxu2  ;;  %v2096_v7 = vadd.f32 %v1935_v54, %v1567_v28 }
 0x2e9   : > { %v2064_v45 = vadd.f32 %v1855_v18, %v1487_v40  ;;  %v1119_v38 = vpop.f32.mrf.mxu0 }
 0x2ea   : > { %v1488_v63 = vpop.f32.mrf.mxu1  ;;  %v4902_v35 = vadd.f32 %v4893_v50, %v2096_v7 }
 0x2eb   : > { %v2196_v44 = vadd.f32 %v4893_v50, %v2064_v45  ;;  %v1489_v0 = vadd.f32 %v1488_v63, %v1119_v38  ;;  %v1572_v45 = vadd.f32 %v4580_v23, %v4295_v31 }
 0x2ed   : > { %v2323_v42 = vadd.f32 %v2322_v13, %v2196_v44  ;;  %v2458_v33 = vmul.f32 %v2196_v44, %v2196_v44 }
 0x2ef   : > { %v2585_v15 = vadd.f32 %v2584_v5, %v2458_v33  ;;  %v1937_v61 = vpop.f32.mrf.mxu3 }
 0x2f0   : > { %v1857_v46 = vpop.f32.mrf.mxu2  ;;  %v2097_v52 = vadd.f32 %v1937_v61, %v1569_v14 }
 0x2f1   : > { %v2065_v27 = vadd.f32 %v1857_v46, %v1489_v0  ;;  %v1122_v29 = vpop.f32.mrf.mxu0  ;;  %v3568_v46 = vld [vmem:[%s4079_s11 + $0x1a8] sm:$0xff] }
 0x2f2   : > { %v4905_v56 = vadd.f32 %v4893_v50, %v2097_v52  ;;  %v1491_v60 = vpop.f32.mrf.mxu1 }
 0x2f3   : > { %v2197_v43 = vadd.f32 %v4893_v50, %v2065_v27  ;;  %v1492_v36 = vadd.f32 %v1491_v60, %v1122_v29 }
 0x2f4   : > { %v3858_v20 = vpack.c.bf16 %v4905_v56, %v4902_v35  ;;  %3326 = vmatmul.msk.bf16.gmra.mxu0 %vm726_vm1, %v4869_v32  ;;  %3510 = vmatmul.msk.bf16.gmra.mxu3 %vm726_vm1, %v4002_v8 }
 0x2f5   : > { %v2324_v24 = vadd.f32 %v2323_v42, %v2197_v43  ;;  %v2459_v6 = vmul.f32 %v2197_v43, %v2197_v43  ;;  %v3778_v40 = vpack.c.bf16 %v2197_v43, %v2196_v44  ;;  %3410 = vmatmul.msk.bf16.gmra.mxu1 %vm726_vm1, %v4842_v41  ;;  %3494 = vmatmul.msk.bf16.gmra.mxu2 %vm726_vm1, %v3567_v3 }
 0x2f6   : > { %3962 = vst [vmem:[%s4185_s17 + $0x1a8] sm:$0xff] %v3858_v20   ;;  %v1574_v41 = vadd.f32 %v4583_v1, %v4298_v51 }
 0x2f7   : > { %v2586_v30 = vadd.f32 %v2585_v15, %v2459_v6  ;;  %3946 = vst [vmem:[%s4185_s17 + $0x128] sm:$0xff] %v3778_v40   ;;  %v1940_v13 = vpop.f32.mrf.mxu3  ;;  %v3586_v15 = vld [vmem:[%s4079_s11 + $0x238] sm:$0xff] }
 0x2f8   : > { %v1860_v49 = vpop.f32.mrf.mxu2  ;;  %v2098_v44 = vadd.f32 %v1940_v13, %v1572_v45 }
 0x2f9   : > { %v2066_v39 = vadd.f32 %v1860_v49, %v1492_v36  ;;  %v1124_v5 = vpop.f32.mrf.mxu0 }
 0x2fa   : > { %v1493_v54 = vpop.f32.mrf.mxu1  ;;  %v4927_v52 = vadd.f32 %v4893_v50, %v2098_v44 }
 0x2fb   : > { %v2198_v18 = vadd.f32 %v4893_v50, %v2066_v39  ;;  %v1494_v42 = vadd.f32 %v1493_v54, %v1124_v5 }
 0x2fd   : > { %v2325_v38 = vadd.f32 %v2324_v24, %v2198_v18  ;;  %v2460_v63 = vmul.f32 %v2198_v18, %v2198_v18 }
 0x2ff   : > { %v2587_v28 = vadd.f32 %v2586_v30, %v2460_v63  ;;  %v1942_v33 = vpop.f32.mrf.mxu3  ;;  %v1577_v30 = vadd.f32 %v4594_v47, %v4309_v4 }
 0x300   : > { %v1862_v14 = vpop.f32.mrf.mxu2  ;;  %v2099_v7 = vadd.f32 %v1942_v33, %v1574_v41 }
 0x301   : > { %v2067_v0 = vadd.f32 %v1862_v14, %v1494_v42  ;;  %v1127_v61 = vpop.f32.mrf.mxu0 }
 0x302   : > { %v4930_v31 = vadd.f32 %v4893_v50, %v2099_v7  ;;  %v1496_v23 = vpop.f32.mrf.mxu1 }
 0x303   : > { %v2199_v51 = vadd.f32 %v4893_v50, %v2067_v0  ;;  %v1497_v27 = vadd.f32 %v1496_v23, %v1127_v61 }
 0x304   : > { %v3863_v1 = vpack.c.bf16 %v4930_v31, %v4927_v52  ;;  %3327 = vmatmul.msk.bf16.gmra.mxu0 %vm726_vm1, %v3567_v3  ;;  %3511 = vmatmul.msk.bf16.gmra.mxu3 %vm726_vm1, %v3586_v15 }
 0x305   : > { %v2326_v29 = vadd.f32 %v2325_v38, %v2199_v51  ;;  %v2461_v60 = vmul.f32 %v2199_v51, %v2199_v51  ;;  %v3783_v43 = vpack.c.bf16 %v2199_v51, %v2198_v18  ;;  %3411 = vmatmul.msk.bf16.gmra.mxu1 %vm726_vm1, %v4869_v32  ;;  %3495 = vmatmul.msk.bf16.gmra.mxu2 %vm726_vm1, %v3568_v46 }
 0x306   : > { %3963 = vst [vmem:[%s4185_s17 + $0x1b0] sm:$0xff] %v3863_v1   ;;  %v1579_v32 = vadd.f32 %v4597_v11, %v4312_v25  ;;  %v1582_v1 = vadd.f32 %v4612_v22, %v4327_v55 }
 0x307   : > { %v2588_v20 = vadd.f32 %v2587_v28, %v2461_v60  ;;  %3947 = vst [vmem:[%s4185_s17 + $0x130] sm:$0xff] %v3783_v43   ;;  %v1945_v36 = vpop.f32.mrf.mxu3  ;;  %v1584_v60 = vadd.f32 %v4615_v62, %v4330_v10 }
 0x308   : > { %v1865_v8 = vpop.f32.mrf.mxu2  ;;  %v2100_v39 = vadd.f32 %v1945_v36, %v1577_v30 }
 0x309   : > { %v2068_v24 = vadd.f32 %v1865_v8, %v1497_v27  ;;  %v1129_v6 = vpop.f32.mrf.mxu0 }
 0x30a   : > { %v1498_v40 = vpop.f32.mrf.mxu1  ;;  %v4948_v44 = vadd.f32 %v4893_v50, %v2100_v39 }
 0x30b   : > { %v2200_v3 = vadd.f32 %v4893_v50, %v2068_v24  ;;  %v1499_v54 = vadd.f32 %v1498_v40, %v1129_v6 }
 0x30d   : > { %v2327_v13 = vadd.f32 %v2326_v29, %v2200_v3  ;;  %v2462_v49 = vmul.f32 %v2200_v3, %v2200_v3 }
 0x30f   : > { %v2589_v5 = vadd.f32 %v2588_v20, %v2462_v49  ;;  %v1947_v18 = vpop.f32.mrf.mxu3 }
 0x310   : > { %v1867_v45 = vpop.f32.mrf.mxu2  ;;  %v2101_v38 = vadd.f32 %v1947_v18, %v1579_v32 }
 0x311   : > { %v2069_v63 = vadd.f32 %v1867_v45, %v1499_v54  ;;  %v1132_v41 = vpop.f32.mrf.mxu0 }
 0x312   : > { %v4951_v4 = vadd.f32 %v4893_v50, %v2101_v38  ;;  %v1501_v47 = vpop.f32.mrf.mxu1 }
 0x313   : > { %v2201_v28 = vadd.f32 %v4893_v50, %v2069_v63  ;;  %v1502_v14 = vadd.f32 %v1501_v47, %v1132_v41  ;;  %v1587_v47 = vadd.f32 %v4629_v2, %v4344_v37 }
 0x314   : > { %v3868_v25 = vpack.c.bf16 %v4951_v4, %v4948_v44 }
 0x315   : > { %v2328_v11 = vadd.f32 %v2327_v13, %v2201_v28  ;;  %v2463_v42 = vmul.f32 %v2201_v28, %v2201_v28  ;;  %v3788_v33 = vpack.c.bf16 %v2201_v28, %v2200_v3 }
 0x316   : > { %3964 = vst [vmem:[%s4185_s17 + $0x1b8] sm:$0xff] %v3868_v25  }
 0x317   : > { %v2590_v7 = vadd.f32 %v2589_v5, %v2463_v42  ;;  %3948 = vst [vmem:[%s4185_s17 + $0x138] sm:$0xff] %v3788_v33   ;;  %v1950_v15 = vpop.f32.mrf.mxu3 }
 0x318   : > { %v1870_v0 = vpop.f32.mrf.mxu2  ;;  %v2102_v43 = vadd.f32 %v1950_v15, %v1582_v1 }
 0x319   : > { %v2070_v61 = vadd.f32 %v1870_v0, %v1502_v14  ;;  %v1134_v46 = vpop.f32.mrf.mxu0 }
 0x31a   : > { %v1503_v23 = vpop.f32.mrf.mxu1  ;;  %v4964_v30 = vadd.f32 %v4893_v50, %v2102_v43 }
 0x31b   : > { %v2202_v51 = vadd.f32 %v4893_v50, %v2070_v61  ;;  %v1504_v36 = vadd.f32 %v1503_v23, %v1134_v46 }
 0x31d   : > { %v2329_v27 = vadd.f32 %v2328_v11, %v2202_v51  ;;  %v2464_v29 = vmul.f32 %v2202_v51, %v2202_v51  ;;  %v1589_v11 = vadd.f32 %v4632_v12, %v4347_v59 }
 0x31f   : > { %v2591_v20 = vadd.f32 %v2590_v7, %v2464_v29  ;;  %v1952_v8 = vpop.f32.mrf.mxu3 }
 0x320   : > { %v1872_v24 = vpop.f32.mrf.mxu2  ;;  %v2103_v6 = vadd.f32 %v1952_v8, %v1584_v60 }
 0x321   : > { %v2071_v40 = vadd.f32 %v1872_v24, %v1504_v36  ;;  %v1137_v3 = vpop.f32.mrf.mxu0  ;;  %v5264_v24 = vld [vmem:[#allocation13_spill] sm:$0xff] }
 0x322   : > { %v4967_v55 = vadd.f32 %v4893_v50, %v2103_v6  ;;  %v1506_v22 = vpop.f32.mrf.mxu1  ;;  %v1592_v6 = vadd.f32 %v5264_v24, %v4362_v21 }
 0x323   : > { %v2203_v13 = vadd.f32 %v4893_v50, %v2071_v40  ;;  %v1507_v39 = vadd.f32 %v1506_v22, %v1137_v3  ;;  %v5265_v40 = vld [vmem:[#allocation2_spill] sm:$0xff] }
 0x324   : > { %v3873_v10 = vpack.c.bf16 %v4967_v55, %v4964_v30  ;;  %v5266_v3 = vld [vmem:[#allocation14_spill] sm:$0xff] }
 0x325   : > { %v2330_v62 = vadd.f32 %v2329_v27, %v2203_v13  ;;  %v2465_v49 = vmul.f32 %v2203_v13, %v2203_v13  ;;  %v3793_v32 = vpack.c.bf16 %v2203_v13, %v2202_v51  ;;  %v1594_v22 = vadd.f32 %v5266_v3, %v5265_v40 }
 0x326   : > { %3965 = vst [vmem:[%s4185_s17 + $0x1c0] sm:$0xff] %v3873_v10  }
 0x327   : > { %v2592_v5 = vadd.f32 %v2591_v20, %v2465_v49  ;;  %3949 = vst [vmem:[%s4185_s17 + $0x140] sm:$0xff] %v3793_v32   ;;  %v1955_v54 = vpop.f32.mrf.mxu3 }
 0x328   : > { %v1875_v18 = vpop.f32.mrf.mxu2  ;;  %v2104_v42 = vadd.f32 %v1955_v54, %v1587_v47 }
 0x329   : > { %v2072_v45 = vadd.f32 %v1875_v18, %v1507_v39  ;;  %v1139_v38 = vpop.f32.mrf.mxu0 }
 0x32a   : > { %v1508_v63 = vpop.f32.mrf.mxu1  ;;  %v4980_v23 = vadd.f32 %v4893_v50, %v2104_v42 }
 0x32b   : > { %v2204_v41 = vadd.f32 %v4893_v50, %v2072_v45  ;;  %v1509_v14 = vadd.f32 %v1508_v63, %v1139_v38 }
 0x32d   : > { %v2331_v28 = vadd.f32 %v2330_v62, %v2204_v41  ;;  %v2466_v25 = vmul.f32 %v2204_v41, %v2204_v41 }
 0x32f   : > { %v2593_v33 = vadd.f32 %v2592_v5, %v2466_v25  ;;  %v1957_v7 = vpop.f32.mrf.mxu3 }
 0x330   : > { %v1877_v15 = vpop.f32.mrf.mxu2  ;;  %v2105_v0 = vadd.f32 %v1957_v7, %v1589_v11  ;;  %v5268_v7 = vld [vmem:[#allocation15_spill] sm:$0xff] }
 0x331   : > { %v2073_v61 = vadd.f32 %v1877_v15, %v1509_v14  ;;  %v1142_v46 = vpop.f32.mrf.mxu0  ;;  %v5267_v14 = vld [vmem:[#allocation3_spill] sm:$0xff] }
 0x332   : > { %v4983_v37 = vadd.f32 %v4893_v50, %v2105_v0  ;;  %v1511_v2 = vpop.f32.mrf.mxu1  ;;  %v1597_v15 = vadd.f32 %v5268_v7, %v5267_v14  ;;  %v5269_v0 = vld [vmem:[#allocation4_spill] sm:$0xff] }
 0x333   : > { %v2205_v51 = vadd.f32 %v4893_v50, %v2073_v61  ;;  %v1512_v8 = vadd.f32 %v1511_v2, %v1142_v46  ;;  %v5270_v61 = vld [vmem:[#allocation16_spill] sm:$0xff] }
 0x334   : > { %v3878_v59 = vpack.c.bf16 %v4983_v37, %v4980_v23  ;;  %v1599_v46 = vadd.f32 %v5270_v61, %v5269_v0 }
 0x335   : > { %v4988_v12 = vadd.f32 %v2331_v28, %v2205_v51  ;;  %v2467_v1 = vmul.f32 %v2205_v51, %v2205_v51  ;;  %v3798_v27 = vpack.c.bf16 %v2205_v51, %v2204_v41 }
 0x336   : > { %3966 = vst [vmem:[%s4185_s17 + $0x1c8] sm:$0xff] %v3878_v59  }
 0x337   : > { %v4991_v29 = vadd.f32 %v2593_v33, %v2467_v1  ;;  %3950 = vst [vmem:[%s4185_s17 + $0x148] sm:$0xff] %v3798_v27   ;;  %v1960_v60 = vpop.f32.mrf.mxu3 }
 0x338   : > { %v1880_v43 = vpop.f32.mrf.mxu2  ;;  %v2106_v13 = vadd.f32 %v1960_v60, %v1592_v6 }
 0x339   : > { %v1144_v20 = vpop.f32.mrf.mxu0  ;;  %v2074_v10 = vadd.f32 %v1880_v43, %v1512_v8 }
 0x33a   : > { %v1513_v36 = vpop.f32.mrf.mxu1  ;;  %v4999_v18 = vadd.f32 %v4893_v50, %v2106_v13 }
 0x33b   : > { %v1514_v62 = vadd.f32 %v1513_v36, %v1144_v20  ;;  %v5005_v38 = vadd.f32 %v4893_v50, %v2074_v10 }
 0x33f   : > { %v1962_v49 = vpop.f32.mrf.mxu3 }
 0x340   : > { %v1882_v32 = vpop.f32.mrf.mxu2  ;;  %v2107_v39 = vadd.f32 %v1962_v49, %v1594_v22 }
 0x341   : > { %v2075_v5 = vadd.f32 %v1882_v32, %v1514_v62  ;;  %v1147_v54 = vpop.f32.mrf.mxu0 }
 0x342   : > { %v5002_v45 = vadd.f32 %v4893_v50, %v2107_v39  ;;  %v1516_v21 = vpop.f32.mrf.mxu1  ;;  %v5271_v39 = vld [vmem:[#allocation5_spill] sm:$0xff] }
 0x343   : > { %v5008_v63 = vadd.f32 %v4893_v50, %v2075_v5  ;;  %v1517_v33 = vadd.f32 %v1516_v21, %v1147_v54  ;;  %v5272_v5 = vld [vmem:[#allocation17_spill] sm:$0xff]  ;;  %v5273_v21 = vld [vmem:[#allocation6_spill] sm:$0xff] }
 0x344   : > { %v3883_v41 = vpack.c.bf16 %v5002_v45, %v4999_v18  ;;  %v1602_v54 = vadd.f32 %v5272_v5, %v5271_v39 }
 0x345   : > { %v3803_v47 = vpack.c.bf16 %v5008_v63, %v5005_v38 }
 0x346   : > { %3967 = vst [vmem:[%s4185_s17 + $0x1d0] sm:$0xff] %v3883_v41   ;;  %v5274_v41 = vld [vmem:[#allocation18_spill] sm:$0xff] }
 0x347   : > { %3951 = vst [vmem:[%s4185_s17 + $0x150] sm:$0xff] %v3803_v47   ;;  %v1965_v28 = vpop.f32.mrf.mxu3  ;;  %v1604_v47 = vadd.f32 %v5274_v41, %v5273_v21 }
 0x348   : > { %v1885_v25 = vpop.f32.mrf.mxu2  ;;  %v2108_v2 = vadd.f32 %v1965_v28, %v1597_v15 }
 0x349   : > { %v1149_v11 = vpop.f32.mrf.mxu0  ;;  %v2076_v51 = vadd.f32 %v1885_v25, %v1517_v33 }
 0x34a   : > { %v1518_v42 = vpop.f32.mrf.mxu1  ;;  %v5021_v36 = vadd.f32 %v4893_v50, %v2108_v2 }
 0x34b   : > { %v1519_v59 = vadd.f32 %v1518_v42, %v1149_v11  ;;  %v5027_v6 = vadd.f32 %v4893_v50, %v2076_v51 }
 0x34f   : > { %v1967_v1 = vpop.f32.mrf.mxu3 }
 0x350   : > { %v1887_v27 = vpop.f32.mrf.mxu2  ;;  %v2109_v60 = vadd.f32 %v1967_v1, %v1599_v46 }
 0x351   : > { %v2077_v43 = vadd.f32 %v1887_v27, %v1519_v59  ;;  %v1152_v20 = vpop.f32.mrf.mxu0 }
 0x352   : > { %v5024_v8 = vadd.f32 %v4893_v50, %v2109_v60  ;;  %v1521_v24 = vpop.f32.mrf.mxu1 }
 0x353   : > { %v5030_v40 = vadd.f32 %v4893_v50, %v2077_v43  ;;  %v1522_v32 = vadd.f32 %v1521_v24, %v1152_v20 }
 0x354   : > { %v3888_v3 = vpack.c.bf16 %v5024_v8, %v5021_v36 }
 0x355   : > { %v3808_v22 = vpack.c.bf16 %v5030_v40, %v5027_v6 }
 0x356   : > { %3968 = vst [vmem:[%s4185_s17 + $0x1d8] sm:$0xff] %v3888_v3   ;;  %v5275_v3 = vld [vmem:[#allocation7_spill] sm:$0xff] }
 0x357   : > { %3952 = vst [vmem:[%s4185_s17 + $0x158] sm:$0xff] %v3808_v22   ;;  %v1970_v13 = vpop.f32.mrf.mxu3  ;;  %v5276_v22 = vld [vmem:[#allocation19_spill] sm:$0xff] }
 0x358   : > { %v1890_v10 = vpop.f32.mrf.mxu2  ;;  %v2110_v28 = vadd.f32 %v1970_v13, %v1602_v54  ;;  %v1607_v13 = vadd.f32 %v5276_v22, %v5275_v3  ;;  %v2468_v3 = vmul.f32 %v5005_v38, %v5005_v38  ;;  %v5281_v22 = vld [vmem:[#allocation10_spill] sm:$0xff] }
 0x359   : > { %v1154_v62 = vpop.f32.mrf.mxu0  ;;  %v2078_v25 = vadd.f32 %v1890_v10, %v1522_v32  ;;  %v5277_v10 = vld [vmem:[#allocation8_spill] sm:$0xff] }
 0x35a   : > { %v1523_v49 = vpop.f32.mrf.mxu1  ;;  %v5043_v0 = vadd.f32 %v4893_v50, %v2110_v28 }
 0x35b   : > { %v1524_v11 = vadd.f32 %v1523_v49, %v1154_v62  ;;  %v5049_v2 = vadd.f32 %v4893_v50, %v2078_v25  ;;  %v5278_v62 = vld [vmem:[#allocation20_spill] sm:$0xff] }
 0x35c   : > { %v1609_v49 = vadd.f32 %v5278_v62, %v5277_v10  ;;  %v2469_v62 = vmul.f32 %v5008_v63, %v5008_v63 }
 0x35f   : > { %v1972_v42 = vpop.f32.mrf.mxu3 }
 0x360   : > { %v1892_v33 = vpop.f32.mrf.mxu2  ;;  %v2111_v14 = vadd.f32 %v1972_v42, %v1604_v47 }
 0x361   : > { %v2079_v7 = vadd.f32 %v1892_v33, %v1524_v11  ;;  %v1157_v15 = vpop.f32.mrf.mxu0 }
 0x362   : > { %v5046_v61 = vadd.f32 %v4893_v50, %v2111_v14  ;;  %v1526_v46 = vpop.f32.mrf.mxu1 }
 0x363   : > { %v5052_v51 = vadd.f32 %v4893_v50, %v2079_v7  ;;  %v1527_v24 = vadd.f32 %v1526_v46, %v1157_v15 }
 0x364   : > { %v3893_v59 = vpack.c.bf16 %v5046_v61, %v5043_v0 }
 0x365   : > { %v3813_v1 = vpack.c.bf16 %v5052_v51, %v5049_v2 }
 0x366   : > { %3969 = vst [vmem:[%s4185_s17 + $0x1e0] sm:$0xff] %v3893_v59  }
 0x367   : > { %3953 = vst [vmem:[%s4185_s17 + $0x160] sm:$0xff] %v3813_v1   ;;  %v1975_v27 = vpop.f32.mrf.mxu3 }
 0x368   : > { %v1895_v60 = vpop.f32.mrf.mxu2  ;;  %v2112_v32 = vadd.f32 %v1975_v27, %v1607_v13  ;;  %v5282_v13 = vld [vmem:[#allocation22_spill] sm:$0xff] }
 0x369   : > { %v1159_v43 = vpop.f32.mrf.mxu0  ;;  %v2080_v39 = vadd.f32 %v1895_v60, %v1527_v24  ;;  %v1614_v10 = vadd.f32 %v5282_v13, %v5281_v22 }
 0x36a   : > { %v1528_v20 = vpop.f32.mrf.mxu1  ;;  %v5065_v25 = vadd.f32 %v4893_v50, %v2112_v32  ;;  %v2333_v32 = vadd.f32 %v4988_v12, %v5005_v38 }
 0x36b   : > { %v1529_v5 = vadd.f32 %v1528_v20, %v1159_v43  ;;  %v2212_v33 = vadd.f32 %v4893_v50, %v2080_v39  ;;  %v5279_v43 = vld [vmem:[#allocation9_spill] sm:$0xff] }
 0x36c   : > { %v5280_v20 = vld [vmem:[#allocation21_spill] sm:$0xff] }
 0x36d   : > { %v1612_v24 = vadd.f32 %v5280_v20, %v5279_v43 }
 0x36f   : > { %v1977_v54 = vpop.f32.mrf.mxu3 }
 0x370   : > { %v1897_v21 = vpop.f32.mrf.mxu2  ;;  %v2113_v41 = vadd.f32 %v1977_v54, %v1609_v49 }
 0x371   : > { %v2081_v47 = vadd.f32 %v1897_v21, %v1529_v5  ;;  %v1162_v28 = vpop.f32.mrf.mxu0  ;;  %v2595_v21 = vadd.f32 %v4991_v29, %v2468_v3 }
 0x372   : > { %v5068_v11 = vadd.f32 %v4893_v50, %v2113_v41  ;;  %v1531_v42 = vpop.f32.mrf.mxu1  ;;  %v2470_v41 = vmul.f32 %v5027_v6, %v5027_v6 }
 0x373   : > { %v2213_v14 = vadd.f32 %v4893_v50, %v2081_v47  ;;  %v1532_v60 = vadd.f32 %v1531_v42, %v1162_v28  ;;  %v2334_v42 = vadd.f32 %v2333_v32, %v5008_v63 }
 0x374   : > { %v3898_v7 = vpack.c.bf16 %v5068_v11, %v5065_v25 }
 0x375   : > { %v3818_v15 = vpack.c.bf16 %v2213_v14, %v2212_v33  ;;  %v2335_v29 = vadd.f32 %v2334_v42, %v5027_v6 }
 0x376   : > { %3970 = vst [vmem:[%s4185_s17 + $0x1e8] sm:$0xff] %v3898_v7  }
 0x377   : > { %3954 = vst [vmem:[%s4185_s17 + $0x168] sm:$0xff] %v3818_v15   ;;  %v1980_v46 = vpop.f32.mrf.mxu3  ;;  %v2596_v15 = vadd.f32 %v2595_v21, %v2469_v62  ;;  %v2336_v20 = vadd.f32 %v2335_v29, %v5030_v40 }
 0x378   : > { %v1900_v59 = vpop.f32.mrf.mxu2  ;;  %v2114_v49 = vadd.f32 %v1980_v46, %v1612_v24  ;;  %v2472_v24 = vmul.f32 %v5049_v2, %v5049_v2 }
 0x379   : > { %v1164_v1 = vpop.f32.mrf.mxu0  ;;  %v2082_v39 = vadd.f32 %v1900_v59, %v1532_v60  ;;  %v2597_v60 = vadd.f32 %v2596_v15, %v2470_v41  ;;  %v2337_v13 = vadd.f32 %v2336_v20, %v5049_v2  ;;  %v2475_v41 = vmul.f32 %v2213_v14, %v2213_v14 }
 0x37a   : > { %v1533_v27 = vpop.f32.mrf.mxu1  ;;  %v5091_v46 = vadd.f32 %v4893_v50, %v2114_v49 }
 0x37b   : > { %v1534_v5 = vadd.f32 %v1533_v27, %v1164_v1  ;;  %v2471_v1 = vmul.f32 %v5030_v40, %v5030_v40  ;;  %v2214_v27 = vadd.f32 %v4893_v50, %v2082_v39  ;;  %v2338_v39 = vadd.f32 %v2337_v13, %v5052_v51 }
 0x37d   : > { %v2598_v6 = vadd.f32 %v2597_v60, %v2471_v1  ;;  %v2339_v21 = vadd.f32 %v2338_v39, %v2212_v33  ;;  %v5285_v1 = vld [vmem:[#allocation12_spill] sm:$0xff] }
 0x37e   : > { %v5286_v60 = vld [vmem:[#allocation24_spill] sm:$0xff] }
 0x37f   : > { %v1982_v54 = vpop.f32.mrf.mxu3  ;;  %v2599_v32 = vadd.f32 %v2598_v6, %v2472_v24 }
 0x380   : > { %v1902_v47 = vpop.f32.mrf.mxu2  ;;  %v2115_v28 = vadd.f32 %v1982_v54, %v1614_v10  ;;  %v2473_v10 = vmul.f32 %v5052_v51, %v5052_v51 }
 0x381   : > { %v2083_v7 = vadd.f32 %v1902_v47, %v1534_v5  ;;  %v1167_v38 = vpop.f32.mrf.mxu0  ;;  %v2474_v5 = vmul.f32 %v2212_v33, %v2212_v33  ;;  %v5283_v47 = vld [vmem:[#allocation11_spill] sm:$0xff] }
 0x382   : > { %v5094_v12 = vadd.f32 %v4893_v50, %v2115_v28  ;;  %v1536_v59 = vpop.f32.mrf.mxu1  ;;  %v2600_v54 = vadd.f32 %v2599_v32, %v2473_v10  ;;  %v5284_v28 = vld [vmem:[#allocation23_spill] sm:$0xff] }
 0x383   : > { %v2215_v63 = vadd.f32 %v4893_v50, %v2083_v7  ;;  %v1537_v22 = vadd.f32 %v1536_v59, %v1167_v38  ;;  %v1617_v42 = vadd.f32 %v5284_v28, %v5283_v47  ;;  %v2340_v38 = vadd.f32 %v2339_v21, %v2213_v14 }
 0x384   : > { %v3903_v43 = vpack.c.bf16 %v5094_v12, %v5091_v46  ;;  %v2601_v2 = vadd.f32 %v2600_v54, %v2474_v5  ;;  %v2476_v59 = vmul.f32 %v2214_v27, %v2214_v27  ;;  %v2480_v28 = vmul.f32 %v4764_v58, %v4764_v58 }
 0x385   : > { %v3823_v3 = vpack.c.bf16 %v2215_v63, %v2214_v27  ;;  %v2341_v24 = vadd.f32 %v2340_v38, %v2214_v27  ;;  %v2482_v38 = vmul.f32 %v4791_v16, %v4791_v16 }
 0x386   : > { %3971 = vst [vmem:[%s4185_s17 + $0x1f0] sm:$0xff] %v3903_v43   ;;  %v1619_v43 = vadd.f32 %v5286_v60, %v5285_v1  ;;  %v2602_v51 = vadd.f32 %v2601_v2, %v2475_v41  ;;  %v2483_v1 = vmul.f32 %v4794_v57, %v4794_v57 }
 0x387   : > { %3955 = vst [vmem:[%s4185_s17 + $0x170] sm:$0xff] %v3823_v3   ;;  %v1985_v62 = vpop.f32.mrf.mxu3  ;;  %v2477_v3 = vmul.f32 %v2215_v63, %v2215_v63 }
 0x388   : > { %v1905_v49 = vpop.f32.mrf.mxu2  ;;  %v2116_v20 = vadd.f32 %v1985_v62, %v1617_v42  ;;  %v2603_v10 = vadd.f32 %v2602_v51, %v2476_v59 }
 0x389   : > { %v2084_v40 = vadd.f32 %v1905_v49, %v1537_v22  ;;  %v1169_v7 = vpop.f32.mrf.mxu0  ;;  %v2342_v49 = vadd.f32 %v2341_v24, %v2215_v63 }
 0x38a   : > { %v1538_v15 = vpop.f32.mrf.mxu1  ;;  %v5118_v39 = vadd.f32 %v4893_v50, %v2116_v20  ;;  %v2604_v62 = vadd.f32 %v2603_v10, %v2477_v3 }
 0x38b   : > { %v2216_v29 = vadd.f32 %v4893_v50, %v2084_v40  ;;  %v1539_v22 = vadd.f32 %v1538_v15, %v1169_v7  ;;  %v2481_v15 = vmul.f32 %v4767_v34, %v4767_v34 }
 0x38d   : > { %v2478_v32 = vmul.f32 %v2216_v29, %v2216_v29  ;;  %v2343_v40 = vadd.f32 %v2342_v49, %v2216_v29 }
 0x38f   : > { %v1987_v33 = vpop.f32.mrf.mxu3  ;;  %v2605_v21 = vadd.f32 %v2604_v62, %v2478_v32 }
 0x390   : > { %v1907_v6 = vpop.f32.mrf.mxu2  ;;  %v2117_v13 = vadd.f32 %v1987_v33, %v1619_v43  ;;  %v2484_v43 = vmul.f32 %v4818_v9, %v4818_v9 }
 0x391   : > { %v2085_v14 = vadd.f32 %v1907_v6, %v1539_v22 }
 0x392   : > { %v5121_v5 = vadd.f32 %v4893_v50, %v2117_v13 }
 0x393   : > { %v2217_v27 = vadd.f32 %v4893_v50, %v2085_v14 }
 0x394   : > { %v3908_v54 = vpack.c.bf16 %v5121_v5, %v5118_v39 }
 0x395   : > { %v2344_v41 = vadd.f32 %v2343_v40, %v2217_v27  ;;  %v2479_v47 = vmul.f32 %v2217_v27, %v2217_v27  ;;  %v3828_v63 = vpack.c.bf16 %v2217_v27, %v2216_v29 }
 0x396   : > { %3972 = vst [vmem:[%s4185_s17 + $0x1f8] sm:$0xff] %v3908_v54  }
 0x397   : > { %v2345_v42 = vadd.f32 %v2344_v41, %v4764_v58  ;;  %v2606_v7 = vadd.f32 %v2605_v21, %v2479_v47  ;;  %3956 = vst [vmem:[%s4185_s17 + $0x178] sm:$0xff] %v3828_v63  }
 0x399   : > { %v2346_v50 = vadd.f32 %v2345_v42, %v4767_v34  ;;  %v2607_v2 = vadd.f32 %v2606_v7, %v2480_v28  ;;  %v2485_v34 = vmul.f32 %v4821_v19, %v4821_v19 }
 0x39b   : > { %v2347_v59 = vadd.f32 %v2346_v50, %v4791_v16  ;;  %v2608_v29 = vadd.f32 %v2607_v2, %v2481_v15  ;;  %v2486_v16 = vmul.f32 %v4845_v26, %v4845_v26 }
 0x39d   : > { %v2348_v60 = vadd.f32 %v2347_v59, %v4794_v57  ;;  %v2609_v58 = vadd.f32 %v2608_v29, %v2482_v38  ;;  %v2487_v57 = vmul.f32 %v4848_v53, %v4848_v53 }
 0x39f   : > { %v2349_v20 = vadd.f32 %v2348_v60, %v4818_v9  ;;  %v2610_v51 = vadd.f32 %v2609_v58, %v2483_v1  ;;  %v2488_v9 = vmul.f32 %v4872_v48, %v4872_v48 }
 0x3a1   : > { %v2350_v24 = vadd.f32 %v2349_v20, %v4821_v19  ;;  %v2611_v3 = vadd.f32 %v2610_v51, %v2484_v43  ;;  %v2489_v19 = vmul.f32 %v4875_v17, %v4875_v17 }
 0x3a3   : > { %v2351_v22 = vadd.f32 %v2350_v24, %v4845_v26  ;;  %v2612_v33 = vadd.f32 %v2611_v3, %v2485_v34  ;;  %v2490_v26 = vmul.f32 %v4902_v35, %v4902_v35 }
 0x3a5   : > { %v2352_v6 = vadd.f32 %v2351_v22, %v4848_v53  ;;  %v2613_v13 = vadd.f32 %v2612_v33, %v2486_v16  ;;  %v2491_v53 = vmul.f32 %v4905_v56, %v4905_v56 }
 0x3a7   : > { %v2353_v10 = vadd.f32 %v2352_v6, %v4872_v48  ;;  %v2614_v49 = vadd.f32 %v2613_v13, %v2487_v57  ;;  %v2492_v48 = vmul.f32 %v4927_v52, %v4927_v52 }
 0x3a9   : > { %v2354_v32 = vadd.f32 %v2353_v10, %v4875_v17  ;;  %v2615_v14 = vadd.f32 %v2614_v49, %v2488_v9  ;;  %v2493_v17 = vmul.f32 %v4930_v31, %v4930_v31 }
 0x3ab   : > { %v2355_v62 = vadd.f32 %v2354_v32, %v4902_v35  ;;  %v2616_v40 = vadd.f32 %v2615_v14, %v2489_v19  ;;  %v2494_v35 = vmul.f32 %v4948_v44, %v4948_v44  ;;  %v2508_v19 = vmul.f32 %v5091_v46, %v5091_v46 }
 0x3ac   : > { %v2509_v14 = vmul.f32 %v5094_v12, %v5094_v12 }
 0x3ad   : > { %v2356_v27 = vadd.f32 %v2355_v62, %v4905_v56  ;;  %v2617_v54 = vadd.f32 %v2616_v40, %v2490_v26  ;;  %v2495_v56 = vmul.f32 %v4951_v4, %v4951_v4  ;;  %v2510_v62 = vmul.f32 %v5118_v39, %v5118_v39 }
 0x3af   : > { %v2357_v21 = vadd.f32 %v2356_v27, %v4927_v52  ;;  %v2618_v41 = vadd.f32 %v2617_v54, %v2491_v53  ;;  %v2496_v52 = vmul.f32 %v4964_v30, %v4964_v30  ;;  %v2511_v27 = vmul.f32 %v5121_v5, %v5121_v5 }
 0x3b1   : > { %v2358_v47 = vadd.f32 %v2357_v21, %v4930_v31  ;;  %v2619_v63 = vadd.f32 %v2618_v41, %v2492_v48  ;;  %v2497_v31 = vmul.f32 %v4967_v55, %v4967_v55 }
 0x3b3   : > { %v2359_v28 = vadd.f32 %v2358_v47, %v4948_v44  ;;  %v2620_v42 = vadd.f32 %v2619_v63, %v2493_v17  ;;  %v2498_v44 = vmul.f32 %v4980_v23, %v4980_v23 }
 0x3b5   : > { %v2621_v7 = vadd.f32 %v2620_v42, %v2494_v35  ;;  %v2360_v15 = vadd.f32 %v2359_v28, %v4951_v4  ;;  %v2499_v4 = vmul.f32 %v4983_v37, %v4983_v37 }
 0x3b7   : > { %v2361_v50 = vadd.f32 %v2360_v15, %v4964_v30  ;;  %v2622_v2 = vadd.f32 %v2621_v7, %v2495_v56  ;;  %v2500_v30 = vmul.f32 %v4999_v18, %v4999_v18 }
 0x3b9   : > { %v2362_v38 = vadd.f32 %v2361_v50, %v4967_v55  ;;  %v2623_v59 = vadd.f32 %v2622_v2, %v2496_v52  ;;  %v2501_v55 = vmul.f32 %v5002_v45, %v5002_v45 }
 0x3bb   : > { %v2363_v29 = vadd.f32 %v2362_v38, %v4980_v23  ;;  %v2624_v1 = vadd.f32 %v2623_v59, %v2497_v31  ;;  %v2502_v23 = vmul.f32 %v5021_v36, %v5021_v36 }
 0x3bd   : > { %v2364_v60 = vadd.f32 %v2363_v29, %v4983_v37  ;;  %v2625_v58 = vadd.f32 %v2624_v1, %v2498_v44  ;;  %v2503_v37 = vmul.f32 %v5024_v8, %v5024_v8 }
 0x3bf   : > { %v2365_v43 = vadd.f32 %v2364_v60, %v4999_v18  ;;  %v2626_v20 = vadd.f32 %v2625_v58, %v2499_v4  ;;  %v2504_v18 = vmul.f32 %v5043_v0, %v5043_v0 }
 0x3c1   : > { %v2366_v51 = vadd.f32 %v2365_v43, %v5002_v45  ;;  %v2627_v34 = vadd.f32 %v2626_v20, %v2500_v30  ;;  %v2505_v45 = vmul.f32 %v5046_v61, %v5046_v61 }
 0x3c3   : > { %v2367_v24 = vadd.f32 %v2366_v51, %v5021_v36  ;;  %v2628_v3 = vadd.f32 %v2627_v34, %v2501_v55  ;;  %v2506_v36 = vmul.f32 %v5065_v25, %v5065_v25 }
 0x3c5   : > { %v2368_v16 = vadd.f32 %v2367_v24, %v5024_v8  ;;  %v2629_v22 = vadd.f32 %v2628_v3, %v2502_v23  ;;  %v2507_v8 = vmul.f32 %v5068_v11, %v5068_v11 }
 0x3c7   : > { %v2369_v33 = vadd.f32 %v2368_v16, %v5043_v0  ;;  %v2630_v57 = vadd.f32 %v2629_v22, %v2503_v37 }
 0x3c9   : > { %v2370_v6 = vadd.f32 %v2369_v33, %v5046_v61  ;;  %v2631_v13 = vadd.f32 %v2630_v57, %v2504_v18 }
 0x3cb   : > { %v2371_v9 = vadd.f32 %v2370_v6, %v5065_v25  ;;  %v2632_v10 = vadd.f32 %v2631_v13, %v2505_v45 }
 0x3cd   : > { %v2372_v49 = vadd.f32 %v2371_v9, %v5068_v11  ;;  %v2633_v0 = vadd.f32 %v2632_v10, %v2506_v36 }
 0x3cf   : > { %v2373_v32 = vadd.f32 %v2372_v49, %v5091_v46  ;;  %v2634_v61 = vadd.f32 %v2633_v0, %v2507_v8 }
 0x3d1   : > { %v2374_v25 = vadd.f32 %v2373_v32, %v5094_v12  ;;  %v2635_v26 = vadd.f32 %v2634_v61, %v2508_v19 }
 0x3d3   : > { %v2375_v11 = vadd.f32 %v2374_v25, %v5118_v39  ;;  %v2636_v40 = vadd.f32 %v2635_v26, %v2509_v14 }
 0x3d5   : > { %v2376_v53 = vadd.f32 %v2375_v11, %v5121_v5  ;;  %v2637_v46 = vadd.f32 %v2636_v40, %v2510_v62 }
 0x3d7   : > { %v2377_v54 = vrot.slane %v2376_v53, 4  ;;  %v2638_v48 = vadd.f32 %v2637_v46, %v2511_v27 }
 0x3d9   : > { %v2378_v21 = vadd.f32 %v2377_v54, %v2376_v53  ;;  %v2639_v41 = vrot.slane %v2638_v48, 4 }
 0x3db   : > { %v2379_v17 = vrot.slane %v2378_v21, 2  ;;  %v2640_v12 = vadd.f32 %v2639_v41, %v2638_v48 }
 0x3dd   : > { %v2380_v47 = vadd.f32 %v2379_v17, %v2378_v21  ;;  %v2641_v63 = vrot.slane %v2640_v12, 2 }
 0x3df   : > { %v2381_v35 = vrot.slane %v2380_v47, 1  ;;  %v2642_v28 = vadd.f32 %v2641_v63, %v2640_v12 }
 0x3e1   : > { %v2382_v39 = vadd.f32 %v2381_v35, %v2380_v47  ;;  %v2643_v42 = vrot.slane %v2642_v28, 1 }
 0x3e3   : > { %2383 = vst [vmem:[%s246_s26] sm:$0x1] %v2382_v39  ;;  %v2644_v5 = vadd.f32 %v2643_v42, %v2642_v28 }
 0x3e5   : > { %2645 = vst [vmem:[%s249_s29] sm:$0x1] %v2644_v5 }
 0x3e6 PF: > { %s16_s18 = sadd.s32 1, %s4009_s18  }
 0x3e7   : > { %p13_p5 = scmp.ge.s32.totalorder %s16_s18, 6  }
 0x3e9   :  { %15 = sbr.rel (!%p13_p5) target bundleno = 1 (0x1), region = 86 }

// kernel: _lambda_.3
= control target key start
LH: loop header
LB: loop body
LE: loop exit
PB: predicated region body
PF: predicated region fallthrough
CT: control target
= control target key end

     0   :  { %s7729_s18 = smov 0   ;;  %s7731_s19 = smov 0   ;;  %s10190_s0 = inlined_call_operand.vmem [shape: bf16[2,8,256,128], index: 0, kind: input, shape index: {}]   ;;  %s10191_s1 = inlined_call_operand.vmem [shape: f32[1,128], index: 1, kind: input, shape index: {}]   ;;  %s10192_s2 = inlined_call_operand.vmem [shape: f32[1,128], index: 2, kind: input, shape index: {}]   ;;  %s10193_s3 = inlined_call_operand.vmem [shape: bf16[3,128,128], index: 3, kind: input, shape index: {}]   ;;  %s10194_s4 = inlined_call_operand.vmem [shape: f32[1,128], index: 4, kind: input, shape index: {}]   ;;  %s10195_s5 = inlined_call_operand.vmem [shape: bf16[2,8,256,128], index: 5, kind: output, shape index: {}]  }
   0x1   :  { %s7733_s20 = smov 0  }
   0x2 LB: > { %s27_s21 = sadd.s32 1, %s7693_s19  ;;  %p5788_p0 = scmp.ge.s32.totalorder %s7697_s20, 1  ;;  %s7697_s20 = sphi %s7733_s20, %s15_s20   ;;  %s7693_s19 = sphi %s7731_s19, %s10321_s19   ;;  %s7689_s18 = sphi %s7729_s18, %s10320_s18  }
   0x3   : > { %p29_p1 = scmp.ge.s32.totalorder %s27_s21, 2  ;;  %p208_p2 = scmp.lt.s32.totalorder %s7697_s20, 3 }
   0x5   : > { %s10323_s21 = smov (%p29_p1, %s27_s21), 0  ;;  %p209_p3 = pnand %p5788_p0, %p208_p2 }
   0x7   : > { %212 = sbr.rel (%p209_p3) target bundleno = 1586 (0x632), region = 40 }
   0xc   : > { %v7750_v0 = vld [vmem:[%s10193_s3 + $0xb8] sm:$0xff]  ;;  %p245_p4 = scmp.lt.s32.totalorder %s7689_s18, 1  ;;  %v7762_v2 = vld [vmem:[%s10193_s3 + $0xb0] sm:$0xff]  ;;  %v7776_v4 = vld [vmem:[%s10193_s3 + $0xa8] sm:$0xff] }
   0xd   : > { %v7755_v1 = vld [vmem:[%s10193_s3 + $0x78] sm:$0xff]  ;;  %2001 = vmatpush.bf16.msra.mxu0 %v7750_v0  ;;  %7547 = vmatpush.bf16.msra.mxu2 %v7750_v0  ;;  %v7771_v3 = vld [vmem:[%s10193_s3 + $0x70] sm:$0xff]  ;;  %v7782_v5 = vld [vmem:[%s10193_s3 + $0x68] sm:$0xff] }
   0xe   : > { %s10325_s18 = smov (!%p245_p4, %s7689_s18), 1  ;;  %2234 = vmatpush.bf16.msra.mxu1 %v7755_v1  ;;  %7555 = vmatpush.bf16.msra.mxu3 %v7755_v1  ;;  %v7794_v6 = vld [vmem:[%s10191_s1] ss:$0 sm:$0xff]  ;;  %v7842_v37 = vld [vmem:[%s10193_s3 + $0x98] sm:$0xff]  ;;  %v7860_v51 = vld [vmem:[%s10193_s3 + $0x90] sm:$0xff] }
   0xf   : > { %s6115_s7 = sshll.u32 %s10325_s18, 10  ;;  %v7802_v8 = vld [vmem:[%s10192_s2] ss:$0 sm:$0xff]  ;;  %v7850_v41 = vld [vmem:[%s10193_s3 + $0x58] sm:$0xff]  ;;  %v7867_v54 = vld [vmem:[%s10193_s3 + $0x50] sm:$0xff] }
  0x10   : > { %s7789_s12 = scalar_lea.vmem %s10190_s0, %s6115_s7  ;;  %v7816_v22 = vld [vmem:[%s10193_s3 + $0xa0] sm:$0xff]  ;;  %s8329_s28 = scalar_lea.vmem %s10195_s5, %s6115_s7 }
  0x11   : > { %2002 = vmatpush.bf16.msra.mxu0 %v7762_v2  ;;  %7548 = vmatpush.bf16.msra.mxu2 %v7762_v2  ;;  %v7308_v7 = vld [vmem:[%s7789_s12 + $0x80] sm:$0xff]   ;;  %v7309_v47 = vld [vmem:[%s7789_s12 + $0x88] sm:$0xff]  }
  0x12   : > { %2235 = vmatpush.bf16.msra.mxu1 %v7771_v3  ;;  %7556 = vmatpush.bf16.msra.mxu3 %v7771_v3  ;;  %v6207_v9 = vunpack.c.l.bf16 %v7308_v7  ;;  %v6208_v10 = vunpack.c.h.bf16 %v7308_v7  ;;  %v7316_v11 = vld [vmem:[%s7789_s12 + $0xc0] sm:$0xff]   ;;  %v7317_v50 = vld [vmem:[%s7789_s12 + $0xc8] sm:$0xff]   ;;  %v6211_v57 = vunpack.c.l.bf16 %v7309_v47  ;;  %v6212_v61 = vunpack.c.h.bf16 %v7309_v47 }
  0x13   : > { %v6142_v12 = vld [vmem:[%s7789_s12] sm:$0xff]   ;;  %v6239_v14 = vunpack.c.l.bf16 %v7316_v11  ;;  %v6240_v15 = vunpack.c.h.bf16 %v7316_v11  ;;  %v7293_v58 = vld [vmem:[%s7789_s12 + $0x8] sm:$0xff]   ;;  %v6243_v62 = vunpack.c.l.bf16 %v7317_v50 }
  0x14   : > { %v7300_v13 = vld [vmem:[%s7789_s12 + $0x40] sm:$0xff]   ;;  %v6143_v16 = vunpack.c.l.bf16 %v6142_v12  ;;  %v6144_v17 = vunpack.c.h.bf16 %v6142_v12  ;;  %v812_v18 = vmul.f32 %v7794_v6, %v6207_v9  ;;  %v813_v19 = vmul.f32 %v7794_v6, %v6208_v10  ;;  %v7301_v63 = vld [vmem:[%s7789_s12 + $0x48] sm:$0xff]  }
  0x15   : > { %v6175_v20 = vunpack.c.l.bf16 %v7300_v13  ;;  %v6176_v21 = vunpack.c.h.bf16 %v7300_v13  ;;  %2003 = vmatpush.bf16.msra.mxu0 %v7776_v4  ;;  %7549 = vmatpush.bf16.msra.mxu2 %v7776_v4  ;;  %v828_v23 = vmul.f32 %v7794_v6, %v6239_v14  ;;  %v829_v24 = vmul.f32 %v7794_v6, %v6240_v15  ;;  %v7826_v26 = vld [vmem:[%s10193_s3 + $0x60] sm:$0xff]  ;;  %v7876_v11 = vld [vmem:[%s10193_s3 + $0x88] sm:$0xff] }
  0x16   : > { %v780_v25 = vmul.f32 %v7794_v6, %v6143_v16  ;;  %2236 = vmatpush.bf16.msra.mxu1 %v7782_v5  ;;  %7557 = vmatpush.bf16.msra.mxu3 %v7782_v5  ;;  %v1072_v27 = vadd.f32 %v7802_v8, %v812_v18  ;;  %v1073_v28 = vadd.f32 %v7802_v8, %v813_v19  ;;  %v6244_v10 = vunpack.c.h.bf16 %v7317_v50  ;;  %v7883_v16 = vld [vmem:[%s10193_s3 + $0x48] sm:$0xff] }
  0x17   : > { %v781_v29 = vmul.f32 %v7794_v6, %v6144_v17  ;;  %v1088_v30 = vadd.f32 %v7802_v8, %v828_v23  ;;  %v1089_v31 = vadd.f32 %v7802_v8, %v829_v24  ;;  %v796_v33 = vmul.f32 %v7794_v6, %v6175_v20 }
  0x18   : > { %v1040_v32 = vadd.f32 %v7802_v8, %v780_v25  ;;  %v1328_v34 = vmax.f32 %v1072_v27, 0.0  ;;  %v797_v36 = vmul.f32 %v7794_v6, %v6176_v21  ;;  %v1329_v38 = vmax.f32 %v1073_v28, 0.0 }
  0x19   : > { %v1041_v35 = vadd.f32 %v7802_v8, %v781_v29  ;;  %2004 = vmatpush.bf16.msra.mxu0 %v7816_v22  ;;  %7550 = vmatpush.bf16.msra.mxu2 %v7816_v22  ;;  %v1344_v39 = vmax.f32 %v1088_v30, 0.0  ;;  %v1056_v40 = vadd.f32 %v7802_v8, %v796_v33  ;;  %v1345_v42 = vmax.f32 %v1089_v31, 0.0  ;;  %v7895_v31 = vld [vmem:[%s10193_s3 + $0x80] sm:$0xff] }
  0x1a   : > { %2237 = vmatpush.bf16.msra.mxu1 %v7826_v26  ;;  %7558 = vmatpush.bf16.msra.mxu3 %v7826_v26  ;;  %v1296_v43 = vmax.f32 %v1040_v32, 0.0  ;;  %v1057_v44 = vadd.f32 %v7802_v8, %v797_v36  ;;  %v1584_v48 = vpack.c.bf16 %v1328_v34, %v1328_v34  ;;  %v1585_v52 = vpack.c.bf16 %v1329_v38, %v1329_v38  ;;  %v7904_v34 = vld [vmem:[%s10193_s3 + $0x40] sm:$0xff] }
  0x1b   : > { %v1297_v45 = vmax.f32 %v1041_v35, 0.0  ;;  %v1312_v46 = vmax.f32 %v1056_v40, 0.0  ;;  %v1600_v53 = vpack.c.bf16 %v1344_v39, %v1344_v39  ;;  %v1601_v55 = vpack.c.bf16 %v1345_v42, %v1345_v42  ;;  %v7915_v40 = vld [vmem:[%s10193_s3 + $0x38] sm:$0xff] }
  0x1c   : > { %v1313_v49 = vmax.f32 %v1057_v44, 0.0  ;;  %v1552_v56 = vpack.c.bf16 %v1296_v43, %v1296_v43  ;;  %v1889_v7 = vunpack.c.l.b16 %v1584_v48  ;;  %v1890_v12 = vunpack.c.l.b16 %v1585_v52 }
  0x1d   : > { %2005 = vmatpush.bf16.msra.mxu0 %v7842_v37  ;;  %7551 = vmatpush.bf16.msra.mxu2 %v7842_v37  ;;  %v1553_v59 = vpack.c.bf16 %v1297_v45, %v1297_v45  ;;  %v1568_v60 = vpack.c.bf16 %v1312_v46, %v1312_v46  ;;  %v1905_v13 = vunpack.c.l.b16 %v1600_v53  ;;  %v6147_v14 = vunpack.c.l.bf16 %v7293_v58 }
  0x1e   : > { %2238 = vmatpush.bf16.msra.mxu1 %v7850_v41  ;;  %7559 = vmatpush.bf16.msra.mxu3 %v7850_v41  ;;  %v1569_v9 = vpack.c.bf16 %v1313_v49, %v1313_v49  ;;  %v6148_v15 = vunpack.c.h.bf16 %v7293_v58  ;;  %v1906_v17 = vunpack.c.l.b16 %v1601_v55  ;;  %v2122_v18 = vunpack.c.l.b16 %v1552_v56  ;;  %v7937_v56 = vld [vmem:[%s10193_s3 + $0x30] sm:$0xff] }
  0x1f   : > { %v814_v19 = vmul.f32 %v7794_v6, %v6211_v57  ;;  %v6179_v20 = vunpack.c.l.bf16 %v7301_v63  ;;  %v2123_v21 = vunpack.c.l.b16 %v1553_v59  ;;  %v2138_v23 = vunpack.c.l.b16 %v1568_v60  ;;  %v7310_v57 = vld [vmem:[%s7789_s12 + $0x90] sm:$0xff]  }
  0x20   : > { %v815_v24 = vmul.f32 %v7794_v6, %v6212_v61  ;;  %v830_v25 = vmul.f32 %v7794_v6, %v6243_v62  ;;  %v2139_v27 = vunpack.c.l.b16 %v1569_v9  ;;  %v831_v28 = vmul.f32 %v7794_v6, %v6244_v10  ;;  %v7318_v58 = vld [vmem:[%s7789_s12 + $0xd0] sm:$0xff]  }
  0x21   : > { %2006 = vmatpush.bf16.msra.mxu0 %v7860_v51  ;;  %7552 = vmatpush.bf16.msra.mxu2 %v7860_v51  ;;  %v782_v29 = vmul.f32 %v7794_v6, %v6147_v14  ;;  %v6180_v30 = vunpack.c.h.bf16 %v7301_v63  ;;  %v783_v32 = vmul.f32 %v7794_v6, %v6148_v15  ;;  %v798_v33 = vmul.f32 %v7794_v6, %v6179_v20  ;;  %v7294_v61 = vld [vmem:[%s7789_s12 + $0x10] sm:$0xff]   ;;  %v7954_v20 = vld [vmem:[%s10193_s3 + $0x28] sm:$0xff] }
  0x22   : > { %2239 = vmatpush.bf16.msra.mxu1 %v7867_v54  ;;  %7560 = vmatpush.bf16.msra.mxu3 %v7867_v54  ;;  %v1074_v35 = vadd.f32 %v7802_v8, %v814_v19  ;;  %v7908_v38 = vpack.c.b16 %v1890_v12, %v1889_v7  ;;  %v7910_v39 = vpack.c.b16 %v1906_v17, %v1905_v13  ;;  %v7302_v9 = vld [vmem:[%s7789_s12 + $0x50] sm:$0xff]   ;;  %v6215_v12 = vunpack.c.l.bf16 %v7310_v57 }
  0x23   : > { %v799_v36 = vmul.f32 %v7794_v6, %v6180_v30  ;;  %v1075_v42 = vadd.f32 %v7802_v8, %v815_v24  ;;  %v1090_v43 = vadd.f32 %v7802_v8, %v830_v25  ;;  %v7919_v44 = vpack.c.b16 %v2123_v21, %v2122_v18 }
  0x24   : > { %v7921_v45 = vpack.c.b16 %v2139_v27, %v2138_v23  ;;  %v1091_v46 = vadd.f32 %v7802_v8, %v831_v28  ;;  %v1042_v47 = vadd.f32 %v7802_v8, %v782_v29  ;;  %v1043_v48 = vadd.f32 %v7802_v8, %v783_v32 }
  0x25   : > { %2007 = vmatpush.bf16.msra.mxu0 %v7876_v11  ;;  %7553 = vmatpush.bf16.msra.mxu2 %v7876_v11  ;;  %v1058_v49 = vadd.f32 %v7802_v8, %v798_v33  ;;  %v1059_v50 = vadd.f32 %v7802_v8, %v799_v36  ;;  %v1330_v52 = vmax.f32 %v1074_v35, 0.0  ;;  %v1331_v53 = vmax.f32 %v1075_v42, 0.0 }
  0x26   : > { %2240 = vmatpush.bf16.msra.mxu1 %v7883_v16  ;;  %7561 = vmatpush.bf16.msra.mxu3 %v7883_v16  ;;  %v1346_v55 = vmax.f32 %v1090_v43, 0.0  ;;  %v1347_v59 = vmax.f32 %v1091_v46, 0.0  ;;  %v1298_v60 = vmax.f32 %v1042_v47, 0.0  ;;  %v1299_v62 = vmax.f32 %v1043_v48, 0.0 }
  0x27   : > { %v1314_v63 = vmax.f32 %v1058_v49, 0.0  ;;  %v1315_v7 = vmax.f32 %v1059_v50, 0.0  ;;  %v1586_v10 = vpack.c.bf16 %v1330_v52, %v1330_v52  ;;  %v6216_v13 = vunpack.c.h.bf16 %v7310_v57 }
  0x28   : > { %v6247_v14 = vunpack.c.l.bf16 %v7318_v58  ;;  %v1587_v15 = vpack.c.bf16 %v1331_v53, %v1331_v53  ;;  %v1602_v17 = vpack.c.bf16 %v1346_v55, %v1346_v55  ;;  %v6248_v18 = vunpack.c.h.bf16 %v7318_v58 }
  0x29   : > { %2008 = vmatpush.bf16.msra.mxu0 %v7895_v31  ;;  %7554 = vmatpush.bf16.msra.mxu2 %v7895_v31  ;;  %v6151_v19 = vunpack.c.l.bf16 %v7294_v61  ;;  %v1554_v21 = vpack.c.bf16 %v1298_v60, %v1298_v60  ;;  %v6152_v23 = vunpack.c.h.bf16 %v7294_v61  ;;  %v6183_v24 = vunpack.c.l.bf16 %v7302_v9 }
  0x2a   : > { %2241 = vmatpush.bf16.msra.mxu1 %v7904_v34  ;;  %7562 = vmatpush.bf16.msra.mxu3 %v7904_v34  ;;  %v1555_v25 = vpack.c.bf16 %v1299_v62, %v1299_v62  ;;  %v1570_v27 = vpack.c.bf16 %v1314_v63, %v1314_v63  ;;  %v1571_v28 = vpack.c.bf16 %v1315_v7, %v1315_v7  ;;  %v6184_v29 = vunpack.c.h.bf16 %v7302_v9 }
  0x2b   : > { %v1891_v30 = vunpack.c.l.b16 %v1586_v10  ;;  %v816_v32 = vmul.f32 %v7794_v6, %v6215_v12  ;;  %v817_v33 = vmul.f32 %v7794_v6, %v6216_v13  ;;  %v832_v35 = vmul.f32 %v7794_v6, %v6247_v14 }
  0x2c   : > { %2009 = vmatmul.bf16.vlgmr.msra.gmra.mxu0 %v7908_v38  ;;  %2049 = vmatmul.bf16.vlgmr.msra.gmra.mxu2 %v7910_v39  ;;  %v1892_v36 = vunpack.c.l.b16 %v1587_v15  ;;  %v1907_v42 = vunpack.c.l.b16 %v1602_v17  ;;  %v833_v43 = vmul.f32 %v7794_v6, %v6248_v18  ;;  %v784_v46 = vmul.f32 %v7794_v6, %v6151_v19  ;;  %v7311_v19 = vld [vmem:[%s7789_s12 + $0x98] sm:$0xff]  }
  0x2d   : > { %2422 = vmatpush.bf16.msrb.mxu2 %v7755_v1  ;;  %2242 = vmatmul.bf16.vlgmr.msra.gmra.mxu1 %v7919_v44  ;;  %v785_v48 = vmul.f32 %v7794_v6, %v6152_v23  ;;  %v800_v49 = vmul.f32 %v7794_v6, %v6183_v24  ;;  %v2125_v50 = vunpack.c.l.b16 %v1555_v25  ;;  %v2140_v52 = vunpack.c.l.b16 %v1570_v27  ;;  %v7319_v23 = vld [vmem:[%s7789_s12 + $0xd8] sm:$0xff]   ;;  %v8000_v25 = vld [vmem:[%s10193_s3 + $0x20] sm:$0xff] }
  0x2e   : > { %2559 = vmatpush.bf16.msrb.mxu3 %v7915_v40  ;;  %2744 = vmatpush.bf16.msrb.mxu0 %v7750_v0  ;;  %v1603_v0 = vpack.c.bf16 %v1347_v59, %v1347_v59  ;;  %v2141_v53 = vunpack.c.l.b16 %v1571_v28  ;;  %v801_v55 = vmul.f32 %v7794_v6, %v6184_v29  ;;  %v1076_v57 = vadd.f32 %v7802_v8, %v816_v32  ;;  %v7295_v24 = vld [vmem:[%s7789_s12 + $0x18] sm:$0xff]  }
  0x2f   : > { %2282 = vmatmul.bf16.vlgmr.msra.gmra.mxu3 %v7921_v45  ;;  %2962 = vmatpush.bf16.msrb.mxu1 %v7755_v1  ;;  %v1077_v58 = vadd.f32 %v7802_v8, %v817_v33  ;;  %v1092_v59 = vadd.f32 %v7802_v8, %v832_v35  ;;  %v1093_v60 = vadd.f32 %v7802_v8, %v833_v43  ;;  %v7303_v32 = vld [vmem:[%s7789_s12 + $0x58] sm:$0xff]  }
  0x30   : > { %v1908_v47 = vunpack.c.l.b16 %v1603_v0  ;;  %v1044_v61 = vadd.f32 %v7802_v8, %v784_v46  ;;  %v7976_v62 = vpack.c.b16 %v1892_v36, %v1891_v30  ;;  %v1045_v7 = vadd.f32 %v7802_v8, %v785_v48 }
  0x31   : > { %2423 = vmatpush.bf16.msrb.mxu2 %v7771_v3  ;;  %v1060_v9 = vadd.f32 %v7802_v8, %v800_v49  ;;  %v1061_v12 = vadd.f32 %v7802_v8, %v801_v55  ;;  %v1332_v13 = vmax.f32 %v1076_v57, 0.0  ;;  %v1333_v14 = vmax.f32 %v1077_v58, 0.0 }
  0x32   : > { %2560 = vmatpush.bf16.msrb.mxu3 %v7937_v56  ;;  %2745 = vmatpush.bf16.msrb.mxu0 %v7762_v2  ;;  %v2124_v2 = vunpack.c.l.b16 %v1554_v21  ;;  %v7978_v63 = vpack.c.b16 %v1908_v47, %v1907_v42  ;;  %v1348_v15 = vmax.f32 %v1092_v59, 0.0  ;;  %v1349_v17 = vmax.f32 %v1093_v60, 0.0 }
  0x33   : > { %2963 = vmatpush.bf16.msrb.mxu1 %v7771_v3  ;;  %v1300_v18 = vmax.f32 %v1044_v61, 0.0  ;;  %v1301_v0 = vmax.f32 %v1045_v7, 0.0  ;;  %v1316_v21 = vmax.f32 %v1060_v9, 0.0  ;;  %v1588_v27 = vpack.c.bf16 %v1332_v13, %v1332_v13 }
  0x34   : > { %v7982_v10 = vpack.c.b16 %v2125_v50, %v2124_v2  ;;  %v1589_v28 = vpack.c.bf16 %v1333_v14, %v1333_v14  ;;  %v1604_v29 = vpack.c.bf16 %v1348_v15, %v1348_v15  ;;  %v6219_v30 = vunpack.c.l.bf16 %v7311_v19 }
  0x35   : > { %2424 = vmatpush.bf16.msrb.mxu2 %v7782_v5  ;;  %v1605_v33 = vpack.c.bf16 %v1349_v17, %v1349_v17  ;;  %v1556_v35 = vpack.c.bf16 %v1300_v18, %v1300_v18  ;;  %v6220_v36 = vunpack.c.h.bf16 %v7311_v19  ;;  %v6251_v42 = vunpack.c.l.bf16 %v7319_v23 }
  0x36   : > { %2561 = vmatpush.bf16.msrb.mxu3 %v7954_v20  ;;  %2746 = vmatpush.bf16.msrb.mxu0 %v7776_v4  ;;  %v7984_v4 = vpack.c.b16 %v2141_v53, %v2140_v52  ;;  %v1557_v43 = vpack.c.bf16 %v1301_v0, %v1301_v0  ;;  %v1572_v46 = vpack.c.bf16 %v1316_v21, %v1316_v21  ;;  %v6252_v47 = vunpack.c.h.bf16 %v7319_v23 }
  0x37   : > { %2964 = vmatpush.bf16.msrb.mxu1 %v7782_v5  ;;  %v6155_v2 = vunpack.c.l.bf16 %v7295_v24  ;;  %v6156_v49 = vunpack.c.h.bf16 %v7295_v24  ;;  %v6187_v50 = vunpack.c.l.bf16 %v7303_v32  ;;  %v6188_v52 = vunpack.c.h.bf16 %v7303_v32 }
  0x38   : > { %v1893_v53 = vunpack.c.l.b16 %v1588_v27  ;;  %v1909_v55 = vunpack.c.l.b16 %v1604_v29  ;;  %v818_v57 = vmul.f32 %v7794_v6, %v6219_v30  ;;  %v1910_v58 = vunpack.c.l.b16 %v1605_v33  ;;  %v7312_v33 = vld [vmem:[%s7789_s12 + $0xa0] sm:$0xff]  }
  0x39   : > { %2425 = vmatpush.bf16.msrb.mxu2 %v7826_v26  ;;  %v2126_v59 = vunpack.c.l.b16 %v1556_v35  ;;  %v819_v60 = vmul.f32 %v7794_v6, %v6220_v36  ;;  %v834_v61 = vmul.f32 %v7794_v6, %v6251_v42  ;;  %v2127_v7 = vunpack.c.l.b16 %v1557_v43  ;;  %v7320_v42 = vld [vmem:[%s7789_s12 + $0xe0] sm:$0xff]  }
  0x3a   : > { %2747 = vmatpush.bf16.msrb.mxu0 %v7816_v22  ;;  %v1317_v22 = vmax.f32 %v1061_v12, 0.0  ;;  %2562 = vmatpush.bf16.msrb.mxu3 %v8000_v25  ;;  %v2142_v9 = vunpack.c.l.b16 %v1572_v46  ;;  %v835_v12 = vmul.f32 %v7794_v6, %v6252_v47  ;;  %v786_v13 = vmul.f32 %v7794_v6, %v6155_v2  ;;  %v7296_v47 = vld [vmem:[%s7789_s12 + $0x20] sm:$0xff]  }
  0x3b   : > { %2965 = vmatpush.bf16.msrb.mxu1 %v7826_v26  ;;  %v787_v15 = vmul.f32 %v7794_v6, %v6156_v49  ;;  %v803_v17 = vmul.f32 %v7794_v6, %v6188_v52  ;;  %v1078_v18 = vadd.f32 %v7802_v8, %v818_v57  ;;  %v1079_v0 = vadd.f32 %v7802_v8, %v819_v60  ;;  %v7304_v52 = vld [vmem:[%s7789_s12 + $0x60] sm:$0xff]  }
  0x3c   : > { %2014 = vmatmul.bf16.gmra.mxu0 %v7976_v62  ;;  %2054 = vmatmul.bf16.gmra.mxu2 %v7978_v63  ;;  %v1573_v48 = vpack.c.bf16 %v1317_v22, %v1317_v22  ;;  %v1094_v21 = vadd.f32 %v7802_v8, %v834_v61  ;;  %v8025_v23 = vpack.c.b16 %v1910_v58, %v1909_v55  ;;  %v6255_v55 = vunpack.c.l.bf16 %v7320_v42 }
  0x3d   : > { %2426 = vmatpush.bf16.msrb.mxu2 %v7850_v41  ;;  %2247 = vmatmul.bf16.gmra.mxu1 %v7982_v10  ;;  %v8027_v22 = vpack.c.b16 %v2127_v7, %v2126_v59  ;;  %v1095_v24 = vadd.f32 %v7802_v8, %v835_v12  ;;  %v1046_v27 = vadd.f32 %v7802_v8, %v786_v13  ;;  %v1334_v32 = vmax.f32 %v1078_v18, 0.0 }
  0x3e   : > { %2748 = vmatpush.bf16.msrb.mxu0 %v7842_v37  ;;  %v1894_v37 = vunpack.c.l.b16 %v1589_v28  ;;  %v2143_v14 = vunpack.c.l.b16 %v1573_v48  ;;  %v1047_v28 = vadd.f32 %v7802_v8, %v787_v15  ;;  %v1063_v30 = vadd.f32 %v7802_v8, %v803_v17 }
  0x3f   : > { %2287 = vmatmul.bf16.gmra.mxu3 %v7984_v4  ;;  %2966 = vmatpush.bf16.msrb.mxu1 %v7850_v41  ;;  %v1335_v35 = vmax.f32 %v1079_v0, 0.0  ;;  %v1350_v36 = vmax.f32 %v1094_v21, 0.0  ;;  %v1351_v43 = vmax.f32 %v1095_v24, 0.0  ;;  %v1302_v46 = vmax.f32 %v1046_v27, 0.0 }
  0x40   : > { %v8020_v19 = vpack.c.b16 %v1894_v37, %v1893_v53  ;;  %v1303_v2 = vmax.f32 %v1047_v28, 0.0  ;;  %v1319_v49 = vmax.f32 %v1063_v30, 0.0  ;;  %v1590_v53 = vpack.c.bf16 %v1334_v32, %v1334_v32 }
  0x41   : > { %2427 = vmatpush.bf16.msrb.mxu2 %v7867_v54  ;;  %v6224_v37 = vunpack.c.h.bf16 %v7312_v33  ;;  %v6256_v57 = vunpack.c.h.bf16 %v7320_v42  ;;  %v1591_v58 = vpack.c.bf16 %v1335_v35, %v1335_v35  ;;  %v1606_v59 = vpack.c.bf16 %v1350_v36, %v1350_v36 }
  0x42   : > { %2749 = vmatpush.bf16.msrb.mxu0 %v7860_v51  ;;  %v802_v51 = vmul.f32 %v7794_v6, %v6187_v50  ;;  %v6223_v50 = vunpack.c.l.bf16 %v7312_v33  ;;  %v6159_v60 = vunpack.c.l.bf16 %v7296_v47  ;;  %v6160_v61 = vunpack.c.h.bf16 %v7296_v47 }
  0x43   : > { %2967 = vmatpush.bf16.msrb.mxu1 %v7867_v54  ;;  %v1607_v7 = vpack.c.bf16 %v1351_v43, %v1351_v43  ;;  %v6191_v12 = vunpack.c.l.bf16 %v7304_v52  ;;  %v6192_v13 = vunpack.c.h.bf16 %v7304_v52  ;;  %v821_v18 = vmul.f32 %v7794_v6, %v6224_v37 }
  0x44   : > { %v1062_v29 = vadd.f32 %v7802_v8, %v802_v51  ;;  %v1575_v51 = vpack.c.bf16 %v1319_v49, %v1319_v49  ;;  %v820_v17 = vmul.f32 %v7794_v6, %v6223_v50  ;;  %v836_v0 = vmul.f32 %v7794_v6, %v6255_v55 }
  0x45   : > { %2428 = vmatpush.bf16.msrb.mxu2 %v7883_v16  ;;  %v837_v21 = vmul.f32 %v7794_v6, %v6256_v57  ;;  %v1911_v24 = vunpack.c.l.b16 %v1606_v59  ;;  %v788_v27 = vmul.f32 %v7794_v6, %v6159_v60  ;;  %v789_v28 = vmul.f32 %v7794_v6, %v6160_v61 }
  0x46   : > { %2750 = vmatpush.bf16.msrb.mxu0 %v7876_v11  ;;  %v8032_v11 = vpack.c.b16 %v2143_v14, %v2142_v9  ;;  %v1318_v48 = vmax.f32 %v1062_v29, 0.0  ;;  %v1558_v9 = vpack.c.bf16 %v1302_v46, %v1302_v46  ;;  %v1559_v14 = vpack.c.bf16 %v1303_v2, %v1303_v2 }
  0x47   : > { %2968 = vmatpush.bf16.msrb.mxu1 %v7883_v16  ;;  %v1912_v29 = vunpack.c.l.b16 %v1607_v7  ;;  %v804_v32 = vmul.f32 %v7794_v6, %v6191_v12  ;;  %v805_v33 = vmul.f32 %v7794_v6, %v6192_v13  ;;  %v2145_v42 = vunpack.c.l.b16 %v1575_v51  ;;  %v7313_v12 = vld [vmem:[%s7789_s12 + $0xa8] sm:$0xff]  }
  0x48   : > { %v1574_v15 = vpack.c.bf16 %v1318_v48, %v1318_v48  ;;  %v2128_v30 = vunpack.c.l.b16 %v1558_v9  ;;  %v2129_v35 = vunpack.c.l.b16 %v1559_v14  ;;  %v1080_v43 = vadd.f32 %v7802_v8, %v820_v17  ;;  %v7321_v13 = vld [vmem:[%s7789_s12 + $0xe8] sm:$0xff]   ;;  %v8100_v14 = vld [vmem:[%s10193_s3 + $0x10] sm:$0xff] }
  0x49   : > { %2429 = vmatpush.bf16.msrb.mxu2 %v7904_v34  ;;  %v1081_v46 = vadd.f32 %v7802_v8, %v821_v18  ;;  %v1096_v47 = vadd.f32 %v7802_v8, %v836_v0  ;;  %v1097_v2 = vadd.f32 %v7802_v8, %v837_v21  ;;  %v1049_v48 = vadd.f32 %v7802_v8, %v789_v28  ;;  %v7305_v18 = vld [vmem:[%s7789_s12 + $0x68] sm:$0xff]  }
  0x4a   : > { %2751 = vmatpush.bf16.msrb.mxu0 %v7895_v31  ;;  %v2144_v36 = vunpack.c.l.b16 %v1574_v15  ;;  %v8080_v50 = vpack.c.b16 %v1912_v29, %v1911_v24  ;;  %v1064_v52 = vadd.f32 %v7802_v8, %v804_v32  ;;  %v8084_v37 = vpack.c.b16 %v2129_v35, %v2128_v30 }
  0x4b   : > { %2969 = vmatpush.bf16.msrb.mxu1 %v7904_v34  ;;  %v1336_v57 = vmax.f32 %v1080_v43, 0.0  ;;  %v1352_v59 = vmax.f32 %v1096_v47, 0.0  ;;  %v1353_v60 = vmax.f32 %v1097_v2, 0.0  ;;  %v1305_v61 = vmax.f32 %v1049_v48, 0.0 }
  0x4c   : > { %2019 = vmatmul.bf16.gmra.mxu0 %v8020_v19  ;;  %2059 = vmatmul.bf16.gmra.mxu2 %v8025_v23  ;;  %v8086_v55 = vpack.c.b16 %v2145_v42, %v2144_v36  ;;  %v1320_v7 = vmax.f32 %v1064_v52, 0.0  ;;  %v6228_v24 = vunpack.c.h.bf16 %v7313_v12  ;;  %v6259_v29 = vunpack.c.l.bf16 %v7321_v13 }
  0x4d   : > { %3051 = vmatpush.bf16.msra.mxu2 %v7915_v40  ;;  %2252 = vmatmul.bf16.gmra.mxu1 %v8027_v22  ;;  %v1592_v15 = vpack.c.bf16 %v1336_v57, %v1336_v57  ;;  %v1609_v17 = vpack.c.bf16 %v1353_v60, %v1353_v60  ;;  %v1561_v21 = vpack.c.bf16 %v1305_v61, %v1305_v61  ;;  %v6260_v30 = vunpack.c.h.bf16 %v7321_v13 }
  0x4e   : > { %3454 = vmatpush.bf16.msra.mxu0 %v7755_v1  ;;  %v8052_v1 = vld [vmem:[%s10193_s3 + $0x18] sm:$0xff]  ;;  %v6195_v35 = vunpack.c.l.bf16 %v7305_v18  ;;  %v6196_v36 = vunpack.c.h.bf16 %v7305_v18  ;;  %v823_v52 = vmul.f32 %v7794_v6, %v6228_v24  ;;  %v7314_v24 = vld [vmem:[%s7789_s12 + $0xb0] sm:$0xff]  }
  0x4f   : > { %2292 = vmatmul.bf16.gmra.mxu3 %v8032_v11  ;;  %3543 = vmatpush.bf16.msra.mxu1 %v7915_v40  ;;  %v1895_v40 = vunpack.c.l.b16 %v1590_v53  ;;  %v1065_v53 = vadd.f32 %v7802_v8, %v805_v33  ;;  %v1897_v42 = vunpack.c.l.b16 %v1592_v15  ;;  %v1914_v47 = vunpack.c.l.b16 %v1609_v17 }
  0x50   : > { %2563 = vmatpush.bf16.msrb.mxu3 %v8052_v1  ;;  %v807_v61 = vmul.f32 %v7794_v6, %v6196_v36  ;;  %v1083_v13 = vadd.f32 %v7802_v8, %v823_v52  ;;  %v7306_v36 = vld [vmem:[%s7789_s12 + $0x70] sm:$0xff]  }
  0x51   : > { %3052 = vmatpush.bf16.msra.mxu2 %v7937_v56  ;;  %v1321_v9 = vmax.f32 %v1065_v53, 0.0 }
  0x52   : > { %3455 = vmatpush.bf16.msra.mxu0 %v7771_v3  ;;  %v1896_v3 = vunpack.c.l.b16 %v1591_v58  ;;  %v1337_v58 = vmax.f32 %v1081_v46, 0.0 }
  0x53   : > { %3544 = vmatpush.bf16.msra.mxu1 %v7937_v56  ;;  %v1577_v28 = vpack.c.bf16 %v1321_v9, %v1321_v9 }
  0x54   : > { %v8078_v49 = vpack.c.b16 %v1896_v3, %v1895_v40  ;;  %v1593_v51 = vpack.c.bf16 %v1337_v58, %v1337_v58  ;;  %v7297_v40 = vld [vmem:[%s7789_s12 + $0x28] sm:$0xff]   ;;  %v6227_v3 = vunpack.c.l.bf16 %v7313_v12  ;;  %2564 = vmatpush.bf16.msrb.mxu3 %v8100_v14  ;;  %v839_v58 = vmul.f32 %v7794_v6, %v6260_v30 }
  0x55   : > { %3053 = vmatpush.bf16.msra.mxu2 %v7954_v20  ;;  %v6163_v32 = vunpack.c.l.bf16 %v7297_v40  ;;  %v6164_v33 = vunpack.c.h.bf16 %v7297_v40  ;;  %v2147_v57 = vunpack.c.l.b16 %v1577_v28 }
  0x56   : > { %3456 = vmatpush.bf16.msra.mxu0 %v7782_v5  ;;  %v1048_v5 = vadd.f32 %v7802_v8, %v788_v27  ;;  %v1576_v27 = vpack.c.bf16 %v1320_v7, %v1320_v7  ;;  %v1898_v43 = vunpack.c.l.b16 %v1593_v51  ;;  %v822_v48 = vmul.f32 %v7794_v6, %v6227_v3 }
  0x57   : > { %3545 = vmatpush.bf16.msra.mxu1 %v7954_v20  ;;  %v791_v60 = vmul.f32 %v7794_v6, %v6164_v33  ;;  %v1339_v3 = vmax.f32 %v1083_v13, 0.0 }
  0x58   : > { %v2146_v53 = vunpack.c.l.b16 %v1576_v27  ;;  %v8118_v7 = vpack.c.b16 %v1898_v43, %v1897_v42  ;;  %v1082_v12 = vadd.f32 %v7802_v8, %v822_v48  ;;  %v7322_v27 = vld [vmem:[%s7789_s12 + $0xf0] sm:$0xff]   ;;  %v8146_v42 = vld [vmem:[%s10193_s3 + $0x8] sm:$0xff]  ;;  %v6231_v43 = vunpack.c.l.bf16 %v7314_v24 }
  0x59   : > { %3054 = vmatpush.bf16.msra.mxu2 %v8000_v25  ;;  %v1051_v40 = vadd.f32 %v7802_v8, %v791_v60  ;;  %v1595_v48 = vpack.c.bf16 %v1339_v3, %v1339_v3  ;;  %2565 = vmatpush.bf16.msrb.mxu3 %v8146_v42 }
  0x5a   : > { %3457 = vmatpush.bf16.msra.mxu0 %v7826_v26  ;;  %v1304_v26 = vmax.f32 %v1048_v5, 0.0  ;;  %v2131_v5 = vunpack.c.l.b16 %v1561_v21  ;;  %v1338_v21 = vmax.f32 %v1082_v12, 0.0  ;;  %v824_v13 = vmul.f32 %v7794_v6, %v6231_v43 }
  0x5b   : > { %3546 = vmatpush.bf16.msra.mxu1 %v8000_v25 }
  0x5c   : > { %2024 = vmatmul.bf16.gmra.mxu0 %v8078_v49  ;;  %2064 = vmatmul.bf16.gmra.mxu2 %v8080_v50  ;;  %v1560_v0 = vpack.c.bf16 %v1304_v26, %v1304_v26  ;;  %v806_v26 = vmul.f32 %v7794_v6, %v6195_v35 }
  0x5d   : > { %3055 = vmatpush.bf16.msra.mxu2 %v8052_v1  ;;  %2257 = vmatmul.bf16.gmra.mxu1 %v8084_v37 }
  0x5e   : > { %3458 = vmatpush.bf16.msra.mxu0 %v7850_v41  ;;  %v1608_v41 = vpack.c.bf16 %v1352_v59, %v1352_v59  ;;  %v2130_v2 = vunpack.c.l.b16 %v1560_v0  ;;  %v790_v59 = vmul.f32 %v7794_v6, %v6163_v32  ;;  %v1066_v18 = vadd.f32 %v7802_v8, %v806_v26 }
  0x5f   : > { %2297 = vmatmul.bf16.gmra.mxu3 %v8086_v55  ;;  %3547 = vmatpush.bf16.msra.mxu1 %v8052_v1  ;;  %v1067_v0 = vadd.f32 %v7802_v8, %v807_v61  ;;  %v1307_v32 = vmax.f32 %v1051_v40, 0.0 }
  0x60   : > { %v1913_v46 = vunpack.c.l.b16 %v1608_v41  ;;  %v8124_v15 = vpack.c.b16 %v2131_v5, %v2130_v2  ;;  %v1099_v41 = vadd.f32 %v7802_v8, %v839_v58  ;;  %v1050_v17 = vadd.f32 %v7802_v8, %v790_v59 }
  0x61   : > { %3056 = vmatpush.bf16.msra.mxu2 %v8100_v14  ;;  %v1322_v33 = vmax.f32 %v1066_v18, 0.0  ;;  %v1323_v35 = vmax.f32 %v1067_v0, 0.0  ;;  %v6264_v2 = vunpack.c.h.bf16 %v7322_v27  ;;  %v1594_v5 = vpack.c.bf16 %v1338_v21, %v1338_v21 }
  0x62   : > { %3459 = vmatpush.bf16.msra.mxu0 %v7867_v54  ;;  %v838_v54 = vmul.f32 %v7794_v6, %v6259_v29  ;;  %v8120_v9 = vpack.c.b16 %v1914_v47, %v1913_v46  ;;  %v1355_v29 = vmax.f32 %v1099_v41, 0.0  ;;  %v1306_v30 = vmax.f32 %v1050_v17, 0.0 }
  0x63   : > { %3548 = vmatpush.bf16.msra.mxu1 %v8100_v14  ;;  %v6232_v46 = vunpack.c.h.bf16 %v7314_v24  ;;  %v6263_v47 = vunpack.c.l.bf16 %v7322_v27  ;;  %v6199_v58 = vunpack.c.l.bf16 %v7306_v36  ;;  %v6200_v59 = vunpack.c.h.bf16 %v7306_v36 }
  0x64   : > { %v1098_v51 = vadd.f32 %v7802_v8, %v838_v54  ;;  %v1611_v54 = vpack.c.bf16 %v1355_v29, %v1355_v29  ;;  %v1562_v60 = vpack.c.bf16 %v1306_v30, %v1306_v30  ;;  %v1563_v26 = vpack.c.bf16 %v1307_v32, %v1307_v32 }
  0x65   : > { %3057 = vmatpush.bf16.msra.mxu2 %v8146_v42  ;;  %v1578_v61 = vpack.c.bf16 %v1322_v33, %v1322_v33  ;;  %v1579_v12 = vpack.c.bf16 %v1323_v35, %v1323_v35  ;;  %v840_v41 = vmul.f32 %v7794_v6, %v6263_v47  ;;  %v841_v17 = vmul.f32 %v7794_v6, %v6264_v2 }
  0x66   : > { %3460 = vmatpush.bf16.msra.mxu0 %v7883_v16  ;;  %v8126_v16 = vpack.c.b16 %v2147_v57, %v2146_v53  ;;  %v1354_v28 = vmax.f32 %v1098_v51, 0.0  ;;  %v825_v51 = vmul.f32 %v7794_v6, %v6232_v46  ;;  %v1899_v40 = vunpack.c.l.b16 %v1594_v5 }
  0x67   : > { %3549 = vmatpush.bf16.msra.mxu1 %v8146_v42  ;;  %v1900_v18 = vunpack.c.l.b16 %v1595_v48  ;;  %v1916_v24 = vunpack.c.l.b16 %v1611_v54  ;;  %v808_v27 = vmul.f32 %v7794_v6, %v6199_v58  ;;  %v2132_v29 = vunpack.c.l.b16 %v1562_v60 }
  0x68   : > { %v1610_v57 = vpack.c.bf16 %v1354_v28, %v1354_v28  ;;  %v809_v28 = vmul.f32 %v7794_v6, %v6200_v59  ;;  %v2148_v30 = vunpack.c.l.b16 %v1578_v61  ;;  %v2149_v32 = vunpack.c.l.b16 %v1579_v12 }
  0x69   : > { %v1084_v33 = vadd.f32 %v7802_v8, %v824_v13  ;;  %v1085_v35 = vadd.f32 %v7802_v8, %v825_v51  ;;  %v1100_v36 = vadd.f32 %v7802_v8, %v840_v41  ;;  %v1101_v43 = vadd.f32 %v7802_v8, %v841_v17  ;;  %v7323_v13 = vld [vmem:[%s7789_s12 + $0xf8] sm:$0xff]   ;;  %v8184_v51 = vld [vmem:[%s10193_s3] sm:$0xff] }
  0x6a   : > { %3461 = vmatpush.bf16.msra.mxu0 %v7904_v34  ;;  %v7298_v34 = vld [vmem:[%s7789_s12 + $0x30] sm:$0xff]   ;;  %v1915_v3 = vunpack.c.l.b16 %v1610_v57  ;;  %v8165_v2 = vpack.c.b16 %v1900_v18, %v1899_v40  ;;  %v1068_v5 = vadd.f32 %v7802_v8, %v808_v27  ;;  %v1069_v48 = vadd.f32 %v7802_v8, %v809_v28  ;;  %2566 = vmatpush.bf16.msrb.mxu3 %v8184_v51 }
  0x6b   : > { %v6167_v52 = vunpack.c.l.bf16 %v7298_v34  ;;  %v6168_v53 = vunpack.c.h.bf16 %v7298_v34  ;;  %v2133_v34 = vunpack.c.l.b16 %v1563_v26  ;;  %v1340_v57 = vmax.f32 %v1084_v33, 0.0  ;;  %3058 = vmatpush.bf16.msra.mxu2 %v8184_v51  ;;  %v8193_v33 = vld [vmem:[%s10193_s3 + $0xb8] sm:$0xff]  ;;  %3550 = vmatpush.bf16.msra.mxu1 %v8184_v51 }
  0x6c   : > { %2029 = vmatmul.bf16.gmra.mxu0 %v8118_v7  ;;  %2069 = vmatmul.bf16.gmra.mxu2 %v8120_v9  ;;  %v1341_v54 = vmax.f32 %v1085_v35, 0.0  ;;  %v1356_v58 = vmax.f32 %v1100_v36, 0.0  ;;  %v1357_v59 = vmax.f32 %v1101_v43, 0.0  ;;  %v1324_v61 = vmax.f32 %v1068_v5, 0.0 }
  0x6d   : > { %2262 = vmatmul.bf16.gmra.mxu1 %v8124_v15  ;;  %v792_v0 = vmul.f32 %v7794_v6, %v6167_v52  ;;  %v793_v21 = vmul.f32 %v7794_v6, %v6168_v53  ;;  %v8167_v6 = vpack.c.b16 %v1916_v24, %v1915_v3  ;;  %v8171_v52 = vpack.c.b16 %v2133_v34, %v2132_v29 }
  0x6e   : > { %v8173_v53 = vpack.c.b16 %v2149_v32, %v2148_v30  ;;  %v1325_v12 = vmax.f32 %v1069_v48, 0.0  ;;  %v1596_v41 = vpack.c.bf16 %v1340_v57, %v1340_v57  ;;  %v1597_v17 = vpack.c.bf16 %v1341_v54, %v1341_v54  ;;  %3236 = vmatpush.bf16.msra.mxu3 %v8193_v33 }
  0x6f   : > { %2302 = vmatmul.bf16.gmra.mxu3 %v8126_v16  ;;  %v1052_v46 = vadd.f32 %v7802_v8, %v792_v0  ;;  %v1053_v47 = vadd.f32 %v7802_v8, %v793_v21  ;;  %v7315_v8 = vld [vmem:[%s7789_s12 + $0xb8] sm:$0xff]   ;;  %v1612_v40 = vpack.c.bf16 %v1356_v58, %v1356_v58  ;;  %v1613_v18 = vpack.c.bf16 %v1357_v59, %v1357_v59  ;;  %v8200_v59 = vld [vmem:[%s10191_s1] ss:$0 sm:$0xff] }
  0x70   : > { %v7299_v0 = vld [vmem:[%s7789_s12 + $0x38] sm:$0xff]   ;;  %v6235_v27 = vunpack.c.l.bf16 %v7315_v8  ;;  %v6236_v28 = vunpack.c.h.bf16 %v7315_v8  ;;  %v1580_v29 = vpack.c.bf16 %v1324_v61, %v1324_v61  ;;  %v1581_v34 = vpack.c.bf16 %v1325_v12, %v1325_v12 }
  0x71   : > { %v1308_v60 = vmax.f32 %v1052_v46, 0.0  ;;  %v1309_v26 = vmax.f32 %v1053_v47, 0.0  ;;  %v7307_v21 = vld [vmem:[%s7789_s12 + $0x78] sm:$0xff]   ;;  %v6267_v30 = vunpack.c.l.bf16 %v7323_v13  ;;  %v6268_v32 = vunpack.c.h.bf16 %v7323_v13 }
  0x72   : > { %v6171_v35 = vunpack.c.l.bf16 %v7299_v0  ;;  %v6172_v36 = vunpack.c.h.bf16 %v7299_v0  ;;  %v6203_v43 = vunpack.c.l.bf16 %v7307_v21  ;;  %v6204_v46 = vunpack.c.h.bf16 %v7307_v21 }
  0x73   : > { %v1564_v3 = vpack.c.bf16 %v1308_v60, %v1308_v60  ;;  %v1565_v24 = vpack.c.bf16 %v1309_v26, %v1309_v26  ;;  %v1901_v47 = vunpack.c.l.b16 %v1596_v41  ;;  %v1902_v5 = vunpack.c.l.b16 %v1597_v17  ;;  %v8209_v41 = vld [vmem:[%s10193_s3 + $0xb0] sm:$0xff] }
  0x74   : > { %v1917_v48 = vunpack.c.l.b16 %v1612_v40  ;;  %v1918_v57 = vunpack.c.l.b16 %v1613_v18  ;;  %v826_v60 = vmul.f32 %v8200_v59, %v6235_v27  ;;  %v827_v26 = vmul.f32 %v8200_v59, %v6236_v28  ;;  %3237 = vmatpush.bf16.msra.mxu3 %v8209_v41 }
  0x75   : > { %v2134_v54 = vunpack.c.l.b16 %v1564_v3  ;;  %v2135_v58 = vunpack.c.l.b16 %v1565_v24  ;;  %v2150_v61 = vunpack.c.l.b16 %v1580_v29  ;;  %v2151_v12 = vunpack.c.l.b16 %v1581_v34  ;;  %v8223_v24 = vld [vmem:[%s10192_s2] ss:$0 sm:$0xff] }
  0x76   : > { %v842_v8 = vmul.f32 %v8200_v59, %v6267_v30  ;;  %v843_v13 = vmul.f32 %v8200_v59, %v6268_v32  ;;  %v794_v17 = vmul.f32 %v8200_v59, %v6171_v35  ;;  %v795_v40 = vmul.f32 %v8200_v59, %v6172_v36  ;;  %v8236_v35 = vld [vmem:[%s10193_s3 + $0xa8] sm:$0xff] }
  0x77   : > { %v810_v18 = vmul.f32 %v8200_v59, %v6203_v43  ;;  %v811_v0 = vmul.f32 %v8200_v59, %v6204_v46  ;;  %v8216_v21 = vpack.c.b16 %v1902_v5, %v1901_v47  ;;  %v8218_v3 = vpack.c.b16 %v1918_v57, %v1917_v48 }
  0x78   : > { %v1086_v27 = vadd.f32 %v8223_v24, %v826_v60  ;;  %v1087_v28 = vadd.f32 %v8223_v24, %v827_v26  ;;  %v8227_v29 = vpack.c.b16 %v2135_v58, %v2134_v54  ;;  %v8229_v34 = vpack.c.b16 %v2151_v12, %v2150_v61  ;;  %3238 = vmatpush.bf16.msra.mxu3 %v8236_v35  ;;  %v7324_v12 = vld [vmem:[%s7789_s12 + $0x100] sm:$0xff]  }
  0x79   : > { %10216 = vst [vmem:[#allocation2_spill] sm:$0xff] %v8218_v3  ;;  %v1102_v30 = vadd.f32 %v8223_v24, %v842_v8  ;;  %v1103_v32 = vadd.f32 %v8223_v24, %v843_v13  ;;  %v1054_v36 = vadd.f32 %v8223_v24, %v794_v17  ;;  %v1055_v43 = vadd.f32 %v8223_v24, %v795_v40  ;;  %v8251_v8 = vld [vmem:[%s10193_s3 + $0xa0] sm:$0xff] }
  0x7a   : > { %10217 = vst [vmem:[#allocation3_spill] sm:$0xff] %v8229_v34  ;;  %v1070_v46 = vadd.f32 %v8223_v24, %v810_v18  ;;  %v1071_v47 = vadd.f32 %v8223_v24, %v811_v0  ;;  %v1342_v5 = vmax.f32 %v1086_v27, 0.0  ;;  %v1343_v48 = vmax.f32 %v1087_v28, 0.0 }
  0x7b   : > { %v1358_v57 = vmax.f32 %v1102_v30, 0.0  ;;  %v1359_v54 = vmax.f32 %v1103_v32, 0.0  ;;  %v1310_v58 = vmax.f32 %v1054_v36, 0.0  ;;  %v1311_v60 = vmax.f32 %v1055_v43, 0.0  ;;  %v8257_v43 = vld [vmem:[%s10193_s3 + $0x98] sm:$0xff] }
  0x7c   : > { %2034 = vmatmul.bf16.gmra.mxu0 %v8165_v2  ;;  %2074 = vmatmul.bf16.gmra.mxu2 %v8167_v6  ;;  %v1326_v26 = vmax.f32 %v1070_v46, 0.0  ;;  %v1327_v61 = vmax.f32 %v1071_v47, 0.0  ;;  %v1598_v13 = vpack.c.bf16 %v1342_v5, %v1342_v5  ;;  %v1599_v17 = vpack.c.bf16 %v1343_v48, %v1343_v48 }
  0x7d   : > { %2267 = vmatmul.bf16.gmra.mxu1 %v8171_v52  ;;  %3239 = vmatpush.bf16.msra.mxu3 %v8251_v8  ;;  %v1614_v40 = vpack.c.bf16 %v1358_v57, %v1358_v57  ;;  %v1615_v18 = vpack.c.bf16 %v1359_v54, %v1359_v54  ;;  %v6271_v0 = vunpack.c.l.bf16 %v7324_v12  ;;  %v6272_v27 = vunpack.c.h.bf16 %v7324_v12 }
  0x7e   : > { %v1566_v28 = vpack.c.bf16 %v1310_v58, %v1310_v58  ;;  %v1567_v30 = vpack.c.bf16 %v1311_v60, %v1311_v60  ;;  %v1582_v32 = vpack.c.bf16 %v1326_v26, %v1326_v26  ;;  %v1583_v36 = vpack.c.bf16 %v1327_v61, %v1327_v61  ;;  %v8265_v61 = vld [vmem:[%s10193_s3 + $0x90] sm:$0xff] }
  0x7f   : > { %2307 = vmatmul.bf16.gmra.mxu3 %v8173_v53  ;;  %v1903_v46 = vunpack.c.l.b16 %v1598_v13  ;;  %v1904_v47 = vunpack.c.l.b16 %v1599_v17  ;;  %v1920_v5 = vunpack.c.l.b16 %v1615_v18  ;;  %v844_v48 = vmul.f32 %v8200_v59, %v6271_v0 }
  0x80   : > { %v845_v57 = vmul.f32 %v8200_v59, %v6272_v27  ;;  %v2136_v54 = vunpack.c.l.b16 %v1566_v28  ;;  %v2137_v58 = vunpack.c.l.b16 %v1567_v30  ;;  %v2152_v60 = vunpack.c.l.b16 %v1582_v32  ;;  %v8281_v27 = vld [vmem:[%s10193_s3 + $0x88] sm:$0xff] }
  0x81   : > { %3240 = vmatpush.bf16.msra.mxu3 %v8257_v43  ;;  %v2153_v26 = vunpack.c.l.b16 %v1583_v36  ;;  %v8268_v12 = vpack.c.b16 %v1904_v47, %v1903_v46  ;;  %v1104_v17 = vadd.f32 %v8223_v24, %v844_v48  ;;  %v7325_v30 = vld [vmem:[%s7789_s12 + $0x108] sm:$0xff]  }
  0x82   : > { %v8274_v18 = vpack.c.b16 %v2137_v58, %v2136_v54  ;;  %v6275_v46 = vunpack.c.l.bf16 %v7325_v30  ;;  %v6276_v47 = vunpack.c.h.bf16 %v7325_v30  ;;  %v7599_v30 = vld [vmem:[%s10193_s3 + $0x78] sm:$0xff] }
  0x83   : > { %v8276_v0 = vpack.c.b16 %v2153_v26, %v2152_v60 }
  0x84   : > { %v847_v54 = vmul.f32 %v8200_v59, %v6276_v47 }
  0x85   : > { %3241 = vmatpush.bf16.msra.mxu3 %v8265_v61 }
  0x86   : > { %v1107_v26 = vadd.f32 %v8223_v24, %v847_v54  ;;  %v8312_v54 = vld [vmem:[%s10194_s4] ss:$0 sm:$0xff] }
  0x89   : > { %3242 = vmatpush.bf16.msra.mxu3 %v8281_v27 }
  0x8c   : > { %2039 = vmatmul.bf16.gmra.mxu0 %v8216_v21  ;;  %2079 = vmatmul.bf16.gmra.mxu2 %v8218_v3 }
  0x8d   : > { %2272 = vmatmul.bf16.gmra.mxu1 %v8227_v29  ;;  %3243 = vmatpush.bf16.msra.mxu3 %v7895_v31 }
  0x8f   : > { %2312 = vmatmul.bf16.gmra.mxu3 %v8229_v34  ;;  %v1919_v34 = vunpack.c.l.b16 %v1614_v40  ;;  %v1105_v40 = vadd.f32 %v8223_v24, %v845_v57  ;;  %v846_v57 = vmul.f32 %v8200_v59, %v6275_v46  ;;  %v7600_v46 = vld [vmem:[%s10193_s3 + $0x38] sm:$0xff] }
  0x91   : > { %v8270_v13 = vpack.c.b16 %v1920_v5, %v1919_v34  ;;  %v1360_v34 = vmax.f32 %v1104_v17, 0.0  ;;  %v1361_v28 = vmax.f32 %v1105_v40, 0.0  ;;  %v1106_v60 = vadd.f32 %v8223_v24, %v846_v57 }
  0x93   : > { %v1616_v32 = vpack.c.bf16 %v1360_v34, %v1360_v34  ;;  %v1617_v36 = vpack.c.bf16 %v1361_v28, %v1361_v28  ;;  %v1362_v31 = vmax.f32 %v1106_v60, 0.0  ;;  %v1363_v34 = vmax.f32 %v1107_v26, 0.0  ;;  %v7326_v28 = vld [vmem:[%s7789_s12 + $0x110] sm:$0xff]  }
  0x94   : > { %v6280_v57 = vunpack.c.h.bf16 %v7326_v28 }
  0x95   : > { %v2680_v5 = vunpack.c.l.b16 %v1616_v32  ;;  %v2681_v48 = vunpack.c.l.b16 %v1617_v36  ;;  %v1618_v47 = vpack.c.bf16 %v1362_v31, %v1362_v31 }
  0x97   : > { %v8292_v58 = vpack.c.b16 %v2681_v48, %v2680_v5  ;;  %v1619_v5 = vpack.c.bf16 %v1363_v34, %v1363_v34  ;;  %v6279_v48 = vunpack.c.l.bf16 %v7326_v28  ;;  %v2682_v31 = vunpack.c.l.b16 %v1618_v47 }
  0x99   : > { %v2683_v34 = vunpack.c.l.b16 %v1619_v5  ;;  %v848_v28 = vmul.f32 %v8200_v59, %v6279_v48 }
  0x9b   : > { %v8336_v48 = vpack.c.b16 %v2683_v34, %v2682_v31  ;;  %v7327_v34 = vld [vmem:[%s7789_s12 + $0x118] sm:$0xff]  }
  0x9c   : > { %2044 = vmatmul.bf16.gmra.mxu0 %v8268_v12  ;;  %2084 = vmatmul.bf16.gmra.mxu2 %v8270_v13 }
  0x9d   : > { %2277 = vmatmul.bf16.gmra.mxu1 %v8274_v18 }
  0x9f   : > { %2317 = vmatmul.bf16.gmra.mxu3 %v8276_v0 }
  0xa9   : > { %v2010_v17 = vpop.f32.mrf.mxu0 }
  0xaa   : > { %v2243_v40 = vpop.f32.mrf.mxu1 }
  0xab   : > { %v2244_v32 = vadd.f32 %v2243_v40, %v2010_v17  ;;  %v7601_v17 = vld [vmem:[%s10193_s3 + $0x70] sm:$0xff] }
  0xac   : > { %2430 = vmatmul.bf16.vlgmr.msrb.gmra.mxu2 %v7908_v38  ;;  %2752 = vmatmul.bf16.vlgmr.msrb.gmra.mxu0 %v8292_v58 }
  0xad   : > { %2970 = vmatmul.bf16.vlgmr.msrb.gmra.mxu1 %v8292_v58  ;;  %3728 = vmatpush.bf16.msrb.mxu2 %v8193_v33 }
  0xae   : > { %4035 = vmatpush.bf16.msrb.mxu0 %v7600_v46  ;;  %4220 = vmatpush.bf16.msrb.mxu1 %v8193_v33  ;;  %v2326_v33 = vadd.f32 %v8312_v54, %v2244_v32 }
  0xaf   : > { %2567 = vmatmul.bf16.vlgmr.msrb.gmra.mxu3 %v7919_v44  ;;  %v2050_v36 = vpop.f32.mrf.mxu2 }
  0xb0   : > { %3946 = vmatpush.bf16.msrb.mxu3 %v7599_v30  ;;  %v849_v30 = vmul.f32 %v8200_v59, %v6280_v57  ;;  %v1108_v57 = vadd.f32 %v8223_v24, %v848_v28 }
  0xb1   : > { %v2012_v60 = vpop.f32.mrf.mxu0  ;;  %3729 = vmatpush.bf16.msrb.mxu2 %v8209_v41 }
  0xb2   : > { %v2283_v44 = vpop.f32.mrf.mxu3  ;;  %v2245_v26 = vpop.f32.mrf.mxu1  ;;  %4036 = vmatpush.bf16.msrb.mxu0 %v7937_v56  ;;  %4221 = vmatpush.bf16.msrb.mxu1 %v8209_v41  ;;  %v7602_v56 = vld [vmem:[%s10193_s3 + $0x68] sm:$0xff] }
  0xb3   : > { %v2246_v40 = vadd.f32 %v2245_v26, %v2012_v60  ;;  %v2284_v32 = vadd.f32 %v2283_v44, %v2050_v36  ;;  %v1109_v60 = vadd.f32 %v8223_v24, %v849_v30 }
  0xb4   : > { %3947 = vmatpush.bf16.msrb.mxu3 %v7601_v17 }
  0xb5   : > { %v2327_v46 = vadd.f32 %v8312_v54, %v2246_v40  ;;  %3730 = vmatpush.bf16.msrb.mxu2 %v8236_v35  ;;  %v2342_v36 = vadd.f32 %v8312_v54, %v2284_v32  ;;  %v6283_v32 = vunpack.c.l.bf16 %v7327_v34 }
  0xb6   : > { %4037 = vmatpush.bf16.msrb.mxu0 %v7954_v20  ;;  %4222 = vmatpush.bf16.msrb.mxu1 %v8236_v35  ;;  %v7603_v20 = vld [vmem:[%s10193_s3 + $0x60] sm:$0xff]  ;;  %v1364_v35 = vmax.f32 %v1108_v57, 0.0 }
  0xb7   : > { %v6656_v47 = vpack.c.bf16 %v2327_v46, %v2326_v33  ;;  %v2052_v5 = vpop.f32.mrf.mxu2  ;;  %v1365_v33 = vmax.f32 %v1109_v60, 0.0  ;;  %v7605_v60 = vld [vmem:[%s10193_s3 + $0x50] sm:$0xff] }
  0xb8   : > { %3948 = vmatpush.bf16.msrb.mxu3 %v7602_v56  ;;  %v1620_v56 = vpack.c.bf16 %v1364_v35, %v1364_v35  ;;  %v7606_v35 = vld [vmem:[%s10193_s3 + $0x48] sm:$0xff] }
  0xb9   : > { %6657 = vst [vmem:[%s8329_s28] sm:$0xff] %v6656_v47   ;;  %v2015_v17 = vpop.f32.mrf.mxu0  ;;  %3731 = vmatpush.bf16.msrb.mxu2 %v8251_v8  ;;  %v6284_v47 = vunpack.c.h.bf16 %v7327_v34 }
  0xba   : > { %v2285_v41 = vpop.f32.mrf.mxu3  ;;  %v2248_v40 = vpop.f32.mrf.mxu1  ;;  %4038 = vmatpush.bf16.msrb.mxu0 %v8000_v25  ;;  %4223 = vmatpush.bf16.msrb.mxu1 %v8251_v8  ;;  %v7604_v25 = vld [vmem:[%s10193_s3 + $0x58] sm:$0xff] }
  0xbb   : > { %v2286_v26 = vadd.f32 %v2285_v41, %v2052_v5  ;;  %v2249_v28 = vadd.f32 %v2248_v40, %v2015_v17  ;;  %v850_v17 = vmul.f32 %v8200_v59, %v6283_v32  ;;  %v851_v40 = vmul.f32 %v8200_v59, %v6284_v47  ;;  %v7328_v47 = vld [vmem:[%s7789_s12 + $0x120] sm:$0xff]  }
  0xbc   : > { %3949 = vmatpush.bf16.msrb.mxu3 %v7603_v20  ;;  %2435 = vmatmul.bf16.gmra.mxu2 %v7976_v62 }
  0xbd   : > { %v2343_v44 = vadd.f32 %v8312_v54, %v2286_v26  ;;  %2757 = vmatmul.bf16.gmra.mxu0 %v8336_v48  ;;  %2975 = vmatmul.bf16.gmra.mxu1 %v8336_v48  ;;  %v2328_v8 = vadd.f32 %v8312_v54, %v2249_v28  ;;  %v1110_v34 = vadd.f32 %v8223_v24, %v850_v17 }
  0xbe   : > { %3732 = vmatpush.bf16.msrb.mxu2 %v8257_v43  ;;  %4039 = vmatpush.bf16.msrb.mxu0 %v8052_v1  ;;  %v2684_v1 = vunpack.c.l.b16 %v1620_v56 }
  0xbf   : > { %v6696_v31 = vpack.c.bf16 %v2343_v44, %v2342_v36  ;;  %2572 = vmatmul.bf16.gmra.mxu3 %v7982_v10  ;;  %v2055_v30 = vpop.f32.mrf.mxu2  ;;  %v1621_v10 = vpack.c.bf16 %v1365_v33, %v1365_v33  ;;  %4224 = vmatpush.bf16.msrb.mxu1 %v8257_v43 }
  0xc0   : > { %3950 = vmatpush.bf16.msrb.mxu3 %v7604_v25  ;;  %v7607_v25 = vld [vmem:[%s10193_s3 + $0x80] sm:$0xff] }
  0xc1   : > { %7427 = vst [vmem:[%s8329_s28 + $0x40] sm:$0xff] %v6696_v31   ;;  %v2017_v5 = vpop.f32.mrf.mxu0  ;;  %v2685_v26 = vunpack.c.l.b16 %v1621_v10 }
  0xc2   : > { %v2288_v46 = vpop.f32.mrf.mxu3  ;;  %v2250_v41 = vpop.f32.mrf.mxu1  ;;  %3733 = vmatpush.bf16.msrb.mxu2 %v8265_v61  ;;  %4040 = vmatpush.bf16.msrb.mxu0 %v8100_v14  ;;  %v1111_v14 = vadd.f32 %v8223_v24, %v851_v40 }
  0xc3   : > { %v2251_v57 = vadd.f32 %v2250_v41, %v2017_v5  ;;  %4225 = vmatpush.bf16.msrb.mxu1 %v8265_v61  ;;  %v2289_v20 = vadd.f32 %v2288_v46, %v2055_v30  ;;  %v8376_v31 = vpack.c.b16 %v2685_v26, %v2684_v1  ;;  %v6287_v1 = vunpack.c.l.bf16 %v7328_v47 }
  0xc4   : > { %3951 = vmatpush.bf16.msrb.mxu3 %v7605_v60  ;;  %v1367_v10 = vmax.f32 %v1111_v14, 0.0  ;;  %v6288_v26 = vunpack.c.h.bf16 %v7328_v47 }
  0xc5   : > { %v2329_v43 = vadd.f32 %v8312_v54, %v2251_v57  ;;  %v2344_v46 = vadd.f32 %v8312_v54, %v2289_v20 }
  0xc6   : > { %3734 = vmatpush.bf16.msrb.mxu2 %v8281_v27  ;;  %4041 = vmatpush.bf16.msrb.mxu0 %v8146_v42  ;;  %v7608_v42 = vld [vmem:[%s10193_s3 + $0x40] sm:$0xff]  ;;  %v1623_v60 = vpack.c.bf16 %v1367_v10, %v1367_v10 }
  0xc7   : > { %v6661_v36 = vpack.c.bf16 %v2329_v43, %v2328_v8  ;;  %v2057_v44 = vpop.f32.mrf.mxu2  ;;  %4226 = vmatpush.bf16.msrb.mxu1 %v8281_v27  ;;  %v1366_v27 = vmax.f32 %v1110_v34, 0.0 }
  0xc8   : > { %3952 = vmatpush.bf16.msrb.mxu3 %v7606_v35 }
  0xc9   : > { %7420 = vst [vmem:[%s8329_s28 + $0x8] sm:$0xff] %v6661_v36   ;;  %v2020_v28 = vpop.f32.mrf.mxu0  ;;  %v1622_v57 = vpack.c.bf16 %v1366_v27, %v1366_v27  ;;  %v2687_v36 = vunpack.c.l.b16 %v1623_v60 }
  0xca   : > { %v2290_v33 = vpop.f32.mrf.mxu3  ;;  %v2253_v30 = vpop.f32.mrf.mxu1  ;;  %3735 = vmatpush.bf16.msrb.mxu2 %v7607_v25  ;;  %4042 = vmatpush.bf16.msrb.mxu0 %v8184_v51  ;;  %v853_v51 = vmul.f32 %v8200_v59, %v6288_v26 }
  0xcb   : > { %v2291_v61 = vadd.f32 %v2290_v33, %v2057_v44  ;;  %4227 = vmatpush.bf16.msrb.mxu1 %v7607_v25  ;;  %v2254_v5 = vadd.f32 %v2253_v30, %v2020_v28  ;;  %v2686_v20 = vunpack.c.l.b16 %v1622_v57  ;;  %v852_v44 = vmul.f32 %v8200_v59, %v6287_v1 }
  0xcc   : > { %3953 = vmatpush.bf16.msrb.mxu3 %v7608_v42  ;;  %2440 = vmatmul.bf16.gmra.mxu2 %v8020_v19  ;;  %v1113_v25 = vadd.f32 %v8223_v24, %v853_v51 }
  0xcd   : > { %v2345_v56 = vadd.f32 %v8312_v54, %v2291_v61  ;;  %2762 = vmatmul.bf16.gmra.mxu0 %v8376_v31  ;;  %2980 = vmatmul.bf16.gmra.mxu1 %v8376_v31  ;;  %v2330_v43 = vadd.f32 %v8312_v54, %v2254_v5  ;;  %v8402_v28 = vpack.c.b16 %v2687_v36, %v2686_v20 }
  0xce   : > { %v1112_v30 = vadd.f32 %v8223_v24, %v852_v44  ;;  %v1369_v47 = vmax.f32 %v1113_v25, 0.0 }
  0xcf   : > { %v6701_v32 = vpack.c.bf16 %v2345_v56, %v2344_v46  ;;  %2577 = vmatmul.bf16.gmra.mxu3 %v8027_v22  ;;  %v2060_v41 = vpop.f32.mrf.mxu2 }
  0xd0   : > { %v1625_v26 = vpack.c.bf16 %v1369_v47, %v1369_v47 }
  0xd1   : > { %7428 = vst [vmem:[%s8329_s28 + $0x48] sm:$0xff] %v6701_v32   ;;  %v2022_v17 = vpop.f32.mrf.mxu0  ;;  %v1368_v32 = vmax.f32 %v1112_v30, 0.0 }
  0xd2   : > { %v2293_v8 = vpop.f32.mrf.mxu3  ;;  %v2255_v40 = vpop.f32.mrf.mxu1  ;;  %v2689_v51 = vunpack.c.l.b16 %v1625_v26 }
  0xd3   : > { %v2256_v22 = vadd.f32 %v2255_v40, %v2022_v17  ;;  %v2294_v33 = vadd.f32 %v2293_v8, %v2060_v41  ;;  %v7329_v41 = vld [vmem:[%s7789_s12 + $0x128] sm:$0xff]   ;;  %v1624_v1 = vpack.c.bf16 %v1368_v32, %v1368_v32 }
  0xd4   : > { %v6291_v17 = vunpack.c.l.bf16 %v7329_v41  ;;  %v6292_v40 = vunpack.c.h.bf16 %v7329_v41 }
  0xd5   : > { %v2331_v35 = vadd.f32 %v8312_v54, %v2256_v22  ;;  %v2346_v27 = vadd.f32 %v8312_v54, %v2294_v33  ;;  %v2688_v44 = vunpack.c.l.b16 %v1624_v1 }
  0xd7   : > { %v6666_v34 = vpack.c.bf16 %v2331_v35, %v2330_v43  ;;  %v2062_v14 = vpop.f32.mrf.mxu2  ;;  %v855_v35 = vmul.f32 %v8200_v59, %v6292_v40  ;;  %v8419_v25 = vpack.c.b16 %v2689_v51, %v2688_v44 }
  0xd9   : > { %7421 = vst [vmem:[%s8329_s28 + $0x10] sm:$0xff] %v6666_v34   ;;  %v2025_v56 = vpop.f32.mrf.mxu0 }
  0xda   : > { %v2295_v61 = vpop.f32.mrf.mxu3  ;;  %v2258_v42 = vpop.f32.mrf.mxu1 }
  0xdb   : > { %v2296_v46 = vadd.f32 %v2295_v61, %v2062_v14  ;;  %v2259_v8 = vadd.f32 %v2258_v42, %v2025_v56  ;;  %v1115_v56 = vadd.f32 %v8223_v24, %v855_v35 }
  0xdc   : > { %2445 = vmatmul.bf16.gmra.mxu2 %v8078_v49 }
  0xdd   : > { %v2347_v10 = vadd.f32 %v8312_v54, %v2296_v46  ;;  %2767 = vmatmul.bf16.gmra.mxu0 %v8402_v28  ;;  %2985 = vmatmul.bf16.gmra.mxu1 %v8402_v28  ;;  %v2332_v20 = vadd.f32 %v8312_v54, %v2259_v8  ;;  %v1371_v41 = vmax.f32 %v1115_v56, 0.0 }
  0xdf   : > { %v6706_v5 = vpack.c.bf16 %v2347_v10, %v2346_v27  ;;  %2582 = vmatmul.bf16.gmra.mxu3 %v8084_v37  ;;  %v2065_v57 = vpop.f32.mrf.mxu2  ;;  %v854_v37 = vmul.f32 %v8200_v59, %v6291_v17  ;;  %v1627_v40 = vpack.c.bf16 %v1371_v41, %v1371_v41 }
  0xe1   : > { %7429 = vst [vmem:[%s8329_s28 + $0x50] sm:$0xff] %v6706_v5   ;;  %v2027_v43 = vpop.f32.mrf.mxu0  ;;  %v1114_v46 = vadd.f32 %v8223_v24, %v854_v37  ;;  %v2691_v35 = vunpack.c.l.b16 %v1627_v40 }
  0xe2   : > { %v2298_v60 = vpop.f32.mrf.mxu3  ;;  %v2260_v22 = vpop.f32.mrf.mxu1 }
  0xe3   : > { %v2261_v36 = vadd.f32 %v2260_v22, %v2027_v43  ;;  %v2299_v34 = vadd.f32 %v2298_v60, %v2065_v57  ;;  %v1370_v5 = vmax.f32 %v1114_v46, 0.0  ;;  %v7330_v57 = vld [vmem:[%s7789_s12 + $0x130] sm:$0xff]  }
  0xe4   : > { %v6295_v43 = vunpack.c.l.bf16 %v7330_v57  ;;  %v6296_v22 = vunpack.c.h.bf16 %v7330_v57 }
  0xe5   : > { %v2333_v33 = vadd.f32 %v8312_v54, %v2261_v36  ;;  %v2348_v32 = vadd.f32 %v8312_v54, %v2299_v34  ;;  %v1626_v17 = vpack.c.bf16 %v1370_v5, %v1370_v5 }
  0xe7   : > { %v6671_v14 = vpack.c.bf16 %v2333_v33, %v2332_v20  ;;  %v2067_v61 = vpop.f32.mrf.mxu2  ;;  %v2690_v37 = vunpack.c.l.b16 %v1626_v17  ;;  %v857_v33 = vmul.f32 %v8200_v59, %v6296_v22 }
  0xe9   : > { %7422 = vst [vmem:[%s8329_s28 + $0x18] sm:$0xff] %v6671_v14   ;;  %v2030_v27 = vpop.f32.mrf.mxu0  ;;  %v8436_v56 = vpack.c.b16 %v2691_v35, %v2690_v37 }
  0xea   : > { %v2300_v30 = vpop.f32.mrf.mxu3  ;;  %v2263_v10 = vpop.f32.mrf.mxu1 }
  0xeb   : > { %v2301_v42 = vadd.f32 %v2300_v30, %v2067_v61  ;;  %v2264_v60 = vadd.f32 %v2263_v10, %v2030_v27  ;;  %v1117_v27 = vadd.f32 %v8223_v24, %v857_v33 }
  0xec   : > { %2450 = vmatmul.bf16.gmra.mxu2 %v8118_v7 }
  0xed   : > { %v2349_v47 = vadd.f32 %v8312_v54, %v2301_v42  ;;  %2772 = vmatmul.bf16.gmra.mxu0 %v8419_v25  ;;  %2990 = vmatmul.bf16.gmra.mxu1 %v8419_v25  ;;  %v2334_v44 = vadd.f32 %v8312_v54, %v2264_v60  ;;  %v1373_v57 = vmax.f32 %v1117_v27, 0.0 }
  0xef   : > { %v6711_v8 = vpack.c.bf16 %v2349_v47, %v2348_v32  ;;  %2587 = vmatmul.bf16.gmra.mxu3 %v8124_v15  ;;  %v2070_v1 = vpop.f32.mrf.mxu2  ;;  %v856_v15 = vmul.f32 %v8200_v59, %v6295_v43  ;;  %v1629_v22 = vpack.c.bf16 %v1373_v57, %v1373_v57 }
  0xf1   : > { %7430 = vst [vmem:[%s8329_s28 + $0x58] sm:$0xff] %v6711_v8   ;;  %v2032_v20 = vpop.f32.mrf.mxu0  ;;  %v1116_v42 = vadd.f32 %v8223_v24, %v856_v15  ;;  %v2693_v33 = vunpack.c.l.b16 %v1629_v22 }
  0xf2   : > { %v2303_v26 = vpop.f32.mrf.mxu3  ;;  %v2265_v36 = vpop.f32.mrf.mxu1 }
  0xf3   : > { %v2266_v51 = vadd.f32 %v2265_v36, %v2032_v20  ;;  %v2304_v14 = vadd.f32 %v2303_v26, %v2070_v1  ;;  %v1372_v8 = vmax.f32 %v1116_v42, 0.0  ;;  %v7331_v1 = vld [vmem:[%s7789_s12 + $0x138] sm:$0xff]  }
  0xf4   : > { %v6299_v20 = vunpack.c.l.bf16 %v7331_v1  ;;  %v6300_v36 = vunpack.c.h.bf16 %v7331_v1 }
  0xf5   : > { %v2335_v34 = vadd.f32 %v8312_v54, %v2266_v51  ;;  %v2350_v5 = vadd.f32 %v8312_v54, %v2304_v14  ;;  %v1628_v43 = vpack.c.bf16 %v1372_v8, %v1372_v8 }
  0xf7   : > { %v6676_v61 = vpack.c.bf16 %v2335_v34, %v2334_v44  ;;  %v2072_v30 = vpop.f32.mrf.mxu2  ;;  %v2692_v15 = vunpack.c.l.b16 %v1628_v43  ;;  %v859_v34 = vmul.f32 %v8200_v59, %v6300_v36 }
  0xf9   : > { %7423 = vst [vmem:[%s8329_s28 + $0x20] sm:$0xff] %v6676_v61   ;;  %v2035_v32 = vpop.f32.mrf.mxu0  ;;  %v8453_v27 = vpack.c.b16 %v2693_v33, %v2692_v15 }
  0xfa   : > { %v2305_v46 = vpop.f32.mrf.mxu3  ;;  %v2268_v47 = vpop.f32.mrf.mxu1 }
  0xfb   : > { %v2306_v10 = vadd.f32 %v2305_v46, %v2072_v30  ;;  %v2269_v26 = vadd.f32 %v2268_v47, %v2035_v32  ;;  %v1119_v32 = vadd.f32 %v8223_v24, %v859_v34 }
  0xfc   : > { %2455 = vmatmul.bf16.gmra.mxu2 %v8165_v2 }
  0xfd   : > { %v2351_v41 = vadd.f32 %v8312_v54, %v2306_v10  ;;  %2777 = vmatmul.bf16.gmra.mxu0 %v8436_v56  ;;  %2995 = vmatmul.bf16.gmra.mxu1 %v8436_v56  ;;  %v2336_v37 = vadd.f32 %v8312_v54, %v2269_v26  ;;  %v1375_v1 = vmax.f32 %v1119_v32, 0.0 }
  0xff   : > { %v6716_v60 = vpack.c.bf16 %v2351_v41, %v2350_v5  ;;  %2592 = vmatmul.bf16.gmra.mxu3 %v8171_v52  ;;  %v2075_v17 = vpop.f32.mrf.mxu2  ;;  %v858_v52 = vmul.f32 %v8200_v59, %v6299_v20  ;;  %v1631_v36 = vpack.c.bf16 %v1375_v1, %v1375_v1 }
 0x101   : > { %7431 = vst [vmem:[%s8329_s28 + $0x60] sm:$0xff] %v6716_v60   ;;  %v2037_v44 = vpop.f32.mrf.mxu0  ;;  %v1118_v10 = vadd.f32 %v8223_v24, %v858_v52  ;;  %v2695_v34 = vunpack.c.l.b16 %v1631_v36 }
 0x102   : > { %v2308_v40 = vpop.f32.mrf.mxu3  ;;  %v2270_v51 = vpop.f32.mrf.mxu1 }
 0x103   : > { %v2271_v35 = vadd.f32 %v2270_v51, %v2037_v44  ;;  %v2309_v61 = vadd.f32 %v2308_v40, %v2075_v17  ;;  %v1374_v60 = vmax.f32 %v1118_v10, 0.0  ;;  %v7332_v17 = vld [vmem:[%s7789_s12 + $0x140] sm:$0xff]  }
 0x104   : > { %v6303_v44 = vunpack.c.l.bf16 %v7332_v17  ;;  %v6304_v51 = vunpack.c.h.bf16 %v7332_v17 }
 0x105   : > { %v2337_v14 = vadd.f32 %v8312_v54, %v2271_v35  ;;  %v2352_v8 = vadd.f32 %v8312_v54, %v2309_v61  ;;  %v1630_v20 = vpack.c.bf16 %v1374_v60, %v1374_v60 }
 0x107   : > { %v6681_v30 = vpack.c.bf16 %v2337_v14, %v2336_v37  ;;  %v2077_v46 = vpop.f32.mrf.mxu2  ;;  %v2694_v52 = vunpack.c.l.b16 %v1630_v20  ;;  %v861_v14 = vmul.f32 %v8200_v59, %v6304_v51 }
 0x109   : > { %7424 = vst [vmem:[%s8329_s28 + $0x28] sm:$0xff] %v6681_v30   ;;  %v2040_v5 = vpop.f32.mrf.mxu0  ;;  %v8470_v32 = vpack.c.b16 %v2695_v34, %v2694_v52 }
 0x10a   : > { %v2310_v42 = vpop.f32.mrf.mxu3  ;;  %v2273_v41 = vpop.f32.mrf.mxu1 }
 0x10b   : > { %v2311_v47 = vadd.f32 %v2310_v42, %v2077_v46  ;;  %v2274_v40 = vadd.f32 %v2273_v41, %v2040_v5  ;;  %v1121_v5 = vadd.f32 %v8223_v24, %v861_v14 }
 0x10c   : > { %2460 = vmatmul.bf16.gmra.mxu2 %v8216_v21 }
 0x10d   : > { %v2353_v57 = vadd.f32 %v8312_v54, %v2311_v47  ;;  %2782 = vmatmul.bf16.gmra.mxu0 %v8453_v27  ;;  %3000 = vmatmul.bf16.gmra.mxu1 %v8453_v27  ;;  %v2338_v15 = vadd.f32 %v8312_v54, %v2274_v40  ;;  %v1377_v17 = vmax.f32 %v1121_v5, 0.0 }
 0x10f   : > { %v6721_v26 = vpack.c.bf16 %v2353_v57, %v2352_v8  ;;  %2597 = vmatmul.bf16.gmra.mxu3 %v8227_v29  ;;  %v2080_v43 = vpop.f32.mrf.mxu2  ;;  %v860_v29 = vmul.f32 %v8200_v59, %v6303_v44  ;;  %v1633_v51 = vpack.c.bf16 %v1377_v17, %v1377_v17 }
 0x111   : > { %7432 = vst [vmem:[%s8329_s28 + $0x68] sm:$0xff] %v6721_v26   ;;  %v2042_v37 = vpop.f32.mrf.mxu0  ;;  %v1120_v47 = vadd.f32 %v8223_v24, %v860_v29  ;;  %v2697_v14 = vunpack.c.l.b16 %v1633_v51 }
 0x112   : > { %v2313_v22 = vpop.f32.mrf.mxu3  ;;  %v2275_v35 = vpop.f32.mrf.mxu1 }
 0x113   : > { %v2276_v33 = vadd.f32 %v2275_v35, %v2042_v37  ;;  %v2314_v30 = vadd.f32 %v2313_v22, %v2080_v43  ;;  %v1376_v26 = vmax.f32 %v1120_v47, 0.0  ;;  %v7333_v43 = vld [vmem:[%s7789_s12 + $0x148] sm:$0xff]  }
 0x114   : > { %v6307_v37 = vunpack.c.l.bf16 %v7333_v43  ;;  %v6308_v35 = vunpack.c.h.bf16 %v7333_v43 }
 0x115   : > { %v2339_v61 = vadd.f32 %v8312_v54, %v2276_v33  ;;  %v2354_v60 = vadd.f32 %v8312_v54, %v2314_v30  ;;  %v1632_v44 = vpack.c.bf16 %v1376_v26, %v1376_v26 }
 0x117   : > { %v6686_v46 = vpack.c.bf16 %v2339_v61, %v2338_v15  ;;  %v2082_v42 = vpop.f32.mrf.mxu2  ;;  %v2696_v29 = vunpack.c.l.b16 %v1632_v44  ;;  %v863_v61 = vmul.f32 %v8200_v59, %v6308_v35 }
 0x119   : > { %7425 = vst [vmem:[%s8329_s28 + $0x30] sm:$0xff] %v6686_v46   ;;  %v2045_v8 = vpop.f32.mrf.mxu0  ;;  %v8487_v5 = vpack.c.b16 %v2697_v14, %v2696_v29 }
 0x11a   : > { %v2315_v10 = vpop.f32.mrf.mxu3  ;;  %v2278_v57 = vpop.f32.mrf.mxu1 }
 0x11b   : > { %v2316_v41 = vadd.f32 %v2315_v10, %v2082_v42  ;;  %v2279_v22 = vadd.f32 %v2278_v57, %v2045_v8  ;;  %v1123_v8 = vadd.f32 %v8223_v24, %v863_v61 }
 0x11c   : > { %2465 = vmatmul.bf16.gmra.mxu2 %v8268_v12 }
 0x11d   : > { %v2355_v1 = vadd.f32 %v8312_v54, %v2316_v41  ;;  %2787 = vmatmul.bf16.gmra.mxu0 %v8470_v32  ;;  %3005 = vmatmul.bf16.gmra.mxu1 %v8470_v32  ;;  %v2340_v52 = vadd.f32 %v8312_v54, %v2279_v22  ;;  %v1379_v43 = vmax.f32 %v1123_v8, 0.0 }
 0x11f   : > { %v6726_v40 = vpack.c.bf16 %v2355_v1, %v2354_v60  ;;  %2602 = vmatmul.bf16.gmra.mxu3 %v8274_v18  ;;  %v2085_v20 = vpop.f32.mrf.mxu2  ;;  %v862_v18 = vmul.f32 %v8200_v59, %v6307_v37  ;;  %v1635_v37 = vpack.c.bf16 %v1379_v43, %v1379_v43 }
 0x121   : > { %7433 = vst [vmem:[%s8329_s28 + $0x70] sm:$0xff] %v6726_v40   ;;  %v2047_v15 = vpop.f32.mrf.mxu0  ;;  %v1122_v41 = vadd.f32 %v8223_v24, %v862_v18  ;;  %v2699_v29 = vunpack.c.l.b16 %v1635_v37 }
 0x122   : > { %v2318_v36 = vpop.f32.mrf.mxu3  ;;  %v2280_v33 = vpop.f32.mrf.mxu1 }
 0x123   : > { %v2281_v34 = vadd.f32 %v2280_v33, %v2047_v15  ;;  %v2319_v46 = vadd.f32 %v2318_v36, %v2085_v20  ;;  %v1378_v40 = vmax.f32 %v1122_v41, 0.0  ;;  %v7334_v20 = vld [vmem:[%s7789_s12 + $0x150] sm:$0xff]  }
 0x124   : > { %v6311_v35 = vunpack.c.l.bf16 %v7334_v20  ;;  %v6312_v15 = vunpack.c.h.bf16 %v7334_v20 }
 0x125   : > { %v2341_v30 = vadd.f32 %v8312_v54, %v2281_v34  ;;  %v2356_v26 = vadd.f32 %v8312_v54, %v2319_v46  ;;  %v1634_v51 = vpack.c.bf16 %v1378_v40, %v1378_v40 }
 0x126   : > { %v864_v14 = vmul.f32 %v8200_v59, %v6311_v35  ;;  %v865_v18 = vmul.f32 %v8200_v59, %v6312_v15 }
 0x127   : > { %v6691_v42 = vpack.c.bf16 %v2341_v30, %v2340_v52  ;;  %v2087_v10 = vpop.f32.mrf.mxu2  ;;  %v2698_v34 = vunpack.c.l.b16 %v1634_v51 }
 0x129   : > { %7426 = vst [vmem:[%s8329_s28 + $0x38] sm:$0xff] %v6691_v42   ;;  %v2753_v60 = vpop.f32.mrf.mxu0  ;;  %v8506_v46 = vpack.c.b16 %v2699_v29, %v2698_v34  ;;  %v1124_v42 = vadd.f32 %v8223_v24, %v864_v14 }
 0x12a   : > { %v2320_v47 = vpop.f32.mrf.mxu3  ;;  %v8492_v1 = vpop.f32.mrf.mxu1 }
 0x12b   : > { %v2321_v57 = vadd.f32 %v2320_v47, %v2087_v10  ;;  %v1125_v10 = vadd.f32 %v8223_v24, %v865_v18 }
 0x12c   : > { %2470 = vmatmul.bf16.gmra.mxu2 %v7910_v39 }
 0x12d   : > { %v2357_v17 = vadd.f32 %v8312_v54, %v2321_v57  ;;  %2792 = vmatmul.bf16.gmra.mxu0 %v8487_v5  ;;  %3010 = vmatmul.bf16.gmra.mxu1 %v8487_v5  ;;  %v1381_v40 = vmax.f32 %v1125_v10, 0.0 }
 0x12f   : > { %v6731_v22 = vpack.c.bf16 %v2357_v17, %v2356_v26  ;;  %2607 = vmatmul.bf16.gmra.mxu3 %v7921_v45  ;;  %v2431_v36 = vpop.f32.mrf.mxu2  ;;  %v1380_v17 = vmax.f32 %v1124_v42, 0.0  ;;  %v1637_v37 = vpack.c.bf16 %v1381_v40, %v1381_v40 }
 0x131   : > { %7434 = vst [vmem:[%s8329_s28 + $0x78] sm:$0xff] %v6731_v22   ;;  %v2755_v33 = vpop.f32.mrf.mxu0  ;;  %v1636_v51 = vpack.c.bf16 %v1380_v17, %v1380_v17  ;;  %v2701_v14 = vunpack.c.l.b16 %v1637_v37 }
 0x132   : > { %v2568_v44 = vpop.f32.mrf.mxu3  ;;  %v8502_v52 = vpop.f32.mrf.mxu1 }
 0x133   : > { %v2569_v45 = vadd.f32 %v2568_v44, %v2431_v36  ;;  %v2700_v29 = vunpack.c.l.b16 %v1636_v51 }
 0x135   : > { %v2833_v47 = vadd.f32 %v2753_v60, %v2569_v45  ;;  %v7335_v60 = vld [vmem:[%s7789_s12 + $0x158] sm:$0xff]   ;;  %v8524_v42 = vpack.c.b16 %v2701_v14, %v2700_v29 }
 0x136   : > { %v6315_v35 = vunpack.c.l.bf16 %v7335_v60  ;;  %v6316_v15 = vunpack.c.h.bf16 %v7335_v60 }
 0x137   : > { %v2433_v61 = vpop.f32.mrf.mxu2  ;;  %v2865_v43 = vadd.f32 %v8312_v54, %v2833_v47 }
 0x138   : > { %v866_v18 = vmul.f32 %v8200_v59, %v6315_v35 }
 0x13a   : > { %v2570_v30 = vpop.f32.mrf.mxu3  ;;  %v2758_v8 = vpop.f32.mrf.mxu0  ;;  %v1126_v10 = vadd.f32 %v8223_v24, %v866_v18 }
 0x13b   : > { %v2571_v41 = vadd.f32 %v2570_v30, %v2433_v61  ;;  %v8510_v57 = vpop.f32.mrf.mxu1 }
 0x13c   : > { %2475 = vmatmul.bf16.gmra.mxu2 %v7978_v63 }
 0x13d   : > { %v2834_v26 = vadd.f32 %v2755_v33, %v2571_v41  ;;  %2797 = vmatmul.bf16.gmra.mxu0 %v8506_v46  ;;  %3015 = vmatmul.bf16.gmra.mxu1 %v8506_v46 }
 0x13f   : > { %v2866_v22 = vadd.f32 %v8312_v54, %v2834_v26  ;;  %2612 = vmatmul.bf16.gmra.mxu3 %v7984_v4  ;;  %v2436_v36 = vpop.f32.mrf.mxu2  ;;  %v867_v4 = vmul.f32 %v8200_v59, %v6316_v15 }
 0x141   : > { %v6736_v20 = vpack.c.bf16 %v2866_v22, %v2865_v43  ;;  %v1127_v47 = vadd.f32 %v8223_v24, %v867_v4  ;;  %v1382_v22 = vmax.f32 %v1126_v10, 0.0 }
 0x142   : > { %v2573_v44 = vpop.f32.mrf.mxu3  ;;  %v2760_v33 = vpop.f32.mrf.mxu0 }
 0x143   : > { %7435 = vst [vmem:[%s8329_s28 + $0x80] sm:$0xff] %v6736_v20   ;;  %v8520_v34 = vpop.f32.mrf.mxu1  ;;  %v2574_v45 = vadd.f32 %v2573_v44, %v2436_v36  ;;  %v1383_v60 = vmax.f32 %v1127_v47, 0.0  ;;  %v1638_v35 = vpack.c.bf16 %v1382_v22, %v1382_v22 }
 0x145   : > { %v2835_v41 = vadd.f32 %v2758_v8, %v2574_v45  ;;  %v7336_v8 = vld [vmem:[%s7789_s12 + $0x160] sm:$0xff]   ;;  %v1639_v15 = vpack.c.bf16 %v1383_v60, %v1383_v60  ;;  %v2702_v4 = vunpack.c.l.b16 %v1638_v35 }
 0x146   : > { %v6320_v29 = vunpack.c.h.bf16 %v7336_v8 }
 0x147   : > { %v2438_v61 = vpop.f32.mrf.mxu2  ;;  %v2867_v20 = vadd.f32 %v8312_v54, %v2835_v41  ;;  %v2703_v45 = vunpack.c.l.b16 %v1639_v15 }
 0x14a   : > { %v2575_v30 = vpop.f32.mrf.mxu3  ;;  %v2763_v17 = vpop.f32.mrf.mxu0 }
 0x14b   : > { %v2576_v26 = vadd.f32 %v2575_v30, %v2438_v61  ;;  %v8528_v40 = vpop.f32.mrf.mxu1 }
 0x14c   : > { %2480 = vmatmul.bf16.gmra.mxu2 %v8025_v23 }
 0x14d   : > { %v2836_v43 = vadd.f32 %v2760_v33, %v2576_v26  ;;  %2802 = vmatmul.bf16.gmra.mxu0 %v8524_v42  ;;  %3020 = vmatmul.bf16.gmra.mxu1 %v8524_v42  ;;  %v6319_v33 = vunpack.c.l.bf16 %v7336_v8  ;;  %v8547_v26 = vpack.c.b16 %v2703_v45, %v2702_v4 }
 0x14f   : > { %v2868_v36 = vadd.f32 %v8312_v54, %v2836_v43  ;;  %2617 = vmatmul.bf16.gmra.mxu3 %v8032_v11  ;;  %v2441_v51 = vpop.f32.mrf.mxu2  ;;  %v868_v61 = vmul.f32 %v8200_v59, %v6319_v33  ;;  %v8544_v11 = vld [vmem:[%s10191_s1] ss:$0 sm:$0xff] }
 0x150   : > { %v869_v30 = vmul.f32 %v8544_v11, %v6320_v29 }
 0x151   : > { %v6741_v44 = vpack.c.bf16 %v2868_v36, %v2867_v20  ;;  %v1128_v43 = vadd.f32 %v8223_v24, %v868_v61 }
 0x152   : > { %v2578_v37 = vpop.f32.mrf.mxu3  ;;  %v2765_v14 = vpop.f32.mrf.mxu0  ;;  %v1129_v22 = vadd.f32 %v8223_v24, %v869_v30  ;;  %v7337_v24 = vld [vmem:[%s7789_s12 + $0x168] sm:$0xff]  }
 0x153   : > { %7436 = vst [vmem:[%s8329_s28 + $0x88] sm:$0xff] %v6741_v44   ;;  %v8538_v18 = vpop.f32.mrf.mxu1  ;;  %v2579_v10 = vadd.f32 %v2578_v37, %v2441_v51  ;;  %v1384_v44 = vmax.f32 %v1128_v43, 0.0  ;;  %v6323_v4 = vunpack.c.l.bf16 %v7337_v24  ;;  %v6324_v45 = vunpack.c.h.bf16 %v7337_v24 }
 0x154   : > { %v1385_v51 = vmax.f32 %v1129_v22, 0.0 }
 0x155   : > { %v2837_v60 = vadd.f32 %v2763_v17, %v2579_v10  ;;  %v1640_v29 = vpack.c.bf16 %v1384_v44, %v1384_v44 }
 0x157   : > { %v2443_v47 = vpop.f32.mrf.mxu2  ;;  %v2869_v37 = vadd.f32 %v8312_v54, %v2837_v60  ;;  %v2704_v10 = vunpack.c.l.b16 %v1640_v29 }
 0x15a   : > { %v2580_v41 = vpop.f32.mrf.mxu3  ;;  %v2768_v59 = vpop.f32.mrf.mxu0 }
 0x15b   : > { %v2581_v20 = vadd.f32 %v2580_v41, %v2443_v47  ;;  %v8551_v36 = vpop.f32.mrf.mxu1  ;;  %v870_v41 = vmul.f32 %v8544_v11, %v6323_v4 }
 0x15c   : > { %2485 = vmatmul.bf16.gmra.mxu2 %v8080_v50 }
 0x15d   : > { %v2838_v8 = vadd.f32 %v2765_v14, %v2581_v20  ;;  %2807 = vmatmul.bf16.gmra.mxu0 %v8547_v26  ;;  %3025 = vmatmul.bf16.gmra.mxu1 %v8547_v26  ;;  %v1641_v14 = vpack.c.bf16 %v1385_v51, %v1385_v51 }
 0x15f   : > { %v2870_v35 = vadd.f32 %v8312_v54, %v2838_v8  ;;  %2622 = vmatmul.bf16.gmra.mxu3 %v8086_v55  ;;  %v2446_v15 = vpop.f32.mrf.mxu2  ;;  %v2705_v47 = vunpack.c.l.b16 %v1641_v14  ;;  %v871_v55 = vmul.f32 %v8544_v11, %v6324_v45  ;;  %v8570_v8 = vld [vmem:[%s10192_s2] ss:$0 sm:$0xff] }
 0x160   : > { %v1130_v44 = vadd.f32 %v8570_v8, %v870_v41 }
 0x161   : > { %v6746_v17 = vpack.c.bf16 %v2870_v35, %v2869_v37  ;;  %v8565_v20 = vpack.c.b16 %v2705_v47, %v2704_v10  ;;  %v1131_v51 = vadd.f32 %v8570_v8, %v871_v55 }
 0x162   : > { %v2583_v33 = vpop.f32.mrf.mxu3  ;;  %v2770_v61 = vpop.f32.mrf.mxu0 }
 0x163   : > { %7437 = vst [vmem:[%s8329_s28 + $0x90] sm:$0xff] %v6746_v17   ;;  %v8561_v30 = vpop.f32.mrf.mxu1  ;;  %v2584_v43 = vadd.f32 %v2583_v33, %v2446_v15  ;;  %v1386_v33 = vmax.f32 %v1130_v44, 0.0  ;;  %v1387_v29 = vmax.f32 %v1131_v51, 0.0 }
 0x165   : > { %v2839_v37 = vadd.f32 %v2768_v59, %v2584_v43  ;;  %v7338_v59 = vld [vmem:[%s7789_s12 + $0x170] sm:$0xff]   ;;  %v1643_v41 = vpack.c.bf16 %v1387_v29, %v1387_v29 }
 0x166   : > { %v6327_v55 = vunpack.c.l.bf16 %v7338_v59  ;;  %v6328_v43 = vunpack.c.h.bf16 %v7338_v59 }
 0x167   : > { %v2448_v22 = vpop.f32.mrf.mxu2  ;;  %v2871_v14 = vadd.f32 %v8312_v54, %v2839_v37  ;;  %v2707_v51 = vunpack.c.l.b16 %v1643_v41 }
 0x168   : > { %v872_v37 = vmul.f32 %v8544_v11, %v6327_v55 }
 0x16a   : > { %v2585_v60 = vpop.f32.mrf.mxu3  ;;  %v2773_v24 = vpop.f32.mrf.mxu0 }
 0x16b   : > { %v2586_v35 = vadd.f32 %v2585_v60, %v2448_v22  ;;  %v8574_v17 = vpop.f32.mrf.mxu1 }
 0x16c   : > { %10218 = vst [vmem:[#allocation4_spill] sm:$0xff] %v8574_v17  ;;  %2490 = vmatmul.bf16.gmra.mxu2 %v8120_v9 }
 0x16d   : > { %v2840_v15 = vadd.f32 %v2770_v61, %v2586_v35  ;;  %2812 = vmatmul.bf16.gmra.mxu0 %v8565_v20  ;;  %3030 = vmatmul.bf16.gmra.mxu1 %v8565_v20  ;;  %v1642_v61 = vpack.c.bf16 %v1386_v33, %v1386_v33  ;;  %v1132_v33 = vadd.f32 %v8570_v8, %v872_v37 }
 0x16f   : > { %v2872_v4 = vadd.f32 %v8312_v54, %v2840_v15  ;;  %2627 = vmatmul.bf16.gmra.mxu3 %v8126_v16  ;;  %v2451_v10 = vpop.f32.mrf.mxu2  ;;  %v2706_v44 = vunpack.c.l.b16 %v1642_v61  ;;  %v873_v16 = vmul.f32 %v8544_v11, %v6328_v43 }
 0x171   : > { %v6751_v45 = vpack.c.bf16 %v2872_v4, %v2871_v14  ;;  %v8588_v14 = vpack.c.b16 %v2707_v51, %v2706_v44  ;;  %v1133_v29 = vadd.f32 %v8570_v8, %v873_v16 }
 0x172   : > { %v2588_v47 = vpop.f32.mrf.mxu3  ;;  %v2775_v22 = vpop.f32.mrf.mxu0 }
 0x173   : > { %7438 = vst [vmem:[%s8329_s28 + $0x98] sm:$0xff] %v6751_v45   ;;  %v8584_v60 = vpop.f32.mrf.mxu1  ;;  %v2589_v35 = vadd.f32 %v2588_v47, %v2451_v10  ;;  %v1388_v10 = vmax.f32 %v1132_v33, 0.0  ;;  %v1389_v47 = vmax.f32 %v1133_v29, 0.0 }
 0x174   : > { %10219 = vst [vmem:[#allocation5_spill] sm:$0xff] %v8584_v60 }
 0x175   : > { %v2841_v4 = vadd.f32 %v2773_v24, %v2589_v35  ;;  %v7339_v24 = vld [vmem:[%s7789_s12 + $0x178] sm:$0xff]   ;;  %v1645_v51 = vpack.c.bf16 %v1389_v47, %v1389_v47 }
 0x176   : > { %v6331_v37 = vunpack.c.l.bf16 %v7339_v24  ;;  %v6332_v16 = vunpack.c.h.bf16 %v7339_v24 }
 0x177   : > { %v2453_v15 = vpop.f32.mrf.mxu2  ;;  %v2873_v41 = vadd.f32 %v8312_v54, %v2841_v4  ;;  %v2709_v29 = vunpack.c.l.b16 %v1645_v51  ;;  %v8617_v51 = vld [vmem:[%s10194_s4] ss:$0 sm:$0xff] }
 0x17a   : > { %v2590_v17 = vpop.f32.mrf.mxu3  ;;  %v2778_v45 = vpop.f32.mrf.mxu0 }
 0x17b   : > { %v2591_v59 = vadd.f32 %v2590_v17, %v2453_v15  ;;  %v8592_v60 = vpop.f32.mrf.mxu1 }
 0x17c   : > { %2495 = vmatmul.bf16.gmra.mxu2 %v8167_v6 }
 0x17d   : > { %v2842_v61 = vadd.f32 %v2775_v22, %v2591_v59  ;;  %2817 = vmatmul.bf16.gmra.mxu0 %v8588_v14  ;;  %3035 = vmatmul.bf16.gmra.mxu1 %v8588_v14  ;;  %v1644_v22 = vpack.c.bf16 %v1388_v10, %v1388_v10 }
 0x17f   : > { %v2874_v55 = vadd.f32 %v8312_v54, %v2842_v61  ;;  %2632 = vmatmul.bf16.gmra.mxu3 %v8173_v53  ;;  %v2456_v43 = vpop.f32.mrf.mxu2  ;;  %v2708_v33 = vunpack.c.l.b16 %v1644_v22  ;;  %v874_v54 = vmul.f32 %v8544_v11, %v6331_v37  ;;  %v875_v53 = vmul.f32 %v8544_v11, %v6332_v16  ;;  %v10223_v16 = vld [vmem:[#allocation3_spill] sm:$0xff] }
 0x181   : > { %v6756_v17 = vpack.c.bf16 %v2874_v55, %v2873_v41  ;;  %v8606_v41 = vpack.c.b16 %v2709_v29, %v2708_v33  ;;  %v1134_v10 = vadd.f32 %v8570_v8, %v874_v54  ;;  %v1135_v47 = vadd.f32 %v8570_v8, %v875_v53 }
 0x182   : > { %v2593_v44 = vpop.f32.mrf.mxu3  ;;  %v2780_v35 = vpop.f32.mrf.mxu0 }
 0x183   : > { %7439 = vst [vmem:[%s8329_s28 + $0xa0] sm:$0xff] %v6756_v17   ;;  %v8602_v15 = vpop.f32.mrf.mxu1  ;;  %v2594_v4 = vadd.f32 %v2593_v44, %v2456_v43  ;;  %v1390_v43 = vmax.f32 %v1134_v10, 0.0  ;;  %v1391_v44 = vmax.f32 %v1135_v47, 0.0 }
 0x184   : > { %10220 = vst [vmem:[#allocation6_spill] sm:$0xff] %v8602_v15 }
 0x185   : > { %10221 = vst [vmem:[#allocation7_spill] sm:$0xff] %v8606_v41  ;;  %v2843_v55 = vadd.f32 %v2778_v45, %v2594_v4  ;;  %v1646_v53 = vpack.c.bf16 %v1390_v43, %v1390_v43  ;;  %v1647_v4 = vpack.c.bf16 %v1391_v44, %v1391_v44 }
 0x187   : > { %v2458_v59 = vpop.f32.mrf.mxu2  ;;  %v2875_v37 = vadd.f32 %v8617_v51, %v2843_v55  ;;  %v2711_v55 = vunpack.c.l.b16 %v1647_v4 }
 0x18a   : > { %v2595_v61 = vpop.f32.mrf.mxu3  ;;  %v2783_v17 = vpop.f32.mrf.mxu0 }
 0x18b   : > { %v2596_v24 = vadd.f32 %v2595_v61, %v2458_v59  ;;  %v8610_v15 = vpop.f32.mrf.mxu1 }
 0x18c   : > { %10222 = vst [vmem:[#allocation8_spill] sm:$0xff] %v8610_v15  ;;  %2500 = vmatmul.bf16.gmra.mxu2 %v8218_v3 }
 0x18d   : > { %v2844_v22 = vadd.f32 %v2780_v35, %v2596_v24  ;;  %2822 = vmatmul.bf16.gmra.mxu0 %v8606_v41  ;;  %3040 = vmatmul.bf16.gmra.mxu1 %v8606_v41  ;;  %v7340_v35 = vld [vmem:[%s7789_s12 + $0x180] sm:$0xff]   ;;  %v2710_v24 = vunpack.c.l.b16 %v1646_v53 }
 0x18e   : > { %v6335_v59 = vunpack.c.l.bf16 %v7340_v35  ;;  %v6336_v61 = vunpack.c.h.bf16 %v7340_v35 }
 0x18f   : > { %v2876_v45 = vadd.f32 %v8617_v51, %v2844_v22  ;;  %2637 = vmatmul.bf16.gmra.mxu3 %v10223_v16  ;;  %v2461_v29 = vpop.f32.mrf.mxu2 }
 0x190   : > { %v876_v22 = vmul.f32 %v8544_v11, %v6335_v59  ;;  %v877_v16 = vmul.f32 %v8544_v11, %v6336_v61 }
 0x191   : > { %v6761_v33 = vpack.c.bf16 %v2876_v45, %v2875_v37  ;;  %v8629_v37 = vpack.c.b16 %v2711_v55, %v2710_v24 }
 0x192   : > { %v2598_v54 = vpop.f32.mrf.mxu3  ;;  %v2785_v10 = vpop.f32.mrf.mxu0  ;;  %v1136_v43 = vadd.f32 %v8570_v8, %v876_v22  ;;  %v1137_v44 = vadd.f32 %v8570_v8, %v877_v16 }
 0x193   : > { %7440 = vst [vmem:[%s8329_s28 + $0xa8] sm:$0xff] %v6761_v33   ;;  %v8625_v47 = vpop.f32.mrf.mxu1  ;;  %v2599_v15 = vadd.f32 %v2598_v54, %v2461_v29 }
 0x194   : > { %10224 = vst [vmem:[#allocation3_spill] sm:$0xff] %v8625_v47  ;;  %v1392_v29 = vmax.f32 %v1136_v43, 0.0  ;;  %v1393_v54 = vmax.f32 %v1137_v44, 0.0 }
 0x195   : > { %v2845_v45 = vadd.f32 %v2783_v17, %v2599_v15 }
 0x196   : > { %v1648_v61 = vpack.c.bf16 %v1392_v29, %v1392_v29 }
 0x197   : > { %v2463_v41 = vpop.f32.mrf.mxu2  ;;  %v2877_v4 = vadd.f32 %v8617_v51, %v2845_v45 }
 0x198   : > { %v3172_v43 = vunpack.c.l.b16 %v1648_v61 }
 0x19a   : > { %v2600_v3 = vpop.f32.mrf.mxu3  ;;  %v2788_v33 = vpop.f32.mrf.mxu0 }
 0x19b   : > { %v2601_v35 = vadd.f32 %v2600_v3, %v2463_v41  ;;  %v8633_v47 = vpop.f32.mrf.mxu1  ;;  %v7341_v3 = vld [vmem:[%s7789_s12 + $0x188] sm:$0xff]  }
 0x19c   : > { %10225 = vst [vmem:[#allocation9_spill] sm:$0xff] %v8633_v47  ;;  %2505 = vmatmul.bf16.gmra.mxu2 %v8270_v13  ;;  %v6339_v24 = vunpack.c.l.bf16 %v7341_v3  ;;  %v6340_v55 = vunpack.c.h.bf16 %v7341_v3 }
 0x19d   : > { %v2846_v53 = vadd.f32 %v2785_v10, %v2601_v35  ;;  %2827 = vmatmul.bf16.gmra.mxu0 %v8629_v37  ;;  %3045 = vmatmul.bf16.gmra.mxu1 %v8629_v37  ;;  %v1649_v10 = vpack.c.bf16 %v1393_v54, %v1393_v54 }
 0x19e   : > { %v878_v45 = vmul.f32 %v8544_v11, %v6339_v24 }
 0x19f   : > { %v2878_v59 = vadd.f32 %v8617_v51, %v2846_v53  ;;  %2642 = vmatmul.bf16.gmra.mxu3 %v8276_v0  ;;  %v2466_v41 = vpop.f32.mrf.mxu2  ;;  %v3173_v44 = vunpack.c.l.b16 %v1649_v10  ;;  %v879_v0 = vmul.f32 %v8544_v11, %v6340_v55 }
 0x1a0   : > { %v1138_v29 = vadd.f32 %v8570_v8, %v878_v45 }
 0x1a1   : > { %v6766_v15 = vpack.c.bf16 %v2878_v59, %v2877_v4  ;;  %v8647_v4 = vpack.c.b16 %v3173_v44, %v3172_v43  ;;  %v1139_v54 = vadd.f32 %v8570_v8, %v879_v0  ;;  %v7614_v43 = vld [vmem:[%s10193_s3 + $0xb8] sm:$0xff] }
 0x1a2   : > { %v2603_v17 = vpop.f32.mrf.mxu3  ;;  %v2790_v22 = vpop.f32.mrf.mxu0 }
 0x1a3   : > { %7441 = vst [vmem:[%s8329_s28 + $0xb0] sm:$0xff] %v6766_v15   ;;  %v8643_v16 = vpop.f32.mrf.mxu1  ;;  %v2604_v35 = vadd.f32 %v2603_v17, %v2466_v41  ;;  %v1394_v41 = vmax.f32 %v1138_v29, 0.0  ;;  %v1395_v17 = vmax.f32 %v1139_v54, 0.0  ;;  %v7615_v54 = vld [vmem:[%s10193_s3 + $0x70] sm:$0xff] }
 0x1a4   : > { %10226 = vst [vmem:[#allocation10_spill] sm:$0xff] %v8643_v16 }
 0x1a5   : > { %v2847_v59 = vadd.f32 %v2788_v33, %v2604_v35  ;;  %v7612_v33 = vld [vmem:[%s10193_s3 + $0x78] sm:$0xff]  ;;  %v1650_v44 = vpack.c.bf16 %v1394_v41, %v1394_v41  ;;  %v1651_v45 = vpack.c.bf16 %v1395_v17, %v1395_v17 }
 0x1a7   : > { %v2468_v53 = vpop.f32.mrf.mxu2  ;;  %v2879_v10 = vadd.f32 %v8617_v51, %v2847_v59  ;;  %v7616_v59 = vld [vmem:[%s10193_s3 + $0x30] sm:$0xff]  ;;  %v3175_v41 = vunpack.c.l.b16 %v1651_v45 }
 0x1aa   : > { %v2605_v47 = vpop.f32.mrf.mxu3  ;;  %v2793_v15 = vpop.f32.mrf.mxu0 }
 0x1ab   : > { %v2606_v3 = vadd.f32 %v2605_v47, %v2468_v53  ;;  %v8651_v16 = vpop.f32.mrf.mxu1  ;;  %v7342_v47 = vld [vmem:[%s7789_s12 + $0x190] sm:$0xff]  }
 0x1ac   : > { %3059 = vmatmul.bf16.vlgmr.msra.gmra.mxu2 %v7908_v38  ;;  %v7613_v38 = vld [vmem:[%s10193_s3 + $0x38] sm:$0xff]  ;;  %v6343_v0 = vunpack.c.l.bf16 %v7342_v47  ;;  %v6344_v35 = vunpack.c.h.bf16 %v7342_v47  ;;  %v7618_v47 = vld [vmem:[%s10193_s3 + $0x68] sm:$0xff] }
 0x1ad   : > { %v2848_v61 = vadd.f32 %v2790_v22, %v2606_v3  ;;  %3462 = vmatmul.bf16.vlgmr.msra.gmra.mxu0 %v8647_v4  ;;  %3551 = vmatmul.bf16.vlgmr.msra.gmra.mxu1 %v8292_v58  ;;  %v7617_v3 = vld [vmem:[%s10193_s3 + $0xb0] sm:$0xff] }
 0x1ae   : > { %4438 = vmatpush.bf16.msra.mxu2 %v7612_v33  ;;  %4712 = vmatpush.bf16.msra.mxu0 %v7614_v43  ;;  %v880_v17 = vmul.f32 %v8544_v11, %v6343_v0 }
 0x1af   : > { %v2880_v24 = vadd.f32 %v8617_v51, %v2848_v61  ;;  %3244 = vmatmul.bf16.vlgmr.msra.gmra.mxu3 %v8647_v4  ;;  %v2471_v22 = vpop.f32.mrf.mxu2  ;;  %4930 = vmatpush.bf16.msra.mxu1 %v7612_v33  ;;  %v3174_v61 = vunpack.c.l.b16 %v1650_v44  ;;  %v7619_v33 = vld [vmem:[%s10193_s3 + $0x28] sm:$0xff] }
 0x1b0   : > { %4527 = vmatpush.bf16.msra.mxu3 %v7613_v38 }
 0x1b1   : > { %v6771_v55 = vpack.c.bf16 %v2880_v24, %v2879_v10  ;;  %v881_v10 = vmul.f32 %v8544_v11, %v6344_v35  ;;  %v8692_v44 = vpack.c.b16 %v3175_v41, %v3174_v61 }
 0x1b2   : > { %v2608_v58 = vpop.f32.mrf.mxu3  ;;  %v2795_v53 = vpop.f32.mrf.mxu0  ;;  %4439 = vmatpush.bf16.msra.mxu2 %v7615_v54  ;;  %4713 = vmatpush.bf16.msra.mxu0 %v7617_v3  ;;  %v7622_v3 = vld [vmem:[%s10193_s3 + $0x20] sm:$0xff] }
 0x1b3   : > { %7442 = vst [vmem:[%s8329_s28 + $0xb8] sm:$0xff] %v6771_v55   ;;  %v8670_v29 = vpop.f32.mrf.mxu1  ;;  %4931 = vmatpush.bf16.msra.mxu1 %v7615_v54  ;;  %v2609_v24 = vadd.f32 %v2608_v58, %v2471_v22  ;;  %v7620_v55 = vld [vmem:[%s10193_s3 + $0xa8] sm:$0xff]  ;;  %v1140_v22 = vadd.f32 %v8570_v8, %v880_v17  ;;  %v1141_v58 = vadd.f32 %v8570_v8, %v881_v10 }
 0x1b4   : > { %4528 = vmatpush.bf16.msra.mxu3 %v7616_v59  ;;  %v7621_v59 = vld [vmem:[%s10193_s3 + $0x60] sm:$0xff] }
 0x1b5   : > { %v2849_v45 = vadd.f32 %v2793_v15, %v2609_v24  ;;  %v7623_v15 = vld [vmem:[%s10193_s3 + $0xa0] sm:$0xff]  ;;  %v1396_v41 = vmax.f32 %v1140_v22, 0.0  ;;  %v1397_v17 = vmax.f32 %v1141_v58, 0.0 }
 0x1b6   : > { %4440 = vmatpush.bf16.msra.mxu2 %v7618_v47  ;;  %4714 = vmatpush.bf16.msra.mxu0 %v7620_v55  ;;  %v7626_v55 = vld [vmem:[%s10193_s3 + $0x98] sm:$0xff] }
 0x1b7   : > { %v2473_v38 = vpop.f32.mrf.mxu2  ;;  %4932 = vmatpush.bf16.msra.mxu1 %v7618_v47  ;;  %v2881_v10 = vadd.f32 %v8617_v51, %v2849_v45  ;;  %v7624_v47 = vld [vmem:[%s10193_s3 + $0x58] sm:$0xff]  ;;  %v1653_v22 = vpack.c.bf16 %v1397_v17, %v1397_v17 }
 0x1b8   : > { %4529 = vmatpush.bf16.msra.mxu3 %v7619_v33 }
 0x1b9   : > { %v3177_v17 = vunpack.c.l.b16 %v1653_v22 }
 0x1ba   : > { %v2610_v43 = vpop.f32.mrf.mxu3  ;;  %v2798_v35 = vpop.f32.mrf.mxu0  ;;  %4441 = vmatpush.bf16.msra.mxu2 %v7621_v59  ;;  %4715 = vmatpush.bf16.msra.mxu0 %v7623_v15  ;;  %v7629_v15 = vld [vmem:[%s10193_s3 + $0x90] sm:$0xff] }
 0x1bb   : > { %v2611_v0 = vadd.f32 %v2610_v43, %v2473_v38  ;;  %v8696_v54 = vpop.f32.mrf.mxu1  ;;  %4933 = vmatpush.bf16.msra.mxu1 %v7621_v59  ;;  %v1652_v43 = vpack.c.bf16 %v1396_v41, %v1396_v41 }
 0x1bc   : > { %4530 = vmatpush.bf16.msra.mxu3 %v7622_v3  ;;  %3064 = vmatmul.bf16.gmra.mxu2 %v7976_v62  ;;  %v7625_v62 = vld [vmem:[%s10193_s3 + $0x18] sm:$0xff]  ;;  %v7627_v3 = vld [vmem:[%s10193_s3 + $0x50] sm:$0xff] }
 0x1bd   : > { %v2850_v61 = vadd.f32 %v2795_v53, %v2611_v0  ;;  %3467 = vmatmul.bf16.gmra.mxu0 %v8692_v44  ;;  %3556 = vmatmul.bf16.gmra.mxu1 %v8336_v48  ;;  %v7343_v53 = vld [vmem:[%s7789_s12 + $0x198] sm:$0xff]   ;;  %v3176_v41 = vunpack.c.l.b16 %v1652_v43 }
 0x1be   : > { %4442 = vmatpush.bf16.msra.mxu2 %v7624_v47  ;;  %4716 = vmatpush.bf16.msra.mxu0 %v7626_v55  ;;  %v6347_v58 = vunpack.c.l.bf16 %v7343_v53  ;;  %v6348_v45 = vunpack.c.h.bf16 %v7343_v53  ;;  %v7632_v55 = vld [vmem:[%s10193_s3 + $0x88] sm:$0xff] }
 0x1bf   : > { %v2882_v24 = vadd.f32 %v8617_v51, %v2850_v61  ;;  %3249 = vmatmul.bf16.gmra.mxu3 %v8692_v44  ;;  %v2476_v38 = vpop.f32.mrf.mxu2  ;;  %4934 = vmatpush.bf16.msra.mxu1 %v7624_v47  ;;  %v7628_v61 = vld [vmem:[%s10193_s3 + $0x10] sm:$0xff]  ;;  %v7630_v47 = vld [vmem:[%s10193_s3 + $0x48] sm:$0xff]  ;;  %v8746_v22 = vpack.c.b16 %v3177_v17, %v3176_v41  ;;  %v7634_v41 = vld [vmem:[%s10193_s3] sm:$0xff] }
 0x1c0   : > { %4531 = vmatpush.bf16.msra.mxu3 %v7625_v62  ;;  %v7631_v62 = vld [vmem:[%s10193_s3 + $0x8] sm:$0xff] }
 0x1c1   : > { %v6776_v33 = vpack.c.bf16 %v2882_v24, %v2881_v10  ;;  %v882_v10 = vmul.f32 %v8544_v11, %v6347_v58  ;;  %v883_v24 = vmul.f32 %v8544_v11, %v6348_v45  ;;  %10227 = vst [vmem:[#allocation11_spill] sm:$0xff] %v8746_v22 }
 0x1c2   : > { %v2613_v48 = vpop.f32.mrf.mxu3  ;;  %v2800_v0 = vpop.f32.mrf.mxu0  ;;  %4443 = vmatpush.bf16.msra.mxu2 %v7627_v3  ;;  %4717 = vmatpush.bf16.msra.mxu0 %v7629_v15  ;;  %v7633_v15 = vld [vmem:[%s10193_s3 + $0x40] sm:$0xff] }
 0x1c3   : > { %7443 = vst [vmem:[%s8329_s28 + $0xc0] sm:$0xff] %v6776_v33   ;;  %v8724_v59 = vpop.f32.mrf.mxu1  ;;  %4935 = vmatpush.bf16.msra.mxu1 %v7627_v3  ;;  %v2614_v53 = vadd.f32 %v2613_v48, %v2476_v38  ;;  %v1142_v38 = vadd.f32 %v8570_v8, %v882_v10  ;;  %v1143_v48 = vadd.f32 %v8570_v8, %v883_v24 }
 0x1c4   : > { %4532 = vmatpush.bf16.msra.mxu3 %v7628_v61 }
 0x1c5   : > { %v2851_v58 = vadd.f32 %v2798_v35, %v2614_v53  ;;  %v7635_v35 = vld [vmem:[%s10193_s3 + $0x80] sm:$0xff]  ;;  %v1398_v10 = vmax.f32 %v1142_v38, 0.0  ;;  %v1399_v24 = vmax.f32 %v1143_v48, 0.0 }
 0x1c6   : > { %4444 = vmatpush.bf16.msra.mxu2 %v7630_v47  ;;  %4718 = vmatpush.bf16.msra.mxu0 %v7632_v55 }
 0x1c7   : > { %v2478_v33 = vpop.f32.mrf.mxu2  ;;  %4936 = vmatpush.bf16.msra.mxu1 %v7630_v47  ;;  %v2883_v53 = vadd.f32 %v8617_v51, %v2851_v58 }
 0x1c8   : > { %4533 = vmatpush.bf16.msra.mxu3 %v7631_v62 }
 0x1ca   : > { %v2615_v43 = vpop.f32.mrf.mxu3  ;;  %v2803_v3 = vpop.f32.mrf.mxu0  ;;  %4445 = vmatpush.bf16.msra.mxu2 %v7633_v15  ;;  %4719 = vmatpush.bf16.msra.mxu0 %v7635_v35 }
 0x1cb   : > { %v2616_v45 = vadd.f32 %v2615_v43, %v2478_v33  ;;  %v8750_v61 = vpop.f32.mrf.mxu1  ;;  %4937 = vmatpush.bf16.msra.mxu1 %v7633_v15  ;;  %v1654_v43 = vpack.c.bf16 %v1398_v10, %v1398_v10 }
 0x1cc   : > { %10228 = vst [vmem:[#allocation12_spill] sm:$0xff] %v8750_v61  ;;  %4534 = vmatpush.bf16.msra.mxu3 %v7634_v41  ;;  %3069 = vmatmul.bf16.gmra.mxu2 %v8020_v19 }
 0x1cd   : > { %v2852_v17 = vadd.f32 %v2800_v0, %v2616_v45  ;;  %3472 = vmatmul.bf16.gmra.mxu0 %v8746_v22  ;;  %3561 = vmatmul.bf16.gmra.mxu1 %v8376_v31  ;;  %v7344_v0 = vld [vmem:[%s7789_s12 + $0x1a0] sm:$0xff]   ;;  %v1655_v45 = vpack.c.bf16 %v1399_v24, %v1399_v24  ;;  %v3178_v48 = vunpack.c.l.b16 %v1654_v43 }
 0x1ce   : > { %v6351_v19 = vunpack.c.l.bf16 %v7344_v0  ;;  %v6352_v15 = vunpack.c.h.bf16 %v7344_v0 }
 0x1cf   : > { %v2884_v47 = vadd.f32 %v8617_v51, %v2852_v17  ;;  %3254 = vmatmul.bf16.gmra.mxu3 %v8746_v22  ;;  %v2481_v33 = vpop.f32.mrf.mxu2  ;;  %v3179_v58 = vunpack.c.l.b16 %v1655_v45 }
 0x1d0   : > { %v884_v17 = vmul.f32 %v8544_v11, %v6351_v19  ;;  %v885_v35 = vmul.f32 %v8544_v11, %v6352_v15 }
 0x1d1   : > { %v6781_v62 = vpack.c.bf16 %v2884_v47, %v2883_v53  ;;  %v8773_v53 = vpack.c.b16 %v3179_v58, %v3178_v48 }
 0x1d2   : > { %v2618_v55 = vpop.f32.mrf.mxu3  ;;  %v2805_v41 = vpop.f32.mrf.mxu0  ;;  %v1144_v10 = vadd.f32 %v8570_v8, %v884_v17  ;;  %v1145_v24 = vadd.f32 %v8570_v8, %v885_v35 }
 0x1d3   : > { %7444 = vst [vmem:[%s8329_s28 + $0xc8] sm:$0xff] %v6781_v62   ;;  %v8769_v38 = vpop.f32.mrf.mxu1  ;;  %v2619_v61 = vadd.f32 %v2618_v55, %v2481_v33 }
 0x1d4   : > { %10229 = vst [vmem:[#allocation13_spill] sm:$0xff] %v8769_v38  ;;  %v1400_v33 = vmax.f32 %v1144_v10, 0.0  ;;  %v1401_v55 = vmax.f32 %v1145_v24, 0.0 }
 0x1d5   : > { %v2853_v47 = vadd.f32 %v2803_v3, %v2619_v61 }
 0x1d6   : > { %v1657_v48 = vpack.c.bf16 %v1401_v55, %v1401_v55 }
 0x1d7   : > { %v2483_v31 = vpop.f32.mrf.mxu2  ;;  %v2885_v45 = vadd.f32 %v8617_v51, %v2853_v47 }
 0x1d8   : > { %v3181_v10 = vunpack.c.l.b16 %v1657_v48 }
 0x1da   : > { %v2620_v22 = vpop.f32.mrf.mxu3  ;;  %v2808_v62 = vpop.f32.mrf.mxu0 }
 0x1db   : > { %v2621_v0 = vadd.f32 %v2620_v22, %v2483_v31  ;;  %v8777_v38 = vpop.f32.mrf.mxu1  ;;  %v7345_v22 = vld [vmem:[%s7789_s12 + $0x1a8] sm:$0xff]  }
 0x1dc   : > { %3074 = vmatmul.bf16.gmra.mxu2 %v8078_v49  ;;  %v6355_v49 = vunpack.c.l.bf16 %v7345_v22  ;;  %v6356_v58 = vunpack.c.h.bf16 %v7345_v22 }
 0x1dd   : > { %v2854_v43 = vadd.f32 %v2805_v41, %v2621_v0  ;;  %3477 = vmatmul.bf16.gmra.mxu0 %v8773_v53  ;;  %3566 = vmatmul.bf16.gmra.mxu1 %v8402_v28  ;;  %v1656_v41 = vpack.c.bf16 %v1400_v33, %v1400_v33 }
 0x1de   : > { %v886_v24 = vmul.f32 %v8544_v11, %v6355_v49  ;;  %v887_v47 = vmul.f32 %v8544_v11, %v6356_v58 }
 0x1df   : > { %v2886_v19 = vadd.f32 %v8617_v51, %v2854_v43  ;;  %3259 = vmatmul.bf16.gmra.mxu3 %v8773_v53  ;;  %v2486_v61 = vpop.f32.mrf.mxu2  ;;  %v3180_v31 = vunpack.c.l.b16 %v1656_v41 }
 0x1e0   : > { %v1146_v33 = vadd.f32 %v8570_v8, %v886_v24  ;;  %v1147_v55 = vadd.f32 %v8570_v8, %v887_v47 }
 0x1e1   : > { %v6786_v3 = vpack.c.bf16 %v2886_v19, %v2885_v45  ;;  %v8791_v45 = vpack.c.b16 %v3181_v10, %v3180_v31 }
 0x1e2   : > { %v2623_v15 = vpop.f32.mrf.mxu3  ;;  %v2810_v17 = vpop.f32.mrf.mxu0 }
 0x1e3   : > { %7445 = vst [vmem:[%s8329_s28 + $0xd0] sm:$0xff] %v6786_v3   ;;  %v8787_v35 = vpop.f32.mrf.mxu1  ;;  %v2624_v0 = vadd.f32 %v2623_v15, %v2486_v61  ;;  %v1402_v61 = vmax.f32 %v1146_v33, 0.0  ;;  %v1403_v15 = vmax.f32 %v1147_v55, 0.0 }
 0x1e4   : > { %10230 = vst [vmem:[#allocation14_spill] sm:$0xff] %v8787_v35 }
 0x1e5   : > { %v2855_v19 = vadd.f32 %v2808_v62, %v2624_v0  ;;  %v7346_v62 = vld [vmem:[%s7789_s12 + $0x1b0] sm:$0xff]   ;;  %v1659_v24 = vpack.c.bf16 %v1403_v15, %v1403_v15 }
 0x1e6   : > { %v6360_v47 = vunpack.c.h.bf16 %v7346_v62 }
 0x1e7   : > { %v2488_v28 = vpop.f32.mrf.mxu2  ;;  %v2887_v48 = vadd.f32 %v8617_v51, %v2855_v19  ;;  %v3183_v33 = vunpack.c.l.b16 %v1659_v24 }
 0x1e8   : > { %v889_v19 = vmul.f32 %v8544_v11, %v6360_v47 }
 0x1ea   : > { %v2625_v43 = vpop.f32.mrf.mxu3  ;;  %v2813_v3 = vpop.f32.mrf.mxu0  ;;  %v1149_v15 = vadd.f32 %v8570_v8, %v889_v19 }
 0x1eb   : > { %v2626_v22 = vadd.f32 %v2625_v43, %v2488_v28  ;;  %v8795_v35 = vpop.f32.mrf.mxu1 }
 0x1ec   : > { %3079 = vmatmul.bf16.gmra.mxu2 %v8118_v7  ;;  %v6359_v7 = vunpack.c.l.bf16 %v7346_v62 }
 0x1ed   : > { %v2856_v41 = vadd.f32 %v2810_v17, %v2626_v22  ;;  %3482 = vmatmul.bf16.gmra.mxu0 %v8791_v45  ;;  %3571 = vmatmul.bf16.gmra.mxu1 %v8419_v25  ;;  %v1658_v17 = vpack.c.bf16 %v1402_v61, %v1402_v61 }
 0x1ee   : > { %v888_v55 = vmul.f32 %v8544_v11, %v6359_v7 }
 0x1ef   : > { %v2888_v49 = vadd.f32 %v8617_v51, %v2856_v41  ;;  %3264 = vmatmul.bf16.gmra.mxu3 %v8791_v45  ;;  %v2491_v31 = vpop.f32.mrf.mxu2  ;;  %v3182_v43 = vunpack.c.l.b16 %v1658_v17 }
 0x1f0   : > { %v1148_v61 = vadd.f32 %v8570_v8, %v888_v55 }
 0x1f1   : > { %v6791_v58 = vpack.c.bf16 %v2888_v49, %v2887_v48  ;;  %v8809_v48 = vpack.c.b16 %v3183_v33, %v3182_v43 }
 0x1f2   : > { %v2628_v10 = vpop.f32.mrf.mxu3  ;;  %v2815_v0 = vpop.f32.mrf.mxu0 }
 0x1f3   : > { %7446 = vst [vmem:[%s8329_s28 + $0xd8] sm:$0xff] %v6791_v58   ;;  %v8805_v28 = vpop.f32.mrf.mxu1  ;;  %v2629_v22 = vadd.f32 %v2628_v10, %v2491_v31  ;;  %v1404_v31 = vmax.f32 %v1148_v61, 0.0  ;;  %v1405_v10 = vmax.f32 %v1149_v15, 0.0 }
 0x1f4   : > { %10231 = vst [vmem:[#allocation15_spill] sm:$0xff] %v8805_v28 }
 0x1f5   : > { %v2857_v49 = vadd.f32 %v2813_v3, %v2629_v22  ;;  %v7347_v3 = vld [vmem:[%s7789_s12 + $0x1b8] sm:$0xff]   ;;  %v1661_v55 = vpack.c.bf16 %v1405_v10, %v1405_v10 }
 0x1f6   : > { %v6364_v19 = vunpack.c.h.bf16 %v7347_v3 }
 0x1f7   : > { %v2493_v25 = vpop.f32.mrf.mxu2  ;;  %v2889_v24 = vadd.f32 %v8617_v51, %v2857_v49  ;;  %v3185_v61 = vunpack.c.l.b16 %v1661_v55 }
 0x1f8   : > { %v891_v49 = vmul.f32 %v8544_v11, %v6364_v19 }
 0x1fa   : > { %v2630_v41 = vpop.f32.mrf.mxu3  ;;  %v2818_v58 = vpop.f32.mrf.mxu0  ;;  %v1151_v10 = vadd.f32 %v8570_v8, %v891_v49 }
 0x1fb   : > { %v2631_v62 = vadd.f32 %v2630_v41, %v2493_v25  ;;  %v8813_v28 = vpop.f32.mrf.mxu1 }
 0x1fc   : > { %3084 = vmatmul.bf16.gmra.mxu2 %v8165_v2  ;;  %v6363_v2 = vunpack.c.l.bf16 %v7347_v3 }
 0x1fd   : > { %v2858_v17 = vadd.f32 %v2815_v0, %v2631_v62  ;;  %3487 = vmatmul.bf16.gmra.mxu0 %v8809_v48  ;;  %3576 = vmatmul.bf16.gmra.mxu1 %v8436_v56  ;;  %v1660_v0 = vpack.c.bf16 %v1404_v31, %v1404_v31 }
 0x1fe   : > { %v890_v15 = vmul.f32 %v8544_v11, %v6363_v2 }
 0x1ff   : > { %v2890_v7 = vadd.f32 %v8617_v51, %v2858_v17  ;;  %3269 = vmatmul.bf16.gmra.mxu3 %v8809_v48  ;;  %v2496_v43 = vpop.f32.mrf.mxu2  ;;  %v3184_v41 = vunpack.c.l.b16 %v1660_v0 }
 0x200   : > { %v1150_v31 = vadd.f32 %v8570_v8, %v890_v15 }
 0x201   : > { %v6796_v47 = vpack.c.bf16 %v2890_v7, %v2889_v24  ;;  %v8827_v24 = vpack.c.b16 %v3185_v61, %v3184_v41 }
 0x202   : > { %v2633_v33 = vpop.f32.mrf.mxu3  ;;  %v2820_v22 = vpop.f32.mrf.mxu0 }
 0x203   : > { %7447 = vst [vmem:[%s8329_s28 + $0xe0] sm:$0xff] %v6796_v47   ;;  %v8823_v25 = vpop.f32.mrf.mxu1  ;;  %v2634_v62 = vadd.f32 %v2633_v33, %v2496_v43  ;;  %v1406_v43 = vmax.f32 %v1150_v31, 0.0  ;;  %v1407_v33 = vmax.f32 %v1151_v10, 0.0 }
 0x204   : > { %10232 = vst [vmem:[#allocation16_spill] sm:$0xff] %v8823_v25 }
 0x205   : > { %v2859_v7 = vadd.f32 %v2818_v58, %v2634_v62  ;;  %v7348_v58 = vld [vmem:[%s7789_s12 + $0x1c0] sm:$0xff]   ;;  %v1663_v15 = vpack.c.bf16 %v1407_v33, %v1407_v33 }
 0x206   : > { %v6368_v49 = vunpack.c.h.bf16 %v7348_v58 }
 0x207   : > { %v2498_v56 = vpop.f32.mrf.mxu2  ;;  %v2891_v55 = vadd.f32 %v8617_v51, %v2859_v7  ;;  %v3187_v31 = vunpack.c.l.b16 %v1663_v15 }
 0x208   : > { %v893_v7 = vmul.f32 %v8544_v11, %v6368_v49 }
 0x20a   : > { %v2635_v17 = vpop.f32.mrf.mxu3  ;;  %v2823_v47 = vpop.f32.mrf.mxu0  ;;  %v1153_v33 = vadd.f32 %v8570_v8, %v893_v7 }
 0x20b   : > { %v2636_v3 = vadd.f32 %v2635_v17, %v2498_v56  ;;  %v8831_v25 = vpop.f32.mrf.mxu1 }
 0x20c   : > { %3089 = vmatmul.bf16.gmra.mxu2 %v8216_v21  ;;  %v6367_v21 = vunpack.c.l.bf16 %v7348_v58 }
 0x20d   : > { %v2860_v0 = vadd.f32 %v2820_v22, %v2636_v3  ;;  %3492 = vmatmul.bf16.gmra.mxu0 %v8827_v24  ;;  %3581 = vmatmul.bf16.gmra.mxu1 %v8453_v27  ;;  %v1662_v22 = vpack.c.bf16 %v1406_v43, %v1406_v43 }
 0x20e   : > { %v892_v10 = vmul.f32 %v8544_v11, %v6367_v21 }
 0x20f   : > { %v2892_v2 = vadd.f32 %v8617_v51, %v2860_v0  ;;  %3274 = vmatmul.bf16.gmra.mxu3 %v8827_v24  ;;  %v2501_v41 = vpop.f32.mrf.mxu2  ;;  %v3186_v17 = vunpack.c.l.b16 %v1662_v22 }
 0x210   : > { %v1152_v43 = vadd.f32 %v8570_v8, %v892_v10 }
 0x211   : > { %v6801_v19 = vpack.c.bf16 %v2892_v2, %v2891_v55  ;;  %v8845_v55 = vpack.c.b16 %v3187_v31, %v3186_v17 }
 0x212   : > { %v2638_v61 = vpop.f32.mrf.mxu3  ;;  %v2825_v62 = vpop.f32.mrf.mxu0 }
 0x213   : > { %7448 = vst [vmem:[%s8329_s28 + $0xe8] sm:$0xff] %v6801_v19   ;;  %v8841_v56 = vpop.f32.mrf.mxu1  ;;  %v2639_v3 = vadd.f32 %v2638_v61, %v2501_v41  ;;  %v1408_v41 = vmax.f32 %v1152_v43, 0.0  ;;  %v1409_v61 = vmax.f32 %v1153_v33, 0.0 }
 0x214   : > { %10233 = vst [vmem:[#allocation17_spill] sm:$0xff] %v8841_v56 }
 0x215   : > { %v2861_v2 = vadd.f32 %v2823_v47, %v2639_v3  ;;  %v7349_v47 = vld [vmem:[%s7789_s12 + $0x1c8] sm:$0xff]   ;;  %v1665_v10 = vpack.c.bf16 %v1409_v61, %v1409_v61 }
 0x216   : > { %v6372_v7 = vunpack.c.h.bf16 %v7349_v47 }
 0x217   : > { %v2503_v27 = vpop.f32.mrf.mxu2  ;;  %v2893_v15 = vadd.f32 %v8617_v51, %v2861_v2  ;;  %v3189_v43 = vunpack.c.l.b16 %v1665_v10 }
 0x218   : > { %v895_v2 = vmul.f32 %v8544_v11, %v6372_v7 }
 0x21a   : > { %v2640_v0 = vpop.f32.mrf.mxu3  ;;  %v2828_v19 = vpop.f32.mrf.mxu0  ;;  %v1155_v61 = vadd.f32 %v8570_v8, %v895_v2 }
 0x21b   : > { %v2641_v58 = vadd.f32 %v2640_v0, %v2503_v27  ;;  %v8849_v56 = vpop.f32.mrf.mxu1 }
 0x21c   : > { %3094 = vmatmul.bf16.gmra.mxu2 %v8268_v12  ;;  %v6371_v12 = vunpack.c.l.bf16 %v7349_v47 }
 0x21d   : > { %v2862_v22 = vadd.f32 %v2825_v62, %v2641_v58  ;;  %3497 = vmatmul.bf16.gmra.mxu0 %v8845_v55  ;;  %3586 = vmatmul.bf16.gmra.mxu1 %v8470_v32  ;;  %v1664_v62 = vpack.c.bf16 %v1408_v41, %v1408_v41 }
 0x21e   : > { %v894_v33 = vmul.f32 %v8544_v11, %v6371_v12  ;;  %v7350_v12 = vld [vmem:[%s7789_s12 + $0x1d0] sm:$0xff]  }
 0x21f   : > { %v2894_v21 = vadd.f32 %v8617_v51, %v2862_v22  ;;  %3279 = vmatmul.bf16.gmra.mxu3 %v8845_v55  ;;  %v2506_v17 = vpop.f32.mrf.mxu2  ;;  %v3188_v0 = vunpack.c.l.b16 %v1664_v62 }
 0x220   : > { %v1154_v41 = vadd.f32 %v8570_v8, %v894_v33 }
 0x221   : > { %v6806_v49 = vpack.c.bf16 %v2894_v21, %v2893_v15  ;;  %v8863_v15 = vpack.c.b16 %v3189_v43, %v3188_v0  ;;  %v6376_v43 = vunpack.c.h.bf16 %v7350_v12 }
 0x222   : > { %v2643_v31 = vpop.f32.mrf.mxu3  ;;  %v2830_v3 = vpop.f32.mrf.mxu0 }
 0x223   : > { %7449 = vst [vmem:[%s8329_s28 + $0xf0] sm:$0xff] %v6806_v49   ;;  %v8859_v27 = vpop.f32.mrf.mxu1  ;;  %v2644_v58 = vadd.f32 %v2643_v31, %v2506_v17  ;;  %v1410_v17 = vmax.f32 %v1154_v41, 0.0  ;;  %v1411_v31 = vmax.f32 %v1155_v61, 0.0  ;;  %v897_v61 = vmul.f32 %v8544_v11, %v6376_v43 }
 0x224   : > { %10234 = vst [vmem:[#allocation18_spill] sm:$0xff] %v8859_v27 }
 0x225   : > { %v2863_v21 = vadd.f32 %v2828_v19, %v2644_v58  ;;  %v1667_v2 = vpack.c.bf16 %v1411_v31, %v1411_v31 }
 0x227   : > { %v2508_v32 = vpop.f32.mrf.mxu2  ;;  %v2895_v7 = vadd.f32 %v8617_v51, %v2863_v21 }
 0x22a   : > { %v2645_v22 = vpop.f32.mrf.mxu3  ;;  %v3463_v49 = vpop.f32.mrf.mxu0 }
 0x22b   : > { %v2646_v47 = vadd.f32 %v2645_v22, %v2508_v32  ;;  %v3552_v27 = vpop.f32.mrf.mxu1 }
 0x22c   : > { %v8867_v10 = vadd.f32 %v3552_v27, %v3463_v49  ;;  %3099 = vmatmul.bf16.gmra.mxu2 %v7910_v39  ;;  %v6375_v27 = vunpack.c.l.bf16 %v7350_v12  ;;  %v1666_v39 = vpack.c.bf16 %v1410_v17, %v1410_v17  ;;  %v1157_v12 = vadd.f32 %v8570_v8, %v897_v61 }
 0x22d   : > { %v2864_v62 = vadd.f32 %v2830_v3, %v2646_v47  ;;  %3502 = vmatmul.bf16.gmra.mxu0 %v8863_v15  ;;  %3591 = vmatmul.bf16.gmra.mxu1 %v8487_v5  ;;  %v3191_v5 = vunpack.c.l.b16 %v1667_v2 }
 0x22e   : > { %v896_v41 = vmul.f32 %v8544_v11, %v6375_v27  ;;  %v3190_v47 = vunpack.c.l.b16 %v1666_v39 }
 0x22f   : > { %v2896_v0 = vadd.f32 %v8617_v51, %v2864_v62  ;;  %3284 = vmatmul.bf16.gmra.mxu3 %v8863_v15  ;;  %v3060_v3 = vpop.f32.mrf.mxu2 }
 0x230   : > { %v3061_v21 = vadd.f32 %v3060_v3, %v8492_v1  ;;  %v1156_v62 = vadd.f32 %v8570_v8, %v896_v41  ;;  %v1413_v3 = vmax.f32 %v1157_v12, 0.0 }
 0x231   : > { %v6811_v19 = vpack.c.bf16 %v2896_v0, %v2895_v7  ;;  %v8885_v0 = vpack.c.b16 %v3191_v5, %v3190_v47 }
 0x232   : > { %v3245_v33 = vpop.f32.mrf.mxu3  ;;  %v3465_v58 = vpop.f32.mrf.mxu0  ;;  %v1412_v1 = vmax.f32 %v1156_v62, 0.0 }
 0x233   : > { %7450 = vst [vmem:[%s8329_s28 + $0xf8] sm:$0xff] %v6811_v19   ;;  %v3554_v32 = vpop.f32.mrf.mxu1  ;;  %v3325_v17 = vadd.f32 %v3245_v33, %v3061_v21 }
 0x234   : > { %v8877_v22 = vadd.f32 %v3554_v32, %v3465_v58  ;;  %v1668_v58 = vpack.c.bf16 %v1412_v1, %v1412_v1  ;;  %v1669_v32 = vpack.c.bf16 %v1413_v3, %v1413_v3 }
 0x235   : > { %v3357_v39 = vadd.f32 %v8617_v51, %v3325_v17 }
 0x236   : > { %v3193_v62 = vunpack.c.l.b16 %v1669_v32 }
 0x237   : > { %v3062_v49 = vpop.f32.mrf.mxu2 }
 0x238   : > { %v3063_v31 = vadd.f32 %v3062_v49, %v8502_v52  ;;  %v7351_v52 = vld [vmem:[%s7789_s12 + $0x1d8] sm:$0xff]  }
 0x239   : > { %v6379_v61 = vunpack.c.l.bf16 %v7351_v52  ;;  %v6380_v21 = vunpack.c.h.bf16 %v7351_v52 }
 0x23a   : > { %v3247_v7 = vpop.f32.mrf.mxu3  ;;  %v3468_v19 = vpop.f32.mrf.mxu0 }
 0x23b   : > { %v3326_v27 = vadd.f32 %v3247_v7, %v3063_v31  ;;  %v3557_v11 = vpop.f32.mrf.mxu1 }
 0x23c   : > { %v8887_v43 = vadd.f32 %v3557_v11, %v3468_v19  ;;  %3104 = vmatmul.bf16.gmra.mxu2 %v7978_v63  ;;  %v3192_v63 = vunpack.c.l.b16 %v1668_v58 }
 0x23d   : > { %v3358_v2 = vadd.f32 %v8617_v51, %v3326_v27  ;;  %3507 = vmatmul.bf16.gmra.mxu0 %v8885_v0  ;;  %3596 = vmatmul.bf16.gmra.mxu1 %v8506_v46  ;;  %v8903_v46 = vld [vmem:[%s10191_s1] ss:$0 sm:$0xff] }
 0x23e   : > { %v898_v17 = vmul.f32 %v8903_v46, %v6379_v61  ;;  %v899_v31 = vmul.f32 %v8903_v46, %v6380_v21  ;;  %v8907_v19 = vpack.c.b16 %v3193_v62, %v3192_v63  ;;  %v7352_v61 = vld [vmem:[%s7789_s12 + $0x1e0] sm:$0xff]  }
 0x23f   : > { %3289 = vmatmul.bf16.gmra.mxu3 %v8885_v0  ;;  %v6816_v8 = vpack.c.bf16 %v3358_v2, %v3357_v39  ;;  %v3065_v33 = vpop.f32.mrf.mxu2  ;;  %v6384_v63 = vunpack.c.h.bf16 %v7352_v61 }
 0x240   : > { %v3066_v12 = vadd.f32 %v3065_v33, %v8510_v57  ;;  %v8913_v57 = vld [vmem:[%s10192_s2] ss:$0 sm:$0xff] }
 0x241   : > { %7451 = vst [vmem:[%s8329_s28 + $0x100] sm:$0xff] %v6816_v8   ;;  %v1158_v3 = vadd.f32 %v8913_v57, %v898_v17  ;;  %v1159_v39 = vadd.f32 %v8913_v57, %v899_v31 }
 0x242   : > { %v3250_v41 = vpop.f32.mrf.mxu3  ;;  %v3470_v47 = vpop.f32.mrf.mxu0 }
 0x243   : > { %v3559_v5 = vpop.f32.mrf.mxu1  ;;  %v3327_v27 = vadd.f32 %v3250_v41, %v3066_v12  ;;  %v1414_v32 = vmax.f32 %v1158_v3, 0.0  ;;  %v1415_v41 = vmax.f32 %v1159_v39, 0.0 }
 0x244   : > { %v8897_v49 = vadd.f32 %v3559_v5, %v3470_v47  ;;  %v6383_v5 = vunpack.c.l.bf16 %v7352_v61 }
 0x245   : > { %v3359_v58 = vadd.f32 %v8617_v51, %v3327_v27  ;;  %v1670_v12 = vpack.c.bf16 %v1414_v32, %v1414_v32  ;;  %v1671_v17 = vpack.c.bf16 %v1415_v41, %v1415_v41 }
 0x246   : > { %v900_v27 = vmul.f32 %v8903_v46, %v6383_v5 }
 0x247   : > { %v3067_v7 = vpop.f32.mrf.mxu2  ;;  %v3194_v3 = vunpack.c.l.b16 %v1670_v12 }
 0x248   : > { %v3068_v11 = vadd.f32 %v3067_v7, %v8520_v34 }
 0x24a   : > { %v3252_v1 = vpop.f32.mrf.mxu3  ;;  %v3473_v2 = vpop.f32.mrf.mxu0 }
 0x24b   : > { %v3328_v52 = vadd.f32 %v3252_v1, %v3068_v11  ;;  %v3562_v8 = vpop.f32.mrf.mxu1  ;;  %v901_v11 = vmul.f32 %v8903_v46, %v6384_v63 }
 0x24c   : > { %v8917_v33 = vadd.f32 %v3562_v8, %v3473_v2  ;;  %3109 = vmatmul.bf16.gmra.mxu2 %v8025_v23  ;;  %v1160_v2 = vadd.f32 %v8913_v57, %v900_v27 }
 0x24d   : > { %v3360_v34 = vadd.f32 %v8617_v51, %v3328_v52  ;;  %3512 = vmatmul.bf16.gmra.mxu0 %v8907_v19  ;;  %3601 = vmatmul.bf16.gmra.mxu1 %v8524_v42  ;;  %v3195_v42 = vunpack.c.l.b16 %v1671_v17  ;;  %v1161_v52 = vadd.f32 %v8913_v57, %v901_v11 }
 0x24f   : > { %3294 = vmatmul.bf16.gmra.mxu3 %v8907_v19  ;;  %v6821_v21 = vpack.c.bf16 %v3360_v34, %v3359_v58  ;;  %v3070_v47 = vpop.f32.mrf.mxu2  ;;  %v8935_v32 = vpack.c.b16 %v3195_v42, %v3194_v3 }
 0x250   : > { %v3071_v1 = vadd.f32 %v3070_v47, %v8528_v40  ;;  %v1416_v40 = vmax.f32 %v1160_v2, 0.0  ;;  %v1417_v47 = vmax.f32 %v1161_v52, 0.0 }
 0x251   : > { %7452 = vst [vmem:[%s8329_s28 + $0x108] sm:$0xff] %v6821_v21  }
 0x252   : > { %v3255_v62 = vpop.f32.mrf.mxu3  ;;  %v3475_v31 = vpop.f32.mrf.mxu0 }
 0x253   : > { %v3564_v7 = vpop.f32.mrf.mxu1  ;;  %v3329_v8 = vadd.f32 %v3255_v62, %v3071_v1 }
 0x254   : > { %v8927_v23 = vadd.f32 %v3564_v7, %v3475_v31  ;;  %v1672_v31 = vpack.c.bf16 %v1416_v40, %v1416_v40  ;;  %v1673_v7 = vpack.c.bf16 %v1417_v47, %v1417_v47 }
 0x255   : > { %v3361_v63 = vadd.f32 %v8617_v51, %v3329_v8 }
 0x257   : > { %v3072_v39 = vpop.f32.mrf.mxu2 }
 0x258   : > { %v3073_v58 = vadd.f32 %v3072_v39, %v8538_v18  ;;  %v7353_v18 = vld [vmem:[%s7789_s12 + $0x1e8] sm:$0xff]   ;;  %v3197_v39 = vunpack.c.l.b16 %v1673_v7  ;;  %v7354_v7 = vld [vmem:[%s7789_s12 + $0x1f0] sm:$0xff]  }
 0x259   : > { %v6387_v11 = vunpack.c.l.bf16 %v7353_v18  ;;  %v6388_v1 = vunpack.c.h.bf16 %v7353_v18  ;;  %v8962_v18 = vld [vmem:[%s10194_s4] ss:$0 sm:$0xff] }
 0x25a   : > { %v3257_v34 = vpop.f32.mrf.mxu3  ;;  %v3478_v41 = vpop.f32.mrf.mxu0 }
 0x25b   : > { %v3330_v61 = vadd.f32 %v3257_v34, %v3073_v58  ;;  %v3567_v21 = vpop.f32.mrf.mxu1  ;;  %v902_v52 = vmul.f32 %v8903_v46, %v6387_v11 }
 0x25c   : > { %v8937_v5 = vadd.f32 %v3567_v21, %v3478_v41  ;;  %3114 = vmatmul.bf16.gmra.mxu2 %v8080_v50  ;;  %v3196_v50 = vunpack.c.l.b16 %v1672_v31 }
 0x25d   : > { %v3362_v12 = vadd.f32 %v8617_v51, %v3330_v61  ;;  %3517 = vmatmul.bf16.gmra.mxu0 %v8935_v32  ;;  %3606 = vmatmul.bf16.gmra.mxu1 %v8547_v26  ;;  %v903_v26 = vmul.f32 %v8903_v46, %v6388_v1  ;;  %v1162_v21 = vadd.f32 %v8913_v57, %v902_v52  ;;  %v6391_v1 = vunpack.c.l.bf16 %v7354_v7 }
 0x25e   : > { %v8952_v58 = vpack.c.b16 %v3197_v39, %v3196_v50 }
 0x25f   : > { %3299 = vmatmul.bf16.gmra.mxu3 %v8935_v32  ;;  %v6826_v62 = vpack.c.bf16 %v3362_v12, %v3361_v63  ;;  %v3075_v17 = vpop.f32.mrf.mxu2  ;;  %v1163_v40 = vadd.f32 %v8913_v57, %v903_v26  ;;  %v904_v26 = vmul.f32 %v8903_v46, %v6391_v1 }
 0x260   : > { %v3076_v2 = vadd.f32 %v3075_v17, %v8551_v36  ;;  %v1418_v17 = vmax.f32 %v1162_v21, 0.0 }
 0x261   : > { %7453 = vst [vmem:[%s8329_s28 + $0x110] sm:$0xff] %v6826_v62   ;;  %v1419_v31 = vmax.f32 %v1163_v40, 0.0  ;;  %v1164_v40 = vadd.f32 %v8913_v57, %v904_v26 }
 0x262   : > { %v3260_v27 = vpop.f32.mrf.mxu3  ;;  %v3480_v3 = vpop.f32.mrf.mxu0  ;;  %v1674_v50 = vpack.c.bf16 %v1418_v17, %v1418_v17 }
 0x263   : > { %v3569_v42 = vpop.f32.mrf.mxu1  ;;  %v3331_v34 = vadd.f32 %v3260_v27, %v3076_v2  ;;  %v1675_v39 = vpack.c.bf16 %v1419_v31, %v1419_v31 }
 0x264   : > { %v8947_v51 = vadd.f32 %v3569_v42, %v3480_v3  ;;  %v6392_v3 = vunpack.c.h.bf16 %v7354_v7 }
 0x265   : > { %v3363_v62 = vadd.f32 %v8962_v18, %v3331_v34  ;;  %v10235_v34 = vld [vmem:[#allocation4_spill] sm:$0xff] }
 0x267   : > { %v3077_v8 = vpop.f32.mrf.mxu2 }
 0x268   : > { %v3078_v41 = vadd.f32 %v3077_v8, %v8561_v30  ;;  %v905_v8 = vmul.f32 %v8903_v46, %v6392_v3 }
 0x26a   : > { %v3262_v61 = vpop.f32.mrf.mxu3  ;;  %v3483_v47 = vpop.f32.mrf.mxu0 }
 0x26b   : > { %v3332_v63 = vadd.f32 %v3262_v61, %v3078_v41  ;;  %v3572_v12 = vpop.f32.mrf.mxu1  ;;  %v3198_v61 = vunpack.c.l.b16 %v1674_v50 }
 0x26c   : > { %v8957_v36 = vadd.f32 %v3572_v12, %v3483_v47  ;;  %3119 = vmatmul.bf16.gmra.mxu2 %v8120_v9  ;;  %v1165_v47 = vadd.f32 %v8913_v57, %v905_v8  ;;  %v10236_v12 = vld [vmem:[#allocation5_spill] sm:$0xff] }
 0x26d   : > { %v3364_v30 = vadd.f32 %v8962_v18, %v3332_v63  ;;  %3522 = vmatmul.bf16.gmra.mxu0 %v8952_v58  ;;  %3611 = vmatmul.bf16.gmra.mxu1 %v8565_v20  ;;  %v3199_v20 = vunpack.c.l.b16 %v1675_v39 }
 0x26e   : > { %v1421_v3 = vmax.f32 %v1165_v47, 0.0 }
 0x26f   : > { %3304 = vmatmul.bf16.gmra.mxu3 %v8952_v58  ;;  %v6831_v27 = vpack.c.bf16 %v3364_v30, %v3363_v62  ;;  %v3080_v11 = vpop.f32.mrf.mxu2  ;;  %v8980_v17 = vpack.c.b16 %v3199_v20, %v3198_v61 }
 0x270   : > { %v3081_v41 = vadd.f32 %v3080_v11, %v10235_v34  ;;  %v1420_v11 = vmax.f32 %v1164_v40, 0.0  ;;  %v1677_v8 = vpack.c.bf16 %v1421_v3, %v1421_v3 }
 0x271   : > { %7454 = vst [vmem:[%s8329_s28 + $0x118] sm:$0xff] %v6831_v27  }
 0x272   : > { %v3265_v42 = vpop.f32.mrf.mxu3  ;;  %v3485_v2 = vpop.f32.mrf.mxu0  ;;  %v1676_v26 = vpack.c.bf16 %v1420_v11, %v1420_v11  ;;  %v3201_v47 = vunpack.c.l.b16 %v1677_v8  ;;  %v10239_v8 = vld [vmem:[#allocation2_spill] sm:$0xff] }
 0x273   : > { %v3574_v52 = vpop.f32.mrf.mxu1  ;;  %v3333_v63 = vadd.f32 %v3265_v42, %v3081_v41  ;;  %v7355_v42 = vld [vmem:[%s7789_s12 + $0x1f8] sm:$0xff]  }
 0x274   : > { %v8972_v9 = vadd.f32 %v3574_v52, %v3485_v2  ;;  %v6395_v41 = vunpack.c.l.bf16 %v7355_v42  ;;  %v6396_v61 = vunpack.c.h.bf16 %v7355_v42 }
 0x275   : > { %v3365_v50 = vadd.f32 %v8962_v18, %v3333_v63 }
 0x277   : > { %v3082_v21 = vpop.f32.mrf.mxu2 }
 0x278   : > { %v3083_v62 = vadd.f32 %v3082_v21, %v10236_v12  ;;  %v906_v12 = vmul.f32 %v8903_v46, %v6395_v41 }
 0x27a   : > { %v3267_v30 = vpop.f32.mrf.mxu3  ;;  %v3488_v31 = vpop.f32.mrf.mxu0  ;;  %v1166_v3 = vadd.f32 %v8913_v57, %v906_v12 }
 0x27b   : > { %v3334_v7 = vadd.f32 %v3267_v30, %v3083_v62  ;;  %v3577_v27 = vpop.f32.mrf.mxu1 }
 0x27c   : > { %v8982_v1 = vadd.f32 %v3577_v27, %v3488_v31  ;;  %3124 = vmatmul.bf16.gmra.mxu2 %v8167_v6  ;;  %v3200_v6 = vunpack.c.l.b16 %v1676_v26 }
 0x27d   : > { %v3366_v39 = vadd.f32 %v8962_v18, %v3334_v7  ;;  %3527 = vmatmul.bf16.gmra.mxu0 %v8980_v17  ;;  %3616 = vmatmul.bf16.gmra.mxu1 %v8588_v14  ;;  %v907_v14 = vmul.f32 %v8903_v46, %v6396_v61  ;;  %v10237_v7 = vld [vmem:[#allocation6_spill] sm:$0xff] }
 0x27e   : > { %v8997_v30 = vpack.c.b16 %v3201_v47, %v3200_v6  ;;  %v7356_v61 = vld [vmem:[%s7789_s12 + $0x200] sm:$0xff]  }
 0x27f   : > { %3309 = vmatmul.bf16.gmra.mxu3 %v8980_v17  ;;  %v6836_v2 = vpack.c.bf16 %v3366_v39, %v3365_v50  ;;  %v3085_v52 = vpop.f32.mrf.mxu2  ;;  %v1167_v50 = vadd.f32 %v8913_v57, %v907_v14  ;;  %v7372_v6 = vld [vmem:[%s7789_s12 + $0x280] sm:$0xff]   ;;  %v6400_v12 = vunpack.c.h.bf16 %v7356_v61 }
 0x280   : > { %v3086_v63 = vadd.f32 %v3085_v52, %v8592_v60 }
 0x281   : > { %7455 = vst [vmem:[%s8329_s28 + $0x120] sm:$0xff] %v6836_v2   ;;  %v1423_v41 = vmax.f32 %v1167_v50, 0.0 }
 0x282   : > { %v3270_v34 = vpop.f32.mrf.mxu3  ;;  %v3490_v20 = vpop.f32.mrf.mxu0 }
 0x283   : > { %v3579_v21 = vpop.f32.mrf.mxu1  ;;  %v3335_v31 = vadd.f32 %v3270_v34, %v3086_v63  ;;  %v1422_v34 = vmax.f32 %v1166_v3, 0.0  ;;  %v6399_v63 = vunpack.c.l.bf16 %v7356_v61 }
 0x284   : > { %v8992_v40 = vadd.f32 %v3579_v21, %v3490_v20  ;;  %v10240_v20 = vld [vmem:[#allocation7_spill] sm:$0xff] }
 0x285   : > { %v3367_v52 = vadd.f32 %v8962_v18, %v3335_v31  ;;  %v1679_v31 = vpack.c.bf16 %v1423_v41, %v1423_v41  ;;  %v908_v50 = vmul.f32 %v8903_v46, %v6399_v63 }
 0x287   : > { %v3087_v62 = vpop.f32.mrf.mxu2  ;;  %v1168_v41 = vadd.f32 %v8913_v57, %v908_v50 }
 0x288   : > { %v3088_v27 = vadd.f32 %v3087_v62, %v10237_v7  ;;  %v1678_v62 = vpack.c.bf16 %v1422_v34, %v1422_v34 }
 0x289   : > { %v1424_v50 = vmax.f32 %v1168_v41, 0.0 }
 0x28a   : > { %v3272_v11 = vpop.f32.mrf.mxu3  ;;  %v3493_v39 = vpop.f32.mrf.mxu0 }
 0x28b   : > { %v3336_v42 = vadd.f32 %v3272_v11, %v3088_v27  ;;  %v3582_v60 = vpop.f32.mrf.mxu1  ;;  %v6463_v27 = vunpack.c.l.bf16 %v7372_v6  ;;  %v6464_v11 = vunpack.c.h.bf16 %v7372_v6 }
 0x28c   : > { %v9002_v2 = vadd.f32 %v3582_v60, %v3493_v39  ;;  %3129 = vmatmul.bf16.gmra.mxu2 %v10239_v8  ;;  %v10242_v60 = vld [vmem:[#allocation8_spill] sm:$0xff]  ;;  %v3203_v8 = vunpack.c.l.b16 %v1679_v31 }
 0x28d   : > { %v3368_v26 = vadd.f32 %v8962_v18, %v3336_v42  ;;  %3532 = vmatmul.bf16.gmra.mxu0 %v8997_v30  ;;  %3621 = vmatmul.bf16.gmra.mxu1 %v10240_v20  ;;  %v909_v42 = vmul.f32 %v8903_v46, %v6400_v12  ;;  %v940_v61 = vmul.f32 %v8903_v46, %v6463_v27 }
 0x28e   : > { %10238 = vst [vmem:[#allocation4_spill] sm:$0xff] %v9002_v2  ;;  %v941_v20 = vmul.f32 %v8903_v46, %v6464_v11 }
 0x28f   : > { %3314 = vmatmul.bf16.gmra.mxu3 %v8997_v30  ;;  %v6841_v21 = vpack.c.bf16 %v3368_v26, %v3367_v52  ;;  %v3090_v47 = vpop.f32.mrf.mxu2  ;;  %v3202_v26 = vunpack.c.l.b16 %v1678_v62 }
 0x290   : > { %v3091_v52 = vadd.f32 %v3090_v47, %v10242_v60  ;;  %v1200_v47 = vadd.f32 %v8913_v57, %v940_v61  ;;  %v1201_v62 = vadd.f32 %v8913_v57, %v941_v20  ;;  %v7373_v61 = vld [vmem:[%s7789_s12 + $0x288] sm:$0xff]  }
 0x291   : > { %7456 = vst [vmem:[%s8329_s28 + $0x128] sm:$0xff] %v6841_v21   ;;  %v1169_v21 = vadd.f32 %v8913_v57, %v909_v42  ;;  %v9023_v63 = vpack.c.b16 %v3203_v8, %v3202_v26  ;;  %v7357_v26 = vld [vmem:[%s7789_s12 + $0x208] sm:$0xff]  }
 0x292   : > { %v3275_v14 = vpop.f32.mrf.mxu3  ;;  %v3495_v7 = vpop.f32.mrf.mxu0 }
 0x293   : > { %v3584_v39 = vpop.f32.mrf.mxu1  ;;  %v3337_v6 = vadd.f32 %v3275_v14, %v3091_v52  ;;  %10244 = vst [vmem:[#allocation6_spill] sm:$0xff] %v9023_v63  ;;  %v1425_v42 = vmax.f32 %v1169_v21, 0.0  ;;  %v1456_v52 = vmax.f32 %v1200_v47, 0.0 }
 0x294   : > { %v9013_v3 = vadd.f32 %v3584_v39, %v3495_v7  ;;  %v10243_v7 = vld [vmem:[#allocation3_spill] sm:$0xff] }
 0x295   : > { %v3369_v14 = vadd.f32 %v8962_v18, %v3337_v6  ;;  %v1681_v41 = vpack.c.bf16 %v1425_v42, %v1425_v42  ;;  %v6403_v6 = vunpack.c.l.bf16 %v7357_v26 }
 0x296   : > { %10241 = vst [vmem:[#allocation5_spill] sm:$0xff] %v9013_v3 }
 0x297   : > { %v3092_v34 = vpop.f32.mrf.mxu2  ;;  %v3665_v47 = vunpack.c.l.b16 %v1681_v41 }
 0x298   : > { %v3093_v39 = vadd.f32 %v3092_v34, %v10243_v7  ;;  %v1680_v34 = vpack.c.bf16 %v1424_v50, %v1424_v50  ;;  %v6404_v7 = vunpack.c.h.bf16 %v7357_v26 }
 0x29a   : > { %v3277_v3 = vpop.f32.mrf.mxu3  ;;  %v3498_v12 = vpop.f32.mrf.mxu0  ;;  %v911_v50 = vmul.f32 %v8903_v46, %v6404_v7 }
 0x29b   : > { %v3338_v31 = vadd.f32 %v3277_v3, %v3093_v39  ;;  %v3587_v27 = vpop.f32.mrf.mxu1  ;;  %v1457_v3 = vmax.f32 %v1201_v62, 0.0  ;;  %v10246_v62 = vld [vmem:[#allocation9_spill] sm:$0xff] }
 0x29c   : > { %v9027_v11 = vadd.f32 %v3587_v27, %v3498_v12  ;;  %3134 = vmatmul.bf16.gmra.mxu2 %v8270_v13  ;;  %v1712_v13 = vpack.c.bf16 %v1456_v52, %v1456_v52  ;;  %v6468_v27 = vunpack.c.h.bf16 %v7373_v61  ;;  %v1171_v41 = vadd.f32 %v8913_v57, %v911_v50 }
 0x29d   : > { %v3370_v60 = vadd.f32 %v8962_v18, %v3338_v31  ;;  %3537 = vmatmul.bf16.gmra.mxu0 %v9023_v63  ;;  %3626 = vmatmul.bf16.gmra.mxu1 %v8629_v37  ;;  %v1713_v12 = vpack.c.bf16 %v1457_v3, %v1457_v3  ;;  %v6467_v31 = vunpack.c.l.bf16 %v7373_v61  ;;  %v3664_v37 = vunpack.c.l.b16 %v1680_v34 }
 0x29e   : > { %10245 = vst [vmem:[#allocation2_spill] sm:$0xff] %v9027_v11  ;;  %v4156_v42 = vunpack.c.l.b16 %v1712_v13  ;;  %v943_v52 = vmul.f32 %v8903_v46, %v6468_v27 }
 0x29f   : > { %3319 = vmatmul.bf16.gmra.mxu3 %v9023_v63  ;;  %v6846_v8 = vpack.c.bf16 %v3370_v60, %v3369_v14  ;;  %v3095_v20 = vpop.f32.mrf.mxu2  ;;  %v910_v60 = vmul.f32 %v8903_v46, %v6403_v6  ;;  %v942_v26 = vmul.f32 %v8903_v46, %v6467_v31  ;;  %v9045_v2 = vpack.c.b16 %v3665_v47, %v3664_v37 }
 0x2a0   : > { %v3096_v14 = vadd.f32 %v3095_v20, %v10246_v62 }
 0x2a1   : > { %7457 = vst [vmem:[%s8329_s28 + $0x130] sm:$0xff] %v6846_v8   ;;  %v4157_v8 = vunpack.c.l.b16 %v1713_v12  ;;  %v1170_v20 = vadd.f32 %v8913_v57, %v910_v60  ;;  %v1202_v13 = vadd.f32 %v8913_v57, %v942_v26  ;;  %v1203_v12 = vadd.f32 %v8913_v57, %v943_v52  ;;  %v7358_v60 = vld [vmem:[%s7789_s12 + $0x210] sm:$0xff]   ;;  %v7639_v52 = vld [vmem:[%s10193_s3 + $0x38] sm:$0xff] }
 0x2a2   : > { %v3280_v21 = vpop.f32.mrf.mxu3  ;;  %v3500_v39 = vpop.f32.mrf.mxu0  ;;  %v7374_v26 = vld [vmem:[%s7789_s12 + $0x290] sm:$0xff]  }
 0x2a3   : > { %v3589_v11 = vpop.f32.mrf.mxu1  ;;  %v3339_v61 = vadd.f32 %v3280_v21, %v3096_v14  ;;  %v9050_v7 = vpack.c.b16 %v4157_v8, %v4156_v42  ;;  %v1426_v62 = vmax.f32 %v1170_v20, 0.0  ;;  %v1427_v14 = vmax.f32 %v1171_v41, 0.0 }
 0x2a4   : > { %v9038_v63 = vadd.f32 %v3589_v11, %v3500_v39  ;;  %v10247_v11 = vld [vmem:[#allocation10_spill] sm:$0xff]  ;;  %v1458_v50 = vmax.f32 %v1202_v13, 0.0  ;;  %v1459_v42 = vmax.f32 %v1203_v12, 0.0 }
 0x2a5   : > { %v3371_v21 = vadd.f32 %v8962_v18, %v3339_v61  ;;  %v6407_v61 = vunpack.c.l.bf16 %v7358_v60  ;;  %v1682_v20 = vpack.c.bf16 %v1426_v62, %v1426_v62  ;;  %v1683_v41 = vpack.c.bf16 %v1427_v14, %v1427_v14 }
 0x2a6   : > { %v1714_v13 = vpack.c.bf16 %v1458_v50, %v1458_v50  ;;  %v1715_v12 = vpack.c.bf16 %v1459_v42, %v1459_v42  ;;  %v7644_v50 = vld [vmem:[%s10193_s3 + $0x70] sm:$0xff] }
 0x2a7   : > { %v3097_v3 = vpop.f32.mrf.mxu2  ;;  %v912_v62 = vmul.f32 %v8903_v46, %v6407_v61  ;;  %v7645_v61 = vld [vmem:[%s10193_s3 + $0x28] sm:$0xff] }
 0x2a8   : > { %v3098_v39 = vadd.f32 %v3097_v3, %v10247_v11  ;;  %v6408_v11 = vunpack.c.h.bf16 %v7358_v60  ;;  %v7643_v60 = vld [vmem:[%s10193_s3 + $0xb0] sm:$0xff] }
 0x2aa   : > { %v3282_v34 = vpop.f32.mrf.mxu3  ;;  %v3503_v6 = vpop.f32.mrf.mxu0  ;;  %v913_v14 = vmul.f32 %v8903_v46, %v6408_v11  ;;  %v7646_v11 = vld [vmem:[%s10193_s3 + $0xa8] sm:$0xff] }
 0x2ab   : > { %v3340_v31 = vadd.f32 %v3282_v34, %v3098_v39  ;;  %v3592_v27 = vpop.f32.mrf.mxu1  ;;  %v7641_v39 = vld [vmem:[%s10193_s3 + $0x78] sm:$0xff] }
 0x2ac   : > { %v9054_v37 = vadd.f32 %v3592_v27, %v3503_v6  ;;  %3736 = vmatmul.bf16.vlgmr.msrb.gmra.mxu2 %v9045_v2  ;;  %v6472_v27 = vunpack.c.h.bf16 %v7374_v26 }
 0x2ad   : > { %v3372_v47 = vadd.f32 %v8962_v18, %v3340_v31  ;;  %4043 = vmatmul.bf16.vlgmr.msrb.gmra.mxu0 %v8647_v4  ;;  %4228 = vmatmul.bf16.vlgmr.msrb.gmra.mxu1 %v9050_v7  ;;  %v7640_v4 = vld [vmem:[%s10193_s3 + $0xb8] sm:$0xff]  ;;  %v6471_v31 = vunpack.c.l.bf16 %v7374_v26  ;;  %v3666_v26 = vunpack.c.l.b16 %v1682_v20  ;;  %v1173_v20 = vadd.f32 %v8913_v57, %v913_v14 }
 0x2ae   : > { %5019 = vmatpush.bf16.msrb.mxu2 %v7639_v52  ;;  %5422 = vmatpush.bf16.msrb.mxu0 %v7641_v39  ;;  %v4159_v39 = vunpack.c.l.b16 %v1715_v12 }
 0x2af   : > { %3954 = vmatmul.bf16.vlgmr.msrb.gmra.mxu3 %v9045_v2  ;;  %v6851_v8 = vpack.c.bf16 %v3372_v47, %v3371_v21  ;;  %v3100_v3 = vpop.f32.mrf.mxu2  ;;  %5511 = vmatpush.bf16.msrb.mxu1 %v7639_v52  ;;  %v7642_v47 = vld [vmem:[%s10193_s3 + $0x30] sm:$0xff]  ;;  %v3667_v52 = vunpack.c.l.b16 %v1683_v41  ;;  %v7647_v41 = vld [vmem:[%s10193_s3 + $0x68] sm:$0xff] }
 0x2b0   : > { %5204 = vmatpush.bf16.msrb.mxu3 %v7640_v4  ;;  %v3101_v42 = vadd.f32 %v3100_v3, %v8651_v16  ;;  %v4158_v4 = vunpack.c.l.b16 %v1714_v13  ;;  %v1172_v3 = vadd.f32 %v8913_v57, %v912_v62 }
 0x2b1   : > { %7458 = vst [vmem:[%s8329_s28 + $0x138] sm:$0xff] %v6851_v8  }
 0x2b2   : > { %v3285_v34 = vpop.f32.mrf.mxu3  ;;  %v3505_v6 = vpop.f32.mrf.mxu0  ;;  %5020 = vmatpush.bf16.msrb.mxu2 %v7642_v47  ;;  %5423 = vmatpush.bf16.msrb.mxu0 %v7644_v50 }
 0x2b3   : > { %v3594_v21 = vpop.f32.mrf.mxu1  ;;  %5512 = vmatpush.bf16.msrb.mxu1 %v7642_v47  ;;  %v3341_v13 = vadd.f32 %v3285_v34, %v3101_v42  ;;  %v9104_v47 = vpack.c.b16 %v4159_v39, %v4158_v4  ;;  %v1428_v42 = vmax.f32 %v1172_v3, 0.0  ;;  %v7375_v3 = vld [vmem:[%s7789_s12 + $0x298] sm:$0xff]  }
 0x2b4   : > { %5205 = vmatpush.bf16.msrb.mxu3 %v7643_v60  ;;  %v9080_v8 = vadd.f32 %v3594_v21, %v3505_v6  ;;  %v944_v60 = vmul.f32 %v8903_v46, %v6471_v31  ;;  %v945_v6 = vmul.f32 %v8903_v46, %v6472_v27  ;;  %v9102_v27 = vpack.c.b16 %v3667_v52, %v3666_v26  ;;  %v7650_v52 = vld [vmem:[%s10193_s3 + $0x60] sm:$0xff] }
 0x2b5   : > { %v1429_v26 = vmax.f32 %v1173_v20, 0.0  ;;  %v3373_v4 = vadd.f32 %v8962_v18, %v3341_v13  ;;  %v7651_v20 = vld [vmem:[%s10193_s3 + $0x18] sm:$0xff] }
 0x2b6   : > { %5021 = vmatpush.bf16.msrb.mxu2 %v7645_v61  ;;  %5424 = vmatpush.bf16.msrb.mxu0 %v7647_v41  ;;  %10248 = vst [vmem:[#allocation7_spill] sm:$0xff] %v9102_v27  ;;  %v1204_v50 = vadd.f32 %v8913_v57, %v944_v60  ;;  %v1205_v62 = vadd.f32 %v8913_v57, %v945_v6  ;;  %v7648_v41 = vld [vmem:[%s10193_s3 + $0x20] sm:$0xff] }
 0x2b7   : > { %v3102_v16 = vpop.f32.mrf.mxu2  ;;  %5513 = vmatpush.bf16.msrb.mxu1 %v7645_v61  ;;  %v7359_v61 = vld [vmem:[%s7789_s12 + $0x218] sm:$0xff]  }
 0x2b8   : > { %5206 = vmatpush.bf16.msrb.mxu3 %v7646_v11  ;;  %v3103_v12 = vadd.f32 %v3102_v16, %v8670_v29  ;;  %v7649_v29 = vld [vmem:[%s10193_s3 + $0xa0] sm:$0xff]  ;;  %v1460_v60 = vmax.f32 %v1204_v50, 0.0  ;;  %v1461_v6 = vmax.f32 %v1205_v62, 0.0  ;;  %v6411_v62 = vunpack.c.l.bf16 %v7359_v61 }
 0x2ba   : > { %v3287_v31 = vpop.f32.mrf.mxu3  ;;  %v3508_v21 = vpop.f32.mrf.mxu0  ;;  %5022 = vmatpush.bf16.msrb.mxu2 %v7648_v41  ;;  %5425 = vmatpush.bf16.msrb.mxu0 %v7650_v52  ;;  %v6475_v52 = vunpack.c.l.bf16 %v7375_v3 }
 0x2bb   : > { %v3342_v14 = vadd.f32 %v3287_v31, %v3103_v12  ;;  %v3597_v11 = vpop.f32.mrf.mxu1  ;;  %5514 = vmatpush.bf16.msrb.mxu1 %v7648_v41  ;;  %v1684_v12 = vpack.c.bf16 %v1428_v42, %v1428_v42  ;;  %v1685_v31 = vpack.c.bf16 %v1429_v26, %v1429_v26  ;;  %v1716_v41 = vpack.c.bf16 %v1460_v60, %v1460_v60 }
 0x2bc   : > { %5207 = vmatpush.bf16.msrb.mxu3 %v7649_v29  ;;  %v9114_v34 = vadd.f32 %v3597_v11, %v3508_v21  ;;  %3741 = vmatmul.bf16.gmra.mxu2 %v9102_v27  ;;  %v7653_v21 = vld [vmem:[%s10193_s3 + $0x58] sm:$0xff]  ;;  %v1717_v29 = vpack.c.bf16 %v1461_v6, %v1461_v6  ;;  %v6476_v42 = vunpack.c.h.bf16 %v7375_v3  ;;  %v914_v6 = vmul.f32 %v8903_v46, %v6411_v62  ;;  %v7656_v3 = vld [vmem:[%s10193_s3 + $0x50] sm:$0xff] }
 0x2bd   : > { %v3374_v39 = vadd.f32 %v8962_v18, %v3342_v14  ;;  %4048 = vmatmul.bf16.gmra.mxu0 %v8692_v44  ;;  %4233 = vmatmul.bf16.gmra.mxu1 %v9104_v47  ;;  %v7652_v44 = vld [vmem:[%s10193_s3 + $0x98] sm:$0xff]  ;;  %v6412_v14 = vunpack.c.h.bf16 %v7359_v61  ;;  %v7655_v61 = vld [vmem:[%s10193_s3 + $0x90] sm:$0xff] }
 0x2be   : > { %10249 = vst [vmem:[#allocation8_spill] sm:$0xff] %v9114_v34  ;;  %5023 = vmatpush.bf16.msrb.mxu2 %v7651_v20  ;;  %5426 = vmatpush.bf16.msrb.mxu0 %v7653_v21  ;;  %v3669_v21 = vunpack.c.l.b16 %v1685_v31  ;;  %v947_v31 = vmul.f32 %v8903_v46, %v6476_v42  ;;  %v1174_v42 = vadd.f32 %v8913_v57, %v914_v6  ;;  %v7660_v6 = vld [vmem:[%s10193_s3] sm:$0xff] }
 0x2bf   : > { %3959 = vmatmul.bf16.gmra.mxu3 %v9102_v27  ;;  %v6856_v16 = vpack.c.bf16 %v3374_v39, %v3373_v4  ;;  %v3105_v13 = vpop.f32.mrf.mxu2  ;;  %5515 = vmatpush.bf16.msrb.mxu1 %v7651_v20  ;;  %v7654_v4 = vld [vmem:[%s10193_s3 + $0x10] sm:$0xff]  ;;  %v4160_v20 = vunpack.c.l.b16 %v1716_v41 }
 0x2c0   : > { %5208 = vmatpush.bf16.msrb.mxu3 %v7652_v44  ;;  %v3668_v44 = vunpack.c.l.b16 %v1684_v12  ;;  %v3106_v60 = vadd.f32 %v3105_v13, %v8696_v54  ;;  %v946_v12 = vmul.f32 %v8903_v46, %v6475_v52  ;;  %v7657_v54 = vld [vmem:[%s10193_s3 + $0x8] sm:$0xff] }
 0x2c1   : > { %7459 = vst [vmem:[%s8329_s28 + $0x140] sm:$0xff] %v6856_v16   ;;  %v915_v16 = vmul.f32 %v8903_v46, %v6412_v14  ;;  %v7658_v14 = vld [vmem:[%s10193_s3 + $0x88] sm:$0xff] }
 0x2c2   : > { %v3290_v50 = vpop.f32.mrf.mxu3  ;;  %v3510_v11 = vpop.f32.mrf.mxu0  ;;  %5024 = vmatpush.bf16.msrb.mxu2 %v7654_v4  ;;  %5427 = vmatpush.bf16.msrb.mxu0 %v7656_v3  ;;  %v9156_v62 = vpack.c.b16 %v3669_v21, %v3668_v44  ;;  %v7661_v3 = vld [vmem:[%s10193_s3 + $0x80] sm:$0xff] }
 0x2c3   : > { %v3599_v26 = vpop.f32.mrf.mxu1  ;;  %5516 = vmatpush.bf16.msrb.mxu1 %v7654_v4  ;;  %v3343_v41 = vadd.f32 %v3290_v50, %v3106_v60  ;;  %v7659_v4 = vld [vmem:[%s10193_s3 + $0x48] sm:$0xff]  ;;  %v1207_v50 = vadd.f32 %v8913_v57, %v947_v31  ;;  %v1430_v31 = vmax.f32 %v1174_v42, 0.0 }
 0x2c4   : > { %v9140_v39 = vadd.f32 %v3599_v26, %v3510_v11  ;;  %5209 = vmatpush.bf16.msrb.mxu3 %v7655_v61  ;;  %v4161_v11 = vunpack.c.l.b16 %v1717_v29  ;;  %10251 = vst [vmem:[#allocation9_spill] sm:$0xff] %v9156_v62  ;;  %v1175_v26 = vadd.f32 %v8913_v57, %v915_v16  ;;  %v1206_v61 = vadd.f32 %v8913_v57, %v946_v12  ;;  %v10254_v12 = vld [vmem:[#allocation11_spill] sm:$0xff] }
 0x2c6   : > { %10250 = vst [vmem:[#allocation3_spill] sm:$0xff] %v9140_v39  ;;  %5025 = vmatpush.bf16.msrb.mxu2 %v7657_v54  ;;  %5428 = vmatpush.bf16.msrb.mxu0 %v7659_v4  ;;  %v9167_v21 = vpack.c.b16 %v4161_v11, %v4160_v20  ;;  %v3375_v20 = vadd.f32 %v8962_v18, %v3343_v41  ;;  %v7376_v4 = vld [vmem:[%s7789_s12 + $0x2a0] sm:$0xff]  }
 0x2c7   : > { %v3107_v13 = vpop.f32.mrf.mxu2  ;;  %5517 = vmatpush.bf16.msrb.mxu1 %v7657_v54  ;;  %v1431_v54 = vmax.f32 %v1175_v26, 0.0  ;;  %v7662_v41 = vld [vmem:[%s10193_s3 + $0x40] sm:$0xff]  ;;  %v1686_v26 = vpack.c.bf16 %v1430_v31, %v1430_v31 }
 0x2c8   : > { %5210 = vmatpush.bf16.msrb.mxu3 %v7658_v14  ;;  %v3108_v29 = vadd.f32 %v3107_v13, %v8724_v59  ;;  %10252 = vst [vmem:[#allocation10_spill] sm:$0xff] %v9167_v21  ;;  %v7360_v13 = vld [vmem:[%s7789_s12 + $0x220] sm:$0xff]   ;;  %v1462_v14 = vmax.f32 %v1206_v61, 0.0  ;;  %v6479_v61 = vunpack.c.l.bf16 %v7376_v4 }
 0x2c9   : > { %v3670_v34 = vunpack.c.l.b16 %v1686_v26 }
 0x2ca   : > { %v3292_v52 = vpop.f32.mrf.mxu3  ;;  %v3513_v44 = vpop.f32.mrf.mxu0  ;;  %5026 = vmatpush.bf16.msrb.mxu2 %v7660_v6  ;;  %5429 = vmatpush.bf16.msrb.mxu0 %v7662_v41  ;;  %v948_v31 = vmul.f32 %v8903_v46, %v6479_v61 }
 0x2cb   : > { %v3344_v60 = vadd.f32 %v3292_v52, %v3108_v29  ;;  %v3602_v59 = vpop.f32.mrf.mxu1  ;;  %v1463_v29 = vmax.f32 %v1207_v50, 0.0  ;;  %5518 = vmatpush.bf16.msrb.mxu1 %v7660_v6  ;;  %v6480_v50 = vunpack.c.h.bf16 %v7376_v4  ;;  %v10256_v6 = vld [vmem:[#allocation12_spill] sm:$0xff] }
 0x2cc   : > { %v9174_v16 = vadd.f32 %v3602_v59, %v3513_v44  ;;  %5211 = vmatpush.bf16.msrb.mxu3 %v7661_v3  ;;  %3746 = vmatmul.bf16.gmra.mxu2 %v9156_v62  ;;  %v6416_v59 = vunpack.c.h.bf16 %v7360_v13  ;;  %v1687_v3 = vpack.c.bf16 %v1431_v54, %v1431_v54 }
 0x2cd   : > { %v3376_v11 = vadd.f32 %v8962_v18, %v3344_v60  ;;  %4053 = vmatmul.bf16.gmra.mxu0 %v10254_v12  ;;  %4238 = vmatmul.bf16.gmra.mxu1 %v9167_v21  ;;  %v6415_v60 = vunpack.c.l.bf16 %v7360_v13  ;;  %v949_v54 = vmul.f32 %v8903_v46, %v6480_v50 }
 0x2ce   : > { %10253 = vst [vmem:[#allocation19_spill] sm:$0xff] %v9174_v16  ;;  %v1718_v16 = vpack.c.bf16 %v1462_v14, %v1462_v14  ;;  %v917_v41 = vmul.f32 %v8903_v46, %v6416_v59  ;;  %v3671_v13 = vunpack.c.l.b16 %v1687_v3 }
 0x2cf   : > { %3964 = vmatmul.bf16.gmra.mxu3 %v9156_v62  ;;  %v6861_v52 = vpack.c.bf16 %v3376_v11, %v3375_v20  ;;  %v3110_v44 = vpop.f32.mrf.mxu2  ;;  %v1719_v62 = vpack.c.bf16 %v1463_v29, %v1463_v29  ;;  %v916_v21 = vmul.f32 %v8903_v46, %v6415_v60 }
 0x2d0   : > { %v3111_v39 = vadd.f32 %v3110_v44, %v10256_v6  ;;  %v1177_v4 = vadd.f32 %v8913_v57, %v917_v41  ;;  %v9201_v59 = vpack.c.b16 %v3671_v13, %v3670_v34  ;;  %v7361_v41 = vld [vmem:[%s7789_s12 + $0x228] sm:$0xff]  }
 0x2d1   : > { %7460 = vst [vmem:[%s8329_s28 + $0x148] sm:$0xff] %v6861_v52   ;;  %v4162_v52 = vunpack.c.l.b16 %v1718_v16  ;;  %v4163_v27 = vunpack.c.l.b16 %v1719_v62  ;;  %v1176_v29 = vadd.f32 %v8913_v57, %v916_v21  ;;  %v1208_v62 = vadd.f32 %v8913_v57, %v948_v31  ;;  %v7377_v13 = vld [vmem:[%s7789_s12 + $0x2a8] sm:$0xff]  }
 0x2d2   : > { %v3295_v42 = vpop.f32.mrf.mxu3  ;;  %v3515_v12 = vpop.f32.mrf.mxu0  ;;  %v1209_v16 = vadd.f32 %v8913_v57, %v949_v54 }
 0x2d3   : > { %v3604_v20 = vpop.f32.mrf.mxu1  ;;  %v9203_v26 = vpack.c.b16 %v4163_v27, %v4162_v52  ;;  %v1432_v50 = vmax.f32 %v1176_v29, 0.0  ;;  %v1464_v27 = vmax.f32 %v1208_v62, 0.0  ;;  %v6419_v29 = vunpack.c.l.bf16 %v7361_v41 }
 0x2d4   : > { %v9191_v11 = vadd.f32 %v3604_v20, %v3515_v12  ;;  %v3345_v12 = vadd.f32 %v3295_v42, %v3111_v39  ;;  %v10257_v20 = vld [vmem:[#allocation13_spill] sm:$0xff]  ;;  %v1433_v39 = vmax.f32 %v1177_v4, 0.0  ;;  %v6420_v4 = vunpack.c.h.bf16 %v7361_v41 }
 0x2d5   : > { %v1688_v31 = vpack.c.bf16 %v1432_v50, %v1432_v50 }
 0x2d6   : > { %10255 = vst [vmem:[#allocation11_spill] sm:$0xff] %v9191_v11  ;;  %v3377_v42 = vadd.f32 %v8962_v18, %v3345_v12  ;;  %v1689_v54 = vpack.c.bf16 %v1433_v39, %v1433_v39  ;;  %v919_v50 = vmul.f32 %v8903_v46, %v6420_v4 }
 0x2d7   : > { %v3112_v14 = vpop.f32.mrf.mxu2  ;;  %v3672_v62 = vunpack.c.l.b16 %v1688_v31 }
 0x2d8   : > { %v3113_v60 = vadd.f32 %v3112_v14, %v10257_v20  ;;  %v1720_v20 = vpack.c.bf16 %v1464_v27, %v1464_v27 }
 0x2da   : > { %v3297_v11 = vpop.f32.mrf.mxu3  ;;  %v3518_v44 = vpop.f32.mrf.mxu0  ;;  %v4164_v39 = vunpack.c.l.b16 %v1720_v20 }
 0x2db   : > { %v3346_v3 = vadd.f32 %v3297_v11, %v3113_v60  ;;  %v3607_v61 = vpop.f32.mrf.mxu1  ;;  %v1465_v11 = vmax.f32 %v1209_v16, 0.0  ;;  %v3673_v16 = vunpack.c.l.b16 %v1689_v54 }
 0x2dc   : > { %v9207_v21 = vadd.f32 %v3607_v61, %v3518_v44  ;;  %3751 = vmatmul.bf16.gmra.mxu2 %v9201_v59  ;;  %v6484_v44 = vunpack.c.h.bf16 %v7377_v13 }
 0x2dd   : > { %v3378_v34 = vadd.f32 %v8962_v18, %v3346_v3  ;;  %4058 = vmatmul.bf16.gmra.mxu0 %v8773_v53  ;;  %4243 = vmatmul.bf16.gmra.mxu1 %v9203_v26  ;;  %v1721_v60 = vpack.c.bf16 %v1465_v11, %v1465_v11  ;;  %v6483_v53 = vunpack.c.l.bf16 %v7377_v13 }
 0x2de   : > { %10258 = vst [vmem:[#allocation12_spill] sm:$0xff] %v9207_v21  ;;  %v951_v27 = vmul.f32 %v8903_v46, %v6484_v44  ;;  %v9225_v21 = vpack.c.b16 %v3673_v16, %v3672_v62 }
 0x2df   : > { %3969 = vmatmul.bf16.gmra.mxu3 %v9201_v59  ;;  %v6866_v6 = vpack.c.bf16 %v3378_v34, %v3377_v42  ;;  %v3115_v52 = vpop.f32.mrf.mxu2  ;;  %v918_v34 = vmul.f32 %v8903_v46, %v6419_v29  ;;  %v950_v41 = vmul.f32 %v8903_v46, %v6483_v53 }
 0x2e0   : > { %v3116_v42 = vadd.f32 %v3115_v52, %v8777_v38  ;;  %v1179_v52 = vadd.f32 %v8913_v57, %v919_v50  ;;  %v1211_v20 = vadd.f32 %v8913_v57, %v951_v27 }
 0x2e1   : > { %7461 = vst [vmem:[%s8329_s28 + $0x150] sm:$0xff] %v6866_v6   ;;  %v4165_v6 = vunpack.c.l.b16 %v1721_v60  ;;  %v1178_v38 = vadd.f32 %v8913_v57, %v918_v34  ;;  %v1210_v4 = vadd.f32 %v8913_v57, %v950_v41  ;;  %v7362_v34 = vld [vmem:[%s7789_s12 + $0x230] sm:$0xff]  }
 0x2e2   : > { %v3300_v14 = vpop.f32.mrf.mxu3  ;;  %v3520_v12 = vpop.f32.mrf.mxu0  ;;  %v1467_v50 = vmax.f32 %v1211_v20, 0.0  ;;  %v6423_v27 = vunpack.c.l.bf16 %v7362_v34 }
 0x2e3   : > { %v3609_v3 = vpop.f32.mrf.mxu1  ;;  %v3347_v13 = vadd.f32 %v3300_v14, %v3116_v42  ;;  %v9230_v29 = vpack.c.b16 %v4165_v6, %v4164_v39  ;;  %v1434_v16 = vmax.f32 %v1178_v38, 0.0  ;;  %v1435_v42 = vmax.f32 %v1179_v52, 0.0  ;;  %v7378_v6 = vld [vmem:[%s7789_s12 + $0x2b0] sm:$0xff]  }
 0x2e4   : > { %v9218_v61 = vadd.f32 %v3609_v3, %v3520_v12  ;;  %v10259_v12 = vld [vmem:[#allocation14_spill] sm:$0xff]  ;;  %v1466_v57 = vmax.f32 %v1210_v4, 0.0  ;;  %v1723_v38 = vpack.c.bf16 %v1467_v50, %v1467_v50  ;;  %v6487_v52 = vunpack.c.l.bf16 %v7378_v6 }
 0x2e5   : > { %v3379_v14 = vadd.f32 %v8962_v18, %v3347_v13  ;;  %v920_v4 = vmul.f32 %v8903_v46, %v6423_v27  ;;  %v10261_v27 = vld [vmem:[#allocation15_spill] sm:$0xff] }
 0x2e7   : > { %v3117_v11 = vpop.f32.mrf.mxu2 }
 0x2e8   : > { %v3118_v3 = vadd.f32 %v3117_v11, %v10259_v12  ;;  %v6424_v11 = vunpack.c.h.bf16 %v7362_v34  ;;  %v1690_v12 = vpack.c.bf16 %v1434_v16, %v1434_v16  ;;  %v9253_v16 = vld [vmem:[%s10191_s1] ss:$0 sm:$0xff] }
 0x2ea   : > { %v3302_v31 = vpop.f32.mrf.mxu3  ;;  %v3523_v54 = vpop.f32.mrf.mxu0  ;;  %v921_v20 = vmul.f32 %v8903_v46, %v6424_v11  ;;  %v9260_v46 = vld [vmem:[%s10192_s2] ss:$0 sm:$0xff] }
 0x2eb   : > { %v3348_v60 = vadd.f32 %v3302_v31, %v3118_v3  ;;  %v3612_v53 = vpop.f32.mrf.mxu1  ;;  %v1691_v3 = vpack.c.bf16 %v1435_v42, %v1435_v42  ;;  %v952_v42 = vmul.f32 %v9253_v16, %v6487_v52 }
 0x2ec   : > { %v9234_v44 = vadd.f32 %v3612_v53, %v3523_v54  ;;  %3756 = vmatmul.bf16.gmra.mxu2 %v9225_v21  ;;  %v6488_v54 = vunpack.c.h.bf16 %v7378_v6  ;;  %v1181_v6 = vadd.f32 %v9260_v46, %v921_v20 }
 0x2ed   : > { %v3380_v62 = vadd.f32 %v8962_v18, %v3348_v60  ;;  %4063 = vmatmul.bf16.gmra.mxu0 %v8791_v45  ;;  %4248 = vmatmul.bf16.gmra.mxu1 %v9230_v29  ;;  %v1722_v45 = vpack.c.bf16 %v1466_v57, %v1466_v57  ;;  %v3675_v34 = vunpack.c.l.b16 %v1691_v3 }
 0x2ee   : > { %10260 = vst [vmem:[#allocation13_spill] sm:$0xff] %v9234_v44  ;;  %v4167_v44 = vunpack.c.l.b16 %v1723_v38  ;;  %v953_v57 = vmul.f32 %v9253_v16, %v6488_v54  ;;  %v1212_v38 = vadd.f32 %v9260_v46, %v952_v42 }
 0x2ef   : > { %3974 = vmatmul.bf16.gmra.mxu3 %v9225_v21  ;;  %v6871_v39 = vpack.c.bf16 %v3380_v62, %v3379_v14  ;;  %v3120_v41 = vpop.f32.mrf.mxu2  ;;  %v3674_v62 = vunpack.c.l.b16 %v1690_v12 }
 0x2f0   : > { %v3121_v14 = vadd.f32 %v3120_v41, %v8795_v35  ;;  %v1180_v35 = vadd.f32 %v9260_v46, %v920_v4  ;;  %v1213_v52 = vadd.f32 %v9260_v46, %v953_v57  ;;  %v7379_v57 = vld [vmem:[%s7789_s12 + $0x2b8] sm:$0xff]  }
 0x2f1   : > { %7462 = vst [vmem:[%s8329_s28 + $0x158] sm:$0xff] %v6871_v39   ;;  %v4166_v39 = vunpack.c.l.b16 %v1722_v45  ;;  %v9265_v3 = vpack.c.b16 %v3675_v34, %v3674_v62 }
 0x2f2   : > { %v3305_v13 = vpop.f32.mrf.mxu3  ;;  %v3525_v31 = vpop.f32.mrf.mxu0  ;;  %v1436_v20 = vmax.f32 %v1180_v35, 0.0  ;;  %v1469_v34 = vmax.f32 %v1213_v52, 0.0 }
 0x2f3   : > { %v3614_v60 = vpop.f32.mrf.mxu1  ;;  %v3349_v41 = vadd.f32 %v3305_v13, %v3121_v14  ;;  %10262 = vst [vmem:[#allocation14_spill] sm:$0xff] %v9265_v3  ;;  %v9267_v45 = vpack.c.b16 %v4167_v44, %v4166_v39  ;;  %v1437_v13 = vmax.f32 %v1181_v6, 0.0  ;;  %v1468_v44 = vmax.f32 %v1212_v38, 0.0  ;;  %v7363_v39 = vld [vmem:[%s7789_s12 + $0x238] sm:$0xff]  }
 0x2f4   : > { %v9245_v53 = vadd.f32 %v3614_v60, %v3525_v31  ;;  %v1692_v35 = vpack.c.bf16 %v1436_v20, %v1436_v20 }
 0x2f5   : > { %10263 = vst [vmem:[#allocation15_spill] sm:$0xff] %v9267_v45  ;;  %v3381_v14 = vadd.f32 %v8962_v18, %v3349_v41  ;;  %v1693_v6 = vpack.c.bf16 %v1437_v13, %v1437_v13 }
 0x2f6   : > { %v3676_v38 = vunpack.c.l.b16 %v1692_v35 }
 0x2f7   : > { %v3122_v50 = vpop.f32.mrf.mxu2  ;;  %v3677_v52 = vunpack.c.l.b16 %v1693_v6 }
 0x2f8   : > { %v3123_v11 = vadd.f32 %v3122_v50, %v10261_v27  ;;  %v6427_v27 = vunpack.c.l.bf16 %v7363_v39 }
 0x2fa   : > { %v3307_v12 = vpop.f32.mrf.mxu3  ;;  %v3528_v31 = vpop.f32.mrf.mxu0 }
 0x2fb   : > { %v3350_v54 = vadd.f32 %v3307_v12, %v3123_v11  ;;  %v3617_v60 = vpop.f32.mrf.mxu1  ;;  %v6428_v11 = vunpack.c.h.bf16 %v7363_v39 }
 0x2fc   : > { %v9271_v4 = vadd.f32 %v3617_v60, %v3528_v31  ;;  %3761 = vmatmul.bf16.gmra.mxu2 %v9265_v3  ;;  %v1724_v31 = vpack.c.bf16 %v1468_v44, %v1468_v44  ;;  %v6492_v60 = vunpack.c.h.bf16 %v7379_v57 }
 0x2fd   : > { %v3382_v62 = vadd.f32 %v8962_v18, %v3350_v54  ;;  %4068 = vmatmul.bf16.gmra.mxu0 %v8809_v48  ;;  %4253 = vmatmul.bf16.gmra.mxu1 %v9267_v45  ;;  %v1725_v54 = vpack.c.bf16 %v1469_v34, %v1469_v34  ;;  %v6491_v48 = vunpack.c.l.bf16 %v7379_v57  ;;  %v923_v20 = vmul.f32 %v9253_v16, %v6428_v11 }
 0x2fe   : > { %10264 = vst [vmem:[#allocation20_spill] sm:$0xff] %v9271_v4  ;;  %v4168_v13 = vunpack.c.l.b16 %v1724_v31  ;;  %v955_v44 = vmul.f32 %v9253_v16, %v6492_v60  ;;  %v9289_v45 = vpack.c.b16 %v3677_v52, %v3676_v38 }
 0x2ff   : > { %3979 = vmatmul.bf16.gmra.mxu3 %v9265_v3  ;;  %v6876_v42 = vpack.c.bf16 %v3382_v62, %v3381_v14  ;;  %v3125_v50 = vpop.f32.mrf.mxu2  ;;  %v922_v62 = vmul.f32 %v9253_v16, %v6427_v27  ;;  %v954_v39 = vmul.f32 %v9253_v16, %v6491_v48 }
 0x300   : > { %v3126_v14 = vadd.f32 %v3125_v50, %v8813_v28  ;;  %v1183_v50 = vadd.f32 %v9260_v46, %v923_v20  ;;  %v1215_v31 = vadd.f32 %v9260_v46, %v955_v44 }
 0x301   : > { %7463 = vst [vmem:[%s8329_s28 + $0x160] sm:$0xff] %v6876_v42   ;;  %v4169_v42 = vunpack.c.l.b16 %v1725_v54  ;;  %v1182_v28 = vadd.f32 %v9260_v46, %v922_v62  ;;  %v1214_v11 = vadd.f32 %v9260_v46, %v954_v39  ;;  %v7364_v62 = vld [vmem:[%s7789_s12 + $0x240] sm:$0xff]  }
 0x302   : > { %v3310_v41 = vpop.f32.mrf.mxu3  ;;  %v3530_v12 = vpop.f32.mrf.mxu0  ;;  %v7380_v39 = vld [vmem:[%s7789_s12 + $0x2c0] sm:$0xff]  }
 0x303   : > { %v3619_v4 = vpop.f32.mrf.mxu1  ;;  %v3351_v57 = vadd.f32 %v3310_v41, %v3126_v14  ;;  %v9294_v27 = vpack.c.b16 %v4169_v42, %v4168_v13  ;;  %v1438_v52 = vmax.f32 %v1182_v28, 0.0  ;;  %v1439_v14 = vmax.f32 %v1183_v50, 0.0 }
 0x304   : > { %v9282_v3 = vadd.f32 %v3619_v4, %v3530_v12  ;;  %v10265_v4 = vld [vmem:[#allocation16_spill] sm:$0xff]  ;;  %v1470_v20 = vmax.f32 %v1214_v11, 0.0  ;;  %v1471_v13 = vmax.f32 %v1215_v31, 0.0  ;;  %v6495_v50 = vunpack.c.l.bf16 %v7380_v39 }
 0x305   : > { %v3383_v41 = vadd.f32 %v8962_v18, %v3351_v57  ;;  %v6432_v57 = vunpack.c.h.bf16 %v7364_v62 }
 0x306   : > { %v1727_v28 = vpack.c.bf16 %v1471_v13, %v1471_v13 }
 0x307   : > { %v3127_v34 = vpop.f32.mrf.mxu2  ;;  %v925_v31 = vmul.f32 %v9253_v16, %v6432_v57 }
 0x308   : > { %v3128_v12 = vadd.f32 %v3127_v34, %v10265_v4  ;;  %v6431_v34 = vunpack.c.l.bf16 %v7364_v62  ;;  %v1694_v4 = vpack.c.bf16 %v1438_v52, %v1438_v52  ;;  %v956_v52 = vmul.f32 %v9253_v16, %v6495_v50 }
 0x30a   : > { %v3312_v35 = vpop.f32.mrf.mxu3  ;;  %v3533_v6 = vpop.f32.mrf.mxu0  ;;  %v924_v11 = vmul.f32 %v9253_v16, %v6431_v34 }
 0x30b   : > { %v3352_v54 = vadd.f32 %v3312_v35, %v3128_v12  ;;  %v3622_v48 = vpop.f32.mrf.mxu1  ;;  %v1695_v12 = vpack.c.bf16 %v1439_v14, %v1439_v14 }
 0x30c   : > { %v9298_v60 = vadd.f32 %v3622_v48, %v3533_v6  ;;  %3766 = vmatmul.bf16.gmra.mxu2 %v9289_v45  ;;  %v6496_v6 = vunpack.c.h.bf16 %v7380_v39  ;;  %v1184_v13 = vadd.f32 %v9260_v46, %v924_v11  ;;  %v1185_v39 = vadd.f32 %v9260_v46, %v925_v31  ;;  %v9330_v11 = vld [vmem:[%s10194_s4] ss:$0 sm:$0xff] }
 0x30d   : > { %v3384_v38 = vadd.f32 %v8962_v18, %v3352_v54  ;;  %4073 = vmatmul.bf16.gmra.mxu0 %v8827_v24  ;;  %4258 = vmatmul.bf16.gmra.mxu1 %v9294_v27  ;;  %v1726_v24 = vpack.c.bf16 %v1470_v20, %v1470_v20  ;;  %v3679_v62 = vunpack.c.l.b16 %v1695_v12 }
 0x30e   : > { %10266 = vst [vmem:[#allocation16_spill] sm:$0xff] %v9298_v60  ;;  %v4171_v60 = vunpack.c.l.b16 %v1727_v28  ;;  %v957_v14 = vmul.f32 %v9253_v16, %v6496_v6  ;;  %v1440_v6 = vmax.f32 %v1184_v13, 0.0 }
 0x30f   : > { %3984 = vmatmul.bf16.gmra.mxu3 %v9289_v45  ;;  %v6881_v42 = vpack.c.bf16 %v3384_v38, %v3383_v41  ;;  %v3130_v44 = vpop.f32.mrf.mxu2  ;;  %v3678_v38 = vunpack.c.l.b16 %v1694_v4  ;;  %v1216_v4 = vadd.f32 %v9260_v46, %v956_v52 }
 0x310   : > { %v3131_v41 = vadd.f32 %v3130_v44, %v8831_v25  ;;  %v1217_v12 = vadd.f32 %v9260_v46, %v957_v14  ;;  %v1696_v14 = vpack.c.bf16 %v1440_v6, %v1440_v6 }
 0x311   : > { %7464 = vst [vmem:[%s8329_s28 + $0x168] sm:$0xff] %v6881_v42   ;;  %v4170_v42 = vunpack.c.l.b16 %v1726_v24  ;;  %v9319_v57 = vpack.c.b16 %v3679_v62, %v3678_v38  ;;  %v7365_v38 = vld [vmem:[%s7789_s12 + $0x248] sm:$0xff]  }
 0x312   : > { %v3315_v18 = vpop.f32.mrf.mxu3  ;;  %v3535_v35 = vpop.f32.mrf.mxu0 }
 0x313   : > { %v3624_v54 = vpop.f32.mrf.mxu1  ;;  %v9321_v44 = vpack.c.b16 %v4171_v60, %v4170_v42  ;;  %v7381_v42 = vld [vmem:[%s7789_s12 + $0x2c8] sm:$0xff]  }
 0x314   : > { %v9309_v48 = vadd.f32 %v3624_v54, %v3535_v35  ;;  %v3353_v35 = vadd.f32 %v3315_v18, %v3131_v41  ;;  %v10268_v54 = vld [vmem:[#allocation17_spill] sm:$0xff]  ;;  %v1441_v18 = vmax.f32 %v1185_v39, 0.0  ;;  %v1473_v41 = vmax.f32 %v1217_v12, 0.0 }
 0x315   : > { %10269 = vst [vmem:[#allocation17_spill] sm:$0xff] %v9319_v57  ;;  %v6435_v39 = vunpack.c.l.bf16 %v7365_v38 }
 0x316   : > { %10267 = vst [vmem:[#allocation21_spill] sm:$0xff] %v9309_v48  ;;  %v3385_v60 = vadd.f32 %v9330_v11, %v3353_v35  ;;  %v6436_v35 = vunpack.c.h.bf16 %v7365_v38 }
 0x317   : > { %v3132_v20 = vpop.f32.mrf.mxu2  ;;  %10270 = vst [vmem:[#allocation22_spill] sm:$0xff] %v9321_v44 }
 0x318   : > { %v3133_v34 = vadd.f32 %v3132_v20, %v10268_v54  ;;  %v1697_v20 = vpack.c.bf16 %v1441_v18, %v1441_v18  ;;  %v927_v6 = vmul.f32 %v9253_v16, %v6436_v35 }
 0x31a   : > { %v3317_v48 = vpop.f32.mrf.mxu3  ;;  %v3538_v25 = vpop.f32.mrf.mxu0  ;;  %v3681_v12 = vunpack.c.l.b16 %v1697_v20 }
 0x31b   : > { %v3354_v24 = vadd.f32 %v3317_v48, %v3133_v34  ;;  %v3627_v28 = vpop.f32.mrf.mxu1  ;;  %v1472_v48 = vmax.f32 %v1216_v4, 0.0  ;;  %v3680_v4 = vunpack.c.l.b16 %v1696_v14 }
 0x31c   : > { %v9325_v50 = vadd.f32 %v3627_v28, %v3538_v25  ;;  %3771 = vmatmul.bf16.gmra.mxu2 %v9319_v57  ;;  %v1729_v25 = vpack.c.bf16 %v1473_v41, %v1473_v41 }
 0x31d   : > { %v3386_v31 = vadd.f32 %v9330_v11, %v3354_v24  ;;  %4078 = vmatmul.bf16.gmra.mxu0 %v8845_v55  ;;  %4263 = vmatmul.bf16.gmra.mxu1 %v9321_v44  ;;  %v1728_v34 = vpack.c.bf16 %v1472_v48, %v1472_v48  ;;  %v6499_v55 = vunpack.c.l.bf16 %v7381_v42  ;;  %v6500_v24 = vunpack.c.h.bf16 %v7381_v42 }
 0x31e   : > { %10271 = vst [vmem:[#allocation23_spill] sm:$0xff] %v9325_v50 }
 0x31f   : > { %3989 = vmatmul.bf16.gmra.mxu3 %v9319_v57  ;;  %v6886_v62 = vpack.c.bf16 %v3386_v31, %v3385_v60  ;;  %v3135_v52 = vpop.f32.mrf.mxu2  ;;  %v926_v31 = vmul.f32 %v9253_v16, %v6435_v39  ;;  %v4172_v18 = vunpack.c.l.b16 %v1728_v34  ;;  %v958_v38 = vmul.f32 %v9253_v16, %v6499_v55 }
 0x320   : > { %v3136_v60 = vadd.f32 %v3135_v52, %v8849_v56  ;;  %v959_v48 = vmul.f32 %v9253_v16, %v6500_v24  ;;  %v9348_v57 = vpack.c.b16 %v3681_v12, %v3680_v4  ;;  %v1187_v52 = vadd.f32 %v9260_v46, %v927_v6 }
 0x321   : > { %7465 = vst [vmem:[%s8329_s28 + $0x170] sm:$0xff] %v6886_v62   ;;  %v4173_v62 = vunpack.c.l.b16 %v1729_v25  ;;  %v1186_v56 = vadd.f32 %v9260_v46, %v926_v31  ;;  %v1218_v35 = vadd.f32 %v9260_v46, %v958_v38 }
 0x322   : > { %v3320_v13 = vpop.f32.mrf.mxu3  ;;  %v3540_v54 = vpop.f32.mrf.mxu0  ;;  %10273 = vst [vmem:[#allocation25_spill] sm:$0xff] %v9348_v57  ;;  %v1219_v34 = vadd.f32 %v9260_v46, %v959_v48  ;;  %v1443_v12 = vmax.f32 %v1187_v52, 0.0 }
 0x323   : > { %v3629_v28 = vpop.f32.mrf.mxu1  ;;  %v3355_v42 = vadd.f32 %v3320_v13, %v3136_v60  ;;  %v9353_v39 = vpack.c.b16 %v4173_v62, %v4172_v18  ;;  %v1442_v4 = vmax.f32 %v1186_v56, 0.0  ;;  %v7366_v60 = vld [vmem:[%s7789_s12 + $0x250] sm:$0xff]   ;;  %v1474_v31 = vmax.f32 %v1218_v35, 0.0 }
 0x324   : > { %v9341_v50 = vadd.f32 %v3629_v28, %v3540_v54  ;;  %v10274_v54 = vld [vmem:[#allocation18_spill] sm:$0xff]  ;;  %v1475_v6 = vmax.f32 %v1219_v34, 0.0  ;;  %v7382_v18 = vld [vmem:[%s7789_s12 + $0x2d0] sm:$0xff]   ;;  %v6439_v48 = vunpack.c.l.bf16 %v7366_v60 }
 0x325   : > { %10275 = vst [vmem:[#allocation18_spill] sm:$0xff] %v9353_v39  ;;  %v3387_v13 = vadd.f32 %v9330_v11, %v3355_v42  ;;  %v1730_v52 = vpack.c.bf16 %v1474_v31, %v1474_v31 }
 0x326   : > { %10272 = vst [vmem:[#allocation24_spill] sm:$0xff] %v9341_v50 }
 0x327   : > { %v3137_v41 = vpop.f32.mrf.mxu2 }
 0x328   : > { %v3138_v28 = vadd.f32 %v3137_v41, %v10274_v54  ;;  %v6440_v41 = vunpack.c.h.bf16 %v7366_v60  ;;  %v1698_v54 = vpack.c.bf16 %v1442_v4, %v1442_v4 }
 0x32a   : > { %v3322_v14 = vpop.f32.mrf.mxu3  ;;  %v4044_v20 = vpop.f32.mrf.mxu0  ;;  %v929_v35 = vmul.f32 %v9253_v16, %v6440_v41  ;;  %v3682_v34 = vunpack.c.l.b16 %v1698_v54 }
 0x32b   : > { %v3356_v25 = vadd.f32 %v3322_v14, %v3138_v28  ;;  %v4229_v55 = vpop.f32.mrf.mxu1  ;;  %v1699_v28 = vpack.c.bf16 %v1443_v12, %v1443_v12  ;;  %v6503_v14 = vunpack.c.l.bf16 %v7382_v18 }
 0x32c   : > { %3776 = vmatmul.bf16.gmra.mxu2 %v9348_v57 }
 0x32d   : > { %v3388_v24 = vadd.f32 %v9330_v11, %v3356_v25  ;;  %4083 = vmatmul.bf16.gmra.mxu0 %v8863_v15  ;;  %4268 = vmatmul.bf16.gmra.mxu1 %v9353_v39  ;;  %v6504_v15 = vunpack.c.h.bf16 %v7382_v18  ;;  %v1731_v25 = vpack.c.bf16 %v1475_v6, %v1475_v6  ;;  %v3683_v39 = vunpack.c.l.b16 %v1699_v28 }
 0x32e   : > { %v1189_v6 = vadd.f32 %v9260_v46, %v929_v35 }
 0x32f   : > { %3994 = vmatmul.bf16.gmra.mxu3 %v9348_v57  ;;  %v6891_v62 = vpack.c.bf16 %v3388_v24, %v3387_v13  ;;  %v3737_v38 = vpop.f32.mrf.mxu2  ;;  %v928_v57 = vmul.f32 %v9253_v16, %v6439_v48  ;;  %v960_v13 = vmul.f32 %v9253_v16, %v6503_v14  ;;  %v961_v24 = vmul.f32 %v9253_v16, %v6504_v15 }
 0x330   : > { %v4175_v4 = vunpack.c.l.b16 %v1731_v25  ;;  %v3817_v12 = vadd.f32 %v3737_v38, %v8867_v10  ;;  %v9374_v41 = vpack.c.b16 %v3683_v39, %v3682_v34  ;;  %v7367_v34 = vld [vmem:[%s7789_s12 + $0x258] sm:$0xff]  }
 0x331   : > { %7466 = vst [vmem:[%s8329_s28 + $0x178] sm:$0xff] %v6891_v62   ;;  %v4174_v62 = vunpack.c.l.b16 %v1730_v52  ;;  %v1188_v31 = vadd.f32 %v9260_v46, %v928_v57  ;;  %v1220_v54 = vadd.f32 %v9260_v46, %v960_v13  ;;  %v1221_v28 = vadd.f32 %v9260_v46, %v961_v24 }
 0x332   : > { %v3955_v42 = vpop.f32.mrf.mxu3  ;;  %v4046_v56 = vpop.f32.mrf.mxu0  ;;  %v3849_v10 = vadd.f32 %v9330_v11, %v3817_v12  ;;  %v1445_v52 = vmax.f32 %v1189_v6, 0.0 }
 0x333   : > { %v4231_v50 = vpop.f32.mrf.mxu1  ;;  %v4045_v60 = vadd.f32 %v4044_v20, %v3955_v42  ;;  %v9378_v15 = vpack.c.b16 %v4175_v4, %v4174_v62  ;;  %v1444_v39 = vmax.f32 %v1188_v31, 0.0  ;;  %v6444_v31 = vunpack.c.h.bf16 %v7367_v34 }
 0x334   : > { %v1701_v62 = vpack.c.bf16 %v1445_v52, %v1445_v52 }
 0x335   : > { %v4309_v14 = vadd.f32 %v4229_v55, %v4045_v60  ;;  %v1477_v55 = vmax.f32 %v1221_v28, 0.0  ;;  %v1700_v60 = vpack.c.bf16 %v1444_v39, %v1444_v39 }
 0x337   : > { %v3739_v18 = vpop.f32.mrf.mxu2  ;;  %v1733_v12 = vpack.c.bf16 %v1477_v55, %v1477_v55 }
 0x338   : > { %v3818_v48 = vadd.f32 %v3739_v18, %v8877_v22  ;;  %v6443_v18 = vunpack.c.l.bf16 %v7367_v34 }
 0x33a   : > { %v3957_v44 = vpop.f32.mrf.mxu3  ;;  %v4049_v42 = vpop.f32.mrf.mxu0  ;;  %v3850_v57 = vadd.f32 %v9330_v11, %v3818_v48 }
 0x33b   : > { %v4047_v20 = vadd.f32 %v4046_v56, %v3957_v44  ;;  %v4234_v22 = vpop.f32.mrf.mxu1  ;;  %v1476_v44 = vmax.f32 %v1220_v54, 0.0  ;;  %v4341_v56 = vadd.f32 %v9330_v11, %v4309_v14  ;;  %v3684_v14 = vunpack.c.l.b16 %v1700_v60 }
 0x33c   : > { %v6896_v25 = vpack.c.bf16 %v3850_v57, %v3849_v10  ;;  %3781 = vmatmul.bf16.gmra.mxu2 %v9374_v41  ;;  %v4177_v57 = vunpack.c.l.b16 %v1733_v12 }
 0x33d   : > { %v4310_v38 = vadd.f32 %v4231_v50, %v4047_v20  ;;  %4088 = vmatmul.bf16.gmra.mxu0 %v8885_v0  ;;  %4273 = vmatmul.bf16.gmra.mxu1 %v9378_v15  ;;  %v7383_v50 = vld [vmem:[%s7789_s12 + $0x2d8] sm:$0xff]   ;;  %v1732_v0 = vpack.c.bf16 %v1476_v44, %v1476_v44  ;;  %v3685_v20 = vunpack.c.l.b16 %v1701_v62 }
 0x33e   : > { %7467 = vst [vmem:[%s8329_s28 + $0x180] sm:$0xff] %v6896_v25   ;;  %v6507_v48 = vunpack.c.l.bf16 %v7383_v50  ;;  %v6508_v54 = vunpack.c.h.bf16 %v7383_v50  ;;  %v931_v25 = vmul.f32 %v9253_v16, %v6444_v31 }
 0x33f   : > { %v4342_v35 = vadd.f32 %v9330_v11, %v4310_v38  ;;  %3999 = vmatmul.bf16.gmra.mxu3 %v9374_v41  ;;  %v3742_v24 = vpop.f32.mrf.mxu2  ;;  %v4176_v10 = vunpack.c.l.b16 %v1732_v0  ;;  %v930_v38 = vmul.f32 %v9253_v16, %v6443_v18 }
 0x340   : > { %v962_v52 = vmul.f32 %v9253_v16, %v6507_v48  ;;  %v963_v44 = vmul.f32 %v9253_v16, %v6508_v54  ;;  %v3819_v55 = vadd.f32 %v3742_v24, %v8887_v43  ;;  %v1191_v62 = vadd.f32 %v9260_v46, %v931_v25  ;;  %v7368_v54 = vld [vmem:[%s7789_s12 + $0x260] sm:$0xff]  }
 0x341   : > { %v6976_v13 = vpack.c.bf16 %v4342_v35, %v4341_v56  ;;  %v9397_v35 = vpack.c.b16 %v3685_v20, %v3684_v14  ;;  %v1190_v60 = vadd.f32 %v9260_v46, %v930_v38 }
 0x342   : > { %v3960_v4 = vpop.f32.mrf.mxu3  ;;  %v4051_v6 = vpop.f32.mrf.mxu0  ;;  %v1222_v12 = vadd.f32 %v9260_v46, %v962_v52  ;;  %v1223_v43 = vadd.f32 %v9260_v46, %v963_v44  ;;  %v3851_v24 = vadd.f32 %v9330_v11, %v3819_v55 }
 0x343   : > { %7483 = vst [vmem:[%s8329_s28 + $0x200] sm:$0xff] %v6976_v13   ;;  %v4236_v28 = vpop.f32.mrf.mxu1  ;;  %v4050_v39 = vadd.f32 %v4049_v42, %v3960_v4  ;;  %v9400_v13 = vpack.c.b16 %v4177_v57, %v4176_v10 }
 0x344   : > { %v1478_v10 = vmax.f32 %v1222_v12, 0.0  ;;  %v1479_v57 = vmax.f32 %v1223_v43, 0.0 }
 0x345   : > { %v4311_v42 = vadd.f32 %v4234_v22, %v4050_v39  ;;  %v1446_v22 = vmax.f32 %v1190_v60, 0.0  ;;  %v6447_v39 = vunpack.c.l.bf16 %v7368_v54 }
 0x346   : > { %v1734_v60 = vpack.c.bf16 %v1478_v10, %v1478_v10 }
 0x347   : > { %v3744_v56 = vpop.f32.mrf.mxu2  ;;  %v4343_v14 = vadd.f32 %v9330_v11, %v4311_v42  ;;  %v1702_v44 = vpack.c.bf16 %v1446_v22, %v1446_v22 }
 0x348   : > { %v3820_v34 = vadd.f32 %v3744_v56, %v8897_v49  ;;  %v4178_v22 = vunpack.c.l.b16 %v1734_v60 }
 0x349   : > { %v3686_v43 = vunpack.c.l.b16 %v1702_v44 }
 0x34a   : > { %v3962_v50 = vpop.f32.mrf.mxu3  ;;  %v4054_v0 = vpop.f32.mrf.mxu0  ;;  %v3852_v49 = vadd.f32 %v9330_v11, %v3820_v34 }
 0x34b   : > { %v4052_v4 = vadd.f32 %v4051_v6, %v3962_v50  ;;  %v4239_v18 = vpop.f32.mrf.mxu1  ;;  %v1447_v6 = vmax.f32 %v1191_v62, 0.0  ;;  %v1735_v62 = vpack.c.bf16 %v1479_v57, %v1479_v57 }
 0x34c   : > { %v6901_v48 = vpack.c.bf16 %v3852_v49, %v3851_v24  ;;  %3786 = vmatmul.bf16.gmra.mxu2 %v9397_v35 }
 0x34d   : > { %v4312_v31 = vadd.f32 %v4236_v28, %v4052_v4  ;;  %4093 = vmatmul.bf16.gmra.mxu0 %v8907_v19  ;;  %4278 = vmatmul.bf16.gmra.mxu1 %v9400_v13  ;;  %v7384_v28 = vld [vmem:[%s7789_s12 + $0x2e0] sm:$0xff]   ;;  %v6448_v19 = vunpack.c.h.bf16 %v7368_v54  ;;  %v1703_v55 = vpack.c.bf16 %v1447_v6, %v1447_v6  ;;  %v932_v4 = vmul.f32 %v9253_v16, %v6447_v39 }
 0x34e   : > { %7468 = vst [vmem:[%s8329_s28 + $0x188] sm:$0xff] %v6901_v48   ;;  %v6511_v56 = vunpack.c.l.bf16 %v7384_v28  ;;  %v6512_v34 = vunpack.c.h.bf16 %v7384_v28  ;;  %v4179_v6 = vunpack.c.l.b16 %v1735_v62 }
 0x34f   : > { %v4344_v20 = vadd.f32 %v9330_v11, %v4312_v31  ;;  %4004 = vmatmul.bf16.gmra.mxu3 %v9397_v35  ;;  %v3747_v25 = vpop.f32.mrf.mxu2  ;;  %v933_v12 = vmul.f32 %v9253_v16, %v6448_v19  ;;  %v3687_v24 = vunpack.c.l.b16 %v1703_v55 }
 0x350   : > { %v964_v49 = vmul.f32 %v9253_v16, %v6511_v56  ;;  %v965_v31 = vmul.f32 %v9253_v16, %v6512_v34  ;;  %v3821_v54 = vadd.f32 %v3747_v25, %v8917_v33  ;;  %v9430_v55 = vpack.c.b16 %v4179_v6, %v4178_v22 }
 0x351   : > { %v6981_v38 = vpack.c.bf16 %v4344_v20, %v4343_v14  ;;  %v1192_v20 = vadd.f32 %v9260_v46, %v932_v4  ;;  %v1193_v10 = vadd.f32 %v9260_v46, %v933_v12 }
 0x352   : > { %v3965_v52 = vpop.f32.mrf.mxu3  ;;  %v4056_v50 = vpop.f32.mrf.mxu0  ;;  %v1224_v39 = vadd.f32 %v9260_v46, %v964_v49  ;;  %v1225_v19 = vadd.f32 %v9260_v46, %v965_v31  ;;  %v3853_v33 = vadd.f32 %v9330_v11, %v3821_v54 }
 0x353   : > { %7484 = vst [vmem:[%s8329_s28 + $0x208] sm:$0xff] %v6981_v38   ;;  %v4241_v42 = vpop.f32.mrf.mxu1  ;;  %v4055_v48 = vadd.f32 %v4054_v0, %v3965_v52  ;;  %v9426_v38 = vpack.c.b16 %v3687_v24, %v3686_v43  ;;  %v1448_v34 = vmax.f32 %v1192_v20, 0.0  ;;  %v1449_v60 = vmax.f32 %v1193_v10, 0.0  ;;  %v7369_v43 = vld [vmem:[%s7789_s12 + $0x268] sm:$0xff]  }
 0x354   : > { %v6451_v54 = vunpack.c.l.bf16 %v7369_v43 }
 0x355   : > { %v4313_v44 = vadd.f32 %v4239_v18, %v4055_v48  ;;  %v1480_v18 = vmax.f32 %v1224_v39, 0.0  ;;  %v1704_v31 = vpack.c.bf16 %v1448_v34, %v1448_v34  ;;  %v1705_v48 = vpack.c.bf16 %v1449_v60, %v1449_v60 }
 0x357   : > { %v3749_v14 = vpop.f32.mrf.mxu2  ;;  %v4345_v4 = vadd.f32 %v9330_v11, %v4313_v44  ;;  %v3688_v39 = vunpack.c.l.b16 %v1704_v31 }
 0x358   : > { %v3822_v57 = vadd.f32 %v3749_v14, %v8927_v23  ;;  %v6452_v14 = vunpack.c.h.bf16 %v7369_v43 }
 0x35a   : > { %v3967_v28 = vpop.f32.mrf.mxu3  ;;  %v4059_v52 = vpop.f32.mrf.mxu0  ;;  %v3854_v25 = vadd.f32 %v9330_v11, %v3822_v57 }
 0x35b   : > { %v4057_v0 = vadd.f32 %v4056_v50, %v3967_v28  ;;  %v4244_v23 = vpop.f32.mrf.mxu1  ;;  %v1481_v50 = vmax.f32 %v1225_v19, 0.0  ;;  %v3689_v19 = vunpack.c.l.b16 %v1705_v48 }
 0x35c   : > { %v6906_v62 = vpack.c.bf16 %v3854_v25, %v3853_v33  ;;  %3791 = vmatmul.bf16.gmra.mxu2 %v9426_v38  ;;  %v934_v33 = vmul.f32 %v9253_v16, %v6451_v54  ;;  %v935_v25 = vmul.f32 %v9253_v16, %v6452_v14 }
 0x35d   : > { %v4314_v56 = vadd.f32 %v4241_v42, %v4057_v0  ;;  %4098 = vmatmul.bf16.gmra.mxu0 %v8935_v32  ;;  %4283 = vmatmul.bf16.gmra.mxu1 %v9430_v55  ;;  %v7385_v42 = vld [vmem:[%s7789_s12 + $0x2e8] sm:$0xff]   ;;  %v1736_v32 = vpack.c.bf16 %v1480_v18, %v1480_v18  ;;  %v1737_v6 = vpack.c.bf16 %v1481_v50, %v1481_v50 }
 0x35e   : > { %7469 = vst [vmem:[%s8329_s28 + $0x190] sm:$0xff] %v6906_v62   ;;  %v6515_v10 = vunpack.c.l.bf16 %v7385_v42  ;;  %v6516_v57 = vunpack.c.h.bf16 %v7385_v42  ;;  %v9449_v50 = vpack.c.b16 %v3689_v19, %v3688_v39  ;;  %v1194_v42 = vadd.f32 %v9260_v46, %v934_v33 }
 0x35f   : > { %v4346_v12 = vadd.f32 %v9330_v11, %v4314_v56  ;;  %4009 = vmatmul.bf16.gmra.mxu3 %v9426_v38  ;;  %v3752_v49 = vpop.f32.mrf.mxu2  ;;  %v4180_v44 = vunpack.c.l.b16 %v1736_v32  ;;  %v4181_v0 = vunpack.c.l.b16 %v1737_v6 }
 0x360   : > { %v966_v34 = vmul.f32 %v9253_v16, %v6515_v10  ;;  %v967_v60 = vmul.f32 %v9253_v16, %v6516_v57  ;;  %v3823_v62 = vadd.f32 %v3752_v49, %v8937_v5 }
 0x361   : > { %v6986_v24 = vpack.c.bf16 %v4346_v12, %v4345_v4  ;;  %v9452_v43 = vpack.c.b16 %v4181_v0, %v4180_v44 }
 0x362   : > { %v3970_v22 = vpop.f32.mrf.mxu3  ;;  %v4061_v20 = vpop.f32.mrf.mxu0  ;;  %v1227_v5 = vadd.f32 %v9260_v46, %v967_v60  ;;  %v3855_v49 = vadd.f32 %v9330_v11, %v3823_v62 }
 0x363   : > { %7485 = vst [vmem:[%s8329_s28 + $0x210] sm:$0xff] %v6986_v24   ;;  %v4246_v28 = vpop.f32.mrf.mxu1  ;;  %v4060_v56 = vadd.f32 %v4059_v52, %v3970_v22  ;;  %v1195_v24 = vadd.f32 %v9260_v46, %v935_v25  ;;  %v1226_v22 = vadd.f32 %v9260_v46, %v966_v34 }
 0x364   : > { %v1483_v19 = vmax.f32 %v1227_v5, 0.0 }
 0x365   : > { %v4315_v52 = vadd.f32 %v4244_v23, %v4060_v56  ;;  %v1450_v23 = vmax.f32 %v1194_v42, 0.0  ;;  %v1451_v14 = vmax.f32 %v1195_v24, 0.0  ;;  %v1482_v39 = vmax.f32 %v1226_v22, 0.0 }
 0x367   : > { %v3754_v18 = vpop.f32.mrf.mxu2  ;;  %v4347_v10 = vadd.f32 %v9330_v11, %v4315_v52  ;;  %v1706_v56 = vpack.c.bf16 %v1450_v23, %v1450_v23  ;;  %v1707_v34 = vpack.c.bf16 %v1451_v14, %v1451_v14 }
 0x368   : > { %v3824_v4 = vadd.f32 %v3754_v18, %v8947_v51 }
 0x369   : > { %v3691_v22 = vunpack.c.l.b16 %v1707_v34 }
 0x36a   : > { %v3972_v12 = vpop.f32.mrf.mxu3  ;;  %v4064_v48 = vpop.f32.mrf.mxu0  ;;  %v3856_v51 = vadd.f32 %v9330_v11, %v3824_v4  ;;  %v1738_v4 = vpack.c.bf16 %v1482_v39, %v1482_v39 }
 0x36b   : > { %v4062_v31 = vadd.f32 %v4061_v20, %v3972_v12  ;;  %v4249_v32 = vpop.f32.mrf.mxu1  ;;  %v7370_v20 = vld [vmem:[%s7789_s12 + $0x270] sm:$0xff]   ;;  %v1739_v12 = vpack.c.bf16 %v1483_v19, %v1483_v19 }
 0x36c   : > { %v6911_v54 = vpack.c.bf16 %v3856_v51, %v3855_v49  ;;  %3796 = vmatmul.bf16.gmra.mxu2 %v9449_v50  ;;  %v6455_v33 = vunpack.c.l.bf16 %v7370_v20 }
 0x36d   : > { %v4316_v6 = vadd.f32 %v4246_v28, %v4062_v31  ;;  %4103 = vmatmul.bf16.gmra.mxu0 %v8952_v58  ;;  %4288 = vmatmul.bf16.gmra.mxu1 %v9452_v43  ;;  %v7386_v28 = vld [vmem:[%s7789_s12 + $0x2f0] sm:$0xff]   ;;  %v6456_v58 = vunpack.c.h.bf16 %v7370_v20  ;;  %v3690_v31 = vunpack.c.l.b16 %v1706_v56 }
 0x36e   : > { %7470 = vst [vmem:[%s8329_s28 + $0x198] sm:$0xff] %v6911_v54   ;;  %v6519_v60 = vunpack.c.l.bf16 %v7386_v28  ;;  %v6520_v62 = vunpack.c.h.bf16 %v7386_v28  ;;  %v936_v24 = vmul.f32 %v9253_v16, %v6455_v33  ;;  %v4183_v54 = vunpack.c.l.b16 %v1739_v12 }
 0x36f   : > { %v4348_v57 = vadd.f32 %v9330_v11, %v4316_v6  ;;  %4014 = vmatmul.bf16.gmra.mxu3 %v9449_v50  ;;  %v3757_v0 = vpop.f32.mrf.mxu2  ;;  %v937_v52 = vmul.f32 %v9253_v16, %v6456_v58  ;;  %v4182_v6 = vunpack.c.l.b16 %v1738_v4  ;;  %v9478_v19 = vpack.c.b16 %v3691_v22, %v3690_v31 }
 0x370   : > { %v968_v5 = vmul.f32 %v9253_v16, %v6519_v60  ;;  %v969_v49 = vmul.f32 %v9253_v16, %v6520_v62  ;;  %v3825_v23 = vadd.f32 %v3757_v0, %v8957_v36  ;;  %v1196_v20 = vadd.f32 %v9260_v46, %v936_v24  ;;  %v7371_v24 = vld [vmem:[%s7789_s12 + $0x278] sm:$0xff]  }
 0x371   : > { %v6991_v44 = vpack.c.bf16 %v4348_v57, %v4347_v10  ;;  %v1197_v10 = vadd.f32 %v9260_v46, %v937_v52 }
 0x372   : > { %v3975_v25 = vpop.f32.mrf.mxu3  ;;  %v4066_v18 = vpop.f32.mrf.mxu0  ;;  %v1228_v28 = vadd.f32 %v9260_v46, %v968_v5  ;;  %v3857_v36 = vadd.f32 %v9330_v11, %v3825_v23  ;;  %v1452_v34 = vmax.f32 %v1196_v20, 0.0 }
 0x373   : > { %7486 = vst [vmem:[%s8329_s28 + $0x218] sm:$0xff] %v6991_v44   ;;  %v4251_v42 = vpop.f32.mrf.mxu1  ;;  %v4065_v51 = vadd.f32 %v4064_v48, %v3975_v25  ;;  %v1229_v44 = vadd.f32 %v9260_v46, %v969_v49  ;;  %v9482_v25 = vpack.c.b16 %v4183_v54, %v4182_v6  ;;  %v1453_v60 = vmax.f32 %v1197_v10, 0.0 }
 0x374   : > { %v1708_v22 = vpack.c.bf16 %v1452_v34, %v1452_v34  ;;  %v6459_v6 = vunpack.c.l.bf16 %v7371_v24  ;;  %v6460_v54 = vunpack.c.h.bf16 %v7371_v24 }
 0x375   : > { %v4317_v33 = vadd.f32 %v4249_v32, %v4065_v51  ;;  %10276 = vst [vmem:[#allocation26_spill] sm:$0xff] %v9482_v25  ;;  %v1484_v32 = vmax.f32 %v1228_v28, 0.0  ;;  %v1709_v5 = vpack.c.bf16 %v1453_v60, %v1453_v60 }
 0x377   : > { %v3759_v14 = vpop.f32.mrf.mxu2  ;;  %v4349_v4 = vadd.f32 %v9330_v11, %v4317_v33  ;;  %v938_v33 = vmul.f32 %v9253_v16, %v6459_v6 }
 0x378   : > { %v3826_v57 = vadd.f32 %v3759_v14, %v8972_v9 }
 0x37a   : > { %v3977_v39 = vpop.f32.mrf.mxu3  ;;  %v4069_v58 = vpop.f32.mrf.mxu0  ;;  %v3858_v0 = vadd.f32 %v9330_v11, %v3826_v57  ;;  %v3692_v57 = vunpack.c.l.b16 %v1708_v22 }
 0x37b   : > { %v4067_v48 = vadd.f32 %v4066_v18, %v3977_v39  ;;  %v4254_v9 = vpop.f32.mrf.mxu1  ;;  %v1485_v18 = vmax.f32 %v1229_v44, 0.0  ;;  %v3693_v39 = vunpack.c.l.b16 %v1709_v5 }
 0x37c   : > { %v6916_v62 = vpack.c.bf16 %v3858_v0, %v3857_v36  ;;  %3801 = vmatmul.bf16.gmra.mxu2 %v9478_v19 }
 0x37d   : > { %v4318_v56 = vadd.f32 %v4251_v42, %v4067_v48  ;;  %4108 = vmatmul.bf16.gmra.mxu0 %v8980_v17  ;;  %4293 = vmatmul.bf16.gmra.mxu1 %v9482_v25  ;;  %v7387_v42 = vld [vmem:[%s7789_s12 + $0x2f8] sm:$0xff]   ;;  %v1740_v17 = vpack.c.bf16 %v1484_v32, %v1484_v32  ;;  %v1741_v51 = vpack.c.bf16 %v1485_v18, %v1485_v18 }
 0x37e   : > { %7471 = vst [vmem:[%s8329_s28 + $0x1a0] sm:$0xff] %v6916_v62   ;;  %v6523_v14 = vunpack.c.l.bf16 %v7387_v42  ;;  %v6524_v20 = vunpack.c.h.bf16 %v7387_v42  ;;  %v939_v48 = vmul.f32 %v9253_v16, %v6460_v54  ;;  %v9501_v62 = vpack.c.b16 %v3693_v39, %v3692_v57 }
 0x37f   : > { %v4350_v12 = vadd.f32 %v9330_v11, %v4318_v56  ;;  %4019 = vmatmul.bf16.gmra.mxu3 %v9478_v19  ;;  %v3762_v31 = vpop.f32.mrf.mxu2  ;;  %v4184_v28 = vunpack.c.l.b16 %v1740_v17  ;;  %v4185_v44 = vunpack.c.l.b16 %v1741_v51 }
 0x380   : > { %v970_v0 = vmul.f32 %v9253_v16, %v6523_v14  ;;  %v971_v56 = vmul.f32 %v9253_v16, %v6524_v20  ;;  %v3827_v34 = vadd.f32 %v3762_v31, %v8982_v1  ;;  %v1199_v24 = vadd.f32 %v9260_v46, %v939_v48 }
 0x381   : > { %v6996_v52 = vpack.c.bf16 %v4350_v12, %v4349_v4  ;;  %v9504_v4 = vpack.c.b16 %v4185_v44, %v4184_v28  ;;  %v1198_v12 = vadd.f32 %v9260_v46, %v938_v33 }
 0x382   : > { %v3980_v49 = vpop.f32.mrf.mxu3  ;;  %v4071_v23 = vpop.f32.mrf.mxu0  ;;  %v1230_v22 = vadd.f32 %v9260_v46, %v970_v0  ;;  %v1231_v16 = vadd.f32 %v9260_v46, %v971_v56  ;;  %v3859_v1 = vadd.f32 %v9330_v11, %v3827_v34  ;;  %v1455_v17 = vmax.f32 %v1199_v24, 0.0  ;;  %v9524_v34 = vld [vmem:[%s10191_s1] ss:$0 sm:$0xff] }
 0x383   : > { %7487 = vst [vmem:[%s8329_s28 + $0x220] sm:$0xff] %v6996_v52   ;;  %v4256_v10 = vpop.f32.mrf.mxu1  ;;  %v4070_v36 = vadd.f32 %v4069_v58, %v3980_v49 }
 0x384   : > { %v1486_v6 = vmax.f32 %v1230_v22, 0.0  ;;  %v1487_v54 = vmax.f32 %v1231_v16, 0.0  ;;  %v10278_v16 = vld [vmem:[#allocation5_spill] sm:$0xff] }
 0x385   : > { %v4319_v42 = vadd.f32 %v4254_v9, %v4070_v36  ;;  %v1454_v9 = vmax.f32 %v1198_v12, 0.0 }
 0x386   : > { %v1742_v33 = vpack.c.bf16 %v1486_v6, %v1486_v6  ;;  %v1743_v48 = vpack.c.bf16 %v1487_v54, %v1487_v54 }
 0x387   : > { %v3764_v60 = vpop.f32.mrf.mxu2  ;;  %v4351_v51 = vadd.f32 %v9330_v11, %v4319_v42  ;;  %v1710_v57 = vpack.c.bf16 %v1454_v9, %v1454_v9  ;;  %v10277_v42 = vld [vmem:[#allocation4_spill] sm:$0xff] }
 0x388   : > { %v3828_v32 = vadd.f32 %v3764_v60, %v8992_v40  ;;  %v4186_v12 = vunpack.c.l.b16 %v1742_v33  ;;  %v4187_v24 = vunpack.c.l.b16 %v1743_v48 }
 0x389   : > { %v3694_v0 = vunpack.c.l.b16 %v1710_v57  ;;  %v10279_v57 = vld [vmem:[#allocation6_spill] sm:$0xff] }
 0x38a   : > { %v3982_v18 = vpop.f32.mrf.mxu3  ;;  %v4074_v52 = vpop.f32.mrf.mxu0  ;;  %v3860_v40 = vadd.f32 %v9330_v11, %v3828_v32  ;;  %v9539_v6 = vpack.c.b16 %v4187_v24, %v4186_v12 }
 0x38b   : > { %v4072_v58 = vadd.f32 %v4071_v23, %v3982_v18  ;;  %v4259_v31 = vpop.f32.mrf.mxu1  ;;  %v7388_v23 = vld [vmem:[%s7789_s12 + $0x300] sm:$0xff]  }
 0x38c   : > { %v6921_v49 = vpack.c.bf16 %v3860_v40, %v3859_v1  ;;  %3806 = vmatmul.bf16.gmra.mxu2 %v9501_v62  ;;  %v6527_v39 = vunpack.c.l.bf16 %v7388_v23  ;;  %v6528_v28 = vunpack.c.h.bf16 %v7388_v23 }
 0x38d   : > { %v4320_v5 = vadd.f32 %v4256_v10, %v4072_v58  ;;  %4113 = vmatmul.bf16.gmra.mxu0 %v8997_v30  ;;  %4298 = vmatmul.bf16.gmra.mxu1 %v9504_v4  ;;  %v1711_v30 = vpack.c.bf16 %v1455_v17, %v1455_v17 }
 0x38e   : > { %7472 = vst [vmem:[%s8329_s28 + $0x1a8] sm:$0xff] %v6921_v49   ;;  %v972_v60 = vmul.f32 %v9524_v34, %v6527_v39  ;;  %v973_v32 = vmul.f32 %v9524_v34, %v6528_v28  ;;  %v9535_v49 = vld [vmem:[%s10192_s2] ss:$0 sm:$0xff] }
 0x38f   : > { %v4352_v46 = vadd.f32 %v9330_v11, %v4320_v5  ;;  %4024 = vmatmul.bf16.gmra.mxu3 %v9501_v62  ;;  %v3767_v20 = vpop.f32.mrf.mxu2  ;;  %v3695_v56 = vunpack.c.l.b16 %v1711_v30 }
 0x390   : > { %v3829_v58 = vadd.f32 %v3767_v20, %v10277_v42  ;;  %v1232_v9 = vadd.f32 %v9535_v49, %v972_v60  ;;  %v1233_v17 = vadd.f32 %v9535_v49, %v973_v32 }
 0x391   : > { %v7001_v14 = vpack.c.bf16 %v4352_v46, %v4351_v51  ;;  %v9530_v5 = vpack.c.b16 %v3695_v56, %v3694_v0 }
 0x392   : > { %v3985_v10 = vpop.f32.mrf.mxu3  ;;  %v4076_v44 = vpop.f32.mrf.mxu0  ;;  %v3861_v54 = vadd.f32 %v9330_v11, %v3829_v58  ;;  %v1488_v30 = vmax.f32 %v1232_v9, 0.0 }
 0x393   : > { %7488 = vst [vmem:[%s8329_s28 + $0x228] sm:$0xff] %v7001_v14   ;;  %v4261_v36 = vpop.f32.mrf.mxu1  ;;  %v4075_v18 = vadd.f32 %v4074_v52, %v3985_v10 }
 0x394   : > { %v1744_v0 = vpack.c.bf16 %v1488_v30, %v1488_v30 }
 0x395   : > { %v4321_v52 = vadd.f32 %v4259_v31, %v4075_v18  ;;  %v1489_v31 = vmax.f32 %v1233_v17, 0.0 }
 0x396   : > { %v4648_v24 = vunpack.c.l.b16 %v1744_v0 }
 0x397   : > { %v3769_v22 = vpop.f32.mrf.mxu2  ;;  %v4353_v39 = vadd.f32 %v9330_v11, %v4321_v52  ;;  %v1745_v56 = vpack.c.bf16 %v1489_v31, %v1489_v31 }
 0x398   : > { %v3830_v1 = vadd.f32 %v3769_v22, %v10278_v16 }
 0x399   : > { %v4649_v42 = vunpack.c.l.b16 %v1745_v56 }
 0x39a   : > { %v3987_v40 = vpop.f32.mrf.mxu3  ;;  %v4079_v46 = vpop.f32.mrf.mxu0  ;;  %v3862_v23 = vadd.f32 %v9330_v11, %v3830_v1  ;;  %v10280_v1 = vld [vmem:[#allocation2_spill] sm:$0xff] }
 0x39b   : > { %v4077_v51 = vadd.f32 %v4076_v44, %v3987_v40  ;;  %v4264_v14 = vpop.f32.mrf.mxu1  ;;  %v7389_v44 = vld [vmem:[%s7789_s12 + $0x308] sm:$0xff]  }
 0x39c   : > { %v6926_v10 = vpack.c.bf16 %v3862_v23, %v3861_v54  ;;  %3811 = vmatmul.bf16.gmra.mxu2 %v9530_v5  ;;  %v6531_v60 = vunpack.c.l.bf16 %v7389_v44  ;;  %v6532_v32 = vunpack.c.h.bf16 %v7389_v44 }
 0x39d   : > { %v4322_v20 = vadd.f32 %v4261_v36, %v4077_v51  ;;  %4118 = vmatmul.bf16.gmra.mxu0 %v10279_v57  ;;  %4303 = vmatmul.bf16.gmra.mxu1 %v9539_v6  ;;  %v9556_v51 = vpack.c.b16 %v4649_v42, %v4648_v24 }
 0x39e   : > { %7473 = vst [vmem:[%s8329_s28 + $0x1b0] sm:$0xff] %v6926_v10   ;;  %v974_v58 = vmul.f32 %v9524_v34, %v6531_v60  ;;  %v975_v22 = vmul.f32 %v9524_v34, %v6532_v32 }
 0x39f   : > { %v4354_v28 = vadd.f32 %v9330_v11, %v4322_v20  ;;  %4029 = vmatmul.bf16.gmra.mxu3 %v9530_v5  ;;  %v3772_v48 = vpop.f32.mrf.mxu2 }
 0x3a0   : > { %v3831_v40 = vadd.f32 %v3772_v48, %v10280_v1  ;;  %v1234_v54 = vadd.f32 %v9535_v49, %v974_v58  ;;  %v1235_v23 = vadd.f32 %v9535_v49, %v975_v22  ;;  %v7390_v48 = vld [vmem:[%s7789_s12 + $0x310] sm:$0xff]  }
 0x3a1   : > { %v7006_v33 = vpack.c.bf16 %v4354_v28, %v4353_v39 }
 0x3a2   : > { %v3990_v36 = vpop.f32.mrf.mxu3  ;;  %v4081_v18 = vpop.f32.mrf.mxu0  ;;  %v3863_v30 = vadd.f32 %v9330_v11, %v3831_v40  ;;  %v1491_v44 = vmax.f32 %v1235_v23, 0.0 }
 0x3a3   : > { %7489 = vst [vmem:[%s8329_s28 + $0x230] sm:$0xff] %v7006_v33   ;;  %v4266_v12 = vpop.f32.mrf.mxu1  ;;  %v4080_v16 = vadd.f32 %v4079_v46, %v3990_v36 }
 0x3a4   : > { %v1747_v32 = vpack.c.bf16 %v1491_v44, %v1491_v44 }
 0x3a5   : > { %v4323_v20 = vadd.f32 %v4264_v14, %v4080_v16 }
 0x3a6   : > { %v4651_v22 = vunpack.c.l.b16 %v1747_v32 }
 0x3a7   : > { %v3774_v9 = vpop.f32.mrf.mxu2  ;;  %v4355_v14 = vadd.f32 %v9330_v11, %v4323_v20 }
 0x3a8   : > { %v3832_v17 = vadd.f32 %v3774_v9, %v9038_v63  ;;  %v1490_v63 = vmax.f32 %v1234_v54, 0.0 }
 0x3aa   : > { %v3992_v52 = vpop.f32.mrf.mxu3  ;;  %v4084_v57 = vpop.f32.mrf.mxu0  ;;  %v3864_v46 = vadd.f32 %v9330_v11, %v3832_v17  ;;  %v1746_v60 = vpack.c.bf16 %v1490_v63, %v1490_v63 }
 0x3ab   : > { %v4082_v10 = vadd.f32 %v4081_v18, %v3992_v52  ;;  %v4269_v31 = vpop.f32.mrf.mxu1  ;;  %v6535_v18 = vunpack.c.l.bf16 %v7390_v48 }
 0x3ac   : > { %v6931_v28 = vpack.c.bf16 %v3864_v46, %v3863_v30  ;;  %4446 = vmatmul.bf16.vlgmr.msra.gmra.mxu2 %v9050_v7  ;;  %v4650_v58 = vunpack.c.l.b16 %v1746_v60 }
 0x3ad   : > { %v4324_v39 = vadd.f32 %v4266_v12, %v4082_v10  ;;  %4720 = vmatmul.bf16.vlgmr.msra.gmra.mxu0 %v9556_v51  ;;  %4938 = vmatmul.bf16.vlgmr.msra.gmra.mxu1 %v9556_v51  ;;  %v6536_v12 = vunpack.c.h.bf16 %v7390_v48  ;;  %v976_v16 = vmul.f32 %v9524_v34, %v6535_v18  ;;  %v7391_v48 = vld [vmem:[%s7789_s12 + $0x318] sm:$0xff]  }
 0x3ae   : > { %7474 = vst [vmem:[%s8329_s28 + $0x1b8] sm:$0xff] %v6931_v28   ;;  %v9575_v54 = vpack.c.b16 %v4651_v22, %v4650_v58  ;;  %v6539_v18 = vunpack.c.l.bf16 %v7391_v48 }
 0x3af   : > { %v4356_v33 = vadd.f32 %v9330_v11, %v4324_v39  ;;  %4535 = vmatmul.bf16.vlgmr.msra.gmra.mxu3 %v9045_v2  ;;  %v3777_v0 = vpop.f32.mrf.mxu2  ;;  %v977_v2 = vmul.f32 %v9524_v34, %v6536_v12  ;;  %v1236_v23 = vadd.f32 %v9535_v49, %v976_v16  ;;  %v6540_v12 = vunpack.c.h.bf16 %v7391_v48 }
 0x3b0   : > { %v3833_v40 = vadd.f32 %v3777_v0, %v9054_v37 }
 0x3b1   : > { %v7011_v36 = vpack.c.bf16 %v4356_v33, %v4355_v14  ;;  %v1237_v20 = vadd.f32 %v9535_v49, %v977_v2  ;;  %v10281_v33 = vld [vmem:[#allocation7_spill] sm:$0xff]  ;;  %v979_v16 = vmul.f32 %v9524_v34, %v6540_v12 }
 0x3b2   : > { %v3995_v56 = vpop.f32.mrf.mxu3  ;;  %v4086_v24 = vpop.f32.mrf.mxu0  ;;  %v3865_v39 = vadd.f32 %v9330_v11, %v3833_v40 }
 0x3b3   : > { %7490 = vst [vmem:[%s8329_s28 + $0x238] sm:$0xff] %v7011_v36   ;;  %v4271_v42 = vpop.f32.mrf.mxu1  ;;  %v4085_v1 = vadd.f32 %v4084_v57, %v3995_v56  ;;  %v1493_v44 = vmax.f32 %v1237_v20, 0.0 }
 0x3b5   : > { %v4325_v10 = vadd.f32 %v4269_v31, %v4085_v1  ;;  %v1749_v32 = vpack.c.bf16 %v1493_v44, %v1493_v44  ;;  %v10282_v1 = vld [vmem:[#allocation8_spill] sm:$0xff] }
 0x3b7   : > { %v3779_v9 = vpop.f32.mrf.mxu2  ;;  %v4357_v31 = vadd.f32 %v9330_v11, %v4325_v10  ;;  %v4653_v22 = vunpack.c.l.b16 %v1749_v32 }
 0x3b8   : > { %v3834_v17 = vadd.f32 %v3779_v9, %v9080_v8  ;;  %v1492_v8 = vmax.f32 %v1236_v23, 0.0 }
 0x3ba   : > { %v3997_v52 = vpop.f32.mrf.mxu3  ;;  %v4089_v46 = vpop.f32.mrf.mxu0  ;;  %v3866_v57 = vadd.f32 %v9330_v11, %v3834_v17  ;;  %v1748_v60 = vpack.c.bf16 %v1492_v8, %v1492_v8  ;;  %v10283_v17 = vld [vmem:[#allocation3_spill] sm:$0xff] }
 0x3bb   : > { %v4087_v30 = vadd.f32 %v4086_v24, %v3997_v52  ;;  %v4274_v37 = vpop.f32.mrf.mxu1 }
 0x3bc   : > { %v6936_v63 = vpack.c.bf16 %v3866_v57, %v3865_v39  ;;  %4451 = vmatmul.bf16.gmra.mxu2 %v9104_v47  ;;  %v4652_v58 = vunpack.c.l.b16 %v1748_v60  ;;  %v7392_v60 = vld [vmem:[%s7789_s12 + $0x320] sm:$0xff]  }
 0x3bd   : > { %v4326_v28 = vadd.f32 %v4271_v42, %v4087_v30  ;;  %4725 = vmatmul.bf16.gmra.mxu0 %v9575_v54  ;;  %4943 = vmatmul.bf16.gmra.mxu1 %v9575_v54  ;;  %v1239_v30 = vadd.f32 %v9535_v49, %v979_v16 }
 0x3be   : > { %7475 = vst [vmem:[%s8329_s28 + $0x1c0] sm:$0xff] %v6936_v63   ;;  %v9594_v20 = vpack.c.b16 %v4653_v22, %v4652_v58  ;;  %v6543_v58 = vunpack.c.l.bf16 %v7392_v60  ;;  %v6544_v22 = vunpack.c.h.bf16 %v7392_v60 }
 0x3bf   : > { %v4358_v14 = vadd.f32 %v9330_v11, %v4326_v28  ;;  %4540 = vmatmul.bf16.gmra.mxu3 %v10281_v33  ;;  %v3782_v0 = vpop.f32.mrf.mxu2  ;;  %v978_v11 = vmul.f32 %v9524_v34, %v6539_v18  ;;  %v10284_v33 = vld [vmem:[#allocation10_spill] sm:$0xff]  ;;  %v1495_v48 = vmax.f32 %v1239_v30, 0.0  ;;  %v10287_v30 = vld [vmem:[#allocation11_spill] sm:$0xff] }
 0x3c0   : > { %v3835_v40 = vadd.f32 %v3782_v0, %v10282_v1 }
 0x3c1   : > { %v7016_v36 = vpack.c.bf16 %v4358_v14, %v4357_v31  ;;  %v1238_v10 = vadd.f32 %v9535_v49, %v978_v11 }
 0x3c2   : > { %v4000_v56 = vpop.f32.mrf.mxu3  ;;  %v4091_v24 = vpop.f32.mrf.mxu0 }
 0x3c3   : > { %7491 = vst [vmem:[%s8329_s28 + $0x240] sm:$0xff] %v7016_v36   ;;  %v4276_v42 = vpop.f32.mrf.mxu1  ;;  %v4090_v2 = vadd.f32 %v4089_v46, %v4000_v56  ;;  %v9601_v46 = vld [vmem:[%s10194_s4] ss:$0 sm:$0xff]  ;;  %v10285_v56 = vld [vmem:[#allocation9_spill] sm:$0xff] }
 0x3c4   : > { %v3867_v63 = vadd.f32 %v9601_v46, %v3835_v40  ;;  %v980_v40 = vmul.f32 %v9524_v34, %v6543_v58 }
 0x3c5   : > { %v4327_v39 = vadd.f32 %v4274_v37, %v4090_v2  ;;  %v1494_v37 = vmax.f32 %v1238_v10, 0.0 }
 0x3c7   : > { %v3784_v9 = vpop.f32.mrf.mxu2  ;;  %v4359_v36 = vadd.f32 %v9601_v46, %v4327_v39 }
 0x3c8   : > { %v3836_v52 = vadd.f32 %v3784_v9, %v10283_v17  ;;  %v981_v9 = vmul.f32 %v9524_v34, %v6544_v22 }
 0x3ca   : > { %v4002_v23 = vpop.f32.mrf.mxu3  ;;  %v4094_v28 = vpop.f32.mrf.mxu0  ;;  %v3868_v8 = vadd.f32 %v9601_v46, %v3836_v52  ;;  %v10286_v52 = vld [vmem:[#allocation19_spill] sm:$0xff] }
 0x3cb   : > { %v4092_v57 = vadd.f32 %v4091_v24, %v4002_v23  ;;  %v4279_v44 = vpop.f32.mrf.mxu1  ;;  %v1750_v24 = vpack.c.bf16 %v1494_v37, %v1494_v37 }
 0x3cc   : > { %v6941_v14 = vpack.c.bf16 %v3868_v8, %v3867_v63  ;;  %4456 = vmatmul.bf16.gmra.mxu2 %v10284_v33  ;;  %v1240_v8 = vadd.f32 %v9535_v49, %v980_v40 }
 0x3cd   : > { %v4328_v31 = vadd.f32 %v4276_v42, %v4092_v57  ;;  %4730 = vmatmul.bf16.gmra.mxu0 %v9594_v20  ;;  %4948 = vmatmul.bf16.gmra.mxu1 %v9594_v20  ;;  %v1751_v42 = vpack.c.bf16 %v1495_v48, %v1495_v48  ;;  %v4654_v2 = vunpack.c.l.b16 %v1750_v24  ;;  %v7393_v24 = vld [vmem:[%s7789_s12 + $0x328] sm:$0xff]  }
 0x3ce   : > { %7476 = vst [vmem:[%s8329_s28 + $0x1c8] sm:$0xff] %v6941_v14  }
 0x3cf   : > { %v4360_v0 = vadd.f32 %v9601_v46, %v4328_v31  ;;  %4545 = vmatmul.bf16.gmra.mxu3 %v10285_v56  ;;  %v3787_v18 = vpop.f32.mrf.mxu2  ;;  %v4655_v1 = vunpack.c.l.b16 %v1751_v42  ;;  %v1241_v31 = vadd.f32 %v9535_v49, %v981_v9 }
 0x3d0   : > { %v3837_v23 = vadd.f32 %v3787_v18, %v10286_v52 }
 0x3d1   : > { %v7021_v32 = vpack.c.bf16 %v4360_v0, %v4359_v36  ;;  %v9618_v63 = vpack.c.b16 %v4655_v1, %v4654_v2  ;;  %v1497_v18 = vmax.f32 %v1241_v31, 0.0  ;;  %v6547_v2 = vunpack.c.l.bf16 %v7393_v24 }
 0x3d2   : > { %v4005_v12 = vpop.f32.mrf.mxu3  ;;  %v4096_v11 = vpop.f32.mrf.mxu0  ;;  %v3869_v36 = vadd.f32 %v9601_v46, %v3837_v23  ;;  %v6548_v1 = vunpack.c.h.bf16 %v7393_v24 }
 0x3d3   : > { %7492 = vst [vmem:[%s8329_s28 + $0x248] sm:$0xff] %v7021_v32   ;;  %v4281_v16 = vpop.f32.mrf.mxu1  ;;  %v4095_v17 = vadd.f32 %v4094_v28, %v4005_v12  ;;  %v1496_v32 = vmax.f32 %v1240_v8, 0.0  ;;  %v982_v23 = vmul.f32 %v9524_v34, %v6547_v2 }
 0x3d5   : > { %v4329_v14 = vadd.f32 %v4279_v44, %v4095_v17 }
 0x3d7   : > { %v3789_v10 = vpop.f32.mrf.mxu2  ;;  %v4361_v44 = vadd.f32 %v9601_v46, %v4329_v14 }
 0x3d8   : > { %v3838_v39 = vadd.f32 %v3789_v10, %v10287_v30  ;;  %v10288_v30 = vld [vmem:[#allocation12_spill] sm:$0xff] }
 0x3da   : > { %v4007_v57 = vpop.f32.mrf.mxu3  ;;  %v4099_v48 = vpop.f32.mrf.mxu0  ;;  %v3870_v28 = vadd.f32 %v9601_v46, %v3838_v39 }
 0x3db   : > { %v4097_v37 = vadd.f32 %v4096_v11, %v4007_v57  ;;  %v4284_v0 = vpop.f32.mrf.mxu1  ;;  %v1752_v11 = vpack.c.bf16 %v1496_v32, %v1496_v32 }
 0x3dc   : > { %v6946_v60 = vpack.c.bf16 %v3870_v28, %v3869_v36  ;;  %4461 = vmatmul.bf16.gmra.mxu2 %v9203_v26 }
 0x3dd   : > { %v4330_v56 = vadd.f32 %v4281_v16, %v4097_v37  ;;  %4735 = vmatmul.bf16.gmra.mxu0 %v9618_v63  ;;  %4953 = vmatmul.bf16.gmra.mxu1 %v9618_v63  ;;  %v1753_v16 = vpack.c.bf16 %v1497_v18, %v1497_v18  ;;  %v4656_v17 = vunpack.c.l.b16 %v1752_v11  ;;  %v1242_v37 = vadd.f32 %v9535_v49, %v982_v23 }
 0x3de   : > { %7477 = vst [vmem:[%s8329_s28 + $0x1d0] sm:$0xff] %v6946_v60  }
 0x3df   : > { %v4362_v12 = vadd.f32 %v9601_v46, %v4330_v56  ;;  %4550 = vmatmul.bf16.gmra.mxu3 %v9201_v59  ;;  %v3792_v58 = vpop.f32.mrf.mxu2  ;;  %v4657_v52 = vunpack.c.l.b16 %v1753_v16  ;;  %v983_v59 = vmul.f32 %v9524_v34, %v6548_v1 }
 0x3e0   : > { %v3839_v39 = vadd.f32 %v3792_v58, %v10288_v30  ;;  %v7394_v58 = vld [vmem:[%s7789_s12 + $0x330] sm:$0xff]  }
 0x3e1   : > { %v7026_v42 = vpack.c.bf16 %v4362_v12, %v4361_v44  ;;  %v9637_v14 = vpack.c.b16 %v4657_v52, %v4656_v17  ;;  %v1243_v36 = vadd.f32 %v9535_v49, %v983_v59 }
 0x3e2   : > { %v4010_v22 = vpop.f32.mrf.mxu3  ;;  %v4101_v40 = vpop.f32.mrf.mxu0  ;;  %v3871_v32 = vadd.f32 %v9601_v46, %v3839_v39  ;;  %v10289_v39 = vld [vmem:[#allocation13_spill] sm:$0xff] }
 0x3e3   : > { %7493 = vst [vmem:[%s8329_s28 + $0x250] sm:$0xff] %v7026_v42   ;;  %v4286_v9 = vpop.f32.mrf.mxu1  ;;  %v4100_v10 = vadd.f32 %v4099_v48, %v4010_v22  ;;  %v1499_v24 = vmax.f32 %v1243_v36, 0.0 }
 0x3e5   : > { %v4331_v28 = vadd.f32 %v4284_v0, %v4100_v10  ;;  %v1755_v1 = vpack.c.bf16 %v1499_v24, %v1499_v24 }
 0x3e7   : > { %v3794_v57 = vpop.f32.mrf.mxu2  ;;  %v4363_v0 = vadd.f32 %v9601_v46, %v4331_v28  ;;  %v4659_v59 = vunpack.c.l.b16 %v1755_v1 }
 0x3e8   : > { %v3840_v8 = vadd.f32 %v3794_v57, %v9218_v61  ;;  %v1498_v61 = vmax.f32 %v1242_v37, 0.0 }
 0x3ea   : > { %v4012_v31 = vpop.f32.mrf.mxu3  ;;  %v4104_v60 = vpop.f32.mrf.mxu0  ;;  %v3872_v48 = vadd.f32 %v9601_v46, %v3840_v8  ;;  %v1754_v2 = vpack.c.bf16 %v1498_v61, %v1498_v61 }
 0x3eb   : > { %v4102_v56 = vadd.f32 %v4101_v40, %v4012_v31  ;;  %v4289_v18 = vpop.f32.mrf.mxu1  ;;  %v6551_v40 = vunpack.c.l.bf16 %v7394_v58 }
 0x3ec   : > { %v6951_v12 = vpack.c.bf16 %v3872_v48, %v3871_v32  ;;  %4466 = vmatmul.bf16.gmra.mxu2 %v9230_v29  ;;  %v4658_v23 = vunpack.c.l.b16 %v1754_v2 }
 0x3ed   : > { %v4332_v44 = vadd.f32 %v4286_v9, %v4102_v56  ;;  %4740 = vmatmul.bf16.gmra.mxu0 %v9637_v14  ;;  %4958 = vmatmul.bf16.gmra.mxu1 %v9637_v14  ;;  %v6552_v9 = vunpack.c.h.bf16 %v7394_v58  ;;  %v984_v10 = vmul.f32 %v9524_v34, %v6551_v40 }
 0x3ee   : > { %7478 = vst [vmem:[%s8329_s28 + $0x1d8] sm:$0xff] %v6951_v12   ;;  %v9656_v36 = vpack.c.b16 %v4659_v59, %v4658_v23 }
 0x3ef   : > { %v4364_v42 = vadd.f32 %v9601_v46, %v4332_v44  ;;  %4555 = vmatmul.bf16.gmra.mxu3 %v9225_v21  ;;  %v3797_v11 = vpop.f32.mrf.mxu2  ;;  %v985_v21 = vmul.f32 %v9524_v34, %v6552_v9  ;;  %v1244_v28 = vadd.f32 %v9535_v49, %v984_v10 }
 0x3f0   : > { %v3841_v57 = vadd.f32 %v3797_v11, %v10289_v39  ;;  %v10291_v11 = vld [vmem:[#allocation14_spill] sm:$0xff] }
 0x3f1   : > { %v7031_v22 = vpack.c.bf16 %v4364_v42, %v4363_v0  ;;  %v1245_v56 = vadd.f32 %v9535_v49, %v985_v21  ;;  %v1500_v42 = vmax.f32 %v1244_v28, 0.0 }
 0x3f2   : > { %v4015_v16 = vpop.f32.mrf.mxu3  ;;  %v4106_v17 = vpop.f32.mrf.mxu0  ;;  %v3873_v12 = vadd.f32 %v9601_v46, %v3841_v57 }
 0x3f3   : > { %7494 = vst [vmem:[%s8329_s28 + $0x258] sm:$0xff] %v7031_v22   ;;  %v4291_v52 = vpop.f32.mrf.mxu1  ;;  %v4105_v30 = vadd.f32 %v4104_v60, %v4015_v16  ;;  %v1501_v58 = vmax.f32 %v1245_v56, 0.0  ;;  %v7395_v16 = vld [vmem:[%s7789_s12 + $0x338] sm:$0xff]   ;;  %v1756_v9 = vpack.c.bf16 %v1500_v42, %v1500_v42 }
 0x3f4   : > { %v6556_v23 = vunpack.c.h.bf16 %v7395_v16 }
 0x3f5   : > { %v4333_v32 = vadd.f32 %v4289_v18, %v4105_v30  ;;  %v4660_v21 = vunpack.c.l.b16 %v1756_v9 }
 0x3f6   : > { %v987_v57 = vmul.f32 %v9524_v34, %v6556_v23 }
 0x3f7   : > { %v3799_v8 = vpop.f32.mrf.mxu2  ;;  %v4365_v18 = vadd.f32 %v9601_v46, %v4333_v32 }
 0x3f8   : > { %v3842_v31 = vadd.f32 %v3799_v8, %v9245_v53  ;;  %v10290_v53 = vld [vmem:[#allocation15_spill] sm:$0xff] }
 0x3fa   : > { %v4017_v37 = vpop.f32.mrf.mxu3  ;;  %v4109_v44 = vpop.f32.mrf.mxu0  ;;  %v3874_v60 = vadd.f32 %v9601_v46, %v3842_v31  ;;  %v10292_v31 = vld [vmem:[#allocation20_spill] sm:$0xff] }
 0x3fb   : > { %v4107_v48 = vadd.f32 %v4106_v17, %v4017_v37  ;;  %v4294_v61 = vpop.f32.mrf.mxu1  ;;  %v1757_v17 = vpack.c.bf16 %v1501_v58, %v1501_v58 }
 0x3fc   : > { %v6956_v0 = vpack.c.bf16 %v3874_v60, %v3873_v12  ;;  %4471 = vmatmul.bf16.gmra.mxu2 %v10290_v53  ;;  %v1247_v60 = vadd.f32 %v9535_v49, %v987_v57 }
 0x3fd   : > { %v4334_v24 = vadd.f32 %v4291_v52, %v4107_v48  ;;  %4745 = vmatmul.bf16.gmra.mxu0 %v9656_v36  ;;  %4963 = vmatmul.bf16.gmra.mxu1 %v9656_v36  ;;  %v6555_v52 = vunpack.c.l.bf16 %v7395_v16  ;;  %v4661_v30 = vunpack.c.l.b16 %v1757_v17 }
 0x3fe   : > { %7479 = vst [vmem:[%s8329_s28 + $0x1e0] sm:$0xff] %v6956_v0   ;;  %v1503_v16 = vmax.f32 %v1247_v60, 0.0 }
 0x3ff   : > { %v4366_v22 = vadd.f32 %v9601_v46, %v4334_v24  ;;  %4560 = vmatmul.bf16.gmra.mxu3 %v10291_v11  ;;  %v3802_v1 = vpop.f32.mrf.mxu2  ;;  %v986_v39 = vmul.f32 %v9524_v34, %v6555_v52  ;;  %v9675_v48 = vpack.c.b16 %v4661_v30, %v4660_v21 }
 0x400   : > { %v3843_v37 = vadd.f32 %v3802_v1, %v10292_v31  ;;  %v7396_v1 = vld [vmem:[%s7789_s12 + $0x340] sm:$0xff]   ;;  %v1759_v23 = vpack.c.bf16 %v1503_v16, %v1503_v16 }
 0x401   : > { %v7036_v2 = vpack.c.bf16 %v4366_v22, %v4365_v18  ;;  %v1246_v12 = vadd.f32 %v9535_v49, %v986_v39 }
 0x402   : > { %v4020_v40 = vpop.f32.mrf.mxu3  ;;  %v4111_v59 = vpop.f32.mrf.mxu0  ;;  %v3875_v58 = vadd.f32 %v9601_v46, %v3843_v37  ;;  %v4663_v57 = vunpack.c.l.b16 %v1759_v23  ;;  %v10293_v37 = vld [vmem:[#allocation16_spill] sm:$0xff]  ;;  %v7397_v23 = vld [vmem:[%s7789_s12 + $0x348] sm:$0xff]  }
 0x403   : > { %7495 = vst [vmem:[%s8329_s28 + $0x260] sm:$0xff] %v7036_v2   ;;  %v4296_v10 = vpop.f32.mrf.mxu1  ;;  %v4110_v8 = vadd.f32 %v4109_v44, %v4020_v40 }
 0x405   : > { %v4335_v24 = vadd.f32 %v4294_v61, %v4110_v8 }
 0x407   : > { %v3804_v28 = vpop.f32.mrf.mxu2  ;;  %v4367_v61 = vadd.f32 %v9601_v46, %v4335_v24 }
 0x408   : > { %v3844_v56 = vadd.f32 %v3804_v28, %v9282_v3  ;;  %v1502_v3 = vmax.f32 %v1246_v12, 0.0 }
 0x40a   : > { %v4022_v32 = vpop.f32.mrf.mxu3  ;;  %v4114_v42 = vpop.f32.mrf.mxu0  ;;  %v3876_v44 = vadd.f32 %v9601_v46, %v3844_v56  ;;  %v1758_v52 = vpack.c.bf16 %v1502_v3, %v1502_v3 }
 0x40b   : > { %v4112_v0 = vadd.f32 %v4111_v59, %v4022_v32  ;;  %v4299_v18 = vpop.f32.mrf.mxu1  ;;  %v6559_v59 = vunpack.c.l.bf16 %v7396_v1  ;;  %v10294_v32 = vld [vmem:[#allocation21_spill] sm:$0xff] }
 0x40c   : > { %v6961_v11 = vpack.c.bf16 %v3876_v44, %v3875_v58  ;;  %4476 = vmatmul.bf16.gmra.mxu2 %v9294_v27  ;;  %v4662_v39 = vunpack.c.l.b16 %v1758_v52  ;;  %v10296_v52 = vld [vmem:[#allocation17_spill] sm:$0xff] }
 0x40d   : > { %v4336_v22 = vadd.f32 %v4296_v10, %v4112_v0  ;;  %4750 = vmatmul.bf16.gmra.mxu0 %v9675_v48  ;;  %4968 = vmatmul.bf16.gmra.mxu1 %v9675_v48  ;;  %v6560_v10 = vunpack.c.h.bf16 %v7396_v1  ;;  %v988_v8 = vmul.f32 %v9524_v34, %v6559_v59  ;;  %v10295_v1 = vld [vmem:[#allocation22_spill] sm:$0xff] }
 0x40e   : > { %7480 = vst [vmem:[%s8329_s28 + $0x1e8] sm:$0xff] %v6961_v11   ;;  %v9694_v24 = vpack.c.b16 %v4663_v57, %v4662_v39  ;;  %v6563_v57 = vunpack.c.l.bf16 %v7397_v23 }
 0x40f   : > { %v4368_v2 = vadd.f32 %v9601_v46, %v4336_v22  ;;  %4565 = vmatmul.bf16.gmra.mxu3 %v9289_v45  ;;  %v3807_v9 = vpop.f32.mrf.mxu2  ;;  %v989_v45 = vmul.f32 %v9524_v34, %v6560_v10  ;;  %v1248_v0 = vadd.f32 %v9535_v49, %v988_v8  ;;  %v6564_v8 = vunpack.c.h.bf16 %v7397_v23 }
 0x410   : > { %v3845_v28 = vadd.f32 %v3807_v9, %v10293_v37 }
 0x411   : > { %v7041_v40 = vpack.c.bf16 %v4368_v2, %v4367_v61  ;;  %v1249_v58 = vadd.f32 %v9535_v49, %v989_v45 }
 0x412   : > { %v4025_v17 = vpop.f32.mrf.mxu3  ;;  %v4116_v21 = vpop.f32.mrf.mxu0  ;;  %v3877_v3 = vadd.f32 %v9601_v46, %v3845_v28 }
 0x413   : > { %7496 = vst [vmem:[%s8329_s28 + $0x268] sm:$0xff] %v7041_v40   ;;  %v4301_v30 = vpop.f32.mrf.mxu1  ;;  %v4115_v31 = vadd.f32 %v4114_v42, %v4025_v17  ;;  %v1504_v40 = vmax.f32 %v1248_v0, 0.0  ;;  %v1505_v9 = vmax.f32 %v1249_v58, 0.0 }
 0x415   : > { %v4337_v44 = vadd.f32 %v4299_v18, %v4115_v31  ;;  %v1761_v39 = vpack.c.bf16 %v1505_v9, %v1505_v9 }
 0x417   : > { %v3809_v56 = vpop.f32.mrf.mxu2  ;;  %v4369_v18 = vadd.f32 %v9601_v46, %v4337_v44  ;;  %v4665_v28 = vunpack.c.l.b16 %v1761_v39  ;;  %v10298_v44 = vld [vmem:[#allocation24_spill] sm:$0xff] }
 0x418   : > { %v3846_v12 = vadd.f32 %v3809_v56, %v10294_v32  ;;  %v990_v56 = vmul.f32 %v9524_v34, %v6563_v57  ;;  %v991_v32 = vmul.f32 %v9524_v34, %v6564_v8  ;;  %v10300_v57 = vld [vmem:[#allocation25_spill] sm:$0xff]  ;;  %v7398_v8 = vld [vmem:[%s7789_s12 + $0x350] sm:$0xff]  }
 0x41a   : > { %v4027_v60 = vpop.f32.mrf.mxu3  ;;  %v4119_v11 = vpop.f32.mrf.mxu0  ;;  %v3878_v42 = vadd.f32 %v9601_v46, %v3846_v12 }
 0x41b   : > { %v4117_v22 = vadd.f32 %v4116_v21, %v4027_v60  ;;  %v4304_v16 = vpop.f32.mrf.mxu1  ;;  %v10297_v60 = vld [vmem:[#allocation23_spill] sm:$0xff] }
 0x41c   : > { %v6966_v2 = vpack.c.bf16 %v3878_v42, %v3877_v3  ;;  %4481 = vmatmul.bf16.gmra.mxu2 %v10295_v1 }
 0x41d   : > { %v4338_v61 = vadd.f32 %v4301_v30, %v4117_v22  ;;  %4755 = vmatmul.bf16.gmra.mxu0 %v9694_v24  ;;  %4973 = vmatmul.bf16.gmra.mxu1 %v9694_v24  ;;  %v1760_v30 = vpack.c.bf16 %v1504_v40, %v1504_v40 }
 0x41e   : > { %7481 = vst [vmem:[%s8329_s28 + $0x1f0] sm:$0xff] %v6966_v2   ;;  %v1251_v2 = vadd.f32 %v9535_v49, %v991_v32  ;;  %v6567_v32 = vunpack.c.l.bf16 %v7398_v8 }
 0x41f   : > { %v4370_v17 = vadd.f32 %v9601_v46, %v4338_v61  ;;  %4570 = vmatmul.bf16.gmra.mxu3 %v10296_v52  ;;  %v3812_v10 = vpop.f32.mrf.mxu2  ;;  %v4664_v37 = vunpack.c.l.b16 %v1760_v30  ;;  %v1250_v61 = vadd.f32 %v9535_v49, %v990_v56 }
 0x420   : > { %v3847_v0 = vadd.f32 %v3812_v10, %v10297_v60  ;;  %v10299_v10 = vld [vmem:[#allocation18_spill] sm:$0xff]  ;;  %v1507_v30 = vmax.f32 %v1251_v2, 0.0 }
 0x421   : > { %v7046_v59 = vpack.c.bf16 %v4370_v17, %v4369_v18  ;;  %v9713_v42 = vpack.c.b16 %v4665_v28, %v4664_v37 }
 0x422   : > { %v4030_v21 = vpop.f32.mrf.mxu3  ;;  %v4121_v45 = vpop.f32.mrf.mxu0  ;;  %v3879_v17 = vadd.f32 %v9601_v46, %v3847_v0  ;;  %v1763_v56 = vpack.c.bf16 %v1507_v30, %v1507_v30 }
 0x423   : > { %7497 = vst [vmem:[%s8329_s28 + $0x270] sm:$0xff] %v7046_v59   ;;  %v4306_v31 = vpop.f32.mrf.mxu1  ;;  %v4120_v12 = vadd.f32 %v4119_v11, %v4030_v21  ;;  %v1506_v21 = vmax.f32 %v1250_v61, 0.0 }
 0x425   : > { %v4339_v40 = vadd.f32 %v4304_v16, %v4120_v12  ;;  %v1762_v28 = vpack.c.bf16 %v1506_v21, %v1506_v21  ;;  %v6568_v12 = vunpack.c.h.bf16 %v7398_v8 }
 0x427   : > { %v3814_v58 = vpop.f32.mrf.mxu2  ;;  %v4371_v16 = vadd.f32 %v9601_v46, %v4339_v40 }
 0x428   : > { %v3848_v22 = vadd.f32 %v3814_v58, %v10298_v44  ;;  %v4666_v58 = vunpack.c.l.b16 %v1762_v28  ;;  %v4667_v44 = vunpack.c.l.b16 %v1763_v56 }
 0x42a   : > { %v4032_v3 = vpop.f32.mrf.mxu3  ;;  %v4721_v18 = vpop.f32.mrf.mxu0  ;;  %v3880_v11 = vadd.f32 %v9601_v46, %v3848_v22  ;;  %v992_v22 = vmul.f32 %v9524_v34, %v6567_v32 }
 0x42b   : > { %v4122_v9 = vadd.f32 %v4121_v45, %v4032_v3  ;;  %v9719_v52 = vpop.f32.mrf.mxu1  ;;  %v993_v3 = vmul.f32 %v9524_v34, %v6568_v12 }
 0x42c   : > { %v6971_v59 = vpack.c.bf16 %v3880_v11, %v3879_v17  ;;  %4486 = vmatmul.bf16.gmra.mxu2 %v10299_v10  ;;  %v1252_v17 = vadd.f32 %v9535_v49, %v992_v22 }
 0x42d   : > { %v4340_v23 = vadd.f32 %v4306_v31, %v4122_v9  ;;  %4760 = vmatmul.bf16.gmra.mxu0 %v9713_v42  ;;  %4978 = vmatmul.bf16.gmra.mxu1 %v9713_v42  ;;  %v9734_v9 = vpack.c.b16 %v4667_v44, %v4666_v58  ;;  %v1253_v11 = vadd.f32 %v9535_v49, %v993_v3 }
 0x42e   : > { %7482 = vst [vmem:[%s8329_s28 + $0x1f8] sm:$0xff] %v6971_v59  }
 0x42f   : > { %v4372_v39 = vadd.f32 %v9601_v46, %v4340_v23  ;;  %4575 = vmatmul.bf16.gmra.mxu3 %v10300_v57  ;;  %v4447_v31 = vpop.f32.mrf.mxu2  ;;  %v1509_v57 = vmax.f32 %v1253_v11, 0.0 }
 0x431   : > { %v7051_v45 = vpack.c.bf16 %v4372_v39, %v4371_v16  ;;  %v1508_v39 = vmax.f32 %v1252_v17, 0.0  ;;  %v1765_v32 = vpack.c.bf16 %v1509_v57, %v1509_v57 }
 0x432   : > { %v4536_v37 = vpop.f32.mrf.mxu3  ;;  %v4723_v60 = vpop.f32.mrf.mxu0 }
 0x433   : > { %7498 = vst [vmem:[%s8329_s28 + $0x278] sm:$0xff] %v7051_v45   ;;  %v9730_v0 = vpop.f32.mrf.mxu1  ;;  %v4537_v61 = vadd.f32 %v4536_v37, %v4447_v31  ;;  %v1764_v56 = vpack.c.bf16 %v1508_v39, %v1508_v39  ;;  %v4669_v3 = vunpack.c.l.b16 %v1765_v32 }
 0x435   : > { %v4801_v23 = vadd.f32 %v4721_v18, %v4537_v61  ;;  %v7399_v18 = vld [vmem:[%s7789_s12 + $0x358] sm:$0xff]   ;;  %v4668_v22 = vunpack.c.l.b16 %v1764_v56 }
 0x436   : > { %v6571_v12 = vunpack.c.l.bf16 %v7399_v18 }
 0x437   : > { %v4449_v2 = vpop.f32.mrf.mxu2  ;;  %v4833_v8 = vadd.f32 %v9601_v46, %v4801_v23  ;;  %v9752_v11 = vpack.c.b16 %v4669_v3, %v4668_v22 }
 0x438   : > { %v994_v61 = vmul.f32 %v9524_v34, %v6571_v12 }
 0x43a   : > { %v4538_v40 = vpop.f32.mrf.mxu3  ;;  %v4726_v21 = vpop.f32.mrf.mxu0  ;;  %v1254_v23 = vadd.f32 %v9535_v49, %v994_v61 }
 0x43b   : > { %v4539_v59 = vadd.f32 %v4538_v40, %v4449_v2  ;;  %v9738_v30 = vpop.f32.mrf.mxu1 }
 0x43c   : > { %4491 = vmatmul.bf16.gmra.mxu2 %v9378_v15 }
 0x43d   : > { %v4802_v16 = vadd.f32 %v4723_v60, %v4539_v59  ;;  %4765 = vmatmul.bf16.gmra.mxu0 %v9734_v9  ;;  %4983 = vmatmul.bf16.gmra.mxu1 %v9734_v9  ;;  %v6572_v60 = vunpack.c.h.bf16 %v7399_v18  ;;  %v1510_v18 = vmax.f32 %v1254_v23, 0.0 }
 0x43f   : > { %v4834_v45 = vadd.f32 %v9601_v46, %v4802_v16  ;;  %4580 = vmatmul.bf16.gmra.mxu3 %v9374_v41  ;;  %v4452_v37 = vpop.f32.mrf.mxu2  ;;  %v995_v41 = vmul.f32 %v9524_v34, %v6572_v60  ;;  %v1766_v60 = vpack.c.bf16 %v1510_v18, %v1510_v18 }
 0x441   : > { %v7056_v31 = vpack.c.bf16 %v4834_v45, %v4833_v8  ;;  %v1255_v59 = vadd.f32 %v9535_v49, %v995_v41 }
 0x442   : > { %v4541_v28 = vpop.f32.mrf.mxu3  ;;  %v4728_v58 = vpop.f32.mrf.mxu0 }
 0x443   : > { %7499 = vst [vmem:[%s8329_s28 + $0x280] sm:$0xff] %v7056_v31   ;;  %v9748_v44 = vpop.f32.mrf.mxu1  ;;  %v4542_v2 = vadd.f32 %v4541_v28, %v4452_v37  ;;  %v1511_v31 = vmax.f32 %v1255_v59, 0.0 }
 0x445   : > { %v4803_v16 = vadd.f32 %v4726_v21, %v4542_v2  ;;  %v7400_v21 = vld [vmem:[%s7789_s12 + $0x360] sm:$0xff]   ;;  %v4670_v2 = vunpack.c.l.b16 %v1766_v60 }
 0x446   : > { %v6575_v22 = vunpack.c.l.bf16 %v7400_v21  ;;  %v6576_v3 = vunpack.c.h.bf16 %v7400_v21 }
 0x447   : > { %v4454_v40 = vpop.f32.mrf.mxu2  ;;  %v4835_v37 = vadd.f32 %v9601_v46, %v4803_v16 }
 0x44a   : > { %v4543_v17 = vpop.f32.mrf.mxu3  ;;  %v4731_v57 = vpop.f32.mrf.mxu0 }
 0x44b   : > { %v4544_v39 = vadd.f32 %v4543_v17, %v4454_v40  ;;  %v9756_v8 = vpop.f32.mrf.mxu1  ;;  %v996_v17 = vmul.f32 %v9524_v34, %v6575_v22 }
 0x44c   : > { %4496 = vmatmul.bf16.gmra.mxu2 %v9400_v13 }
 0x44d   : > { %v4804_v45 = vadd.f32 %v4728_v58, %v4544_v39  ;;  %4770 = vmatmul.bf16.gmra.mxu0 %v9752_v11  ;;  %4988 = vmatmul.bf16.gmra.mxu1 %v9752_v11  ;;  %v1767_v58 = vpack.c.bf16 %v1511_v31, %v1511_v31 }
 0x44f   : > { %v4836_v28 = vadd.f32 %v9601_v46, %v4804_v45  ;;  %4585 = vmatmul.bf16.gmra.mxu3 %v9397_v35  ;;  %v4457_v32 = vpop.f32.mrf.mxu2  ;;  %v4671_v40 = vunpack.c.l.b16 %v1767_v58  ;;  %v997_v35 = vmul.f32 %v9524_v34, %v6576_v3  ;;  %v1256_v45 = vadd.f32 %v9535_v49, %v996_v17 }
 0x451   : > { %v7061_v56 = vpack.c.bf16 %v4836_v28, %v4835_v37  ;;  %v9770_v39 = vpack.c.b16 %v4671_v40, %v4670_v2  ;;  %v1257_v18 = vadd.f32 %v9535_v49, %v997_v35 }
 0x452   : > { %v4546_v12 = vpop.f32.mrf.mxu3  ;;  %v4733_v61 = vpop.f32.mrf.mxu0 }
 0x453   : > { %7500 = vst [vmem:[%s8329_s28 + $0x288] sm:$0xff] %v7061_v56   ;;  %v9766_v41 = vpop.f32.mrf.mxu1  ;;  %v4547_v23 = vadd.f32 %v4546_v12, %v4457_v32  ;;  %v1512_v32 = vmax.f32 %v1256_v45, 0.0  ;;  %v1513_v12 = vmax.f32 %v1257_v18, 0.0 }
 0x455   : > { %v4805_v31 = vadd.f32 %v4731_v57, %v4547_v23  ;;  %v7401_v57 = vld [vmem:[%s7789_s12 + $0x368] sm:$0xff]   ;;  %v1769_v40 = vpack.c.bf16 %v1513_v12, %v1513_v12 }
 0x456   : > { %v6579_v17 = vunpack.c.l.bf16 %v7401_v57  ;;  %v6580_v35 = vunpack.c.h.bf16 %v7401_v57 }
 0x457   : > { %v4459_v59 = vpop.f32.mrf.mxu2  ;;  %v4837_v60 = vadd.f32 %v9601_v46, %v4805_v31  ;;  %v4673_v45 = vunpack.c.l.b16 %v1769_v40 }
 0x458   : > { %v998_v18 = vmul.f32 %v9524_v34, %v6579_v17 }
 0x45a   : > { %v4548_v16 = vpop.f32.mrf.mxu3  ;;  %v4736_v28 = vpop.f32.mrf.mxu0 }
 0x45b   : > { %v4549_v37 = vadd.f32 %v4548_v16, %v4459_v59  ;;  %v9774_v21 = vpop.f32.mrf.mxu1 }
 0x45c   : > { %4501 = vmatmul.bf16.gmra.mxu2 %v9430_v55 }
 0x45d   : > { %v4806_v56 = vadd.f32 %v4733_v61, %v4549_v37  ;;  %4775 = vmatmul.bf16.gmra.mxu0 %v9770_v39  ;;  %4993 = vmatmul.bf16.gmra.mxu1 %v9770_v39  ;;  %v1768_v61 = vpack.c.bf16 %v1512_v32, %v1512_v32  ;;  %v1258_v32 = vadd.f32 %v9535_v49, %v998_v18 }
 0x45f   : > { %v4838_v58 = vadd.f32 %v9601_v46, %v4806_v56  ;;  %4590 = vmatmul.bf16.gmra.mxu3 %v9426_v38  ;;  %v4462_v3 = vpop.f32.mrf.mxu2  ;;  %v4672_v16 = vunpack.c.l.b16 %v1768_v61  ;;  %v999_v38 = vmul.f32 %v9524_v34, %v6580_v35  ;;  %v1514_v34 = vmax.f32 %v1258_v32, 0.0 }
 0x461   : > { %v7066_v22 = vpack.c.bf16 %v4838_v58, %v4837_v60  ;;  %v9788_v60 = vpack.c.b16 %v4673_v45, %v4672_v16  ;;  %v1259_v12 = vadd.f32 %v9535_v49, %v999_v38  ;;  %v7402_v49 = vld [vmem:[%s7789_s12 + $0x370] sm:$0xff]  }
 0x462   : > { %v4551_v2 = vpop.f32.mrf.mxu3  ;;  %v4738_v23 = vpop.f32.mrf.mxu0  ;;  %v6583_v45 = vunpack.c.l.bf16 %v7402_v49  ;;  %v6584_v18 = vunpack.c.h.bf16 %v7402_v49 }
 0x463   : > { %7501 = vst [vmem:[%s8329_s28 + $0x290] sm:$0xff] %v7066_v22   ;;  %v9784_v59 = vpop.f32.mrf.mxu1  ;;  %v4552_v31 = vadd.f32 %v4551_v2, %v4462_v3  ;;  %v1515_v3 = vmax.f32 %v1259_v12, 0.0 }
 0x464   : > { %10301 = vst [vmem:[#allocation4_spill] sm:$0xff] %v9784_v59 }
 0x465   : > { %v4807_v58 = vadd.f32 %v4736_v28, %v4552_v31  ;;  %v1771_v16 = vpack.c.bf16 %v1515_v3, %v1515_v3  ;;  %v9816_v3 = vld [vmem:[%s10192_s2] ss:$0 sm:$0xff] }
 0x467   : > { %v4464_v37 = vpop.f32.mrf.mxu2  ;;  %v4839_v2 = vadd.f32 %v9601_v46, %v4807_v58 }
 0x46a   : > { %v4553_v56 = vpop.f32.mrf.mxu3  ;;  %v4741_v22 = vpop.f32.mrf.mxu0 }
 0x46b   : > { %v4554_v57 = vadd.f32 %v4553_v56, %v4464_v37  ;;  %v9792_v59 = vpop.f32.mrf.mxu1  ;;  %v4675_v56 = vunpack.c.l.b16 %v1771_v16 }
 0x46c   : > { %4506 = vmatmul.bf16.gmra.mxu2 %v9452_v43 }
 0x46d   : > { %v4808_v61 = vadd.f32 %v4738_v23, %v4554_v57  ;;  %4780 = vmatmul.bf16.gmra.mxu0 %v9788_v60  ;;  %4998 = vmatmul.bf16.gmra.mxu1 %v9788_v60  ;;  %v1770_v23 = vpack.c.bf16 %v1514_v34, %v1514_v34 }
 0x46f   : > { %v4840_v40 = vadd.f32 %v9601_v46, %v4808_v61  ;;  %4595 = vmatmul.bf16.gmra.mxu3 %v9449_v50  ;;  %v4467_v17 = vpop.f32.mrf.mxu2  ;;  %v4674_v37 = vunpack.c.l.b16 %v1770_v23  ;;  %v9807_v50 = vld [vmem:[%s10191_s1] ss:$0 sm:$0xff] }
 0x470   : > { %v1000_v32 = vmul.f32 %v9807_v50, %v6583_v45  ;;  %v1001_v12 = vmul.f32 %v9807_v50, %v6584_v18 }
 0x471   : > { %v7071_v28 = vpack.c.bf16 %v4840_v40, %v4839_v2  ;;  %v9811_v34 = vpack.c.b16 %v4675_v56, %v4674_v37 }
 0x472   : > { %v4556_v35 = vpop.f32.mrf.mxu3  ;;  %v4743_v38 = vpop.f32.mrf.mxu0  ;;  %v1260_v2 = vadd.f32 %v9816_v3, %v1000_v32  ;;  %v1261_v40 = vadd.f32 %v9816_v3, %v1001_v12 }
 0x473   : > { %7502 = vst [vmem:[%s8329_s28 + $0x298] sm:$0xff] %v7071_v28   ;;  %v9802_v31 = vpop.f32.mrf.mxu1  ;;  %v4557_v58 = vadd.f32 %v4556_v35, %v4467_v17 }
 0x474   : > { %10302 = vst [vmem:[#allocation5_spill] sm:$0xff] %v9811_v34  ;;  %v1516_v35 = vmax.f32 %v1260_v2, 0.0  ;;  %v1517_v45 = vmax.f32 %v1261_v40, 0.0 }
 0x475   : > { %v4809_v49 = vadd.f32 %v4741_v22, %v4557_v58  ;;  %v7403_v22 = vld [vmem:[%s7789_s12 + $0x378] sm:$0xff]  }
 0x476   : > { %v1773_v58 = vpack.c.bf16 %v1517_v45, %v1517_v45 }
 0x477   : > { %v4469_v57 = vpop.f32.mrf.mxu2  ;;  %v4841_v18 = vadd.f32 %v9601_v46, %v4809_v49 }
 0x478   : > { %v4677_v49 = vunpack.c.l.b16 %v1773_v58 }
 0x47a   : > { %v4558_v61 = vpop.f32.mrf.mxu3  ;;  %v4746_v23 = vpop.f32.mrf.mxu0 }
 0x47b   : > { %v4559_v28 = vadd.f32 %v4558_v61, %v4469_v57  ;;  %v9820_v16 = vpop.f32.mrf.mxu1  ;;  %v6587_v57 = vunpack.c.l.bf16 %v7403_v22  ;;  %v6588_v61 = vunpack.c.h.bf16 %v7403_v22 }
 0x47c   : > { %10303 = vst [vmem:[#allocation6_spill] sm:$0xff] %v9820_v16  ;;  %4511 = vmatmul.bf16.gmra.mxu2 %v9482_v25 }
 0x47d   : > { %v4810_v17 = vadd.f32 %v4743_v38, %v4559_v28  ;;  %4785 = vmatmul.bf16.gmra.mxu0 %v9811_v34  ;;  %5003 = vmatmul.bf16.gmra.mxu1 %v9811_v34  ;;  %v1772_v38 = vpack.c.bf16 %v1516_v35, %v1516_v35 }
 0x47f   : > { %v4842_v37 = vadd.f32 %v9601_v46, %v4810_v17  ;;  %4600 = vmatmul.bf16.gmra.mxu3 %v9478_v19  ;;  %v4472_v32 = vpop.f32.mrf.mxu2  ;;  %v4676_v40 = vunpack.c.l.b16 %v1772_v38  ;;  %v1002_v17 = vmul.f32 %v9807_v50, %v6587_v57  ;;  %v1003_v19 = vmul.f32 %v9807_v50, %v6588_v61 }
 0x481   : > { %v7076_v56 = vpack.c.bf16 %v4842_v37, %v4841_v18  ;;  %v9834_v18 = vpack.c.b16 %v4677_v49, %v4676_v40  ;;  %v1262_v35 = vadd.f32 %v9816_v3, %v1002_v17  ;;  %v1263_v45 = vadd.f32 %v9816_v3, %v1003_v19 }
 0x482   : > { %v4561_v12 = vpop.f32.mrf.mxu3  ;;  %v4748_v28 = vpop.f32.mrf.mxu0 }
 0x483   : > { %7503 = vst [vmem:[%s8329_s28 + $0x2a0] sm:$0xff] %v7076_v56   ;;  %v9830_v2 = vpop.f32.mrf.mxu1  ;;  %v4562_v16 = vadd.f32 %v4561_v12, %v4472_v32  ;;  %v1518_v32 = vmax.f32 %v1262_v35, 0.0  ;;  %v1519_v12 = vmax.f32 %v1263_v45, 0.0 }
 0x484   : > { %10304 = vst [vmem:[#allocation2_spill] sm:$0xff] %v9830_v2 }
 0x485   : > { %v4811_v37 = vadd.f32 %v4746_v23, %v4562_v16  ;;  %v1774_v61 = vpack.c.bf16 %v1518_v32, %v1518_v32 }
 0x487   : > { %v4474_v34 = vpop.f32.mrf.mxu2  ;;  %v4843_v58 = vadd.f32 %v9601_v46, %v4811_v37  ;;  %v4678_v35 = vunpack.c.l.b16 %v1774_v61 }
 0x48a   : > { %v4563_v25 = vpop.f32.mrf.mxu3  ;;  %v4751_v56 = vpop.f32.mrf.mxu0 }
 0x48b   : > { %v4564_v22 = vadd.f32 %v4563_v25, %v4474_v34  ;;  %v9838_v2 = vpop.f32.mrf.mxu1  ;;  %v7404_v25 = vld [vmem:[%s7789_s12 + $0x380] sm:$0xff]  }
 0x48c   : > { %10305 = vst [vmem:[#allocation7_spill] sm:$0xff] %v9838_v2  ;;  %4516 = vmatmul.bf16.gmra.mxu2 %v9504_v4  ;;  %v6591_v40 = vunpack.c.l.bf16 %v7404_v25  ;;  %v6592_v49 = vunpack.c.h.bf16 %v7404_v25 }
 0x48d   : > { %v4812_v38 = vadd.f32 %v4748_v28, %v4564_v22  ;;  %4790 = vmatmul.bf16.gmra.mxu0 %v9834_v18  ;;  %5008 = vmatmul.bf16.gmra.mxu1 %v9834_v18  ;;  %v1775_v28 = vpack.c.bf16 %v1519_v12, %v1519_v12 }
 0x48e   : > { %v1004_v37 = vmul.f32 %v9807_v50, %v6591_v40 }
 0x48f   : > { %v4844_v57 = vadd.f32 %v9601_v46, %v4812_v38  ;;  %4605 = vmatmul.bf16.gmra.mxu3 %v9501_v62  ;;  %v4477_v23 = vpop.f32.mrf.mxu2  ;;  %v4679_v45 = vunpack.c.l.b16 %v1775_v28  ;;  %v1005_v62 = vmul.f32 %v9807_v50, %v6592_v49 }
 0x490   : > { %v1264_v32 = vadd.f32 %v9816_v3, %v1004_v37 }
 0x491   : > { %v7081_v34 = vpack.c.bf16 %v4844_v57, %v4843_v58  ;;  %v9852_v58 = vpack.c.b16 %v4679_v45, %v4678_v35  ;;  %v1265_v12 = vadd.f32 %v9816_v3, %v1005_v62 }
 0x492   : > { %v4566_v16 = vpop.f32.mrf.mxu3  ;;  %v4753_v17 = vpop.f32.mrf.mxu0 }
 0x493   : > { %7504 = vst [vmem:[%s8329_s28 + $0x2a8] sm:$0xff] %v7081_v34   ;;  %v9848_v19 = vpop.f32.mrf.mxu1  ;;  %v4567_v22 = vadd.f32 %v4566_v16, %v4477_v23  ;;  %v1520_v23 = vmax.f32 %v1264_v32, 0.0  ;;  %v1521_v16 = vmax.f32 %v1265_v12, 0.0 }
 0x494   : > { %10306 = vst [vmem:[#allocation8_spill] sm:$0xff] %v9848_v19 }
 0x495   : > { %v4813_v57 = vadd.f32 %v4751_v56, %v4567_v22  ;;  %v1777_v45 = vpack.c.bf16 %v1521_v16, %v1521_v16 }
 0x497   : > { %v4479_v38 = vpop.f32.mrf.mxu2  ;;  %v4845_v28 = vadd.f32 %v9601_v46, %v4813_v57  ;;  %v5141_v12 = vunpack.c.l.b16 %v1777_v45 }
 0x49a   : > { %v4568_v2 = vpop.f32.mrf.mxu3  ;;  %v4756_v34 = vpop.f32.mrf.mxu0 }
 0x49b   : > { %v4569_v25 = vadd.f32 %v4568_v2, %v4479_v38  ;;  %v9856_v19 = vpop.f32.mrf.mxu1  ;;  %v7405_v2 = vld [vmem:[%s7789_s12 + $0x388] sm:$0xff]  }
 0x49c   : > { %10307 = vst [vmem:[#allocation3_spill] sm:$0xff] %v9856_v19  ;;  %4521 = vmatmul.bf16.gmra.mxu2 %v9539_v6  ;;  %v6595_v37 = vunpack.c.l.bf16 %v7405_v2  ;;  %v6596_v62 = vunpack.c.h.bf16 %v7405_v2 }
 0x49d   : > { %v4814_v61 = vadd.f32 %v4753_v17, %v4569_v25  ;;  %4795 = vmatmul.bf16.gmra.mxu0 %v9852_v58  ;;  %5013 = vmatmul.bf16.gmra.mxu1 %v9852_v58  ;;  %v1776_v17 = vpack.c.bf16 %v1520_v23, %v1520_v23 }
 0x49f   : > { %v4846_v40 = vadd.f32 %v9601_v46, %v4814_v61  ;;  %4610 = vmatmul.bf16.gmra.mxu3 %v9530_v5  ;;  %v4482_v49 = vpop.f32.mrf.mxu2  ;;  %v5140_v32 = vunpack.c.l.b16 %v1776_v17  ;;  %v1006_v46 = vmul.f32 %v9807_v50, %v6595_v37  ;;  %v1007_v5 = vmul.f32 %v9807_v50, %v6596_v62  ;;  %v7406_v62 = vld [vmem:[%s7789_s12 + $0x390] sm:$0xff]  }
 0x4a1   : > { %v7086_v56 = vpack.c.bf16 %v4846_v40, %v4845_v28  ;;  %v5172_v28 = vpack.c.b16 %v5141_v12, %v5140_v32  ;;  %v1266_v40 = vadd.f32 %v9816_v3, %v1006_v46  ;;  %v1267_v23 = vadd.f32 %v9816_v3, %v1007_v5 }
 0x4a2   : > { %v4571_v35 = vpop.f32.mrf.mxu3  ;;  %v4758_v22 = vpop.f32.mrf.mxu0  ;;  %v6599_v5 = vunpack.c.l.bf16 %v7406_v62 }
 0x4a3   : > { %7505 = vst [vmem:[%s8329_s28 + $0x2b0] sm:$0xff] %v7086_v56   ;;  %v9866_v38 = vpop.f32.mrf.mxu1  ;;  %v4572_v57 = vadd.f32 %v4571_v35, %v4482_v49  ;;  %v1522_v45 = vmax.f32 %v1266_v40, 0.0  ;;  %v1523_v49 = vmax.f32 %v1267_v23, 0.0  ;;  %v9878_v35 = vld [vmem:[%s10194_s4] ss:$0 sm:$0xff] }
 0x4a5   : > { %v4815_v16 = vadd.f32 %v4756_v34, %v4572_v57  ;;  %v1778_v12 = vpack.c.bf16 %v1522_v45, %v1522_v45  ;;  %v1779_v46 = vpack.c.bf16 %v1523_v49, %v1523_v49  ;;  %v6600_v57 = vunpack.c.h.bf16 %v7406_v62 }
 0x4a7   : > { %v4484_v25 = vpop.f32.mrf.mxu2  ;;  %v4847_v37 = vadd.f32 %v9878_v35, %v4815_v16  ;;  %v5142_v40 = vunpack.c.l.b16 %v1778_v12  ;;  %v5143_v23 = vunpack.c.l.b16 %v1779_v46  ;;  %v1008_v16 = vmul.f32 %v9807_v50, %v6599_v5 }
 0x4a9   : > { %v1268_v45 = vadd.f32 %v9816_v3, %v1008_v16 }
 0x4aa   : > { %v4573_v61 = vpop.f32.mrf.mxu3  ;;  %v4761_v56 = vpop.f32.mrf.mxu0 }
 0x4ab   : > { %v4574_v2 = vadd.f32 %v4573_v61, %v4484_v25  ;;  %v9872_v19 = vpop.f32.mrf.mxu1  ;;  %v1524_v46 = vmax.f32 %v1268_v45, 0.0 }
 0x4ac   : > { %10308 = vst [vmem:[#allocation10_spill] sm:$0xff] %v9872_v19  ;;  %5027 = vmatmul.bf16.vlgmr.msrb.gmra.mxu2 %v9050_v7 }
 0x4ad   : > { %v4816_v17 = vadd.f32 %v4758_v22, %v4574_v2  ;;  %5430 = vmatmul.bf16.vlgmr.msrb.gmra.mxu0 %v5172_v28  ;;  %5519 = vmatmul.bf16.vlgmr.msrb.gmra.mxu1 %v9556_v51  ;;  %v1780_v16 = vpack.c.bf16 %v1524_v46, %v1524_v46 }
 0x4af   : > { %v4848_v34 = vadd.f32 %v9878_v35, %v4816_v17  ;;  %5212 = vmatmul.bf16.vlgmr.msrb.gmra.mxu3 %v5172_v28  ;;  %v4487_v32 = vpop.f32.mrf.mxu2  ;;  %v1009_v28 = vmul.f32 %v9807_v50, %v6600_v57  ;;  %v7407_v57 = vld [vmem:[%s7789_s12 + $0x398] sm:$0xff]  }
 0x4b1   : > { %v7091_v22 = vpack.c.bf16 %v4848_v34, %v4847_v37  ;;  %v5173_v37 = vpack.c.b16 %v5143_v23, %v5142_v40  ;;  %v1269_v49 = vadd.f32 %v9816_v3, %v1009_v28 }
 0x4b2   : > { %v4576_v7 = vpop.f32.mrf.mxu3  ;;  %v4763_v25 = vpop.f32.mrf.mxu0 }
 0x4b3   : > { %7506 = vst [vmem:[%s8329_s28 + $0x2b8] sm:$0xff] %v7091_v22   ;;  %v9885_v61 = vpop.f32.mrf.mxu1  ;;  %v4577_v2 = vadd.f32 %v4576_v7, %v4487_v32  ;;  %v1525_v32 = vmax.f32 %v1269_v49, 0.0 }
 0x4b5   : > { %v4817_v34 = vadd.f32 %v4761_v56, %v4577_v2  ;;  %v1781_v28 = vpack.c.bf16 %v1525_v32, %v1525_v32  ;;  %v6604_v2 = vunpack.c.h.bf16 %v7407_v57 }
 0x4b7   : > { %v4489_v51 = vpop.f32.mrf.mxu2  ;;  %v4849_v7 = vadd.f32 %v9878_v35, %v4817_v34  ;;  %v5145_v45 = vunpack.c.l.b16 %v1781_v28 }
 0x4ba   : > { %v4578_v17 = vpop.f32.mrf.mxu3  ;;  %v4766_v22 = vpop.f32.mrf.mxu0 }
 0x4bb   : > { %v4579_v62 = vadd.f32 %v4578_v17, %v4489_v51  ;;  %v9891_v19 = vpop.f32.mrf.mxu1  ;;  %v5144_v17 = vunpack.c.l.b16 %v1780_v16 }
 0x4bc   : > { %5032 = vmatmul.bf16.gmra.mxu2 %v9104_v47 }
 0x4bd   : > { %v4818_v12 = vadd.f32 %v4763_v25, %v4579_v62  ;;  %5435 = vmatmul.bf16.gmra.mxu0 %v5173_v37  ;;  %5524 = vmatmul.bf16.gmra.mxu1 %v9575_v54  ;;  %v6603_v25 = vunpack.c.l.bf16 %v7407_v57 }
 0x4bf   : > { %v4850_v5 = vadd.f32 %v9878_v35, %v4818_v12  ;;  %5217 = vmatmul.bf16.gmra.mxu3 %v5173_v37  ;;  %v4492_v40 = vpop.f32.mrf.mxu2  ;;  %v1010_v49 = vmul.f32 %v9807_v50, %v6603_v25  ;;  %v1011_v37 = vmul.f32 %v9807_v50, %v6604_v2  ;;  %v5174_v12 = vpack.c.b16 %v5145_v45, %v5144_v17  ;;  %v7408_v2 = vld [vmem:[%s7789_s12 + $0x3a0] sm:$0xff]  }
 0x4c1   : > { %v7096_v56 = vpack.c.bf16 %v4850_v5, %v4849_v7  ;;  %v1270_v46 = vadd.f32 %v9816_v3, %v1010_v49  ;;  %v1271_v32 = vadd.f32 %v9816_v3, %v1011_v37 }
 0x4c2   : > { %v4581_v23 = vpop.f32.mrf.mxu3  ;;  %v4768_v47 = vpop.f32.mrf.mxu0 }
 0x4c3   : > { %7507 = vst [vmem:[%s8329_s28 + $0x2c0] sm:$0xff] %v7096_v56   ;;  %v9899_v51 = vpop.f32.mrf.mxu1  ;;  %v4582_v34 = vadd.f32 %v4581_v23, %v4492_v40  ;;  %v1526_v28 = vmax.f32 %v1270_v46, 0.0  ;;  %v1527_v40 = vmax.f32 %v1271_v32, 0.0 }
 0x4c5   : > { %v4819_v7 = vadd.f32 %v4766_v22, %v4582_v34  ;;  %v1782_v49 = vpack.c.bf16 %v1526_v28, %v1526_v28  ;;  %v1783_v37 = vpack.c.bf16 %v1527_v40, %v1527_v40  ;;  %v6608_v34 = vunpack.c.h.bf16 %v7408_v2 }
 0x4c7   : > { %v4494_v54 = vpop.f32.mrf.mxu2  ;;  %v4851_v23 = vadd.f32 %v9878_v35, %v4819_v7  ;;  %v5147_v46 = vunpack.c.l.b16 %v1783_v37 }
 0x4ca   : > { %v4583_v62 = vpop.f32.mrf.mxu3  ;;  %v4771_v57 = vpop.f32.mrf.mxu0 }
 0x4cb   : > { %v4584_v5 = vadd.f32 %v4583_v62, %v4494_v54  ;;  %v9905_v56 = vpop.f32.mrf.mxu1  ;;  %v5146_v62 = vunpack.c.l.b16 %v1782_v49 }
 0x4cc   : > { %5037 = vmatmul.bf16.gmra.mxu2 %v10284_v33 }
 0x4cd   : > { %v4820_v16 = vadd.f32 %v4768_v47, %v4584_v5  ;;  %5440 = vmatmul.bf16.gmra.mxu0 %v5174_v12  ;;  %5529 = vmatmul.bf16.gmra.mxu1 %v9594_v20  ;;  %v6607_v47 = vunpack.c.l.bf16 %v7408_v2 }
 0x4cf   : > { %v4852_v25 = vadd.f32 %v9878_v35, %v4820_v16  ;;  %5222 = vmatmul.bf16.gmra.mxu3 %v5174_v12  ;;  %v4497_v17 = vpop.f32.mrf.mxu2  ;;  %v1012_v32 = vmul.f32 %v9807_v50, %v6607_v47  ;;  %v1013_v12 = vmul.f32 %v9807_v50, %v6608_v34  ;;  %v5175_v16 = vpack.c.b16 %v5147_v46, %v5146_v62  ;;  %v7409_v34 = vld [vmem:[%s7789_s12 + $0x3a8] sm:$0xff]  }
 0x4d1   : > { %v7101_v22 = vpack.c.bf16 %v4852_v25, %v4851_v23  ;;  %v1272_v28 = vadd.f32 %v9816_v3, %v1012_v32  ;;  %v1273_v40 = vadd.f32 %v9816_v3, %v1013_v12 }
 0x4d2   : > { %v4586_v45 = vpop.f32.mrf.mxu3  ;;  %v4773_v33 = vpop.f32.mrf.mxu0 }
 0x4d3   : > { %7508 = vst [vmem:[%s8329_s28 + $0x2c8] sm:$0xff] %v7101_v22   ;;  %v9913_v54 = vpop.f32.mrf.mxu1  ;;  %v4587_v7 = vadd.f32 %v4586_v45, %v4497_v17  ;;  %v1528_v37 = vmax.f32 %v1272_v28, 0.0  ;;  %v1529_v17 = vmax.f32 %v1273_v40, 0.0 }
 0x4d5   : > { %v4821_v23 = vadd.f32 %v4771_v57, %v4587_v7  ;;  %v1784_v32 = vpack.c.bf16 %v1528_v37, %v1528_v37  ;;  %v1785_v12 = vpack.c.bf16 %v1529_v17, %v1529_v17  ;;  %v6612_v7 = vunpack.c.h.bf16 %v7409_v34 }
 0x4d7   : > { %v4499_v20 = vpop.f32.mrf.mxu2  ;;  %v4853_v45 = vadd.f32 %v9878_v35, %v4821_v23  ;;  %v5149_v28 = vunpack.c.l.b16 %v1785_v12 }
 0x4da   : > { %v4588_v5 = vpop.f32.mrf.mxu3  ;;  %v4776_v2 = vpop.f32.mrf.mxu0 }
 0x4db   : > { %v4589_v25 = vadd.f32 %v4588_v5, %v4499_v20  ;;  %v9919_v22 = vpop.f32.mrf.mxu1  ;;  %v5148_v5 = vunpack.c.l.b16 %v1784_v32 }
 0x4dc   : > { %5042 = vmatmul.bf16.gmra.mxu2 %v9203_v26 }
 0x4dd   : > { %v4822_v49 = vadd.f32 %v4773_v33, %v4589_v25  ;;  %5445 = vmatmul.bf16.gmra.mxu0 %v5175_v16  ;;  %5534 = vmatmul.bf16.gmra.mxu1 %v9618_v63  ;;  %v6611_v33 = vunpack.c.l.bf16 %v7409_v34 }
 0x4df   : > { %v4854_v47 = vadd.f32 %v9878_v35, %v4822_v49  ;;  %5227 = vmatmul.bf16.gmra.mxu3 %v5175_v16  ;;  %v4502_v62 = vpop.f32.mrf.mxu2  ;;  %v1014_v40 = vmul.f32 %v9807_v50, %v6611_v33  ;;  %v1015_v16 = vmul.f32 %v9807_v50, %v6612_v7  ;;  %v5176_v49 = vpack.c.b16 %v5149_v28, %v5148_v5  ;;  %v7410_v7 = vld [vmem:[%s7789_s12 + $0x3b0] sm:$0xff]  }
 0x4e1   : > { %v7106_v57 = vpack.c.bf16 %v4854_v47, %v4853_v45  ;;  %v1274_v37 = vadd.f32 %v9816_v3, %v1014_v40  ;;  %v1275_v17 = vadd.f32 %v9816_v3, %v1015_v16 }
 0x4e2   : > { %v4591_v46 = vpop.f32.mrf.mxu3  ;;  %v4778_v26 = vpop.f32.mrf.mxu0 }
 0x4e3   : > { %7509 = vst [vmem:[%s8329_s28 + $0x2d0] sm:$0xff] %v7106_v57   ;;  %v9927_v20 = vpop.f32.mrf.mxu1  ;;  %v4592_v23 = vadd.f32 %v4591_v46, %v4502_v62  ;;  %v1530_v12 = vmax.f32 %v1274_v37, 0.0  ;;  %v1531_v62 = vmax.f32 %v1275_v17, 0.0 }
 0x4e5   : > { %v4823_v45 = vadd.f32 %v4776_v2, %v4592_v23  ;;  %v1786_v40 = vpack.c.bf16 %v1530_v12, %v1530_v12  ;;  %v1787_v16 = vpack.c.bf16 %v1531_v62, %v1531_v62  ;;  %v6616_v23 = vunpack.c.h.bf16 %v7410_v7 }
 0x4e7   : > { %v4504_v63 = vpop.f32.mrf.mxu2  ;;  %v4855_v46 = vadd.f32 %v9878_v35, %v4823_v45  ;;  %v5151_v37 = vunpack.c.l.b16 %v1787_v16 }
 0x4ea   : > { %v4593_v25 = vpop.f32.mrf.mxu3  ;;  %v4781_v34 = vpop.f32.mrf.mxu0 }
 0x4eb   : > { %v4594_v47 = vadd.f32 %v4593_v25, %v4504_v63  ;;  %v9933_v57 = vpop.f32.mrf.mxu1  ;;  %v5150_v25 = vunpack.c.l.b16 %v1786_v40 }
 0x4ec   : > { %5047 = vmatmul.bf16.gmra.mxu2 %v9230_v29 }
 0x4ed   : > { %v4824_v32 = vadd.f32 %v4778_v26, %v4594_v47  ;;  %5450 = vmatmul.bf16.gmra.mxu0 %v5176_v49  ;;  %5539 = vmatmul.bf16.gmra.mxu1 %v9637_v14  ;;  %v6615_v26 = vunpack.c.l.bf16 %v7410_v7 }
 0x4ef   : > { %v4856_v33 = vadd.f32 %v9878_v35, %v4824_v32  ;;  %5232 = vmatmul.bf16.gmra.mxu3 %v5176_v49  ;;  %v4507_v5 = vpop.f32.mrf.mxu2  ;;  %v1016_v17 = vmul.f32 %v9807_v50, %v6615_v26  ;;  %v1017_v49 = vmul.f32 %v9807_v50, %v6616_v23  ;;  %v5177_v32 = vpack.c.b16 %v5151_v37, %v5150_v25  ;;  %v7411_v23 = vld [vmem:[%s7789_s12 + $0x3b8] sm:$0xff]  }
 0x4f1   : > { %v7111_v2 = vpack.c.bf16 %v4856_v33, %v4855_v46  ;;  %v1276_v12 = vadd.f32 %v9816_v3, %v1016_v17  ;;  %v1277_v62 = vadd.f32 %v9816_v3, %v1017_v49 }
 0x4f2   : > { %v4596_v28 = vpop.f32.mrf.mxu3  ;;  %v4783_v29 = vpop.f32.mrf.mxu0 }
 0x4f3   : > { %7510 = vst [vmem:[%s8329_s28 + $0x2d8] sm:$0xff] %v7111_v2   ;;  %v9941_v63 = vpop.f32.mrf.mxu1  ;;  %v4597_v45 = vadd.f32 %v4596_v28, %v4507_v5  ;;  %v1532_v16 = vmax.f32 %v1276_v12, 0.0  ;;  %v1533_v5 = vmax.f32 %v1277_v62, 0.0 }
 0x4f5   : > { %v4825_v46 = vadd.f32 %v4781_v34, %v4597_v45  ;;  %v1788_v17 = vpack.c.bf16 %v1532_v16, %v1532_v16  ;;  %v1789_v49 = vpack.c.bf16 %v1533_v5, %v1533_v5  ;;  %v6620_v45 = vunpack.c.h.bf16 %v7411_v23 }
 0x4f7   : > { %v4509_v14 = vpop.f32.mrf.mxu2  ;;  %v4857_v28 = vadd.f32 %v9878_v35, %v4825_v46  ;;  %v5153_v12 = vunpack.c.l.b16 %v1789_v49 }
 0x4fa   : > { %v4598_v47 = vpop.f32.mrf.mxu3  ;;  %v4786_v7 = vpop.f32.mrf.mxu0 }
 0x4fb   : > { %v4599_v33 = vadd.f32 %v4598_v47, %v4509_v14  ;;  %v9947_v2 = vpop.f32.mrf.mxu1  ;;  %v5152_v47 = vunpack.c.l.b16 %v1788_v17 }
 0x4fc   : > { %5052 = vmatmul.bf16.gmra.mxu2 %v10290_v53 }
 0x4fd   : > { %v4826_v40 = vadd.f32 %v4783_v29, %v4599_v33  ;;  %5455 = vmatmul.bf16.gmra.mxu0 %v5177_v32  ;;  %5544 = vmatmul.bf16.gmra.mxu1 %v9656_v36  ;;  %v6619_v29 = vunpack.c.l.bf16 %v7411_v23 }
 0x4ff   : > { %v4858_v26 = vadd.f32 %v9878_v35, %v4826_v40  ;;  %5237 = vmatmul.bf16.gmra.mxu3 %v5177_v32  ;;  %v4512_v25 = vpop.f32.mrf.mxu2  ;;  %v1018_v62 = vmul.f32 %v9807_v50, %v6619_v29  ;;  %v1019_v32 = vmul.f32 %v9807_v50, %v6620_v45  ;;  %v5178_v40 = vpack.c.b16 %v5153_v12, %v5152_v47  ;;  %v7412_v45 = vld [vmem:[%s7789_s12 + $0x3c0] sm:$0xff]  }
 0x501   : > { %v7116_v34 = vpack.c.bf16 %v4858_v26, %v4857_v28  ;;  %v1278_v16 = vadd.f32 %v9816_v3, %v1018_v62  ;;  %v1279_v5 = vadd.f32 %v9816_v3, %v1019_v32 }
 0x502   : > { %v4601_v37 = vpop.f32.mrf.mxu3  ;;  %v4788_v53 = vpop.f32.mrf.mxu0 }
 0x503   : > { %7511 = vst [vmem:[%s8329_s28 + $0x2e0] sm:$0xff] %v7116_v34   ;;  %v9955_v14 = vpop.f32.mrf.mxu1  ;;  %v4602_v46 = vadd.f32 %v4601_v37, %v4512_v25  ;;  %v1534_v49 = vmax.f32 %v1278_v16, 0.0  ;;  %v1535_v25 = vmax.f32 %v1279_v5, 0.0 }
 0x505   : > { %v4827_v28 = vadd.f32 %v4786_v7, %v4602_v46  ;;  %v1790_v62 = vpack.c.bf16 %v1534_v49, %v1534_v49  ;;  %v1791_v32 = vpack.c.bf16 %v1535_v25, %v1535_v25  ;;  %v6624_v46 = vunpack.c.h.bf16 %v7412_v45 }
 0x507   : > { %v4514_v36 = vpop.f32.mrf.mxu2  ;;  %v4859_v37 = vadd.f32 %v9878_v35, %v4827_v28  ;;  %v5155_v16 = vunpack.c.l.b16 %v1791_v32 }
 0x50a   : > { %v4603_v33 = vpop.f32.mrf.mxu3  ;;  %v4791_v23 = vpop.f32.mrf.mxu0 }
 0x50b   : > { %v4604_v26 = vadd.f32 %v4603_v33, %v4514_v36  ;;  %v9961_v34 = vpop.f32.mrf.mxu1  ;;  %v5154_v33 = vunpack.c.l.b16 %v1790_v62 }
 0x50c   : > { %5057 = vmatmul.bf16.gmra.mxu2 %v9294_v27 }
 0x50d   : > { %v4828_v17 = vadd.f32 %v4788_v53, %v4604_v26  ;;  %5460 = vmatmul.bf16.gmra.mxu0 %v5178_v40  ;;  %5549 = vmatmul.bf16.gmra.mxu1 %v9675_v48  ;;  %v6623_v53 = vunpack.c.l.bf16 %v7412_v45 }
 0x50f   : > { %v4860_v29 = vadd.f32 %v9878_v35, %v4828_v17  ;;  %5242 = vmatmul.bf16.gmra.mxu3 %v5178_v40  ;;  %v4517_v47 = vpop.f32.mrf.mxu2  ;;  %v1020_v5 = vmul.f32 %v9807_v50, %v6623_v53  ;;  %v1021_v40 = vmul.f32 %v9807_v50, %v6624_v46  ;;  %v5179_v17 = vpack.c.b16 %v5155_v16, %v5154_v33  ;;  %v7413_v46 = vld [vmem:[%s7789_s12 + $0x3c8] sm:$0xff]  }
 0x511   : > { %v7121_v7 = vpack.c.bf16 %v4860_v29, %v4859_v37  ;;  %v1280_v49 = vadd.f32 %v9816_v3, %v1020_v5  ;;  %v1281_v25 = vadd.f32 %v9816_v3, %v1021_v40 }
 0x512   : > { %v4606_v12 = vpop.f32.mrf.mxu3  ;;  %v4793_v27 = vpop.f32.mrf.mxu0 }
 0x513   : > { %7512 = vst [vmem:[%s8329_s28 + $0x2e8] sm:$0xff] %v7121_v7   ;;  %v9969_v36 = vpop.f32.mrf.mxu1  ;;  %v4607_v28 = vadd.f32 %v4606_v12, %v4517_v47  ;;  %v1536_v32 = vmax.f32 %v1280_v49, 0.0  ;;  %v1537_v47 = vmax.f32 %v1281_v25, 0.0 }
 0x515   : > { %v4829_v37 = vadd.f32 %v4791_v23, %v4607_v28  ;;  %v1792_v5 = vpack.c.bf16 %v1536_v32, %v1536_v32  ;;  %v1793_v40 = vpack.c.bf16 %v1537_v47, %v1537_v47  ;;  %v6628_v28 = vunpack.c.h.bf16 %v7413_v46 }
 0x517   : > { %v4519_v48 = vpop.f32.mrf.mxu2  ;;  %v4861_v12 = vadd.f32 %v9878_v35, %v4829_v37  ;;  %v5157_v49 = vunpack.c.l.b16 %v1793_v40 }
 0x51a   : > { %v4608_v26 = vpop.f32.mrf.mxu3  ;;  %v4796_v45 = vpop.f32.mrf.mxu0 }
 0x51b   : > { %v4609_v29 = vadd.f32 %v4608_v26, %v4519_v48  ;;  %v9975_v7 = vpop.f32.mrf.mxu1  ;;  %v5156_v26 = vunpack.c.l.b16 %v1792_v5 }
 0x51c   : > { %5062 = vmatmul.bf16.gmra.mxu2 %v10295_v1 }
 0x51d   : > { %v4830_v62 = vadd.f32 %v4793_v27, %v4609_v29  ;;  %5465 = vmatmul.bf16.gmra.mxu0 %v5179_v17  ;;  %5554 = vmatmul.bf16.gmra.mxu1 %v9694_v24  ;;  %v6627_v27 = vunpack.c.l.bf16 %v7413_v46 }
 0x51f   : > { %v4862_v53 = vadd.f32 %v9878_v35, %v4830_v62  ;;  %5247 = vmatmul.bf16.gmra.mxu3 %v5179_v17  ;;  %v4522_v33 = vpop.f32.mrf.mxu2  ;;  %v1022_v25 = vmul.f32 %v9807_v50, %v6627_v27  ;;  %v1023_v17 = vmul.f32 %v9807_v50, %v6628_v28  ;;  %v5180_v62 = vpack.c.b16 %v5157_v49, %v5156_v26  ;;  %v7414_v27 = vld [vmem:[%s7789_s12 + $0x3d0] sm:$0xff]  }
 0x520   : > { %v6631_v49 = vunpack.c.l.bf16 %v7414_v27 }
 0x521   : > { %v7126_v23 = vpack.c.bf16 %v4862_v53, %v4861_v12  ;;  %v1282_v32 = vadd.f32 %v9816_v3, %v1022_v25  ;;  %v1283_v47 = vadd.f32 %v9816_v3, %v1023_v17  ;;  %v6632_v25 = vunpack.c.h.bf16 %v7414_v27 }
 0x522   : > { %v4611_v16 = vpop.f32.mrf.mxu3  ;;  %v4798_v1 = vpop.f32.mrf.mxu0 }
 0x523   : > { %7513 = vst [vmem:[%s8329_s28 + $0x2f0] sm:$0xff] %v7126_v23   ;;  %v9983_v48 = vpop.f32.mrf.mxu1  ;;  %v4612_v24 = vadd.f32 %v4611_v16, %v4522_v33  ;;  %v1538_v5 = vmax.f32 %v1282_v32, 0.0  ;;  %v1539_v40 = vmax.f32 %v1283_v47, 0.0 }
 0x524   : > { %10309 = vst [vmem:[#allocation9_spill] sm:$0xff] %v9983_v48 }
 0x525   : > { %v4831_v12 = vadd.f32 %v4796_v45, %v4612_v24  ;;  %v1794_v17 = vpack.c.bf16 %v1538_v5, %v1538_v5 }
 0x527   : > { %v4524_v37 = vpop.f32.mrf.mxu2  ;;  %v4863_v33 = vadd.f32 %v9878_v35, %v4831_v12  ;;  %v5158_v47 = vunpack.c.l.b16 %v1794_v17 }
 0x52a   : > { %v4613_v29 = vpop.f32.mrf.mxu3  ;;  %v5431_v46 = vpop.f32.mrf.mxu0 }
 0x52b   : > { %v4614_v53 = vadd.f32 %v4613_v29, %v4524_v37  ;;  %v5520_v23 = vpop.f32.mrf.mxu1 }
 0x52c   : > { %5067 = vmatmul.bf16.gmra.mxu2 %v10299_v10  ;;  %v5521_v45 = vadd.f32 %v5520_v23, %v5431_v46  ;;  %v1795_v10 = vpack.c.bf16 %v1539_v40, %v1539_v40 }
 0x52d   : > { %v4832_v48 = vadd.f32 %v4798_v1, %v4614_v53  ;;  %5470 = vmatmul.bf16.gmra.mxu0 %v5180_v62  ;;  %5559 = vmatmul.bf16.gmra.mxu1 %v9713_v42 }
 0x52e   : > { %v5600_v29 = vadd.f32 %v9878_v35, %v5521_v45  ;;  %v5159_v12 = vunpack.c.l.b16 %v1795_v10 }
 0x52f   : > { %v4864_v16 = vadd.f32 %v9878_v35, %v4832_v48  ;;  %5252 = vmatmul.bf16.gmra.mxu3 %v5180_v62  ;;  %v5028_v26 = vpop.f32.mrf.mxu2  ;;  %v1024_v48 = vmul.f32 %v9807_v50, %v6631_v49  ;;  %v1025_v62 = vmul.f32 %v9807_v50, %v6632_v25 }
 0x530   : > { %v5029_v42 = vadd.f32 %v5028_v26, %v9719_v52 }
 0x531   : > { %v7131_v28 = vpack.c.bf16 %v4864_v16, %v4863_v33  ;;  %v1284_v5 = vadd.f32 %v9816_v3, %v1024_v48  ;;  %v1285_v40 = vadd.f32 %v9816_v3, %v1025_v62 }
 0x532   : > { %v5213_v1 = vpop.f32.mrf.mxu3  ;;  %v5433_v24 = vpop.f32.mrf.mxu0 }
 0x533   : > { %7514 = vst [vmem:[%s8329_s28 + $0x2f8] sm:$0xff] %v7131_v28   ;;  %v5522_v37 = vpop.f32.mrf.mxu1  ;;  %v5293_v27 = vadd.f32 %v5213_v1, %v5029_v42  ;;  %v5181_v28 = vpack.c.b16 %v5159_v12, %v5158_v47  ;;  %v1540_v26 = vmax.f32 %v1284_v5, 0.0  ;;  %v1541_v25 = vmax.f32 %v1285_v40, 0.0 }
 0x534   : > { %v5523_v32 = vadd.f32 %v5522_v37, %v5433_v24 }
 0x535   : > { %v5325_v17 = vadd.f32 %v9878_v35, %v5293_v27 }
 0x536   : > { %v5601_v53 = vadd.f32 %v9878_v35, %v5523_v32  ;;  %v1797_v32 = vpack.c.bf16 %v1541_v25, %v1541_v25 }
 0x537   : > { %v5030_v23 = vpop.f32.mrf.mxu2 }
 0x538   : > { %v7216_v46 = vpack.c.bf16 %v5601_v53, %v5600_v29  ;;  %v5031_v33 = vadd.f32 %v5030_v23, %v9730_v0  ;;  %v7415_v0 = vld [vmem:[%s7789_s12 + $0x3d8] sm:$0xff]   ;;  %v1796_v29 = vpack.c.bf16 %v1540_v26, %v1540_v26  ;;  %v5161_v23 = vunpack.c.l.b16 %v1797_v32 }
 0x539   : > { %v6635_v62 = vunpack.c.l.bf16 %v7415_v0  ;;  %v6636_v42 = vunpack.c.h.bf16 %v7415_v0 }
 0x53a   : > { %v5215_v16 = vpop.f32.mrf.mxu3  ;;  %7531 = vst [vmem:[%s8329_s28 + $0x380] sm:$0xff] %v7216_v46   ;;  %v5436_v45 = vpop.f32.mrf.mxu0  ;;  %v5160_v46 = vunpack.c.l.b16 %v1796_v29 }
 0x53b   : > { %v5294_v49 = vadd.f32 %v5215_v16, %v5031_v33  ;;  %v5525_v52 = vpop.f32.mrf.mxu1  ;;  %v1026_v5 = vmul.f32 %v9807_v50, %v6635_v62  ;;  %v1027_v40 = vmul.f32 %v9807_v50, %v6636_v42 }
 0x53c   : > { %5072 = vmatmul.bf16.gmra.mxu2 %v9378_v15  ;;  %v5526_v24 = vadd.f32 %v5525_v52, %v5436_v45 }
 0x53d   : > { %v5326_v10 = vadd.f32 %v9878_v35, %v5294_v49  ;;  %5475 = vmatmul.bf16.gmra.mxu0 %v5181_v28  ;;  %5564 = vmatmul.bf16.gmra.mxu1 %v9734_v9  ;;  %v1286_v26 = vadd.f32 %v9816_v3, %v1026_v5  ;;  %v1287_v25 = vadd.f32 %v9816_v3, %v1027_v40 }
 0x53e   : > { %v5602_v53 = vadd.f32 %v9878_v35, %v5526_v24 }
 0x53f   : > { %5257 = vmatmul.bf16.gmra.mxu3 %v5181_v28  ;;  %v7136_v1 = vpack.c.bf16 %v5326_v10, %v5325_v17  ;;  %v5033_v37 = vpop.f32.mrf.mxu2  ;;  %v5182_v28 = vpack.c.b16 %v5161_v23, %v5160_v46  ;;  %v1542_v24 = vmax.f32 %v1286_v26, 0.0 }
 0x540   : > { %v5034_v9 = vadd.f32 %v5033_v37, %v9738_v30  ;;  %v1543_v37 = vmax.f32 %v1287_v25, 0.0 }
 0x541   : > { %7515 = vst [vmem:[%s8329_s28 + $0x300] sm:$0xff] %v7136_v1  }
 0x542   : > { %v5218_v48 = vpop.f32.mrf.mxu3  ;;  %v5438_v47 = vpop.f32.mrf.mxu0 }
 0x543   : > { %v5527_v12 = vpop.f32.mrf.mxu1  ;;  %v5295_v45 = vadd.f32 %v5218_v48, %v5034_v9 }
 0x544   : > { %v5528_v15 = vadd.f32 %v5527_v12, %v5438_v47  ;;  %v1798_v12 = vpack.c.bf16 %v1542_v24, %v1542_v24 }
 0x545   : > { %v5327_v0 = vadd.f32 %v9878_v35, %v5295_v45 }
 0x546   : > { %v5603_v27 = vadd.f32 %v9878_v35, %v5528_v15  ;;  %v5162_v40 = vunpack.c.l.b16 %v1798_v12 }
 0x547   : > { %v5035_v16 = vpop.f32.mrf.mxu2 }
 0x548   : > { %v7221_v33 = vpack.c.bf16 %v5603_v27, %v5602_v53  ;;  %v5036_v49 = vadd.f32 %v5035_v16, %v9748_v44  ;;  %v7416_v44 = vld [vmem:[%s7789_s12 + $0x3e0] sm:$0xff]   ;;  %v1799_v53 = vpack.c.bf16 %v1543_v37, %v1543_v37 }
 0x549   : > { %v6639_v62 = vunpack.c.l.bf16 %v7416_v44  ;;  %v6640_v42 = vunpack.c.h.bf16 %v7416_v44 }
 0x54a   : > { %v5220_v52 = vpop.f32.mrf.mxu3  ;;  %7532 = vst [vmem:[%s8329_s28 + $0x388] sm:$0xff] %v7221_v33   ;;  %v5441_v30 = vpop.f32.mrf.mxu0  ;;  %v5163_v27 = vunpack.c.l.b16 %v1799_v53 }
 0x54b   : > { %v5296_v17 = vadd.f32 %v5220_v52, %v5036_v49  ;;  %v5530_v10 = vpop.f32.mrf.mxu1  ;;  %v1028_v9 = vmul.f32 %v9807_v50, %v6639_v62  ;;  %v1029_v5 = vmul.f32 %v9807_v50, %v6640_v42 }
 0x54c   : > { %5077 = vmatmul.bf16.gmra.mxu2 %v9400_v13  ;;  %v5531_v32 = vadd.f32 %v5530_v10, %v5441_v30  ;;  %v5183_v30 = vpack.c.b16 %v5163_v27, %v5162_v40 }
 0x54d   : > { %v5328_v1 = vadd.f32 %v9878_v35, %v5296_v17  ;;  %5480 = vmatmul.bf16.gmra.mxu0 %v5182_v28  ;;  %5569 = vmatmul.bf16.gmra.mxu1 %v9752_v11  ;;  %v1288_v45 = vadd.f32 %v9816_v3, %v1028_v9  ;;  %v1289_v49 = vadd.f32 %v9816_v3, %v1029_v5 }
 0x54e   : > { %v5604_v13 = vadd.f32 %v9878_v35, %v5531_v32 }
 0x54f   : > { %5262 = vmatmul.bf16.gmra.mxu3 %v5182_v28  ;;  %v7141_v29 = vpack.c.bf16 %v5328_v1, %v5327_v0  ;;  %v5038_v48 = vpop.f32.mrf.mxu2  ;;  %v1544_v10 = vmax.f32 %v1288_v45, 0.0  ;;  %v1545_v0 = vmax.f32 %v1289_v49, 0.0 }
 0x550   : > { %v5039_v11 = vadd.f32 %v5038_v48, %v9756_v8 }
 0x551   : > { %7516 = vst [vmem:[%s8329_s28 + $0x308] sm:$0xff] %v7141_v29   ;;  %v1800_v29 = vpack.c.bf16 %v1544_v10, %v1544_v10  ;;  %v1801_v32 = vpack.c.bf16 %v1545_v0, %v1545_v0  ;;  %v7418_v0 = vld [vmem:[%s7789_s12 + $0x3f0] sm:$0xff]  }
 0x552   : > { %v5223_v47 = vpop.f32.mrf.mxu3  ;;  %v5443_v15 = vpop.f32.mrf.mxu0 }
 0x553   : > { %v5532_v46 = vpop.f32.mrf.mxu1  ;;  %v5297_v52 = vadd.f32 %v5223_v47, %v5039_v11 }
 0x554   : > { %v5533_v23 = vadd.f32 %v5532_v46, %v5443_v15  ;;  %v5165_v46 = vunpack.c.l.b16 %v1801_v32 }
 0x555   : > { %v5329_v1 = vadd.f32 %v9878_v35, %v5297_v52 }
 0x556   : > { %v5605_v33 = vadd.f32 %v9878_v35, %v5533_v23 }
 0x557   : > { %v5040_v28 = vpop.f32.mrf.mxu2 }
 0x558   : > { %v7226_v16 = vpack.c.bf16 %v5605_v33, %v5604_v13  ;;  %v5041_v26 = vadd.f32 %v5040_v28, %v9766_v41  ;;  %v7417_v41 = vld [vmem:[%s7789_s12 + $0x3e8] sm:$0xff]   ;;  %v10045_v13 = vld [vmem:[%s10191_s1] ss:$0 sm:$0xff] }
 0x559   : > { %v6643_v62 = vunpack.c.l.bf16 %v7417_v41  ;;  %v6644_v42 = vunpack.c.h.bf16 %v7417_v41 }
 0x55a   : > { %v5225_v25 = vpop.f32.mrf.mxu3  ;;  %7533 = vst [vmem:[%s8329_s28 + $0x390] sm:$0xff] %v7226_v16   ;;  %v5446_v50 = vpop.f32.mrf.mxu0  ;;  %v10310_v16 = vld [vmem:[#allocation4_spill] sm:$0xff] }
 0x55b   : > { %v5298_v17 = vadd.f32 %v5225_v25, %v5041_v26  ;;  %v5535_v8 = vpop.f32.mrf.mxu1  ;;  %v1030_v23 = vmul.f32 %v10045_v13, %v6643_v62  ;;  %v1031_v9 = vmul.f32 %v10045_v13, %v6644_v42 }
 0x55c   : > { %5082 = vmatmul.bf16.gmra.mxu2 %v9430_v55  ;;  %v5536_v37 = vadd.f32 %v5535_v8, %v5446_v50  ;;  %v5164_v55 = vunpack.c.l.b16 %v1800_v29 }
 0x55d   : > { %v5330_v24 = vadd.f32 %v9878_v35, %v5298_v17  ;;  %5485 = vmatmul.bf16.gmra.mxu0 %v5183_v30  ;;  %5574 = vmatmul.bf16.gmra.mxu1 %v9770_v39 }
 0x55e   : > { %v5606_v53 = vadd.f32 %v9878_v35, %v5536_v37  ;;  %v5184_v27 = vpack.c.b16 %v5165_v46, %v5164_v55  ;;  %v6648_v37 = vunpack.c.h.bf16 %v7418_v0 }
 0x55f   : > { %5267 = vmatmul.bf16.gmra.mxu3 %v5183_v30  ;;  %v7146_v3 = vpack.c.bf16 %v5330_v24, %v5329_v1  ;;  %v5043_v44 = vpop.f32.mrf.mxu2 }
 0x560   : > { %v5044_v39 = vadd.f32 %v5043_v44, %v9774_v21  ;;  %v10054_v21 = vld [vmem:[%s10192_s2] ss:$0 sm:$0xff] }
 0x561   : > { %7517 = vst [vmem:[%s8329_s28 + $0x310] sm:$0xff] %v7146_v3   ;;  %v1290_v49 = vadd.f32 %v10054_v21, %v1030_v23  ;;  %v1291_v52 = vadd.f32 %v10054_v21, %v1031_v9  ;;  %v6647_v3 = vunpack.c.l.bf16 %v7418_v0 }
 0x562   : > { %v5228_v48 = vpop.f32.mrf.mxu3  ;;  %v5448_v47 = vpop.f32.mrf.mxu0 }
 0x563   : > { %v5537_v12 = vpop.f32.mrf.mxu1  ;;  %v5299_v33 = vadd.f32 %v5228_v48, %v5044_v39  ;;  %v1546_v8 = vmax.f32 %v1290_v49, 0.0  ;;  %v1547_v10 = vmax.f32 %v1291_v52, 0.0 }
 0x564   : > { %v5538_v15 = vadd.f32 %v5537_v12, %v5448_v47  ;;  %v1032_v47 = vmul.f32 %v10045_v13, %v6647_v3  ;;  %v1033_v12 = vmul.f32 %v10045_v13, %v6648_v37 }
 0x565   : > { %v5331_v50 = vadd.f32 %v9878_v35, %v5299_v33  ;;  %v1802_v29 = vpack.c.bf16 %v1546_v8, %v1546_v8  ;;  %v1803_v32 = vpack.c.bf16 %v1547_v10, %v1547_v10 }
 0x566   : > { %v5607_v5 = vadd.f32 %v9878_v35, %v5538_v15  ;;  %v1292_v23 = vadd.f32 %v10054_v21, %v1032_v47  ;;  %v1293_v9 = vadd.f32 %v10054_v21, %v1033_v12 }
 0x567   : > { %v5045_v40 = vpop.f32.mrf.mxu2  ;;  %v5167_v15 = vunpack.c.l.b16 %v1803_v32 }
 0x568   : > { %v7231_v11 = vpack.c.bf16 %v5607_v5, %v5606_v53  ;;  %v5046_v28 = vadd.f32 %v5045_v40, %v10310_v16  ;;  %v5166_v53 = vunpack.c.l.b16 %v1802_v29 }
 0x56a   : > { %v5230_v45 = vpop.f32.mrf.mxu3  ;;  %7534 = vst [vmem:[%s8329_s28 + $0x398] sm:$0xff] %v7231_v11   ;;  %v5451_v26 = vpop.f32.mrf.mxu0 }
 0x56b   : > { %v5300_v25 = vadd.f32 %v5230_v45, %v5046_v28  ;;  %v5540_v30 = vpop.f32.mrf.mxu1  ;;  %v1548_v28 = vmax.f32 %v1292_v23, 0.0  ;;  %v1549_v45 = vmax.f32 %v1293_v9, 0.0 }
 0x56c   : > { %5087 = vmatmul.bf16.gmra.mxu2 %v9452_v43  ;;  %v5541_v24 = vadd.f32 %v5540_v30, %v5451_v26  ;;  %v10311_v26 = vld [vmem:[#allocation26_spill] sm:$0xff] }
 0x56d   : > { %v5332_v17 = vadd.f32 %v9878_v35, %v5300_v25  ;;  %5490 = vmatmul.bf16.gmra.mxu0 %v5184_v27  ;;  %5579 = vmatmul.bf16.gmra.mxu1 %v9788_v60  ;;  %v10312_v25 = vld [vmem:[#allocation5_spill] sm:$0xff]  ;;  %v1804_v8 = vpack.c.bf16 %v1548_v28, %v1548_v28  ;;  %v1805_v10 = vpack.c.bf16 %v1549_v45, %v1549_v45 }
 0x56e   : > { %v5608_v43 = vadd.f32 %v9878_v35, %v5541_v24 }
 0x56f   : > { %5272 = vmatmul.bf16.gmra.mxu3 %v5184_v27  ;;  %v7151_v1 = vpack.c.bf16 %v5332_v17, %v5331_v50  ;;  %v5048_v41 = vpop.f32.mrf.mxu2  ;;  %v5185_v27 = vpack.c.b16 %v5167_v15, %v5166_v53  ;;  %v5168_v29 = vunpack.c.l.b16 %v1804_v8  ;;  %v5169_v32 = vunpack.c.l.b16 %v1805_v10 }
 0x570   : > { %v5049_v60 = vadd.f32 %v5048_v41, %v9792_v59 }
 0x571   : > { %7518 = vst [vmem:[%s8329_s28 + $0x318] sm:$0xff] %v7151_v1   ;;  %v5186_v53 = vpack.c.b16 %v5169_v32, %v5168_v29 }
 0x572   : > { %v5233_v44 = vpop.f32.mrf.mxu3  ;;  %v5453_v48 = vpop.f32.mrf.mxu0 }
 0x573   : > { %v5542_v62 = vpop.f32.mrf.mxu1  ;;  %v5301_v5 = vadd.f32 %v5233_v44, %v5049_v60 }
 0x574   : > { %v5543_v42 = vadd.f32 %v5542_v62, %v5453_v48  ;;  %v10313_v48 = vld [vmem:[#allocation6_spill] sm:$0xff] }
 0x575   : > { %v5333_v49 = vadd.f32 %v9878_v35, %v5301_v5 }
 0x576   : > { %v5609_v55 = vadd.f32 %v9878_v35, %v5543_v42 }
 0x577   : > { %v5050_v39 = vpop.f32.mrf.mxu2 }
 0x578   : > { %v7236_v46 = vpack.c.bf16 %v5609_v55, %v5608_v43  ;;  %v5051_v11 = vadd.f32 %v5050_v39, %v9802_v31  ;;  %v7419_v31 = vld [vmem:[%s7789_s12 + $0x3f8] sm:$0xff]   ;;  %v10314_v55 = vld [vmem:[#allocation2_spill] sm:$0xff] }
 0x579   : > { %v6651_v1 = vunpack.c.l.bf16 %v7419_v31  ;;  %v6652_v24 = vunpack.c.h.bf16 %v7419_v31 }
 0x57a   : > { %v5235_v40 = vpop.f32.mrf.mxu3  ;;  %7535 = vst [vmem:[%s8329_s28 + $0x3a0] sm:$0xff] %v7236_v46   ;;  %v5456_v33 = vpop.f32.mrf.mxu0 }
 0x57b   : > { %v5302_v16 = vadd.f32 %v5235_v40, %v5051_v11  ;;  %v5545_v59 = vpop.f32.mrf.mxu1  ;;  %v1034_v43 = vmul.f32 %v10045_v13, %v6651_v1  ;;  %v1035_v42 = vmul.f32 %v10045_v13, %v6652_v24  ;;  %v10316_v24 = vld [vmem:[#allocation8_spill] sm:$0xff] }
 0x57c   : > { %5092 = vmatmul.bf16.gmra.mxu2 %v10311_v26  ;;  %v5546_v50 = vadd.f32 %v5545_v59, %v5456_v33 }
 0x57d   : > { %v5334_v52 = vadd.f32 %v9878_v35, %v5302_v16  ;;  %5495 = vmatmul.bf16.gmra.mxu0 %v5185_v27  ;;  %5584 = vmatmul.bf16.gmra.mxu1 %v10312_v25  ;;  %v1294_v23 = vadd.f32 %v10054_v21, %v1034_v43  ;;  %v1295_v9 = vadd.f32 %v10054_v21, %v1035_v42 }
 0x57e   : > { %v5610_v37 = vadd.f32 %v9878_v35, %v5546_v50 }
 0x57f   : > { %5277 = vmatmul.bf16.gmra.mxu3 %v5185_v27  ;;  %v7156_v30 = vpack.c.bf16 %v5334_v52, %v5333_v49  ;;  %v5053_v17 = vpop.f32.mrf.mxu2  ;;  %v1550_v33 = vmax.f32 %v1294_v23, 0.0  ;;  %v1551_v16 = vmax.f32 %v1295_v9, 0.0 }
 0x580   : > { %v5054_v62 = vadd.f32 %v5053_v17, %v10313_v48 }
 0x581   : > { %7519 = vst [vmem:[%s8329_s28 + $0x320] sm:$0xff] %v7156_v30   ;;  %v1806_v49 = vpack.c.bf16 %v1550_v33, %v1550_v33  ;;  %v1807_v52 = vpack.c.bf16 %v1551_v16, %v1551_v16  ;;  %v10315_v30 = vld [vmem:[#allocation7_spill] sm:$0xff] }
 0x582   : > { %v5238_v0 = vpop.f32.mrf.mxu3  ;;  %v5458_v41 = vpop.f32.mrf.mxu0 }
 0x583   : > { %v5547_v3 = vpop.f32.mrf.mxu1  ;;  %v5303_v15 = vadd.f32 %v5238_v0, %v5054_v62  ;;  %v5170_v50 = vunpack.c.l.b16 %v1806_v49  ;;  %v5171_v17 = vunpack.c.l.b16 %v1807_v52 }
 0x584   : > { %v5548_v44 = vadd.f32 %v5547_v3, %v5458_v41 }
 0x585   : > { %v5335_v13 = vadd.f32 %v9878_v35, %v5303_v15 }
 0x586   : > { %v5611_v47 = vadd.f32 %v9878_v35, %v5548_v44 }
 0x587   : > { %v5055_v60 = vpop.f32.mrf.mxu2 }
 0x588   : > { %v7241_v12 = vpack.c.bf16 %v5611_v47, %v5610_v37  ;;  %v5056_v46 = vadd.f32 %v5055_v60, %v10314_v55  ;;  %v5187_v37 = vpack.c.b16 %v5171_v17, %v5170_v50 }
 0x58a   : > { %v5240_v39 = vpop.f32.mrf.mxu3  ;;  %7536 = vst [vmem:[%s8329_s28 + $0x3a8] sm:$0xff] %v7241_v12   ;;  %v5461_v5 = vpop.f32.mrf.mxu0 }
 0x58b   : > { %v5304_v11 = vadd.f32 %v5240_v39, %v5056_v46  ;;  %v5550_v40 = vpop.f32.mrf.mxu1  ;;  %v10317_v46 = vld [vmem:[#allocation3_spill] sm:$0xff] }
 0x58c   : > { %5097 = vmatmul.bf16.gmra.mxu2 %v9504_v4  ;;  %v5551_v28 = vadd.f32 %v5550_v40, %v5461_v5  ;;  %v10097_v4 = vld [vmem:[%s10194_s4] ss:$0 sm:$0xff] }
 0x58d   : > { %v5336_v27 = vadd.f32 %v9878_v35, %v5304_v11  ;;  %5500 = vmatmul.bf16.gmra.mxu0 %v5186_v53  ;;  %5589 = vmatmul.bf16.gmra.mxu1 %v9834_v18 }
 0x58e   : > { %v5612_v35 = vadd.f32 %v10097_v4, %v5551_v28 }
 0x58f   : > { %5282 = vmatmul.bf16.gmra.mxu3 %v5186_v53  ;;  %v7161_v59 = vpack.c.bf16 %v5336_v27, %v5335_v13  ;;  %v5058_v21 = vpop.f32.mrf.mxu2 }
 0x590   : > { %v5059_v18 = vadd.f32 %v5058_v21, %v10315_v30 }
 0x591   : > { %7520 = vst [vmem:[%s8329_s28 + $0x328] sm:$0xff] %v7161_v59  }
 0x592   : > { %v5243_v45 = vpop.f32.mrf.mxu3  ;;  %v5463_v26 = vpop.f32.mrf.mxu0 }
 0x593   : > { %v5552_v25 = vpop.f32.mrf.mxu1  ;;  %v5305_v1 = vadd.f32 %v5243_v45, %v5059_v18 }
 0x594   : > { %v5553_v31 = vadd.f32 %v5552_v25, %v5463_v26  ;;  %v10318_v25 = vld [vmem:[#allocation10_spill] sm:$0xff] }
 0x595   : > { %v5337_v48 = vadd.f32 %v10097_v4, %v5305_v1 }
 0x596   : > { %v5613_v8 = vadd.f32 %v10097_v4, %v5553_v31 }
 0x597   : > { %v5060_v0 = vpop.f32.mrf.mxu2 }
 0x598   : > { %v7246_v10 = vpack.c.bf16 %v5613_v8, %v5612_v35  ;;  %v5061_v41 = vadd.f32 %v5060_v0, %v10316_v24 }
 0x59a   : > { %v5245_v3 = vpop.f32.mrf.mxu3  ;;  %7537 = vst [vmem:[%s8329_s28 + $0x3b0] sm:$0xff] %v7246_v10   ;;  %v5466_v44 = vpop.f32.mrf.mxu0 }
 0x59b   : > { %v5306_v29 = vadd.f32 %v5245_v3, %v5061_v41  ;;  %v5555_v32 = vpop.f32.mrf.mxu1 }
 0x59c   : > { %5102 = vmatmul.bf16.gmra.mxu2 %v9539_v6  ;;  %v5556_v42 = vadd.f32 %v5555_v32, %v5466_v44 }
 0x59d   : > { %v5338_v62 = vadd.f32 %v10097_v4, %v5306_v29  ;;  %5505 = vmatmul.bf16.gmra.mxu0 %v5187_v37  ;;  %5594 = vmatmul.bf16.gmra.mxu1 %v9852_v58 }
 0x59e   : > { %v5614_v15 = vadd.f32 %v10097_v4, %v5556_v42 }
 0x59f   : > { %5287 = vmatmul.bf16.gmra.mxu3 %v5187_v37  ;;  %v7166_v43 = vpack.c.bf16 %v5338_v62, %v5337_v48  ;;  %v5063_v47 = vpop.f32.mrf.mxu2 }
 0x5a0   : > { %v5064_v39 = vadd.f32 %v5063_v47, %v10317_v46 }
 0x5a1   : > { %7521 = vst [vmem:[%s8329_s28 + $0x330] sm:$0xff] %v7166_v43  }
 0x5a2   : > { %v5248_v12 = vpop.f32.mrf.mxu3  ;;  %v5468_v60 = vpop.f32.mrf.mxu0 }
 0x5a3   : > { %v5557_v53 = vpop.f32.mrf.mxu1  ;;  %v5307_v5 = vadd.f32 %v5248_v12, %v5064_v39 }
 0x5a4   : > { %v5558_v55 = vadd.f32 %v5557_v53, %v5468_v60 }
 0x5a5   : > { %v5339_v33 = vadd.f32 %v10097_v4, %v5307_v5 }
 0x5a6   : > { %v5615_v6 = vadd.f32 %v10097_v4, %v5558_v55 }
 0x5a7   : > { %v5065_v9 = vpop.f32.mrf.mxu2 }
 0x5a8   : > { %v7251_v23 = vpack.c.bf16 %v5615_v6, %v5614_v15  ;;  %v5066_v58 = vadd.f32 %v5065_v9, %v9866_v38 }
 0x5aa   : > { %v5250_v11 = vpop.f32.mrf.mxu3  ;;  %7538 = vst [vmem:[%s8329_s28 + $0x3b8] sm:$0xff] %v7251_v23   ;;  %v5471_v40 = vpop.f32.mrf.mxu0 }
 0x5ab   : > { %v5308_v13 = vadd.f32 %v5250_v11, %v5066_v58  ;;  %v5560_v27 = vpop.f32.mrf.mxu1 }
 0x5ac   : > { %v5561_v28 = vadd.f32 %v5560_v27, %v5471_v40 }
 0x5ad   : > { %v5340_v16 = vadd.f32 %v10097_v4, %v5308_v13 }
 0x5ae   : > { %v5616_v26 = vadd.f32 %v10097_v4, %v5561_v28 }
 0x5af   : > { %v7171_v59 = vpack.c.bf16 %v5340_v16, %v5339_v33  ;;  %v5068_v21 = vpop.f32.mrf.mxu2 }
 0x5b0   : > { %v5069_v35 = vadd.f32 %v5068_v21, %v10318_v25 }
 0x5b1   : > { %7522 = vst [vmem:[%s8329_s28 + $0x338] sm:$0xff] %v7171_v59  }
 0x5b2   : > { %v5253_v45 = vpop.f32.mrf.mxu3  ;;  %v5473_v49 = vpop.f32.mrf.mxu0 }
 0x5b3   : > { %v5562_v52 = vpop.f32.mrf.mxu1  ;;  %v5309_v50 = vadd.f32 %v5253_v45, %v5069_v35 }
 0x5b4   : > { %v5563_v38 = vadd.f32 %v5562_v52, %v5473_v49 }
 0x5b5   : > { %v5341_v24 = vadd.f32 %v10097_v4, %v5309_v50 }
 0x5b6   : > { %v5617_v31 = vadd.f32 %v10097_v4, %v5563_v38 }
 0x5b7   : > { %v5070_v18 = vpop.f32.mrf.mxu2 }
 0x5b8   : > { %v7256_v30 = vpack.c.bf16 %v5617_v31, %v5616_v26  ;;  %v5071_v17 = vadd.f32 %v5070_v18, %v9885_v61 }
 0x5ba   : > { %v5255_v8 = vpop.f32.mrf.mxu3  ;;  %7539 = vst [vmem:[%s8329_s28 + $0x3c0] sm:$0xff] %v7256_v30   ;;  %v5476_v10 = vpop.f32.mrf.mxu0 }
 0x5bb   : > { %v5310_v0 = vadd.f32 %v5255_v8, %v5071_v17  ;;  %v5565_v1 = vpop.f32.mrf.mxu1 }
 0x5bc   : > { %v5566_v37 = vadd.f32 %v5565_v1, %v5476_v10 }
 0x5bd   : > { %v5342_v41 = vadd.f32 %v10097_v4, %v5310_v0 }
 0x5be   : > { %v5618_v62 = vadd.f32 %v10097_v4, %v5566_v37 }
 0x5bf   : > { %v7176_v3 = vpack.c.bf16 %v5342_v41, %v5341_v24  ;;  %v5073_v44 = vpop.f32.mrf.mxu2 }
 0x5c0   : > { %v5074_v43 = vadd.f32 %v5073_v44, %v9891_v19 }
 0x5c1   : > { %7523 = vst [vmem:[%s8329_s28 + $0x340] sm:$0xff] %v7176_v3  }
 0x5c2   : > { %v5258_v29 = vpop.f32.mrf.mxu3  ;;  %v5478_v32 = vpop.f32.mrf.mxu0 }
 0x5c3   : > { %v5567_v48 = vpop.f32.mrf.mxu1  ;;  %v5311_v60 = vadd.f32 %v5258_v29, %v5074_v43 }
 0x5c4   : > { %v5568_v61 = vadd.f32 %v5567_v48, %v5478_v32 }
 0x5c5   : > { %v5343_v6 = vadd.f32 %v10097_v4, %v5311_v60 }
 0x5c6   : > { %v5619_v42 = vadd.f32 %v10097_v4, %v5568_v61 }
 0x5c7   : > { %v5075_v12 = vpop.f32.mrf.mxu2 }
 0x5c8   : > { %v7261_v47 = vpack.c.bf16 %v5619_v42, %v5618_v62  ;;  %v5076_v53 = vadd.f32 %v5075_v12, %v9899_v51 }
 0x5ca   : > { %v5260_v15 = vpop.f32.mrf.mxu3  ;;  %7540 = vst [vmem:[%s8329_s28 + $0x3c8] sm:$0xff] %v7261_v47   ;;  %v5481_v55 = vpop.f32.mrf.mxu0 }
 0x5cb   : > { %v5312_v46 = vadd.f32 %v5260_v15, %v5076_v53  ;;  %v5570_v39 = vpop.f32.mrf.mxu1 }
 0x5cc   : > { %v5571_v19 = vadd.f32 %v5570_v39, %v5481_v55 }
 0x5cd   : > { %v5344_v23 = vadd.f32 %v10097_v4, %v5312_v46 }
 0x5ce   : > { %v5620_v13 = vadd.f32 %v10097_v4, %v5571_v19 }
 0x5cf   : > { %v7181_v9 = vpack.c.bf16 %v5344_v23, %v5343_v6  ;;  %v5078_v5 = vpop.f32.mrf.mxu2 }
 0x5d0   : > { %v5079_v27 = vadd.f32 %v5078_v5, %v9905_v56 }
 0x5d1   : > { %7524 = vst [vmem:[%s8329_s28 + $0x348] sm:$0xff] %v7181_v9  }
 0x5d2   : > { %v5263_v58 = vpop.f32.mrf.mxu3  ;;  %v5483_v11 = vpop.f32.mrf.mxu0 }
 0x5d3   : > { %v5572_v40 = vpop.f32.mrf.mxu1  ;;  %v5313_v28 = vadd.f32 %v5263_v58, %v5079_v27 }
 0x5d4   : > { %v5573_v51 = vadd.f32 %v5572_v40, %v5483_v11 }
 0x5d5   : > { %v5345_v38 = vadd.f32 %v10097_v4, %v5313_v28 }
 0x5d6   : > { %v5621_v33 = vadd.f32 %v10097_v4, %v5573_v51 }
 0x5d7   : > { %v5080_v59 = vpop.f32.mrf.mxu2 }
 0x5d8   : > { %v7266_v16 = vpack.c.bf16 %v5621_v33, %v5620_v13  ;;  %v5081_v21 = vadd.f32 %v5080_v59, %v9913_v54 }
 0x5da   : > { %v5265_v45 = vpop.f32.mrf.mxu3  ;;  %7541 = vst [vmem:[%s8329_s28 + $0x3d0] sm:$0xff] %v7266_v16   ;;  %v5486_v49 = vpop.f32.mrf.mxu0 }
 0x5db   : > { %v5314_v52 = vadd.f32 %v5265_v45, %v5081_v21  ;;  %v5575_v26 = vpop.f32.mrf.mxu1 }
 0x5dc   : > { %v5576_v56 = vadd.f32 %v5575_v26, %v5486_v49 }
 0x5dd   : > { %v5346_v25 = vadd.f32 %v10097_v4, %v5314_v52 }
 0x5de   : > { %v5622_v17 = vadd.f32 %v10097_v4, %v5576_v56 }
 0x5df   : > { %v7186_v35 = vpack.c.bf16 %v5346_v25, %v5345_v38  ;;  %v5083_v31 = vpop.f32.mrf.mxu2 }
 0x5e0   : > { %v5084_v8 = vadd.f32 %v5083_v31, %v9919_v22 }
 0x5e1   : > { %7525 = vst [vmem:[%s8329_s28 + $0x350] sm:$0xff] %v7186_v35  }
 0x5e2   : > { %v5268_v30 = vpop.f32.mrf.mxu3  ;;  %v5488_v18 = vpop.f32.mrf.mxu0 }
 0x5e3   : > { %v5577_v50 = vpop.f32.mrf.mxu1  ;;  %v5315_v24 = vadd.f32 %v5268_v30, %v5084_v8 }
 0x5e4   : > { %v5578_v54 = vadd.f32 %v5577_v50, %v5488_v18 }
 0x5e5   : > { %v5347_v32 = vadd.f32 %v10097_v4, %v5315_v24 }
 0x5e6   : > { %v5623_v10 = vadd.f32 %v10097_v4, %v5578_v54 }
 0x5e7   : > { %v5085_v1 = vpop.f32.mrf.mxu2 }
 0x5e8   : > { %v7271_v0 = vpack.c.bf16 %v5623_v10, %v5622_v17  ;;  %v5086_v41 = vadd.f32 %v5085_v1, %v9927_v20 }
 0x5ea   : > { %v5270_v3 = vpop.f32.mrf.mxu3  ;;  %7542 = vst [vmem:[%s8329_s28 + $0x3d8] sm:$0xff] %v7271_v0   ;;  %v5491_v37 = vpop.f32.mrf.mxu0 }
 0x5eb   : > { %v5316_v44 = vadd.f32 %v5270_v3, %v5086_v41  ;;  %v5580_v29 = vpop.f32.mrf.mxu1 }
 0x5ec   : > { %v5581_v22 = vadd.f32 %v5580_v29, %v5491_v37 }
 0x5ed   : > { %v5348_v48 = vadd.f32 %v10097_v4, %v5316_v44 }
 0x5ee   : > { %v5624_v12 = vadd.f32 %v10097_v4, %v5581_v22 }
 0x5ef   : > { %v7191_v62 = vpack.c.bf16 %v5348_v48, %v5347_v32  ;;  %v5088_v61 = vpop.f32.mrf.mxu2 }
 0x5f0   : > { %v5089_v60 = vadd.f32 %v5088_v61, %v9933_v57 }
 0x5f1   : > { %7526 = vst [vmem:[%s8329_s28 + $0x358] sm:$0xff] %v7191_v62  }
 0x5f2   : > { %v5273_v43 = vpop.f32.mrf.mxu3  ;;  %v5493_v42 = vpop.f32.mrf.mxu0 }
 0x5f3   : > { %v5582_v47 = vpop.f32.mrf.mxu1  ;;  %v5317_v46 = vadd.f32 %v5273_v43, %v5089_v60 }
 0x5f4   : > { %v5583_v20 = vadd.f32 %v5582_v47, %v5493_v42 }
 0x5f5   : > { %v5349_v5 = vadd.f32 %v10097_v4, %v5317_v46 }
 0x5f6   : > { %v5625_v53 = vadd.f32 %v10097_v4, %v5583_v20 }
 0x5f7   : > { %v5090_v55 = vpop.f32.mrf.mxu2 }
 0x5f8   : > { %v7276_v15 = vpack.c.bf16 %v5625_v53, %v5624_v12  ;;  %v5091_v39 = vadd.f32 %v5090_v55, %v9941_v63  ;;  %v10319_v55 = vld [vmem:[#allocation9_spill] sm:$0xff] }
 0x5fa   : > { %v5275_v6 = vpop.f32.mrf.mxu3  ;;  %7543 = vst [vmem:[%s8329_s28 + $0x3e0] sm:$0xff] %v7276_v15   ;;  %v5496_v23 = vpop.f32.mrf.mxu0 }
 0x5fb   : > { %v5318_v9 = vadd.f32 %v5275_v6, %v5091_v39  ;;  %v5585_v19 = vpop.f32.mrf.mxu1 }
 0x5fc   : > { %v5586_v57 = vadd.f32 %v5585_v19, %v5496_v23 }
 0x5fd   : > { %v5350_v58 = vadd.f32 %v10097_v4, %v5318_v9 }
 0x5fe   : > { %v5626_v33 = vadd.f32 %v10097_v4, %v5586_v57 }
 0x5ff   : > { %v7196_v11 = vpack.c.bf16 %v5350_v58, %v5349_v5  ;;  %v5093_v40 = vpop.f32.mrf.mxu2 }
 0x600   : > { %v5094_v16 = vadd.f32 %v5093_v40, %v9947_v2 }
 0x601   : > { %7527 = vst [vmem:[%s8329_s28 + $0x360] sm:$0xff] %v7196_v11  }
 0x602   : > { %v5278_v13 = vpop.f32.mrf.mxu3  ;;  %v5498_v51 = vpop.f32.mrf.mxu0 }
 0x603   : > { %v5587_v27 = vpop.f32.mrf.mxu1  ;;  %v5319_v45 = vadd.f32 %v5278_v13, %v5094_v16 }
 0x604   : > { %v5588_v63 = vadd.f32 %v5587_v27, %v5498_v51 }
 0x605   : > { %v5351_v35 = vadd.f32 %v10097_v4, %v5319_v45 }
 0x606   : > { %v5627_v59 = vadd.f32 %v10097_v4, %v5588_v63 }
 0x607   : > { %v5095_v21 = vpop.f32.mrf.mxu2 }
 0x608   : > { %v7281_v28 = vpack.c.bf16 %v5627_v59, %v5626_v33  ;;  %v5096_v49 = vadd.f32 %v5095_v21, %v9955_v14 }
 0x60a   : > { %v5280_v52 = vpop.f32.mrf.mxu3  ;;  %7544 = vst [vmem:[%s8329_s28 + $0x3e8] sm:$0xff] %v7281_v28   ;;  %v5501_v26 = vpop.f32.mrf.mxu0 }
 0x60b   : > { %v5320_v38 = vadd.f32 %v5280_v52, %v5096_v49  ;;  %v5590_v25 = vpop.f32.mrf.mxu1 }
 0x60c   : > { %v5591_v2 = vadd.f32 %v5590_v25, %v5501_v26 }
 0x60d   : > { %v5352_v56 = vadd.f32 %v10097_v4, %v5320_v38 }
 0x60e   : > { %v5628_v54 = vadd.f32 %v10097_v4, %v5591_v2 }
 0x60f   : > { %v7201_v31 = vpack.c.bf16 %v5352_v56, %v5351_v35  ;;  %v5098_v30 = vpop.f32.mrf.mxu2 }
 0x610   : > { %v5099_v8 = vadd.f32 %v5098_v30, %v9961_v34 }
 0x611   : > { %7528 = vst [vmem:[%s8329_s28 + $0x368] sm:$0xff] %v7201_v31  }
 0x612   : > { %v5283_v18 = vpop.f32.mrf.mxu3  ;;  %v5503_v50 = vpop.f32.mrf.mxu0 }
 0x613   : > { %v5592_v17 = vpop.f32.mrf.mxu1  ;;  %v5321_v24 = vadd.f32 %v5283_v18, %v5099_v8 }
 0x614   : > { %v5593_v14 = vadd.f32 %v5592_v17, %v5503_v50 }
 0x615   : > { %v5353_v32 = vadd.f32 %v10097_v4, %v5321_v24 }
 0x616   : > { %v5629_v10 = vadd.f32 %v10097_v4, %v5593_v14 }
 0x617   : > { %v5100_v1 = vpop.f32.mrf.mxu2 }
 0x618   : > { %v7286_v0 = vpack.c.bf16 %v5629_v10, %v5628_v54  ;;  %v5101_v41 = vadd.f32 %v5100_v1, %v9969_v36 }
 0x61a   : > { %v5285_v3 = vpop.f32.mrf.mxu3  ;;  %7545 = vst [vmem:[%s8329_s28 + $0x3f0] sm:$0xff] %v7286_v0   ;;  %v5506_v37 = vpop.f32.mrf.mxu0 }
 0x61b   : > { %v5322_v44 = vadd.f32 %v5285_v3, %v5101_v41  ;;  %v5595_v29 = vpop.f32.mrf.mxu1 }
 0x61c   : > { %v5596_v34 = vadd.f32 %v5595_v29, %v5506_v37 }
 0x61d   : > { %v5354_v48 = vadd.f32 %v10097_v4, %v5322_v44 }
 0x61e   : > { %v5630_v36 = vadd.f32 %v10097_v4, %v5596_v34 }
 0x61f   : > { %v7206_v62 = vpack.c.bf16 %v5354_v48, %v5353_v32  ;;  %v5103_v22 = vpop.f32.mrf.mxu2 }
 0x620   : > { %v5104_v12 = vadd.f32 %v5103_v22, %v9975_v7 }
 0x621   : > { %7529 = vst [vmem:[%s8329_s28 + $0x370] sm:$0xff] %v7206_v62  }
 0x622   : > { %v5288_v61 = vpop.f32.mrf.mxu3  ;;  %v5508_v43 = vpop.f32.mrf.mxu0 }
 0x623   : > { %v5597_v42 = vpop.f32.mrf.mxu1  ;;  %v5323_v15 = vadd.f32 %v5288_v61, %v5104_v12 }
 0x624   : > { %v5598_v47 = vadd.f32 %v5597_v42, %v5508_v43 }
 0x625   : > { %v5355_v23 = vadd.f32 %v10097_v4, %v5323_v15 }
 0x626   : > { %v5631_v20 = vadd.f32 %v10097_v4, %v5598_v47 }
 0x627   : > { %v5105_v53 = vpop.f32.mrf.mxu2 }
 0x628   : > { %v7291_v60 = vpack.c.bf16 %v5631_v20, %v5630_v36  ;;  %v5106_v46 = vadd.f32 %v5105_v53, %v10319_v55 }
 0x62a   : > { %7546 = vst [vmem:[%s8329_s28 + $0x3f8] sm:$0xff] %v7291_v60   ;;  %v5290_v39 = vpop.f32.mrf.mxu3 }
 0x62b   : > { %v5324_v6 = vadd.f32 %v5290_v39, %v5106_v46 }
 0x62d   : > { %v5356_v9 = vadd.f32 %v10097_v4, %v5324_v6 }
 0x62f   : > { %v7211_v19 = vpack.c.bf16 %v5356_v9, %v5355_v23 }
 0x631   : > { %7530 = vst [vmem:[%s8329_s28 + $0x378] sm:$0xff] %v7211_v19  }
 0x632 PF: > { %s15_s20 = sadd.s32 1, %s7697_s20   ;;  %s10320_s18 = smov %s7693_s19 }
 0x633   : > { %p12_p5 = scmp.ge.s32.totalorder %s15_s20, 4   ;;  %s10321_s19 = smov %s10323_s21 }
 0x635   :  { %14 = sbr.rel (!%p12_p5) target bundleno = 2 (0x2), region = 77 }

</bundles_post_ra>
